<compile_context>
chip_gen: v6e
topology: v6e:2x2x1
jax: 0.10.0
libtpu: 0.0.40
codegen_flags: <defaults>
</compile_context>

<pallas_src>
import math
import jax
import jax.numpy as jnp
from jax import lax
from jax.experimental import pallas as pl
from jax.experimental.pallas import tpu as pltpu

D_MODEL = 512
N_HEADS = 8
HEAD_DIM = D_MODEL // N_HEADS
D_FF = 2048          # PyTorch TransformerEncoderLayer default dim_feedforward
LN_EPS = 1e-5
MAX_LEN = 64


def _layer_norm(x, g, b):
    mu = jnp.mean(x, axis=-1, keepdims=True)
    var = jnp.mean((x - mu) ** 2, axis=-1, keepdims=True)
    return (x - mu) * lax.rsqrt(var + LN_EPS) * g + b


def transam_kernel(x_ref, mask_ref, pe_ref,
                   emb_w_ref, emb_b_ref,
                   wqkv_ref, bqkv_ref,
                   wo_ref, bo_ref,
                   ln1_g_ref, ln1_b_ref,
                   w1_ref, b1_ref, w2_ref, b2_ref,
                   ln2_g_ref, ln2_b_ref,
                   dec_w_ref, dec_b_ref,
                   out_ref):
    bt, s, f = x_ref.shape                       # one batch tile per grid step
    n = bt * s
    bf16 = jnp.bfloat16

    # ---- embedding + positional encoding (flattened (N, D) slab) ----
    x = x_ref[...].reshape(n, f).astype(bf16)
    h = jnp.dot(x, emb_w_ref[...], preferred_element_type=jnp.float32) + emb_b_ref[...]
    h = (h.reshape(bt, s, D_MODEL) + pe_ref[...][None, :, :]).reshape(n, D_MODEL)

    # ---- fused QKV projection (1/sqrt(head_dim) already folded into q part) ----
    qkv = jnp.dot(h.astype(bf16), wqkv_ref[...],
                  preferred_element_type=jnp.float32) + bqkv_ref[...]        # (N, 3D) f32
    qkv_bf = qkv.astype(bf16)                                                # single cast
    q = qkv_bf[:, 0 * D_MODEL:1 * D_MODEL].reshape(bt, s, D_MODEL)
    k = qkv_bf[:, 1 * D_MODEL:2 * D_MODEL].reshape(bt, s, D_MODEL)
    v = qkv_bf[:, 2 * D_MODEL:3 * D_MODEL].reshape(bt, s, D_MODEL)

    key_mask = mask_ref[...]                                                 # (bt, 1, s) additive f32

    # ---- multi-head attention: batched over the tile, accumulated into Wo ----
    attn = jnp.zeros((n, D_MODEL), jnp.float32)
    for hd in range(N_HEADS):                    # static unroll; static lane slices
        lo = hd * HEAD_DIM
        qh = q[:, :, lo:lo + HEAD_DIM]                                        # (bt, s, hd) bf16
        kh = k[:, :, lo:lo + HEAD_DIM]
        vh = v[:, :, lo:lo + HEAD_DIM]
        sc = jnp.einsum('bqd,bkd->bqk', qh, kh,
                        preferred_element_type=jnp.float32)                  # (bt, s, s) f32
        sc = sc + key_mask
        m = jnp.max(sc, axis=-1, keepdims=True)
        e = jnp.exp(sc - m)
        p = e * pl.reciprocal(jnp.sum(e, axis=-1, keepdims=True), approx=True)
        oh = jnp.einsum('bqk,bkd->bqd', p.astype(bf16), vh,
                        preferred_element_type=jnp.float32)                  # (bt, s, hd)
        attn = attn + jnp.dot(oh.reshape(n, HEAD_DIM).astype(bf16),
                              wo_ref[pl.ds(lo, HEAD_DIM), :],
                              preferred_element_type=jnp.float32)
    attn = attn + bo_ref[...]

    h = _layer_norm(h + attn, ln1_g_ref[...], ln1_b_ref[...])

    # ---- feed-forward ----
    fwd = jnp.dot(h.astype(bf16), w1_ref[...],
                  preferred_element_type=jnp.float32) + b1_ref[...]
    fwd = jnp.maximum(fwd, 0.0)
    fwd = jnp.dot(fwd.astype(bf16), w2_ref[...],
                  preferred_element_type=jnp.float32) + b2_ref[...]
    h = _layer_norm(h + fwd, ln2_g_ref[...], ln2_b_ref[...])

    # ---- decoder linear ----
    out = jnp.dot(h.astype(bf16), dec_w_ref[...],
                  preferred_element_type=jnp.float32) + dec_b_ref[...]
    out_ref[...] = out.reshape(bt, s, -1).astype(out_ref.dtype)


def transam_forward(src, src_key_padding_mask, params, out_size):
    """src: (S, B, F) float32; src_key_padding_mask: (B, S) bool (True = pad)."""
    S, B, F = src.shape
    x = jnp.transpose(src, (1, 0, 2)).astype(jnp.float32)                    # (B, S, F)
    add_mask = jnp.where(src_key_padding_mask, -1e30, 0.0).astype(jnp.float32)[:, None, :]

    # Batch tile: aim for B_TILE*S >= 512 MXU rows per grid step, capped at B.
    bt = max(1, min(B, -(-512 // S)))
    b_pad = -(-B // bt) * bt
    if b_pad != B:
        x = jnp.pad(x, ((0, b_pad - B), (0, 0), (0, 0)))
        add_mask = jnp.pad(add_mask, ((0, b_pad - B), (0, 0), (0, 0)))

    pe = params["pe"][:S]
    bf16 = jnp.bfloat16
    scale = 1.0 / math.sqrt(HEAD_DIM)

    # Fuse QKV; fold the 1/sqrt(head_dim) scale into the q weight & bias.
    wqkv = jnp.concatenate([params["wq"] * scale, params["wk"], params["wv"]],
                           axis=1).astype(bf16)                              # (D, 3D)
    bqkv = jnp.concatenate([params["bq"] * scale, params["bk"], params["bv"]],
                           axis=1)                                           # (1, 3D) f32

    ops = [x, add_mask, pe,
           params["emb_w"].astype(bf16), params["emb_b"],
           wqkv, bqkv,
           params["wo"].astype(bf16), params["bo"],
           params["ln1_g"], params["ln1_b"],
           params["w1"].astype(bf16), params["b1"],
           params["w2"].astype(bf16), params["b2"],
           params["ln2_g"], params["ln2_b"],
           params["dec_w"].astype(bf16), params["dec_b"]]

    def tile_spec(shape):
        nd = len(shape)
        return pl.BlockSpec((bt,) + tuple(shape[1:]),
                            lambda b, nd=nd: (b,) + (0,) * (nd - 1))

    def full_spec(arr):
        nd = arr.ndim
        return pl.BlockSpec(tuple(arr.shape), lambda b, nd=nd: (0,) * nd)

    in_specs = ([tile_spec(x.shape), tile_spec(add_mask.shape)]
                + [full_spec(a) for a in ops[2:]])

    out = pl.pallas_call(
        transam_kernel,
        out_shape=jax.ShapeDtypeStruct((b_pad, S, out_size), jnp.float32),
        grid=(b_pad // bt,),
        in_specs=in_specs,
        out_specs=pl.BlockSpec((bt, S, out_size), lambda b: (b, 0, 0)),
        compiler_params=pltpu.CompilerParams(
            dimension_semantics=("parallel",),
            vmem_limit_bytes=48 * 1024 * 1024),
    )(*ops)
    return jnp.transpose(out[:B], (1, 0, 2))                                 # (S, B, out)


def init_params(key, feature_size, out_size):
    ks = jax.random.split(key, 12)

    def u(k, shape, scale):
        return jax.random.uniform(k, shape, jnp.float32, -scale, scale)

    p = {}
    p["emb_w"] = u(ks[0], (feature_size, D_MODEL), 1.0 / math.sqrt(feature_size))
    p["emb_b"] = u(ks[1], (1, D_MODEL), 1.0 / math.sqrt(feature_size))
    p["wq"] = u(ks[2], (D_MODEL, D_MODEL), 1.0 / math.sqrt(D_MODEL))
    p["wk"] = u(ks[3], (D_MODEL, D_MODEL), 1.0 / math.sqrt(D_MODEL))
    p["wv"] = u(ks[4], (D_MODEL, D_MODEL), 1.0 / math.sqrt(D_MODEL))
    p["bq"] = jnp.zeros((1, D_MODEL), jnp.float32)
    p["bk"] = jnp.zeros((1, D_MODEL), jnp.float32)
    p["bv"] = jnp.zeros((1, D_MODEL), jnp.float32)
    p["wo"] = u(ks[5], (D_MODEL, D_MODEL), 1.0 / math.sqrt(D_MODEL))
    p["bo"] = jnp.zeros((1, D_MODEL), jnp.float32)
    p["ln1_g"] = jnp.ones((1, D_MODEL), jnp.float32)
    p["ln1_b"] = jnp.zeros((1, D_MODEL), jnp.float32)
    p["w1"] = u(ks[6], (D_MODEL, D_FF), 1.0 / math.sqrt(D_MODEL))
    p["b1"] = u(ks[7], (1, D_FF), 1.0 / math.sqrt(D_MODEL))
    p["w2"] = u(ks[8], (D_FF, D_MODEL), 1.0 / math.sqrt(D_FF))
    p["b2"] = u(ks[9], (1, D_MODEL), 1.0 / math.sqrt(D_FF))
    p["ln2_g"] = jnp.ones((1, D_MODEL), jnp.float32)
    p["ln2_b"] = jnp.zeros((1, D_MODEL), jnp.float32)
    # decoder: init_weights() -> uniform(-0.1, 0.1) weight, zero bias
    p["dec_w"] = u(ks[10], (D_MODEL, out_size), 0.1)
    p["dec_b"] = jnp.zeros((1, out_size), jnp.float32)

    # PositionalEncoding buffer (exactly as the PyTorch module builds it)
    pos = jnp.arange(MAX_LEN, dtype=jnp.float32)[:, None]
    div = jnp.exp(jnp.arange(0, D_MODEL, 2, dtype=jnp.float32)
                  * (-math.log(10000.0) / D_MODEL))
    pe = jnp.zeros((MAX_LEN, D_MODEL), jnp.float32)
    pe = pe.at[:, 0::2].set(jnp.sin(pos * div))
    pe = pe.at[:, 1::2].set(jnp.cos(pos * div))
    p["pe"] = pe
    return p


def transam_reference(src, src_key_padding_mask, params, out_size):
    """Plain-JAX f32 reference mirroring PyTorch's post-norm encoder layer."""
    S, B, F = src.shape
    x = jnp.transpose(src, (1, 0, 2)).astype(jnp.float32)
    pe = params["pe"][:S]
    h = x @ params["emb_w"] + params["emb_b"] + pe
    add_mask = jnp.where(src_key_padding_mask, -1e30, 0.0)[:, None, None, :]
    q = h @ params["wq"] + params["bq"]
    k = h @ params["wk"] + params["bk"]
    v = h @ params["wv"] + params["bv"]

    def split(t):
        return t.reshape(B, S, N_HEADS, HEAD_DIM).transpose(0, 2, 1, 3)

    qh, kh, vh = split(q), split(k), split(v)
    s = jnp.einsum("bhqd,bhkd->bhqk", qh, kh) / math.sqrt(HEAD_DIM) + add_mask
    p = jax.nn.softmax(s, axis=-1)
    a = jnp.einsum("bhqk,bhkd->bhqd", p, vh).transpose(0, 2, 1, 3).reshape(B, S, D_MODEL)
    a = a @ params["wo"] + params["bo"]
    h = _layer_norm(h + a, params["ln1_g"], params["ln1_b"])
    f = jax.nn.relu(h @ params["w1"] + params["b1"]) @ params["w2"] + params["b2"]
    h = _layer_norm(h + f, params["ln2_g"], params["ln2_b"])
    out = h @ params["dec_w"] + params["dec_b"]
    return jnp.transpose(out, (1, 0, 2))


if __name__ == "__main__":
    S, B, F, OUT = 8, 2, 4, 1
    key = jax.random.PRNGKey(0)
    kx, kp = jax.random.split(key)
    src = jax.random.normal(kx, (S, B, F), jnp.float32)                 # (seq, batch, feature)
    src_padding = jnp.zeros((B, S), dtype=bool).at[1, S - 1].set(True)  # True = padded key
    params = init_params(kp, F, OUT)

    out = transam_forward(src, src_padding, params, OUT)
    out = jax.block_until_ready(out)

    ref = transam_reference(src, src_padding, params, OUT)
    assert out.shape == (S, B, OUT)
    assert bool(jnp.all(jnp.isfinite(out)))
    # Looser tolerance: kernel uses bf16 MXU operands (f32 accumulation) vs a pure-f32 reference.
    assert bool(jnp.allclose(out, ref, atol=1e-1, rtol=1e-1))
    print("KERNEL_OK")
</pallas_src>

<mosaic_0001>
module attributes {stable_mosaic.version = 11 : i64} {
  func.func @transam_kernel(%arg0: i32, %arg1: memref<2x8x4xf32, #tpu.memory_space<vmem>>, %arg2: memref<2x1x8xf32, #tpu.memory_space<vmem>>, %arg3: memref<8x512xf32, #tpu.memory_space<vmem>>, %arg4: memref<4x512xbf16, #tpu.memory_space<vmem>>, %arg5: memref<1x512xf32, #tpu.memory_space<vmem>>, %arg6: memref<512x1536xbf16, #tpu.memory_space<vmem>>, %arg7: memref<1x1536xf32, #tpu.memory_space<vmem>>, %arg8: memref<512x512xbf16, #tpu.memory_space<vmem>>, %arg9: memref<1x512xf32, #tpu.memory_space<vmem>>, %arg10: memref<1x512xf32, #tpu.memory_space<vmem>>, %arg11: memref<1x512xf32, #tpu.memory_space<vmem>>, %arg12: memref<512x2048xbf16, #tpu.memory_space<vmem>>, %arg13: memref<1x2048xf32, #tpu.memory_space<vmem>>, %arg14: memref<2048x512xbf16, #tpu.memory_space<vmem>>, %arg15: memref<1x512xf32, #tpu.memory_space<vmem>>, %arg16: memref<1x512xf32, #tpu.memory_space<vmem>>, %arg17: memref<1x512xf32, #tpu.memory_space<vmem>>, %arg18: memref<512x1xbf16, #tpu.memory_space<vmem>>, %arg19: memref<1x1xf32, #tpu.memory_space<vmem>>, %arg20: memref<2x8x1xf32, #tpu.memory_space<vmem>>) attributes {dimension_semantics = [#tpu.dimension_semantics<parallel>], iteration_bounds = array<i64: 1>, scalar_prefetch = 0 : i64, scratch_operands = 0 : i64, tpu.core_type = #tpu.core_type<tc>, window_params = [{transform_indices = @transform_0, window_bounds = array<i64: 2, 8, 4>}, {transform_indices = @transform_1, window_bounds = array<i64: 2, 1, 8>}, {pipeline_mode = #tpu.pipeline_mode<synchronous>, transform_indices = @transform_2, window_bounds = array<i64: 8, 512>}, {pipeline_mode = #tpu.pipeline_mode<synchronous>, transform_indices = @transform_3, window_bounds = array<i64: 4, 512>}, {pipeline_mode = #tpu.pipeline_mode<synchronous>, transform_indices = @transform_4, window_bounds = array<i64: 1, 512>}, {pipeline_mode = #tpu.pipeline_mode<synchronous>, transform_indices = @transform_5, window_bounds = array<i64: 512, 1536>}, {pipeline_mode = #tpu.pipeline_mode<synchronous>, transform_indices = @transform_6, window_bounds = array<i64: 1, 1536>}, {pipeline_mode = #tpu.pipeline_mode<synchronous>, transform_indices = @transform_7, window_bounds = array<i64: 512, 512>}, {pipeline_mode = #tpu.pipeline_mode<synchronous>, transform_indices = @transform_8, window_bounds = array<i64: 1, 512>}, {pipeline_mode = #tpu.pipeline_mode<synchronous>, transform_indices = @transform_9, window_bounds = array<i64: 1, 512>}, {pipeline_mode = #tpu.pipeline_mode<synchronous>, transform_indices = @transform_10, window_bounds = array<i64: 1, 512>}, {pipeline_mode = #tpu.pipeline_mode<synchronous>, transform_indices = @transform_11, window_bounds = array<i64: 512, 2048>}, {pipeline_mode = #tpu.pipeline_mode<synchronous>, transform_indices = @transform_12, window_bounds = array<i64: 1, 2048>}, {pipeline_mode = #tpu.pipeline_mode<synchronous>, transform_indices = @transform_13, window_bounds = array<i64: 2048, 512>}, {pipeline_mode = #tpu.pipeline_mode<synchronous>, transform_indices = @transform_14, window_bounds = array<i64: 1, 512>}, {pipeline_mode = #tpu.pipeline_mode<synchronous>, transform_indices = @transform_15, window_bounds = array<i64: 1, 512>}, {pipeline_mode = #tpu.pipeline_mode<synchronous>, transform_indices = @transform_16, window_bounds = array<i64: 1, 512>}, {pipeline_mode = #tpu.pipeline_mode<synchronous>, transform_indices = @transform_17, window_bounds = array<i64: 512, 1>}, {pipeline_mode = #tpu.pipeline_mode<synchronous>, transform_indices = @transform_18, window_bounds = array<i64: 1, 1>}, {transform_indices = @transform_19, window_bounds = array<i64: 2, 8, 1>}]} {
    %c0 = arith.constant 0 : index
    %c0_0 = arith.constant 0 : index
    %c0_1 = arith.constant 0 : index
    %0 = vector.load %arg1[%c0, %c0_0, %c0_1] : memref<2x8x4xf32, #tpu.memory_space<vmem>>, vector<2x8x4xf32>
    %1 = vector.shape_cast %0 : vector<2x8x4xf32> to vector<16x4xf32>
    %2 = arith.truncf %1 : vector<16x4xf32> to vector<16x4xbf16>
    %c0_2 = arith.constant 0 : index
    %c0_3 = arith.constant 0 : index
    %3 = vector.load %arg4[%c0_2, %c0_3] : memref<4x512xbf16, #tpu.memory_space<vmem>>, vector<4x512xbf16>
    %cst = arith.constant dense<0.000000e+00> : vector<16x512xf32>
    %4 = tpu.matmul %2, %3, %cst {dimension_numbers = #tpu.dot_dimension_numbers<[1], [0], [0], [1], [0, 0, 1, 1], [], []>} : vector<16x4xbf16>, vector<4x512xbf16>, vector<16x512xf32> -> vector<16x512xf32>
    %c0_4 = arith.constant 0 : index
    %c0_5 = arith.constant 0 : index
    %5 = vector.load %arg5[%c0_4, %c0_5] : memref<1x512xf32, #tpu.memory_space<vmem>>, vector<1x512xf32>
    %6 = vector.broadcast %5 : vector<1x512xf32> to vector<16x512xf32>
    %7 = arith.addf %4, %6 : vector<16x512xf32>
    %8 = vector.shape_cast %7 : vector<16x512xf32> to vector<2x8x512xf32>
    %c0_6 = arith.constant 0 : index
    %c0_7 = arith.constant 0 : index
    %9 = vector.load %arg3[%c0_6, %c0_7] : memref<8x512xf32, #tpu.memory_space<vmem>>, vector<8x512xf32>
    %10 = vector.shape_cast %9 : vector<8x512xf32> to vector<1x8x512xf32>
    %11 = vector.broadcast %10 : vector<1x8x512xf32> to vector<2x8x512xf32>
    %12 = arith.addf %8, %11 : vector<2x8x512xf32>
    %13 = vector.shape_cast %12 : vector<2x8x512xf32> to vector<16x512xf32>
    %14 = arith.truncf %13 : vector<16x512xf32> to vector<16x512xbf16>
    %c0_8 = arith.constant 0 : index
    %c0_9 = arith.constant 0 : index
    %15 = vector.load %arg6[%c0_8, %c0_9] : memref<512x1536xbf16, #tpu.memory_space<vmem>>, vector<512x1536xbf16>
    %cst_10 = arith.constant dense<0.000000e+00> : vector<16x1536xf32>
    %16 = tpu.matmul %14, %15, %cst_10 {dimension_numbers = #tpu.dot_dimension_numbers<[1], [0], [0], [1], [0, 0, 1, 1], [], []>} : vector<16x512xbf16>, vector<512x1536xbf16>, vector<16x1536xf32> -> vector<16x1536xf32>
    %c0_11 = arith.constant 0 : index
    %c0_12 = arith.constant 0 : index
    %17 = vector.load %arg7[%c0_11, %c0_12] : memref<1x1536xf32, #tpu.memory_space<vmem>>, vector<1x1536xf32>
    %18 = vector.broadcast %17 : vector<1x1536xf32> to vector<16x1536xf32>
    %19 = arith.addf %16, %18 : vector<16x1536xf32>
    %20 = arith.truncf %19 : vector<16x1536xf32> to vector<16x1536xbf16>
    %21 = vector.extract_strided_slice %20 {offsets = [0, 0], sizes = [16, 512], strides = [1, 1]} : vector<16x1536xbf16> to vector<16x512xbf16>
    %22 = vector.shape_cast %21 : vector<16x512xbf16> to vector<2x8x512xbf16>
    %23 = vector.extract_strided_slice %20 {offsets = [0, 512], sizes = [16, 512], strides = [1, 1]} : vector<16x1536xbf16> to vector<16x512xbf16>
    %24 = vector.shape_cast %23 : vector<16x512xbf16> to vector<2x8x512xbf16>
    %25 = vector.extract_strided_slice %20 {offsets = [0, 1024], sizes = [16, 512], strides = [1, 1]} : vector<16x1536xbf16> to vector<16x512xbf16>
    %26 = vector.shape_cast %25 : vector<16x512xbf16> to vector<2x8x512xbf16>
    %c0_13 = arith.constant 0 : index
    %c0_14 = arith.constant 0 : index
    %c0_15 = arith.constant 0 : index
    %27 = vector.load %arg2[%c0_13, %c0_14, %c0_15] : memref<2x1x8xf32, #tpu.memory_space<vmem>>, vector<2x1x8xf32>
    %cst_16 = arith.constant 0.000000e+00 : f32
    %28 = vector.broadcast %cst_16 : f32 to vector<16x512xf32>
    %29 = vector.extract_strided_slice %22 {offsets = [0, 0, 0], sizes = [2, 8, 64], strides = [1, 1, 1]} : vector<2x8x512xbf16> to vector<2x8x64xbf16>
    %30 = vector.extract_strided_slice %24 {offsets = [0, 0, 0], sizes = [2, 8, 64], strides = [1, 1, 1]} : vector<2x8x512xbf16> to vector<2x8x64xbf16>
    %31 = vector.extract_strided_slice %26 {offsets = [0, 0, 0], sizes = [2, 8, 64], strides = [1, 1, 1]} : vector<2x8x512xbf16> to vector<2x8x64xbf16>
    "tpu.trace_start"() <{level = 10 : i32, message = "bqd,bkd->bqk"}> : () -> ()
    %cst_17 = arith.constant dense<0.000000e+00> : vector<2x8x8xf32>
    %32 = tpu.matmul %29, %30, %cst_17 {dimension_numbers = #tpu.dot_dimension_numbers<[2], [2], [1], [1], [0, 0, 0, 1, 1, 1], [0], [0]>} : vector<2x8x64xbf16>, vector<2x8x64xbf16>, vector<2x8x8xf32> -> vector<2x8x8xf32>
    "tpu.trace_stop"() : () -> ()
    %33 = vector.broadcast %27 : vector<2x1x8xf32> to vector<2x8x8xf32>
    %34 = arith.addf %32, %33 : vector<2x8x8xf32>
    %cst_18 = arith.constant dense<0xFF800000> : vector<2x8xf32>
    %35 = vector.multi_reduction <maximumf>, %34, %cst_18 [2] : vector<2x8x8xf32> to vector<2x8xf32>
    %36 = vector.shape_cast %35 : vector<2x8xf32> to vector<2x8x1xf32>
    %37 = vector.broadcast %36 : vector<2x8x1xf32> to vector<2x8x8xf32>
    %38 = arith.subf %34, %37 : vector<2x8x8xf32>
    %39 = math.exp %38 : vector<2x8x8xf32>
    %cst_19 = arith.constant dense<0.000000e+00> : vector<2x8xf32>
    %40 = vector.multi_reduction <add>, %39, %cst_19 [2] : vector<2x8x8xf32> to vector<2x8xf32>
    %41 = vector.shape_cast %40 : vector<2x8xf32> to vector<2x8x1xf32>
    %42 = tpu.reciprocal %41 {approx = true} : vector<2x8x1xf32> -> vector<2x8x1xf32>
    %43 = vector.broadcast %42 : vector<2x8x1xf32> to vector<2x8x8xf32>
    %44 = arith.mulf %39, %43 : vector<2x8x8xf32>
    %45 = arith.truncf %44 : vector<2x8x8xf32> to vector<2x8x8xbf16>
    "tpu.trace_start"() <{level = 10 : i32, message = "bqk,bkd->bqd"}> : () -> ()
    %cst_20 = arith.constant dense<0.000000e+00> : vector<2x8x64xf32>
    %46 = tpu.matmul %45, %31, %cst_20 {dimension_numbers = #tpu.dot_dimension_numbers<[2], [1], [1], [2], [0, 0, 0, 1, 1, 2], [0], [0]>} : vector<2x8x8xbf16>, vector<2x8x64xbf16>, vector<2x8x64xf32> -> vector<2x8x64xf32>
    "tpu.trace_stop"() : () -> ()
    %47 = vector.shape_cast %46 : vector<2x8x64xf32> to vector<16x64xf32>
    %48 = arith.truncf %47 : vector<16x64xf32> to vector<16x64xbf16>
    %c0_21 = arith.constant 0 : index
    %c0_22 = arith.constant 0 : index
    %49 = vector.load %arg8[%c0_21, %c0_22] : memref<512x512xbf16, #tpu.memory_space<vmem>>, vector<64x512xbf16>
    %cst_23 = arith.constant dense<0.000000e+00> : vector<16x512xf32>
    %50 = tpu.matmul %48, %49, %cst_23 {dimension_numbers = #tpu.dot_dimension_numbers<[1], [0], [0], [1], [0, 0, 1, 1], [], []>} : vector<16x64xbf16>, vector<64x512xbf16>, vector<16x512xf32> -> vector<16x512xf32>
    %51 = arith.addf %28, %50 : vector<16x512xf32>
    %52 = vector.extract_strided_slice %22 {offsets = [0, 0, 64], sizes = [2, 8, 64], strides = [1, 1, 1]} : vector<2x8x512xbf16> to vector<2x8x64xbf16>
    %53 = vector.extract_strided_slice %24 {offsets = [0, 0, 64], sizes = [2, 8, 64], strides = [1, 1, 1]} : vector<2x8x512xbf16> to vector<2x8x64xbf16>
    %54 = vector.extract_strided_slice %26 {offsets = [0, 0, 64], sizes = [2, 8, 64], strides = [1, 1, 1]} : vector<2x8x512xbf16> to vector<2x8x64xbf16>
    "tpu.trace_start"() <{level = 10 : i32, message = "bqd,bkd->bqk"}> : () -> ()
    %cst_24 = arith.constant dense<0.000000e+00> : vector<2x8x8xf32>
    %55 = tpu.matmul %52, %53, %cst_24 {dimension_numbers = #tpu.dot_dimension_numbers<[2], [2], [1], [1], [0, 0, 0, 1, 1, 1], [0], [0]>} : vector<2x8x64xbf16>, vector<2x8x64xbf16>, vector<2x8x8xf32> -> vector<2x8x8xf32>
    "tpu.trace_stop"() : () -> ()
    %56 = vector.broadcast %27 : vector<2x1x8xf32> to vector<2x8x8xf32>
    %57 = arith.addf %55, %56 : vector<2x8x8xf32>
    %cst_25 = arith.constant dense<0xFF800000> : vector<2x8xf32>
    %58 = vector.multi_reduction <maximumf>, %57, %cst_25 [2] : vector<2x8x8xf32> to vector<2x8xf32>
    %59 = vector.shape_cast %58 : vector<2x8xf32> to vector<2x8x1xf32>
    %60 = vector.broadcast %59 : vector<2x8x1xf32> to vector<2x8x8xf32>
    %61 = arith.subf %57, %60 : vector<2x8x8xf32>
    %62 = math.exp %61 : vector<2x8x8xf32>
    %cst_26 = arith.constant dense<0.000000e+00> : vector<2x8xf32>
    %63 = vector.multi_reduction <add>, %62, %cst_26 [2] : vector<2x8x8xf32> to vector<2x8xf32>
    %64 = vector.shape_cast %63 : vector<2x8xf32> to vector<2x8x1xf32>
    %65 = tpu.reciprocal %64 {approx = true} : vector<2x8x1xf32> -> vector<2x8x1xf32>
    %66 = vector.broadcast %65 : vector<2x8x1xf32> to vector<2x8x8xf32>
    %67 = arith.mulf %62, %66 : vector<2x8x8xf32>
    %68 = arith.truncf %67 : vector<2x8x8xf32> to vector<2x8x8xbf16>
    "tpu.trace_start"() <{level = 10 : i32, message = "bqk,bkd->bqd"}> : () -> ()
    %cst_27 = arith.constant dense<0.000000e+00> : vector<2x8x64xf32>
    %69 = tpu.matmul %68, %54, %cst_27 {dimension_numbers = #tpu.dot_dimension_numbers<[2], [1], [1], [2], [0, 0, 0, 1, 1, 2], [0], [0]>} : vector<2x8x8xbf16>, vector<2x8x64xbf16>, vector<2x8x64xf32> -> vector<2x8x64xf32>
    "tpu.trace_stop"() : () -> ()
    %70 = vector.shape_cast %69 : vector<2x8x64xf32> to vector<16x64xf32>
    %71 = arith.truncf %70 : vector<16x64xf32> to vector<16x64xbf16>
    %c64 = arith.constant 64 : index
    %c0_28 = arith.constant 0 : index
    %72 = vector.load %arg8[%c64, %c0_28] : memref<512x512xbf16, #tpu.memory_space<vmem>>, vector<64x512xbf16>
    %cst_29 = arith.constant dense<0.000000e+00> : vector<16x512xf32>
    %73 = tpu.matmul %71, %72, %cst_29 {dimension_numbers = #tpu.dot_dimension_numbers<[1], [0], [0], [1], [0, 0, 1, 1], [], []>} : vector<16x64xbf16>, vector<64x512xbf16>, vector<16x512xf32> -> vector<16x512xf32>
    %74 = arith.addf %51, %73 : vector<16x512xf32>
    %75 = vector.extract_strided_slice %22 {offsets = [0, 0, 128], sizes = [2, 8, 64], strides = [1, 1, 1]} : vector<2x8x512xbf16> to vector<2x8x64xbf16>
    %76 = vector.extract_strided_slice %24 {offsets = [0, 0, 128], sizes = [2, 8, 64], strides = [1, 1, 1]} : vector<2x8x512xbf16> to vector<2x8x64xbf16>
    %77 = vector.extract_strided_slice %26 {offsets = [0, 0, 128], sizes = [2, 8, 64], strides = [1, 1, 1]} : vector<2x8x512xbf16> to vector<2x8x64xbf16>
    "tpu.trace_start"() <{level = 10 : i32, message = "bqd,bkd->bqk"}> : () -> ()
    %cst_30 = arith.constant dense<0.000000e+00> : vector<2x8x8xf32>
    %78 = tpu.matmul %75, %76, %cst_30 {dimension_numbers = #tpu.dot_dimension_numbers<[2], [2], [1], [1], [0, 0, 0, 1, 1, 1], [0], [0]>} : vector<2x8x64xbf16>, vector<2x8x64xbf16>, vector<2x8x8xf32> -> vector<2x8x8xf32>
    "tpu.trace_stop"() : () -> ()
    %79 = vector.broadcast %27 : vector<2x1x8xf32> to vector<2x8x8xf32>
    %80 = arith.addf %78, %79 : vector<2x8x8xf32>
    %cst_31 = arith.constant dense<0xFF800000> : vector<2x8xf32>
    %81 = vector.multi_reduction <maximumf>, %80, %cst_31 [2] : vector<2x8x8xf32> to vector<2x8xf32>
    %82 = vector.shape_cast %81 : vector<2x8xf32> to vector<2x8x1xf32>
    %83 = vector.broadcast %82 : vector<2x8x1xf32> to vector<2x8x8xf32>
    %84 = arith.subf %80, %83 : vector<2x8x8xf32>
    %85 = math.exp %84 : vector<2x8x8xf32>
    %cst_32 = arith.constant dense<0.000000e+00> : vector<2x8xf32>
    %86 = vector.multi_reduction <add>, %85, %cst_32 [2] : vector<2x8x8xf32> to vector<2x8xf32>
    %87 = vector.shape_cast %86 : vector<2x8xf32> to vector<2x8x1xf32>
    %88 = tpu.reciprocal %87 {approx = true} : vector<2x8x1xf32> -> vector<2x8x1xf32>
    %89 = vector.broadcast %88 : vector<2x8x1xf32> to vector<2x8x8xf32>
    %90 = arith.mulf %85, %89 : vector<2x8x8xf32>
    %91 = arith.truncf %90 : vector<2x8x8xf32> to vector<2x8x8xbf16>
    "tpu.trace_start"() <{level = 10 : i32, message = "bqk,bkd->bqd"}> : () -> ()
    %cst_33 = arith.constant dense<0.000000e+00> : vector<2x8x64xf32>
    %92 = tpu.matmul %91, %77, %cst_33 {dimension_numbers = #tpu.dot_dimension_numbers<[2], [1], [1], [2], [0, 0, 0, 1, 1, 2], [0], [0]>} : vector<2x8x8xbf16>, vector<2x8x64xbf16>, vector<2x8x64xf32> -> vector<2x8x64xf32>
    "tpu.trace_stop"() : () -> ()
    %93 = vector.shape_cast %92 : vector<2x8x64xf32> to vector<16x64xf32>
    %94 = arith.truncf %93 : vector<16x64xf32> to vector<16x64xbf16>
    %c128 = arith.constant 128 : index
    %c0_34 = arith.constant 0 : index
    %95 = vector.load %arg8[%c128, %c0_34] : memref<512x512xbf16, #tpu.memory_space<vmem>>, vector<64x512xbf16>
    %cst_35 = arith.constant dense<0.000000e+00> : vector<16x512xf32>
    %96 = tpu.matmul %94, %95, %cst_35 {dimension_numbers = #tpu.dot_dimension_numbers<[1], [0], [0], [1], [0, 0, 1, 1], [], []>} : vector<16x64xbf16>, vector<64x512xbf16>, vector<16x512xf32> -> vector<16x512xf32>
    %97 = arith.addf %74, %96 : vector<16x512xf32>
    %98 = vector.extract_strided_slice %22 {offsets = [0, 0, 192], sizes = [2, 8, 64], strides = [1, 1, 1]} : vector<2x8x512xbf16> to vector<2x8x64xbf16>
    %99 = vector.extract_strided_slice %24 {offsets = [0, 0, 192], sizes = [2, 8, 64], strides = [1, 1, 1]} : vector<2x8x512xbf16> to vector<2x8x64xbf16>
    %100 = vector.extract_strided_slice %26 {offsets = [0, 0, 192], sizes = [2, 8, 64], strides = [1, 1, 1]} : vector<2x8x512xbf16> to vector<2x8x64xbf16>
    "tpu.trace_start"() <{level = 10 : i32, message = "bqd,bkd->bqk"}> : () -> ()
    %cst_36 = arith.constant dense<0.000000e+00> : vector<2x8x8xf32>
    %101 = tpu.matmul %98, %99, %cst_36 {dimension_numbers = #tpu.dot_dimension_numbers<[2], [2], [1], [1], [0, 0, 0, 1, 1, 1], [0], [0]>} : vector<2x8x64xbf16>, vector<2x8x64xbf16>, vector<2x8x8xf32> -> vector<2x8x8xf32>
    "tpu.trace_stop"() : () -> ()
    %102 = vector.broadcast %27 : vector<2x1x8xf32> to vector<2x8x8xf32>
    %103 = arith.addf %101, %102 : vector<2x8x8xf32>
    %cst_37 = arith.constant dense<0xFF800000> : vector<2x8xf32>
    %104 = vector.multi_reduction <maximumf>, %103, %cst_37 [2] : vector<2x8x8xf32> to vector<2x8xf32>
    %105 = vector.shape_cast %104 : vector<2x8xf32> to vector<2x8x1xf32>
    %106 = vector.broadcast %105 : vector<2x8x1xf32> to vector<2x8x8xf32>
    %107 = arith.subf %103, %106 : vector<2x8x8xf32>
    %108 = math.exp %107 : vector<2x8x8xf32>
    %cst_38 = arith.constant dense<0.000000e+00> : vector<2x8xf32>
    %109 = vector.multi_reduction <add>, %108, %cst_38 [2] : vector<2x8x8xf32> to vector<2x8xf32>
    %110 = vector.shape_cast %109 : vector<2x8xf32> to vector<2x8x1xf32>
    %111 = tpu.reciprocal %110 {approx = true} : vector<2x8x1xf32> -> vector<2x8x1xf32>
    %112 = vector.broadcast %111 : vector<2x8x1xf32> to vector<2x8x8xf32>
    %113 = arith.mulf %108, %112 : vector<2x8x8xf32>
    %114 = arith.truncf %113 : vector<2x8x8xf32> to vector<2x8x8xbf16>
    "tpu.trace_start"() <{level = 10 : i32, message = "bqk,bkd->bqd"}> : () -> ()
    %cst_39 = arith.constant dense<0.000000e+00> : vector<2x8x64xf32>
    %115 = tpu.matmul %114, %100, %cst_39 {dimension_numbers = #tpu.dot_dimension_numbers<[2], [1], [1], [2], [0, 0, 0, 1, 1, 2], [0], [0]>} : vector<2x8x8xbf16>, vector<2x8x64xbf16>, vector<2x8x64xf32> -> vector<2x8x64xf32>
    "tpu.trace_stop"() : () -> ()
    %116 = vector.shape_cast %115 : vector<2x8x64xf32> to vector<16x64xf32>
    %117 = arith.truncf %116 : vector<16x64xf32> to vector<16x64xbf16>
    %c192 = arith.constant 192 : index
    %c0_40 = arith.constant 0 : index
    %118 = vector.load %arg8[%c192, %c0_40] : memref<512x512xbf16, #tpu.memory_space<vmem>>, vector<64x512xbf16>
    %cst_41 = arith.constant dense<0.000000e+00> : vector<16x512xf32>
    %119 = tpu.matmul %117, %118, %cst_41 {dimension_numbers = #tpu.dot_dimension_numbers<[1], [0], [0], [1], [0, 0, 1, 1], [], []>} : vector<16x64xbf16>, vector<64x512xbf16>, vector<16x512xf32> -> vector<16x512xf32>
    %120 = arith.addf %97, %119 : vector<16x512xf32>
    %121 = vector.extract_strided_slice %22 {offsets = [0, 0, 256], sizes = [2, 8, 64], strides = [1, 1, 1]} : vector<2x8x512xbf16> to vector<2x8x64xbf16>
    %122 = vector.extract_strided_slice %24 {offsets = [0, 0, 256], sizes = [2, 8, 64], strides = [1, 1, 1]} : vector<2x8x512xbf16> to vector<2x8x64xbf16>
    %123 = vector.extract_strided_slice %26 {offsets = [0, 0, 256], sizes = [2, 8, 64], strides = [1, 1, 1]} : vector<2x8x512xbf16> to vector<2x8x64xbf16>
    "tpu.trace_start"() <{level = 10 : i32, message = "bqd,bkd->bqk"}> : () -> ()
    %cst_42 = arith.constant dense<0.000000e+00> : vector<2x8x8xf32>
    %124 = tpu.matmul %121, %122, %cst_42 {dimension_numbers = #tpu.dot_dimension_numbers<[2], [2], [1], [1], [0, 0, 0, 1, 1, 1], [0], [0]>} : vector<2x8x64xbf16>, vector<2x8x64xbf16>, vector<2x8x8xf32> -> vector<2x8x8xf32>
    "tpu.trace_stop"() : () -> ()
    %125 = vector.broadcast %27 : vector<2x1x8xf32> to vector<2x8x8xf32>
    %126 = arith.addf %124, %125 : vector<2x8x8xf32>
    %cst_43 = arith.constant dense<0xFF800000> : vector<2x8xf32>
    %127 = vector.multi_reduction <maximumf>, %126, %cst_43 [2] : vector<2x8x8xf32> to vector<2x8xf32>
    %128 = vector.shape_cast %127 : vector<2x8xf32> to vector<2x8x1xf32>
    %129 = vector.broadcast %128 : vector<2x8x1xf32> to vector<2x8x8xf32>
    %130 = arith.subf %126, %129 : vector<2x8x8xf32>
    %131 = math.exp %130 : vector<2x8x8xf32>
    %cst_44 = arith.constant dense<0.000000e+00> : vector<2x8xf32>
    %132 = vector.multi_reduction <add>, %131, %cst_44 [2] : vector<2x8x8xf32> to vector<2x8xf32>
    %133 = vector.shape_cast %132 : vector<2x8xf32> to vector<2x8x1xf32>
    %134 = tpu.reciprocal %133 {approx = true} : vector<2x8x1xf32> -> vector<2x8x1xf32>
    %135 = vector.broadcast %134 : vector<2x8x1xf32> to vector<2x8x8xf32>
    %136 = arith.mulf %131, %135 : vector<2x8x8xf32>
    %137 = arith.truncf %136 : vector<2x8x8xf32> to vector<2x8x8xbf16>
    "tpu.trace_start"() <{level = 10 : i32, message = "bqk,bkd->bqd"}> : () -> ()
    %cst_45 = arith.constant dense<0.000000e+00> : vector<2x8x64xf32>
    %138 = tpu.matmul %137, %123, %cst_45 {dimension_numbers = #tpu.dot_dimension_numbers<[2], [1], [1], [2], [0, 0, 0, 1, 1, 2], [0], [0]>} : vector<2x8x8xbf16>, vector<2x8x64xbf16>, vector<2x8x64xf32> -> vector<2x8x64xf32>
    "tpu.trace_stop"() : () -> ()
    %139 = vector.shape_cast %138 : vector<2x8x64xf32> to vector<16x64xf32>
    %140 = arith.truncf %139 : vector<16x64xf32> to vector<16x64xbf16>
    %c256 = arith.constant 256 : index
    %c0_46 = arith.constant 0 : index
    %141 = vector.load %arg8[%c256, %c0_46] : memref<512x512xbf16, #tpu.memory_space<vmem>>, vector<64x512xbf16>
    %cst_47 = arith.constant dense<0.000000e+00> : vector<16x512xf32>
    %142 = tpu.matmul %140, %141, %cst_47 {dimension_numbers = #tpu.dot_dimension_numbers<[1], [0], [0], [1], [0, 0, 1, 1], [], []>} : vector<16x64xbf16>, vector<64x512xbf16>, vector<16x512xf32> -> vector<16x512xf32>
    %143 = arith.addf %120, %142 : vector<16x512xf32>
    %144 = vector.extract_strided_slice %22 {offsets = [0, 0, 320], sizes = [2, 8, 64], strides = [1, 1, 1]} : vector<2x8x512xbf16> to vector<2x8x64xbf16>
    %145 = vector.extract_strided_slice %24 {offsets = [0, 0, 320], sizes = [2, 8, 64], strides = [1, 1, 1]} : vector<2x8x512xbf16> to vector<2x8x64xbf16>
    %146 = vector.extract_strided_slice %26 {offsets = [0, 0, 320], sizes = [2, 8, 64], strides = [1, 1, 1]} : vector<2x8x512xbf16> to vector<2x8x64xbf16>
    "tpu.trace_start"() <{level = 10 : i32, message = "bqd,bkd->bqk"}> : () -> ()
    %cst_48 = arith.constant dense<0.000000e+00> : vector<2x8x8xf32>
    %147 = tpu.matmul %144, %145, %cst_48 {dimension_numbers = #tpu.dot_dimension_numbers<[2], [2], [1], [1], [0, 0, 0, 1, 1, 1], [0], [0]>} : vector<2x8x64xbf16>, vector<2x8x64xbf16>, vector<2x8x8xf32> -> vector<2x8x8xf32>
    "tpu.trace_stop"() : () -> ()
    %148 = vector.broadcast %27 : vector<2x1x8xf32> to vector<2x8x8xf32>
    %149 = arith.addf %147, %148 : vector<2x8x8xf32>
    %cst_49 = arith.constant dense<0xFF800000> : vector<2x8xf32>
    %150 = vector.multi_reduction <maximumf>, %149, %cst_49 [2] : vector<2x8x8xf32> to vector<2x8xf32>
    %151 = vector.shape_cast %150 : vector<2x8xf32> to vector<2x8x1xf32>
    %152 = vector.broadcast %151 : vector<2x8x1xf32> to vector<2x8x8xf32>
    %153 = arith.subf %149, %152 : vector<2x8x8xf32>
    %154 = math.exp %153 : vector<2x8x8xf32>
    %cst_50 = arith.constant dense<0.000000e+00> : vector<2x8xf32>
    %155 = vector.multi_reduction <add>, %154, %cst_50 [2] : vector<2x8x8xf32> to vector<2x8xf32>
    %156 = vector.shape_cast %155 : vector<2x8xf32> to vector<2x8x1xf32>
    %157 = tpu.reciprocal %156 {approx = true} : vector<2x8x1xf32> -> vector<2x8x1xf32>
    %158 = vector.broadcast %157 : vector<2x8x1xf32> to vector<2x8x8xf32>
    %159 = arith.mulf %154, %158 : vector<2x8x8xf32>
    %160 = arith.truncf %159 : vector<2x8x8xf32> to vector<2x8x8xbf16>
    "tpu.trace_start"() <{level = 10 : i32, message = "bqk,bkd->bqd"}> : () -> ()
    %cst_51 = arith.constant dense<0.000000e+00> : vector<2x8x64xf32>
    %161 = tpu.matmul %160, %146, %cst_51 {dimension_numbers = #tpu.dot_dimension_numbers<[2], [1], [1], [2], [0, 0, 0, 1, 1, 2], [0], [0]>} : vector<2x8x8xbf16>, vector<2x8x64xbf16>, vector<2x8x64xf32> -> vector<2x8x64xf32>
    "tpu.trace_stop"() : () -> ()
    %162 = vector.shape_cast %161 : vector<2x8x64xf32> to vector<16x64xf32>
    %163 = arith.truncf %162 : vector<16x64xf32> to vector<16x64xbf16>
    %c320 = arith.constant 320 : index
    %c0_52 = arith.constant 0 : index
    %164 = vector.load %arg8[%c320, %c0_52] : memref<512x512xbf16, #tpu.memory_space<vmem>>, vector<64x512xbf16>
    %cst_53 = arith.constant dense<0.000000e+00> : vector<16x512xf32>
    %165 = tpu.matmul %163, %164, %cst_53 {dimension_numbers = #tpu.dot_dimension_numbers<[1], [0], [0], [1], [0, 0, 1, 1], [], []>} : vector<16x64xbf16>, vector<64x512xbf16>, vector<16x512xf32> -> vector<16x512xf32>
    %166 = arith.addf %143, %165 : vector<16x512xf32>
    %167 = vector.extract_strided_slice %22 {offsets = [0, 0, 384], sizes = [2, 8, 64], strides = [1, 1, 1]} : vector<2x8x512xbf16> to vector<2x8x64xbf16>
    %168 = vector.extract_strided_slice %24 {offsets = [0, 0, 384], sizes = [2, 8, 64], strides = [1, 1, 1]} : vector<2x8x512xbf16> to vector<2x8x64xbf16>
    %169 = vector.extract_strided_slice %26 {offsets = [0, 0, 384], sizes = [2, 8, 64], strides = [1, 1, 1]} : vector<2x8x512xbf16> to vector<2x8x64xbf16>
    "tpu.trace_start"() <{level = 10 : i32, message = "bqd,bkd->bqk"}> : () -> ()
    %cst_54 = arith.constant dense<0.000000e+00> : vector<2x8x8xf32>
    %170 = tpu.matmul %167, %168, %cst_54 {dimension_numbers = #tpu.dot_dimension_numbers<[2], [2], [1], [1], [0, 0, 0, 1, 1, 1], [0], [0]>} : vector<2x8x64xbf16>, vector<2x8x64xbf16>, vector<2x8x8xf32> -> vector<2x8x8xf32>
    "tpu.trace_stop"() : () -> ()
    %171 = vector.broadcast %27 : vector<2x1x8xf32> to vector<2x8x8xf32>
    %172 = arith.addf %170, %171 : vector<2x8x8xf32>
    %cst_55 = arith.constant dense<0xFF800000> : vector<2x8xf32>
    %173 = vector.multi_reduction <maximumf>, %172, %cst_55 [2] : vector<2x8x8xf32> to vector<2x8xf32>
    %174 = vector.shape_cast %173 : vector<2x8xf32> to vector<2x8x1xf32>
    %175 = vector.broadcast %174 : vector<2x8x1xf32> to vector<2x8x8xf32>
    %176 = arith.subf %172, %175 : vector<2x8x8xf32>
    %177 = math.exp %176 : vector<2x8x8xf32>
    %cst_56 = arith.constant dense<0.000000e+00> : vector<2x8xf32>
    %178 = vector.multi_reduction <add>, %177, %cst_56 [2] : vector<2x8x8xf32> to vector<2x8xf32>
    %179 = vector.shape_cast %178 : vector<2x8xf32> to vector<2x8x1xf32>
    %180 = tpu.reciprocal %179 {approx = true} : vector<2x8x1xf32> -> vector<2x8x1xf32>
    %181 = vector.broadcast %180 : vector<2x8x1xf32> to vector<2x8x8xf32>
    %182 = arith.mulf %177, %181 : vector<2x8x8xf32>
    %183 = arith.truncf %182 : vector<2x8x8xf32> to vector<2x8x8xbf16>
    "tpu.trace_start"() <{level = 10 : i32, message = "bqk,bkd->bqd"}> : () -> ()
    %cst_57 = arith.constant dense<0.000000e+00> : vector<2x8x64xf32>
    %184 = tpu.matmul %183, %169, %cst_57 {dimension_numbers = #tpu.dot_dimension_numbers<[2], [1], [1], [2], [0, 0, 0, 1, 1, 2], [0], [0]>} : vector<2x8x8xbf16>, vector<2x8x64xbf16>, vector<2x8x64xf32> -> vector<2x8x64xf32>
    "tpu.trace_stop"() : () -> ()
    %185 = vector.shape_cast %184 : vector<2x8x64xf32> to vector<16x64xf32>
    %186 = arith.truncf %185 : vector<16x64xf32> to vector<16x64xbf16>
    %c384 = arith.constant 384 : index
    %c0_58 = arith.constant 0 : index
    %187 = vector.load %arg8[%c384, %c0_58] : memref<512x512xbf16, #tpu.memory_space<vmem>>, vector<64x512xbf16>
    %cst_59 = arith.constant dense<0.000000e+00> : vector<16x512xf32>
    %188 = tpu.matmul %186, %187, %cst_59 {dimension_numbers = #tpu.dot_dimension_numbers<[1], [0], [0], [1], [0, 0, 1, 1], [], []>} : vector<16x64xbf16>, vector<64x512xbf16>, vector<16x512xf32> -> vector<16x512xf32>
    %189 = arith.addf %166, %188 : vector<16x512xf32>
    %190 = vector.extract_strided_slice %22 {offsets = [0, 0, 448], sizes = [2, 8, 64], strides = [1, 1, 1]} : vector<2x8x512xbf16> to vector<2x8x64xbf16>
    %191 = vector.extract_strided_slice %24 {offsets = [0, 0, 448], sizes = [2, 8, 64], strides = [1, 1, 1]} : vector<2x8x512xbf16> to vector<2x8x64xbf16>
    %192 = vector.extract_strided_slice %26 {offsets = [0, 0, 448], sizes = [2, 8, 64], strides = [1, 1, 1]} : vector<2x8x512xbf16> to vector<2x8x64xbf16>
    "tpu.trace_start"() <{level = 10 : i32, message = "bqd,bkd->bqk"}> : () -> ()
    %cst_60 = arith.constant dense<0.000000e+00> : vector<2x8x8xf32>
    %193 = tpu.matmul %190, %191, %cst_60 {dimension_numbers = #tpu.dot_dimension_numbers<[2], [2], [1], [1], [0, 0, 0, 1, 1, 1], [0], [0]>} : vector<2x8x64xbf16>, vector<2x8x64xbf16>, vector<2x8x8xf32> -> vector<2x8x8xf32>
    "tpu.trace_stop"() : () -> ()
    %194 = vector.broadcast %27 : vector<2x1x8xf32> to vector<2x8x8xf32>
    %195 = arith.addf %193, %194 : vector<2x8x8xf32>
    %cst_61 = arith.constant dense<0xFF800000> : vector<2x8xf32>
    %196 = vector.multi_reduction <maximumf>, %195, %cst_61 [2] : vector<2x8x8xf32> to vector<2x8xf32>
    %197 = vector.shape_cast %196 : vector<2x8xf32> to vector<2x8x1xf32>
    %198 = vector.broadcast %197 : vector<2x8x1xf32> to vector<2x8x8xf32>
    %199 = arith.subf %195, %198 : vector<2x8x8xf32>
    %200 = math.exp %199 : vector<2x8x8xf32>
    %cst_62 = arith.constant dense<0.000000e+00> : vector<2x8xf32>
    %201 = vector.multi_reduction <add>, %200, %cst_62 [2] : vector<2x8x8xf32> to vector<2x8xf32>
    %202 = vector.shape_cast %201 : vector<2x8xf32> to vector<2x8x1xf32>
    %203 = tpu.reciprocal %202 {approx = true} : vector<2x8x1xf32> -> vector<2x8x1xf32>
    %204 = vector.broadcast %203 : vector<2x8x1xf32> to vector<2x8x8xf32>
    %205 = arith.mulf %200, %204 : vector<2x8x8xf32>
    %206 = arith.truncf %205 : vector<2x8x8xf32> to vector<2x8x8xbf16>
    "tpu.trace_start"() <{level = 10 : i32, message = "bqk,bkd->bqd"}> : () -> ()
    %cst_63 = arith.constant dense<0.000000e+00> : vector<2x8x64xf32>
    %207 = tpu.matmul %206, %192, %cst_63 {dimension_numbers = #tpu.dot_dimension_numbers<[2], [1], [1], [2], [0, 0, 0, 1, 1, 2], [0], [0]>} : vector<2x8x8xbf16>, vector<2x8x64xbf16>, vector<2x8x64xf32> -> vector<2x8x64xf32>
    "tpu.trace_stop"() : () -> ()
    %208 = vector.shape_cast %207 : vector<2x8x64xf32> to vector<16x64xf32>
    %209 = arith.truncf %208 : vector<16x64xf32> to vector<16x64xbf16>
    %c448 = arith.constant 448 : index
    %c0_64 = arith.constant 0 : index
    %210 = vector.load %arg8[%c448, %c0_64] : memref<512x512xbf16, #tpu.memory_space<vmem>>, vector<64x512xbf16>
    %cst_65 = arith.constant dense<0.000000e+00> : vector<16x512xf32>
    %211 = tpu.matmul %209, %210, %cst_65 {dimension_numbers = #tpu.dot_dimension_numbers<[1], [0], [0], [1], [0, 0, 1, 1], [], []>} : vector<16x64xbf16>, vector<64x512xbf16>, vector<16x512xf32> -> vector<16x512xf32>
    %212 = arith.addf %189, %211 : vector<16x512xf32>
    %c0_66 = arith.constant 0 : index
    %c0_67 = arith.constant 0 : index
    %213 = vector.load %arg9[%c0_66, %c0_67] : memref<1x512xf32, #tpu.memory_space<vmem>>, vector<1x512xf32>
    %214 = vector.broadcast %213 : vector<1x512xf32> to vector<16x512xf32>
    %215 = arith.addf %212, %214 : vector<16x512xf32>
    %216 = arith.addf %13, %215 : vector<16x512xf32>
    %c0_68 = arith.constant 0 : index
    %c0_69 = arith.constant 0 : index
    %217 = vector.load %arg10[%c0_68, %c0_69] : memref<1x512xf32, #tpu.memory_space<vmem>>, vector<1x512xf32>
    %c0_70 = arith.constant 0 : index
    %c0_71 = arith.constant 0 : index
    %218 = vector.load %arg11[%c0_70, %c0_71] : memref<1x512xf32, #tpu.memory_space<vmem>>, vector<1x512xf32>
    %cst_72 = arith.constant dense<0.000000e+00> : vector<16xf32>
    %219 = vector.multi_reduction <add>, %216, %cst_72 [1] : vector<16x512xf32> to vector<16xf32>
    %220 = vector.shape_cast %219 : vector<16xf32> to vector<16x1xf32>
    %cst_73 = arith.constant 5.120000e+02 : f32
    %221 = vector.broadcast %cst_73 : f32 to vector<16x1xf32>
    %222 = arith.divf %220, %221 : vector<16x1xf32>
    %223 = vector.broadcast %222 : vector<16x1xf32> to vector<16x512xf32>
    %224 = arith.subf %216, %223 : vector<16x512xf32>
    %225 = arith.mulf %224, %224 : vector<16x512xf32>
    %cst_74 = arith.constant dense<0.000000e+00> : vector<16xf32>
    %226 = vector.multi_reduction <add>, %225, %cst_74 [1] : vector<16x512xf32> to vector<16xf32>
    %227 = vector.shape_cast %226 : vector<16xf32> to vector<16x1xf32>
    %cst_75 = arith.constant 5.120000e+02 : f32
    %228 = vector.broadcast %cst_75 : f32 to vector<16x1xf32>
    %229 = arith.divf %227, %228 : vector<16x1xf32>
    %230 = vector.broadcast %222 : vector<16x1xf32> to vector<16x512xf32>
    %231 = arith.subf %216, %230 : vector<16x512xf32>
    %cst_76 = arith.constant 9.99999974E-6 : f32
    %232 = vector.broadcast %cst_76 : f32 to vector<16x1xf32>
    %233 = arith.addf %229, %232 : vector<16x1xf32>
    %234 = math.rsqrt %233 : vector<16x1xf32>
    %235 = vector.broadcast %234 : vector<16x1xf32> to vector<16x512xf32>
    %236 = arith.mulf %231, %235 : vector<16x512xf32>
    %237 = vector.broadcast %217 : vector<1x512xf32> to vector<16x512xf32>
    %238 = arith.mulf %236, %237 : vector<16x512xf32>
    %239 = vector.broadcast %218 : vector<1x512xf32> to vector<16x512xf32>
    %240 = arith.addf %238, %239 : vector<16x512xf32>
    %241 = arith.truncf %240 : vector<16x512xf32> to vector<16x512xbf16>
    %c0_77 = arith.constant 0 : index
    %c0_78 = arith.constant 0 : index
    %242 = vector.load %arg12[%c0_77, %c0_78] : memref<512x2048xbf16, #tpu.memory_space<vmem>>, vector<512x2048xbf16>
    %cst_79 = arith.constant dense<0.000000e+00> : vector<16x2048xf32>
    %243 = tpu.matmul %241, %242, %cst_79 {dimension_numbers = #tpu.dot_dimension_numbers<[1], [0], [0], [1], [0, 0, 1, 1], [], []>} : vector<16x512xbf16>, vector<512x2048xbf16>, vector<16x2048xf32> -> vector<16x2048xf32>
    %c0_80 = arith.constant 0 : index
    %c0_81 = arith.constant 0 : index
    %244 = vector.load %arg13[%c0_80, %c0_81] : memref<1x2048xf32, #tpu.memory_space<vmem>>, vector<1x2048xf32>
    %245 = vector.broadcast %244 : vector<1x2048xf32> to vector<16x2048xf32>
    %246 = arith.addf %243, %245 : vector<16x2048xf32>
    %cst_82 = arith.constant 0.000000e+00 : f32
    %247 = vector.broadcast %cst_82 : f32 to vector<16x2048xf32>
    %248 = arith.maximumf %246, %247 : vector<16x2048xf32>
    %249 = arith.truncf %248 : vector<16x2048xf32> to vector<16x2048xbf16>
    %c0_83 = arith.constant 0 : index
    %c0_84 = arith.constant 0 : index
    %250 = vector.load %arg14[%c0_83, %c0_84] : memref<2048x512xbf16, #tpu.memory_space<vmem>>, vector<2048x512xbf16>
    %cst_85 = arith.constant dense<0.000000e+00> : vector<16x512xf32>
    %251 = tpu.matmul %249, %250, %cst_85 {dimension_numbers = #tpu.dot_dimension_numbers<[1], [0], [0], [1], [0, 0, 1, 1], [], []>} : vector<16x2048xbf16>, vector<2048x512xbf16>, vector<16x512xf32> -> vector<16x512xf32>
    %c0_86 = arith.constant 0 : index
    %c0_87 = arith.constant 0 : index
    %252 = vector.load %arg15[%c0_86, %c0_87] : memref<1x512xf32, #tpu.memory_space<vmem>>, vector<1x512xf32>
    %253 = vector.broadcast %252 : vector<1x512xf32> to vector<16x512xf32>
    %254 = arith.addf %251, %253 : vector<16x512xf32>
    %255 = arith.addf %240, %254 : vector<16x512xf32>
    %c0_88 = arith.constant 0 : index
    %c0_89 = arith.constant 0 : index
    %256 = vector.load %arg16[%c0_88, %c0_89] : memref<1x512xf32, #tpu.memory_space<vmem>>, vector<1x512xf32>
    %c0_90 = arith.constant 0 : index
    %c0_91 = arith.constant 0 : index
    %257 = vector.load %arg17[%c0_90, %c0_91] : memref<1x512xf32, #tpu.memory_space<vmem>>, vector<1x512xf32>
    %cst_92 = arith.constant dense<0.000000e+00> : vector<16xf32>
    %258 = vector.multi_reduction <add>, %255, %cst_92 [1] : vector<16x512xf32> to vector<16xf32>
    %259 = vector.shape_cast %258 : vector<16xf32> to vector<16x1xf32>
    %cst_93 = arith.constant 5.120000e+02 : f32
    %260 = vector.broadcast %cst_93 : f32 to vector<16x1xf32>
    %261 = arith.divf %259, %260 : vector<16x1xf32>
    %262 = vector.broadcast %261 : vector<16x1xf32> to vector<16x512xf32>
    %263 = arith.subf %255, %262 : vector<16x512xf32>
    %264 = arith.mulf %263, %263 : vector<16x512xf32>
    %cst_94 = arith.constant dense<0.000000e+00> : vector<16xf32>
    %265 = vector.multi_reduction <add>, %264, %cst_94 [1] : vector<16x512xf32> to vector<16xf32>
    %266 = vector.shape_cast %265 : vector<16xf32> to vector<16x1xf32>
    %cst_95 = arith.constant 5.120000e+02 : f32
    %267 = vector.broadcast %cst_95 : f32 to vector<16x1xf32>
    %268 = arith.divf %266, %267 : vector<16x1xf32>
    %269 = vector.broadcast %261 : vector<16x1xf32> to vector<16x512xf32>
    %270 = arith.subf %255, %269 : vector<16x512xf32>
    %cst_96 = arith.constant 9.99999974E-6 : f32
    %271 = vector.broadcast %cst_96 : f32 to vector<16x1xf32>
    %272 = arith.addf %268, %271 : vector<16x1xf32>
    %273 = math.rsqrt %272 : vector<16x1xf32>
    %274 = vector.broadcast %273 : vector<16x1xf32> to vector<16x512xf32>
    %275 = arith.mulf %270, %274 : vector<16x512xf32>
    %276 = vector.broadcast %256 : vector<1x512xf32> to vector<16x512xf32>
    %277 = arith.mulf %275, %276 : vector<16x512xf32>
    %278 = vector.broadcast %257 : vector<1x512xf32> to vector<16x512xf32>
    %279 = arith.addf %277, %278 : vector<16x512xf32>
    %280 = arith.truncf %279 : vector<16x512xf32> to vector<16x512xbf16>
    %c0_97 = arith.constant 0 : index
    %c0_98 = arith.constant 0 : index
    %281 = vector.load %arg18[%c0_97, %c0_98] : memref<512x1xbf16, #tpu.memory_space<vmem>>, vector<512x1xbf16>
    %cst_99 = arith.constant dense<0.000000e+00> : vector<16x1xf32>
    %282 = tpu.matmul %280, %281, %cst_99 {dimension_numbers = #tpu.dot_dimension_numbers<[1], [0], [0], [1], [0, 0, 1, 1], [], []>} : vector<16x512xbf16>, vector<512x1xbf16>, vector<16x1xf32> -> vector<16x1xf32>
    %c0_100 = arith.constant 0 : index
    %c0_101 = arith.constant 0 : index
    %283 = vector.load %arg19[%c0_100, %c0_101] : memref<1x1xf32, #tpu.memory_space<vmem>>, vector<1x1xf32>
    %284 = vector.broadcast %283 : vector<1x1xf32> to vector<16x1xf32>
    %285 = arith.addf %282, %284 : vector<16x1xf32>
    %286 = vector.shape_cast %285 : vector<16x1xf32> to vector<2x8x1xf32>
    %c0_102 = arith.constant 0 : index
    %c0_103 = arith.constant 0 : index
    %c0_104 = arith.constant 0 : index
    %287 = vector.load %arg20[%c0_102, %c0_103, %c0_104] : memref<2x8x1xf32, #tpu.memory_space<vmem>>, vector<2x8x1xf32>
    tpu.vector_store %arg20[%c0_102, %c0_103, %c0_104], %286 {strides = array<i32>} : memref<2x8x1xf32, #tpu.memory_space<vmem>>, vector<2x8x1xf32>,
    return
  }
  func.func @transform_0(%arg0: i32) -> (i32, i32, i32) {
    %c0_i32 = arith.constant 0 : i32
    %c0_i32_0 = arith.constant 0 : i32
    %c0_i32_1 = arith.constant 0 : i32
    return %arg0, %c0_i32, %c0_i32_0 : i32, i32, i32
  }
  func.func @transform_1(%arg0: i32) -> (i32, i32, i32) {
    %c0_i32 = arith.constant 0 : i32
    %c0_i32_0 = arith.constant 0 : i32
    %c0_i32_1 = arith.constant 0 : i32
    return %arg0, %c0_i32, %c0_i32_0 : i32, i32, i32
  }
  func.func @transform_2(%arg0: i32) -> (i32, i32) {
    %c0_i32 = arith.constant 0 : i32
    %c0_i32_0 = arith.constant 0 : i32
    %c0_i32_1 = arith.constant 0 : i32
    return %c0_i32, %c0_i32_0 : i32, i32
  }
  func.func @transform_3(%arg0: i32) -> (i32, i32) {
    %c0_i32 = arith.constant 0 : i32
    %c0_i32_0 = arith.constant 0 : i32
    %c0_i32_1 = arith.constant 0 : i32
    return %c0_i32, %c0_i32_0 : i32, i32
  }
  func.func @transform_4(%arg0: i32) -> (i32, i32) {
    %c0_i32 = arith.constant 0 : i32
    %c0_i32_0 = arith.constant 0 : i32
    %c0_i32_1 = arith.constant 0 : i32
    return %c0_i32, %c0_i32_0 : i32, i32
  }
  func.func @transform_5(%arg0: i32) -> (i32, i32) {
    %c0_i32 = arith.constant 0 : i32
    %c0_i32_0 = arith.constant 0 : i32
    %c0_i32_1 = arith.constant 0 : i32
    return %c0_i32, %c0_i32_0 : i32, i32
  }
  func.func @transform_6(%arg0: i32) -> (i32, i32) {
    %c0_i32 = arith.constant 0 : i32
    %c0_i32_0 = arith.constant 0 : i32
    %c0_i32_1 = arith.constant 0 : i32
    return %c0_i32, %c0_i32_0 : i32, i32
  }
  func.func @transform_7(%arg0: i32) -> (i32, i32) {
    %c0_i32 = arith.constant 0 : i32
    %c0_i32_0 = arith.constant 0 : i32
    %c0_i32_1 = arith.constant 0 : i32
    return %c0_i32, %c0_i32_0 : i32, i32
  }
  func.func @transform_8(%arg0: i32) -> (i32, i32) {
    %c0_i32 = arith.constant 0 : i32
    %c0_i32_0 = arith.constant 0 : i32
    %c0_i32_1 = arith.constant 0 : i32
    return %c0_i32, %c0_i32_0 : i32, i32
  }
  func.func @transform_9(%arg0: i32) -> (i32, i32) {
    %c0_i32 = arith.constant 0 : i32
    %c0_i32_0 = arith.constant 0 : i32
    %c0_i32_1 = arith.constant 0 : i32
    return %c0_i32, %c0_i32_0 : i32, i32
  }
  func.func @transform_10(%arg0: i32) -> (i32, i32) {
    %c0_i32 = arith.constant 0 : i32
    %c0_i32_0 = arith.constant 0 : i32
    %c0_i32_1 = arith.constant 0 : i32
    return %c0_i32, %c0_i32_0 : i32, i32
  }
  func.func @transform_11(%arg0: i32) -> (i32, i32) {
    %c0_i32 = arith.constant 0 : i32
    %c0_i32_0 = arith.constant 0 : i32
    %c0_i32_1 = arith.constant 0 : i32
    return %c0_i32, %c0_i32_0 : i32, i32
  }
  func.func @transform_12(%arg0: i32) -> (i32, i32) {
    %c0_i32 = arith.constant 0 : i32
    %c0_i32_0 = arith.constant 0 : i32
    %c0_i32_1 = arith.constant 0 : i32
    return %c0_i32, %c0_i32_0 : i32, i32
  }
  func.func @transform_13(%arg0: i32) -> (i32, i32) {
    %c0_i32 = arith.constant 0 : i32
    %c0_i32_0 = arith.constant 0 : i32
    %c0_i32_1 = arith.constant 0 : i32
    return %c0_i32, %c0_i32_0 : i32, i32
  }
  func.func @transform_14(%arg0: i32) -> (i32, i32) {
    %c0_i32 = arith.constant 0 : i32
    %c0_i32_0 = arith.constant 0 : i32
    %c0_i32_1 = arith.constant 0 : i32
    return %c0_i32, %c0_i32_0 : i32, i32
  }
  func.func @transform_15(%arg0: i32) -> (i32, i32) {
    %c0_i32 = arith.constant 0 : i32
    %c0_i32_0 = arith.constant 0 : i32
    %c0_i32_1 = arith.constant 0 : i32
    return %c0_i32, %c0_i32_0 : i32, i32
  }
  func.func @transform_16(%arg0: i32) -> (i32, i32) {
    %c0_i32 = arith.constant 0 : i32
    %c0_i32_0 = arith.constant 0 : i32
    %c0_i32_1 = arith.constant 0 : i32
    return %c0_i32, %c0_i32_0 : i32, i32
  }
  func.func @transform_17(%arg0: i32) -> (i32, i32) {
    %c0_i32 = arith.constant 0 : i32
    %c0_i32_0 = arith.constant 0 : i32
    %c0_i32_1 = arith.constant 0 : i32
    return %c0_i32, %c0_i32_0 : i32, i32
  }
  func.func @transform_18(%arg0: i32) -> (i32, i32) {
    %c0_i32 = arith.constant 0 : i32
    %c0_i32_0 = arith.constant 0 : i32
    %c0_i32_1 = arith.constant 0 : i32
    return %c0_i32, %c0_i32_0 : i32, i32
  }
  func.func @transform_19(%arg0: i32) -> (i32, i32, i32) {
    %c0_i32 = arith.constant 0 : i32
    %c0_i32_0 = arith.constant 0 : i32
    %c0_i32_1 = arith.constant 0 : i32
    return %arg0, %c0_i32, %c0_i32_0 : i32, i32, i32
  }
}

</mosaic_0001>

<bundles_post_ra>
// kernel: tpu_custom_call.1
= control target key start
LH: loop header
LB: loop body
LE: loop exit
PB: predicated region body
PF: predicated region fallthrough
CT: control target
= control target key end

     0   :  { %s20427_s0 = inlined_call_operand.vmem [shape: f32[2,8,4], index: 0, kind: input, shape index: {}]   ;;  %s20428_s1 = inlined_call_operand.hbm [shape: f32[2,1,8], index: 1, kind: input, shape index: {}]   ;;  %s20429_s2 = inlined_call_operand.hbm [shape: f32[8,512], index: 2, kind: input, shape index: {}]   ;;  %s20430_s3 = inlined_call_operand.hbm [shape: bf16[4,512], index: 3, kind: input, shape index: {}]   ;;  %s20431_s4 = inlined_call_operand.hbm [shape: f32[1,512], index: 4, kind: input, shape index: {}]   ;;  %s20432_s5 = inlined_call_operand.hbm [shape: bf16[512,1536], index: 5, kind: input, shape index: {}]   ;;  %s20433_s6 = inlined_call_operand.hbm [shape: f32[1,1536], index: 6, kind: input, shape index: {}]   ;;  %s20434_s7 = inlined_call_operand.hbm [shape: bf16[512,512], index: 7, kind: input, shape index: {}]   ;;  %s20435_s8 = inlined_call_operand.hbm [shape: f32[1,512], index: 8, kind: input, shape index: {}]   ;;  %s20436_s9 = inlined_call_operand.hbm [shape: f32[1,512], index: 9, kind: input, shape index: {}]   ;;  %s20437_s10 = inlined_call_operand.hbm [shape: f32[1,512], index: 10, kind: input, shape index: {}]   ;;  %s20438_s11 = inlined_call_operand.hbm [shape: bf16[512,2048], index: 11, kind: input, shape index: {}]   ;;  %s20439_s12 = inlined_call_operand.hbm [shape: f32[1,2048], index: 12, kind: input, shape index: {}]   ;;  %s20440_s13 = inlined_call_operand.hbm [shape: bf16[2048,512], index: 13, kind: input, shape index: {}]   ;;  %s20441_s14 = inlined_call_operand.hbm [shape: f32[1,512], index: 14, kind: input, shape index: {}]   ;;  %s20442_s15 = inlined_call_operand.hbm [shape: f32[1,512], index: 15, kind: input, shape index: {}]   ;;  %s20443_s16 = inlined_call_operand.hbm [shape: f32[1,512], index: 16, kind: input, shape index: {}]   ;;  %s20444_s17 = inlined_call_operand.vmem [shape: bf16[512,1], index: 17, kind: input, shape index: {}]   ;;  %s20445_s18 = inlined_call_operand.<no memory space> [shape: f32[1,1], index: 18, kind: input, shape index: {}]   ;;  %s20446_s19 = inlined_call_operand.vmem [shape: f32[2,8,1], index: 19, kind: output, shape index: {}]  }
   0x1   :  { %20473 = sst [smem:[#allocation51_spill]] %s20427_s0  ;;  %v24_v0 = vstv %s20445_s18 }
   0x2   :  { %20474 = sst [smem:[#allocation52_spill]] %s20428_s1  ;;  %25 = vst [vmem:[#allocation2] sm:$0x1] %v24_v0 }
   0x3   :  { %20475 = sst [smem:[#allocation53_spill]] %s20429_s2 }
   0x4   :  { %20476 = sst [smem:[#allocation54_spill]] %s20430_s3 }
   0x5   :  { %26 = vsyncpa [#allocation4], 0 }
   0x6   :  { %27 = vsyncpa [#allocation6], 0 }
   0x7   :  { %28 = vsyncpa [#allocation9], 0 }
   0x8   :  { %29 = vsyncpa [#allocation12], 0 }
   0x9   :  { %30 = vsyncpa [#allocation15], 0 }
   0xa   :  { %31 = vsyncpa [#allocation18], 0 }
   0xb   :  { %32 = vsyncpa [#allocation21], 0 }
   0xc   :  { %33 = vsyncpa [#allocation24], 0 }
   0xd   :  { %34 = vsyncpa [#allocation27], 0  ;;  %s18963_s20 = smov [#allocation5]   ;;  %s18964_s1 = smov [#allocation8]  }
   0xe   :  { %s55_s21 = sshll.u32 %s18963_s20, 4  ;;  %s75_s22 = sshll.u32 %s18964_s1, 4  ;;  %s56_s21 = int_to_ptr.vmem [resolvable:$true] %s55_s21  ;;  %s76_s22 = int_to_ptr.vmem [resolvable:$true] %s75_s22 }
   0xf   :  { %s18633_s2 = scalar_lea.vmem %s56_s21, 512  ;;  %p18638_p1 = scmp.lt.s32.totalorder %s56_s21, %s56_s21 }
  0x10   :  { %p18634_p0 = scmp.ne.s32.totalorder %s56_s21, %s18633_s2  ;;  %p18639_p2 = scmp.lt.s32.totalorder %s18633_s2, %s18633_s2 }
  0x12   :  { %p18640_p3 = por %p18639_p2, %p18638_p1 }
  0x14   :  { %p18641_p4 = pnand %p18640_p3, %p18634_p0 }
  0x16   :  { %18644 = shalt.err (!%p18641_p4)
}
  0x17   :  { %s20477_s24 = sld [smem:[#allocation53_spill]]  ;;  %s18653_s25 = scalar_lea.vmem %s76_s22, 64 }
  0x18   :  { %p18654_p5 = scmp.ne.s32.totalorder %s76_s22, %s18653_s25  ;;  %p18658_p6 = scmp.lt.s32.totalorder %s76_s22, %s76_s22 }
  0x19   :  { %p18659_p7 = scmp.lt.s32.totalorder %s18653_s25, %s18653_s25 }
  0x1b   :  { %p18660_p8 = por %p18659_p7, %p18658_p6 }
  0x1d   :  { %58 = dma.hbm_to_vmem [thread:$0]  %s20477_s24, 512, %s56_s21, [#allocation6]  }
  0x1e   :  { %p18661_p9 = pnand %p18660_p8, %p18654_p5 }
  0x20   :  { %18664 = shalt.err (!%p18661_p9)
}
  0x21   :  { %78 = dma.hbm_to_vmem [thread:$0]  %s20431_s4, 64, %s76_s22, [#allocation9]  }
  0x22   :  { %s18965_s27 = smov [#allocation11]   ;;  %s18966_s29 = smov [#allocation14]  }
  0x23   :  { %s97_s28 = sshll.u32 %s18965_s27, 4  ;;  %s119_s0 = sshll.u32 %s18966_s29, 4  ;;  %s98_s28 = int_to_ptr.vmem [resolvable:$true] %s97_s28  ;;  %s120_s0 = int_to_ptr.vmem [resolvable:$true] %s119_s0 }
  0x24   :  { %s18673_s30 = scalar_lea.vmem %s98_s28, 192  ;;  %p18678_p11 = scmp.lt.s32.totalorder %s98_s28, %s98_s28 }
  0x25   :  { %p18674_p10 = scmp.ne.s32.totalorder %s98_s28, %s18673_s30  ;;  %p18679_p12 = scmp.lt.s32.totalorder %s18673_s30, %s18673_s30 }
  0x27   :  { %p18680_p13 = por %p18679_p12, %p18678_p11 }
  0x29   :  { %p18681_p0 = pnand %p18680_p13, %p18674_p10 }
  0x2b   :  { %18684 = shalt.err (!%p18681_p0)
}
  0x2c   :  { %100 = dma.hbm_to_vmem [thread:$0]  %s20433_s6, 192, %s98_s28, [#allocation12]  }
  0x2d   :  { %s18693_s1 = scalar_lea.vmem %s120_s0, 64  ;;  %p18698_p2 = scmp.lt.s32.totalorder %s120_s0, %s120_s0 }
  0x2e   :  { %p18694_p1 = scmp.ne.s32.totalorder %s120_s0, %s18693_s1  ;;  %p18699_p3 = scmp.lt.s32.totalorder %s18693_s1, %s18693_s1 }
  0x30   :  { %p18700_p4 = por %p18699_p3, %p18698_p2 }
  0x32   :  { %p18701_p5 = pnand %p18700_p4, %p18694_p1 }
  0x34   :  { %18704 = shalt.err (!%p18701_p5)
}
  0x35   :  { %122 = dma.hbm_to_vmem [thread:$0]  %s20435_s8, 64, %s120_s0, [#allocation15]  }
  0x36   :  { %s18967_s2 = smov [#allocation17]   ;;  %s18968_s23 = smov [#allocation20]  }
  0x37   :  { %s139_s18 = sshll.u32 %s18967_s2, 4  ;;  %s161_s24 = sshll.u32 %s18968_s23, 4  ;;  %s140_s18 = int_to_ptr.vmem [resolvable:$true] %s139_s18  ;;  %s162_s24 = int_to_ptr.vmem [resolvable:$true] %s161_s24 }
  0x38   :  { %s18713_s25 = scalar_lea.vmem %s140_s18, 64  ;;  %p18718_p7 = scmp.lt.s32.totalorder %s140_s18, %s140_s18 }
  0x39   :  { %p18714_p6 = scmp.ne.s32.totalorder %s140_s18, %s18713_s25  ;;  %p18719_p8 = scmp.lt.s32.totalorder %s18713_s25, %s18713_s25 }
  0x3b   :  { %p18720_p9 = por %p18719_p8, %p18718_p7 }
  0x3d   :  { %p18721_p10 = pnand %p18720_p9, %p18714_p6 }
  0x3f   :  { %18724 = shalt.err (!%p18721_p10)
}
  0x40   :  { %142 = dma.hbm_to_vmem [thread:$0]  %s20437_s10, 64, %s140_s18, [#allocation18]  }
  0x41   :  { %s18733_s26 = scalar_lea.vmem %s162_s24, 256  ;;  %p18738_p12 = scmp.lt.s32.totalorder %s162_s24, %s162_s24 }
  0x42   :  { %p18734_p11 = scmp.ne.s32.totalorder %s162_s24, %s18733_s26  ;;  %p18739_p13 = scmp.lt.s32.totalorder %s18733_s26, %s18733_s26 }
  0x44   :  { %p18740_p0 = por %p18739_p13, %p18738_p12 }
  0x46   :  { %p18741_p1 = pnand %p18740_p0, %p18734_p11 }
  0x48   :  { %18744 = shalt.err (!%p18741_p1)
}
  0x49   :  { %164 = dma.hbm_to_vmem [thread:$0]  %s20439_s12, 256, %s162_s24, [#allocation21]  }
  0x4a   :  { %s18969_s28 = smov [#allocation23]   ;;  %s18970_s0 = smov [#allocation3]  }
  0x4b   :  { %s183_s29 = sshll.u32 %s18969_s28, 4  ;;  %s42_s30 = sshll.u32 %s18970_s0, 4  ;;  %s184_s29 = int_to_ptr.vmem [resolvable:$true] %s183_s29  ;;  %s43_s30 = int_to_ptr.vmem [resolvable:$true] %s42_s30 }
  0x4c   :  { %s18753_s20 = scalar_lea.vmem %s184_s29, 64  ;;  %p18758_p3 = scmp.lt.s32.totalorder %s184_s29, %s184_s29 }
  0x4d   :  { %p18754_p2 = scmp.ne.s32.totalorder %s184_s29, %s18753_s20  ;;  %p18759_p4 = scmp.lt.s32.totalorder %s18753_s20, %s18753_s20 }
  0x4f   :  { %p18760_p5 = por %p18759_p4, %p18758_p3 }
  0x51   :  { %p18761_p6 = pnand %p18760_p5, %p18754_p2 }
  0x53   :  { %18764 = shalt.err (!%p18761_p6)
}
  0x54   :  { %186 = dma.hbm_to_vmem [thread:$0]  %s20441_s14, 64, %s184_s29, [#allocation24]  }
  0x55   :  { %s18773_s1 = scalar_lea.vmem %s43_s30, 32  ;;  %p18778_p8 = scmp.lt.s32.totalorder %s43_s30, %s43_s30 }
  0x56   :  { %p18774_p7 = scmp.ne.s32.totalorder %s43_s30, %s18773_s1  ;;  %p18779_p9 = scmp.lt.s32.totalorder %s18773_s1, %s18773_s1 }
  0x58   :  { %p18780_p10 = por %p18779_p9, %p18778_p8 }
  0x5a   :  { %p18781_p11 = pnand %p18780_p10, %p18774_p7 }
  0x5c   :  { %18784 = shalt.err (!%p18781_p11)
}
  0x5d   :  { %s18971_s12 = smov 16   ;;  %s18972_s4 = smov 1  }
  0x5e   :  { %s20478_s18 = sld [smem:[#allocation52_spill]]  ;;  %s18973_s23 = smov [#allocation7]  }
  0x5f   :  { %s65_s24 = sshll.u32 %s18973_s23, 4  ;;  %s18974_s25 = smov [#allocation10]   ;;  %s66_s24 = int_to_ptr.vmem [resolvable:$true] %s65_s24 }
  0x60   :  { %s84_s6 = sshll.u32 %s18974_s25, 4  ;;  %s18793_s14 = scalar_lea.vmem %s66_s24, 128  ;;  %s85_s6 = int_to_ptr.vmem [resolvable:$true] %s84_s6 }
  0x61   :  { %p18794_p12 = scmp.ne.s32.totalorder %s66_s24, %s18793_s14  ;;  %p18798_p13 = scmp.lt.s32.totalorder %s66_s24, %s66_s24 }
  0x62   :  { %p18799_p0 = scmp.lt.s32.totalorder %s18793_s14, %s18793_s14 }
  0x64   :  { %48 = dma.hbm_to_vmem [thread:$0]  %s20478_s18, 32, %s43_s30, [#allocation4], %s18971_s12, %s18971_s12, %s18972_s4  }
  0x65   :  { %p18800_p1 = por %p18799_p0, %p18798_p13 }
  0x67   :  { %p18801_p2 = pnand %p18800_p1, %p18794_p12 }
  0x69   :  { %18804 = shalt.err (!%p18801_p2)
}
  0x6a   :  { %s20479_s8 = sld [smem:[#allocation54_spill]]  ;;  %s18813_s27 = scalar_lea.vmem %s85_s6, 49152 }
  0x6b   :  { %p18814_p3 = scmp.ne.s32.totalorder %s85_s6, %s18813_s27  ;;  %p18818_p4 = scmp.lt.s32.totalorder %s85_s6, %s85_s6 }
  0x6c   :  { %p18819_p5 = scmp.lt.s32.totalorder %s18813_s27, %s18813_s27 }
  0x6e   :  { %p18820_p6 = por %p18819_p5, %p18818_p4 }
  0x70   :  { %68 = dma.hbm_to_vmem [thread:$0]  %s20479_s8, 128, %s66_s24, [#allocation6]  }
  0x71   :  { %p18821_p7 = pnand %p18820_p6, %p18814_p3 }
  0x73   :  { %18824 = shalt.err (!%p18821_p7)
}
  0x74   :  { %s18975_s28 = smov 768   ;;  %s18976_s29 = smov 48  }
  0x75   :  { %90 = dma.hbm_to_vmem [thread:$0]  %s20432_s5, 49152, %s85_s6, [#allocation9], %s18975_s28, %s18975_s28, %s18976_s29  }
  0x76   :  { %s18977_s20 = smov [#allocation13]   ;;  %s18978_s21 = smov [#allocation16]  }
  0x77   :  { %s106_s10 = sshll.u32 %s18977_s20, 4  ;;  %s129_s1 = sshll.u32 %s18978_s21, 4  ;;  %s107_s10 = int_to_ptr.vmem [resolvable:$true] %s106_s10  ;;  %s130_s1 = int_to_ptr.vmem [resolvable:$true] %s129_s1 }
  0x78   :  { %s18833_s4 = scalar_lea.vmem %s107_s10, 16384  ;;  %p18838_p9 = scmp.lt.s32.totalorder %s107_s10, %s107_s10 }
  0x79   :  { %p18834_p8 = scmp.ne.s32.totalorder %s107_s10, %s18833_s4  ;;  %p18839_p10 = scmp.lt.s32.totalorder %s18833_s4, %s18833_s4 }
  0x7b   :  { %p18840_p11 = por %p18839_p10, %p18838_p9 }
  0x7d   :  { %p18841_p12 = pnand %p18840_p11, %p18834_p8 }
  0x7f   :  { %18844 = shalt.err (!%p18841_p12)
}
  0x80   :  { %s18979_s22 = smov 256   ;;  %s18853_s5 = scalar_lea.vmem %s130_s1, 64 }
  0x81   :  { %112 = dma.hbm_to_vmem [thread:$0]  %s20434_s7, 16384, %s107_s10, [#allocation12], %s18979_s22, %s18979_s22, %s18971_s12  }
  0x82   :  { %p18854_p13 = scmp.ne.s32.totalorder %s130_s1, %s18853_s5  ;;  %p18858_p0 = scmp.lt.s32.totalorder %s130_s1, %s130_s1 }
  0x83   :  { %p18859_p1 = scmp.lt.s32.totalorder %s18853_s5, %s18853_s5 }
  0x85   :  { %p18860_p2 = por %p18859_p1, %p18858_p0 }
  0x87   :  { %p18861_p3 = pnand %p18860_p2, %p18854_p13 }
  0x89   :  { %18864 = shalt.err (!%p18861_p3)
}
  0x8a   :  { %132 = dma.hbm_to_vmem [thread:$0]  %s20436_s9, 64, %s130_s1, [#allocation15]  }
  0x8b   :  { %s18980_s25 = smov [#allocation19]  }
  0x8c   :  { %s148_s6 = sshll.u32 %s18980_s25, 4  ;;  %s149_s6 = int_to_ptr.vmem [resolvable:$true] %s148_s6 }
  0x8d   :  { %s18873_s14 = scalar_lea.vmem %s149_s6, 65536  ;;  %p18878_p5 = scmp.lt.s32.totalorder %s149_s6, %s149_s6 }
  0x8e   :  { %p18874_p4 = scmp.ne.s32.totalorder %s149_s6, %s18873_s14  ;;  %p18879_p6 = scmp.lt.s32.totalorder %s18873_s14, %s18873_s14 }
  0x90   :  { %p18880_p7 = por %p18879_p6, %p18878_p5 }
  0x92   :  { %p18881_p8 = pnand %p18880_p7, %p18874_p4 }
  0x94   :  { %18884 = shalt.err (!%p18881_p8)
}
  0x95   :  { %s18981_s7 = smov 1024   ;;  %s18982_s3 = smov 64  }
  0x96   :  { %154 = dma.hbm_to_vmem [thread:$0]  %s20438_s11, 65536, %s149_s6, [#allocation18], %s18981_s7, %s18981_s7, %s18982_s3  }
  0x97   :  { %s18983_s27 = smov [#allocation22]   ;;  %s18984_s9 = smov [#allocation25]  }
  0x98   :  { %s170_s28 = sshll.u32 %s18983_s27, 4  ;;  %s193_s29 = sshll.u32 %s18984_s9, 4  ;;  %s171_s28 = int_to_ptr.vmem [resolvable:$true] %s170_s28  ;;  %s194_s29 = int_to_ptr.vmem [resolvable:$true] %s193_s29 }
  0x99   :  { %s18893_s0 = scalar_lea.vmem %s171_s28, 65536  ;;  %p18898_p10 = scmp.lt.s32.totalorder %s171_s28, %s171_s28 }
  0x9a   :  { %p18894_p9 = scmp.ne.s32.totalorder %s171_s28, %s18893_s0  ;;  %p18899_p11 = scmp.lt.s32.totalorder %s18893_s0, %s18893_s0 }
  0x9c   :  { %p18900_p12 = por %p18899_p11, %p18898_p10 }
  0x9e   :  { %p18901_p13 = pnand %p18900_p12, %p18894_p9 }
  0xa0   :  { %18904 = shalt.err (!%p18901_p13)
}
  0xa1   :  { %176 = dma.hbm_to_vmem [thread:$0]  %s20440_s13, 65536, %s171_s28, [#allocation21], %s18979_s22, %s18979_s22, %s18971_s12  }
  0xa2   :  { %s18913_s11 = scalar_lea.vmem %s194_s29, 64  ;;  %p18918_p1 = scmp.lt.s32.totalorder %s194_s29, %s194_s29 }
  0xa3   :  { %p18914_p0 = scmp.ne.s32.totalorder %s194_s29, %s18913_s11  ;;  %p18919_p2 = scmp.lt.s32.totalorder %s18913_s11, %s18913_s11 }
  0xa5   :  { %p18920_p3 = por %p18919_p2, %p18918_p1 }
  0xa7   :  { %p18921_p4 = pnand %p18920_p3, %p18914_p0 }
  0xa9   :  { %18924 = shalt.err (!%p18921_p4)
}
  0xaa   :  { %196 = dma.hbm_to_vmem [thread:$0]  %s20442_s15, 64, %s194_s29, [#allocation24]  }
  0xab   :  { %s18985_s1 = smov [#allocation26]  }
  0xac   :  { %s203_s4 = sshll.u32 %s18985_s1, 4  ;;  %s204_s4 = int_to_ptr.vmem [resolvable:$true] %s203_s4 }
  0xad   :  { %s18933_s2 = scalar_lea.vmem %s204_s4, 64  ;;  %p18938_p6 = scmp.lt.s32.totalorder %s204_s4, %s204_s4 }
  0xae   :  { %p18934_p5 = scmp.ne.s32.totalorder %s204_s4, %s18933_s2  ;;  %p18939_p7 = scmp.lt.s32.totalorder %s18933_s2, %s18933_s2 }
  0xb0   :  { %p18940_p8 = por %p18939_p7, %p18938_p6 }
  0xb2   :  { %p18941_p9 = pnand %p18940_p8, %p18934_p5 }
  0xb4   :  { %18944 = shalt.err (!%p18941_p9)
}
  0xb5   :  { %206 = dma.hbm_to_vmem [thread:$0]  %s20443_s16, 64, %s204_s4, [#allocation27]  }
  0xb6   :  { %18945 = dma.done.wait [#allocation4], 32  }
  0xb7   :  { %18946 = vsyncadd [#allocation4], 4294967264 }
  0xb8   :  { %18947 = dma.done.wait [#allocation6], 640  }
  0xb9   :  { %18948 = vsyncadd [#allocation6], 4294966656 }
  0xba   :  { %18949 = dma.done.wait [#allocation9], 49216  }
  0xbb   :  { %18950 = vsyncadd [#allocation9], 4294918080 }
  0xbc   :  { %18951 = dma.done.wait [#allocation12], 16576  }
  0xbd   :  { %18952 = vsyncadd [#allocation12], 4294950720 }
  0xbe   :  { %18953 = dma.done.wait [#allocation15], 128  }
  0xbf   :  { %18954 = vsyncadd [#allocation15], 4294967168 }
  0xc0   :  { %18955 = dma.done.wait [#allocation18], 65600  }
  0xc1   :  { %18956 = vsyncadd [#allocation18], 4294901696 }
  0xc2   :  { %18957 = dma.done.wait [#allocation21], 65792  }
  0xc3   :  { %18958 = vsyncadd [#allocation21], 4294901504 }
  0xc4   :  { %18959 = dma.done.wait [#allocation24], 128  }
  0xc5   :  { %18960 = vsyncadd [#allocation24], 4294967168 }
  0xc6   :  { %18961 = dma.done.wait [#allocation27], 64  }
  0xc7   :  { %18962 = vsyncadd [#allocation27], 4294967232  ;;  %v266_v1 = vlaneseq  ;;  %v18986_v2 = vmov 1983009808   ;;  %v20450_v4 = vmov 0   ;;  %v263_v8 = vld [vmem:[#allocation7] sm:$0xff] }
  0xc8   :  { %v289_v3 = vunpack.c.l.s4 %v18986_v2  ;;  %353 = vmatprep.mubr.bf16.mxu0 %v20450_v4  ;;  %396 = vmatprep.mubr.bf16.mxu1 %v20450_v4  ;;  %vm308_vm0 = vcmask 1041408   ;;  %v287_v10 = vcombine.high %v263_v8, %v263_v8  ;;  %s20480_s22 = sld [smem:[#allocation51_spill]]  ;;  %v16983_v16 = vld [vmem:[#allocation10 + $0x2a4] ss:$48 sps:$4 sm:$0xff]   ;;  %vm304_vm1 = vcmask 31744  }
  0xc9   :  { %v19152_v5 = vshrl.u32 %v266_v1, 7  ;;  %v16986_v20 = vld [vmem:[#allocation10 + $0x8a4] ss:$48 sps:$4 sm:$0xff]   ;;  %v16981_v21 = vld [vmem:[#allocation10 + $0x2a0] ss:$48 sps:$4 sm:$0xff]   ;;  %vm18989_vm2 = vmmov 0  }
  0xca   :  { %v290_v6 = vunpack.c.0.s8 %v289_v3  ;;  %v16989_v22 = vld [vmem:[#allocation10 + $0x244] ss:$48 sps:$4 sm:$0xff]   ;;  %v16984_v23 = vld [vmem:[#allocation10 + $0x8a0] ss:$48 sps:$4 sm:$0xff]   ;;  %vm3381_vm3 = vcmask 523264   ;;  %vm3502_vm4 = vcmask 1043456  }
  0xcb   :  { %v16992_v24 = vld [vmem:[#allocation10 + $0x844] ss:$48 sps:$4 sm:$0xff]   ;;  %v16987_v25 = vld [vmem:[#allocation10 + $0x240] ss:$48 sps:$4 sm:$0xff]   ;;  %vm3474_vm5 = vcmask 64512   ;;  %vm14966_vm6 = vcmask 7168  }
  0xcc   :  { %v293_v7 = vsub.s32 %v290_v6, %v19152_v5  ;;  %v16995_v26 = vld [vmem:[#allocation10 + $0x1e4] ss:$48 sps:$4 sm:$0xff]   ;;  %v16990_v27 = vld [vmem:[#allocation10 + $0x840] ss:$48 sps:$4 sm:$0xff]  }
  0xcd   :  { %v16998_v28 = vld [vmem:[#allocation10 + $0x7e4] ss:$48 sps:$4 sm:$0xff]   ;;  %v16993_v29 = vld [vmem:[#allocation10 + $0x1e0] ss:$48 sps:$4 sm:$0xff]  }
  0xce   :  { %v294_v9 = vrot.slane %v263_v8, %v293_v7  ;;  %v260_v11 = vld [vmem:[%s20480_s22] sm:$0xff]  ;;  %v261_v12 = vld [vmem:[%s20480_s22 + $0x8] sm:$0xff]  ;;  %v301_v15 = vrot.slane %v287_v10, %v293_v7 }
  0xcf   :  { %v262_v19 = vpack.c.bf16 %v261_v12, %v260_v11  ;;  %v17001_v30 = vld [vmem:[#allocation10 + $0x184] ss:$48 sps:$4 sm:$0xff]   ;;  %v16996_v31 = vld [vmem:[#allocation10 + $0x7e0] ss:$48 sps:$4 sm:$0xff]  }
  0xd0   :  { %v302_v13 = vcombine.high %v294_v9, %v294_v9  ;;  %v310_v14 = vsel %vm308_vm0, %v294_v9, 0  ;;  %v303_v17 = vcombine.high %v301_v15, %v301_v15  ;;  %v316_v18 = vsel %vm308_vm0, %v301_v15, 0  ;;  %v17004_v32 = vld [vmem:[#allocation10 + $0x784] ss:$48 sps:$4 sm:$0xff]   ;;  %v16999_v33 = vld [vmem:[#allocation10 + $0x180] ss:$48 sps:$4 sm:$0xff]  }
  0xd1   :  { %v17007_v34 = vld [vmem:[#allocation10 + $0x124] ss:$48 sps:$4 sm:$0xff]   ;;  %v17002_v35 = vld [vmem:[#allocation10 + $0x780] ss:$48 sps:$4 sm:$0xff]  }
  0xd2   :  { %14982 = vmatprep.subr.msk.bf16.mxu0 %vm308_vm0, %v302_v13  ;;  %14984 = vmatprep.subr.msk.bf16.mxu1 %vm308_vm0, %v303_v17  ;;  %v17010_v36 = vld [vmem:[#allocation10 + $0x724] ss:$48 sps:$4 sm:$0xff]   ;;  %v17005_v37 = vld [vmem:[#allocation10 + $0x120] ss:$48 sps:$4 sm:$0xff]  }
  0xd3   :  { %336 = vmatpush1.bf16.msra.mxu0 %v310_v14  ;;  %379 = vmatpush1.bf16.msra.mxu1 %v316_v18  ;;  %v17013_v38 = vld [vmem:[#allocation10 + $0xc4] ss:$48 sps:$4 sm:$0xff]   ;;  %v17008_v39 = vld [vmem:[#allocation10 + $0x720] ss:$48 sps:$4 sm:$0xff]  }
  0xd4   :  { %2791 = vmatprep.subr.bf16.mxu0 %v16983_v16  ;;  %2834 = vmatprep.subr.bf16.mxu1 %v16986_v20  ;;  %v17016_v40 = vld [vmem:[#allocation10 + $0x6c4] ss:$48 sps:$4 sm:$0xff]   ;;  %v17011_v41 = vld [vmem:[#allocation10 + $0xc0] ss:$48 sps:$4 sm:$0xff]  }
  0xd5   :  { %v17019_v42 = vld [vmem:[#allocation10 + $0x64] ss:$48 sps:$4 sm:$0xff]   ;;  %v17014_v43 = vld [vmem:[#allocation10 + $0x6c0] ss:$48 sps:$4 sm:$0xff]  }
  0xd6   :  { %14983 = vmatmul.mubr.msk.bf16.vlgmr.msra.gmra.mxu0 %vm304_vm1, %v262_v19  ;;  %14985 = vmatmul.mubr.msk.bf16.vlgmr.msra.gmra.mxu1 %vm304_vm1, %v262_v19  ;;  %v17022_v44 = vld [vmem:[#allocation10 + $0x664] ss:$48 sps:$4 sm:$0xff]   ;;  %v17017_v45 = vld [vmem:[#allocation10 + $0x60] ss:$48 sps:$4 sm:$0xff]  }
  0xd7   :  { %2792 = vmatpush1.bf16.msra.mxu0 %v16981_v21  ;;  %2835 = vmatpush1.bf16.msra.mxu1 %v16984_v23  ;;  %v17025_v46 = vld [vmem:[#allocation10 + $0x4] ss:$48 sps:$4 sm:$0xff]   ;;  %v17020_v47 = vld [vmem:[#allocation10 + $0x660] ss:$48 sps:$4 sm:$0xff]   ;;  %v17079_v21 = vld [vmem:[#allocation10 + $0x2ac] ss:$48 sps:$4 sm:$0xff]  }
  0xd8   :  { %2793 = vmatprep.subr.bf16.mxu0 %v16989_v22  ;;  %2836 = vmatprep.subr.bf16.mxu1 %v16992_v24  ;;  %v17028_v48 = vld [vmem:[#allocation10 + $0x604] ss:$48 sps:$4 sm:$0xff]   ;;  %v17023_v49 = vld [vmem:[#allocation10] ss:$48 sps:$4 sm:$0xff]   ;;  %v17082_v22 = vld [vmem:[#allocation10 + $0x8ac] ss:$48 sps:$4 sm:$0xff]  }
  0xd9   :  { %v17026_v50 = vld [vmem:[#allocation10 + $0x600] ss:$48 sps:$4 sm:$0xff]   ;;  %v17031_v51 = vld [vmem:[#allocation10 + $0x5a4] ss:$48 sps:$4 sm:$0xff]   ;;  %v19166_v23 = vsub.s32 1, %v19152_v5  ;;  %v19169_v24 = vsub.s32 0, %v19152_v5 }
  0xda   :  { %v17034_v52 = vld [vmem:[#allocation10 + $0xba4] ss:$48 sps:$4 sm:$0xff]   ;;  %v17029_v53 = vld [vmem:[#allocation10 + $0x5a0] ss:$48 sps:$4 sm:$0xff]  }
  0xdb   :  { %2794 = vmatpush1.bf16.msra.mxu0 %v16987_v25  ;;  %2837 = vmatpush1.bf16.msra.mxu1 %v16990_v27  ;;  %v17037_v54 = vld [vmem:[#allocation10 + $0x544] ss:$48 sps:$4 sm:$0xff]   ;;  %v17032_v55 = vld [vmem:[#allocation10 + $0xba0] ss:$48 sps:$4 sm:$0xff]   ;;  %20481 = vst [vmem:[#allocation37_spill] sm:$0xff] %v19166_v23  ;;  %20482 = vst [vmem:[#allocation38_spill] sm:$0xff] %v19169_v24 }
  0xdc   :  { %2795 = vmatprep.subr.bf16.mxu0 %v16995_v26  ;;  %2838 = vmatprep.subr.bf16.mxu1 %v16998_v28  ;;  %v17040_v56 = vld [vmem:[#allocation10 + $0xb44] ss:$48 sps:$4 sm:$0xff]   ;;  %v17035_v57 = vld [vmem:[#allocation10 + $0x540] ss:$48 sps:$4 sm:$0xff]   ;;  %v264_v25 = vld [vmem:[#allocation8] sm:$0xf] }
  0xdd   :  { %v17043_v58 = vld [vmem:[#allocation10 + $0x4e4] ss:$48 sps:$4 sm:$0xff]   ;;  %v17038_v59 = vld [vmem:[#allocation10 + $0xb40] ss:$48 sps:$4 sm:$0xff]   ;;  %v19172_v26 = vsub.s32 3, %v19152_v5  ;;  %v19175_v28 = vsub.s32 2, %v19152_v5 }
  0xde   :  { %v17046_v60 = vld [vmem:[#allocation10 + $0xae4] ss:$48 sps:$4 sm:$0xff]   ;;  %v17041_v61 = vld [vmem:[#allocation10 + $0x4e0] ss:$48 sps:$4 sm:$0xff]  }
  0xdf   :  { %2796 = vmatpush1.bf16.msra.mxu0 %v16993_v29  ;;  %2839 = vmatpush1.bf16.msra.mxu1 %v16996_v31  ;;  %v17049_v62 = vld [vmem:[#allocation10 + $0x484] ss:$48 sps:$4 sm:$0xff]   ;;  %v17044_v63 = vld [vmem:[#allocation10 + $0xae0] ss:$48 sps:$4 sm:$0xff]   ;;  %v273_v29 = vrot.slane %v264_v25, %v19166_v23 }
  0xe0   :  { %2797 = vmatprep.subr.bf16.mxu0 %v17001_v30  ;;  %2840 = vmatprep.subr.bf16.mxu1 %v17004_v32  ;;  %v17052_v0 = vld [vmem:[#allocation10 + $0xa84] ss:$48 sps:$4 sm:$0xff]   ;;  %v17047_v1 = vld [vmem:[#allocation10 + $0x480] ss:$48 sps:$4 sm:$0xff]   ;;  %v269_v30 = vrot.slane %v264_v25, %v19169_v24 }
  0xe1   :  { %v17055_v2 = vld [vmem:[#allocation10 + $0x424] ss:$48 sps:$4 sm:$0xff]   ;;  %v17050_v3 = vld [vmem:[#allocation10 + $0xa80] ss:$48 sps:$4 sm:$0xff]  }
  0xe2   :  { %v17058_v6 = vld [vmem:[#allocation10 + $0xa24] ss:$48 sps:$4 sm:$0xff]   ;;  %v17053_v7 = vld [vmem:[#allocation10 + $0x420] ss:$48 sps:$4 sm:$0xff]  }
  0xe3   :  { %2798 = vmatpush1.bf16.msra.mxu0 %v16999_v33  ;;  %2841 = vmatpush1.bf16.msra.mxu1 %v17002_v35  ;;  %v17056_v8 = vld [vmem:[#allocation10 + $0xa20] ss:$48 sps:$4 sm:$0xff]   ;;  %v17061_v9 = vld [vmem:[#allocation10 + $0x3c4] ss:$48 sps:$4 sm:$0xff]   ;;  %v281_v33 = vrot.slane %v264_v25, %v19172_v26 }
  0xe4   :  { %2799 = vmatprep.subr.bf16.mxu0 %v17007_v34  ;;  %2842 = vmatprep.subr.bf16.mxu1 %v17010_v36  ;;  %v17059_v10 = vld [vmem:[#allocation10 + $0x3c0] ss:$48 sps:$4 sm:$0xff]   ;;  %v17064_v11 = vld [vmem:[#allocation10 + $0x9c4] ss:$48 sps:$4 sm:$0xff]   ;;  %v277_v34 = vrot.slane %v264_v25, %v19175_v28  ;;  %v17115_v25 = vld [vmem:[#allocation10 + $0x6c] ss:$48 sps:$4 sm:$0xff]  }
  0xe5   :  { %v17062_v12 = vld [vmem:[#allocation10 + $0x9c0] ss:$48 sps:$4 sm:$0xff]   ;;  %v17067_v13 = vld [vmem:[#allocation10 + $0x364] ss:$48 sps:$4 sm:$0xff]  }
  0xe6   :  { %v17065_v14 = vld [vmem:[#allocation10 + $0x360] ss:$48 sps:$4 sm:$0xff]   ;;  %v17070_v15 = vld [vmem:[#allocation10 + $0x964] ss:$48 sps:$4 sm:$0xff]  }
  0xe7   :  { %2800 = vmatpush1.bf16.msra.mxu0 %v17005_v37  ;;  %2843 = vmatpush1.bf16.msra.mxu1 %v17008_v39  ;;  %v17068_v16 = vld [vmem:[#allocation10 + $0x960] ss:$48 sps:$4 sm:$0xff]   ;;  %v17073_v17 = vld [vmem:[#allocation10 + $0x304] ss:$48 sps:$4 sm:$0xff]  }
  0xe8   :  { %2801 = vmatprep.subr.bf16.mxu0 %v17013_v38  ;;  %2844 = vmatprep.subr.bf16.mxu1 %v17016_v40  ;;  %v17071_v18 = vld [vmem:[#allocation10 + $0x300] ss:$48 sps:$4 sm:$0xff]   ;;  %v17076_v19 = vld [vmem:[#allocation10 + $0x904] ss:$48 sps:$4 sm:$0xff]  }
  0xe9   :  { %v17074_v20 = vld [vmem:[#allocation10 + $0x900] ss:$48 sps:$4 sm:$0xff]  }
  0xea   :  { %v408_v40 = vld [vmem:[#allocation5 + $0x8] sm:$0xff] }
  0xeb   :  { %2802 = vmatpush1.bf16.msra.mxu0 %v17011_v41  ;;  %2845 = vmatpush1.bf16.msra.mxu1 %v17014_v43  ;;  %v407_v43 = vld [vmem:[#allocation5] sm:$0xff] }
  0xec   :  { %2803 = vmatprep.subr.bf16.mxu0 %v17019_v42  ;;  %2846 = vmatprep.subr.bf16.mxu1 %v17022_v44 }
  0xef   :  { %2804 = vmatpush1.bf16.msra.mxu0 %v17017_v45  ;;  %2847 = vmatpush1.bf16.msra.mxu1 %v17020_v47 }
  0xf0   :  { %2805 = vmatprep.subr.bf16.mxu0 %v17025_v46  ;;  %2848 = vmatprep.subr.bf16.mxu1 %v17028_v48 }
  0xf3   :  { %2806 = vmatpush1.bf16.msra.mxu0 %v17023_v49  ;;  %2849 = vmatpush1.bf16.msra.mxu1 %v17026_v50  ;;  %v410_v49 = vld [vmem:[#allocation5 + $0x18] sm:$0xff] }
  0xf4   :  { %2807 = vmatprep.subr.bf16.mxu0 %v17031_v51  ;;  %2850 = vmatprep.subr.bf16.mxu1 %v17034_v52  ;;  %v409_v52 = vld [vmem:[#allocation5 + $0x10] sm:$0xff] }
  0xf7   :  { %2808 = vmatpush2.bf16.msra.mxu0 %v17029_v53  ;;  %2851 = vmatpush2.bf16.msra.mxu1 %v17032_v55 }
  0xf8   :  { %2809 = vmatprep.subr.bf16.mxu0 %v17037_v54  ;;  %2852 = vmatprep.subr.bf16.mxu1 %v17040_v56 }
  0xfb   :  { %2810 = vmatpush2.bf16.msra.mxu0 %v17035_v57  ;;  %2853 = vmatpush2.bf16.msra.mxu1 %v17038_v59 }
  0xfc   :  { %2811 = vmatprep.subr.bf16.mxu0 %v17043_v58  ;;  %2854 = vmatprep.subr.bf16.mxu1 %v17046_v60  ;;  %v17077_v60 = vld [vmem:[#allocation10 + $0x2a8] ss:$48 sps:$4 sm:$0xff]  }
  0xff   :  { %2812 = vmatpush2.bf16.msra.mxu0 %v17041_v61  ;;  %2855 = vmatpush2.bf16.msra.mxu1 %v17044_v63  ;;  %v17080_v63 = vld [vmem:[#allocation10 + $0x8a8] ss:$48 sps:$4 sm:$0xff]  }
 0x100   :  { %2813 = vmatprep.subr.bf16.mxu0 %v17049_v62  ;;  %2856 = vmatprep.subr.bf16.mxu1 %v17052_v0 }
 0x103   :  { %2814 = vmatpush2.bf16.msra.mxu0 %v17047_v1  ;;  %2857 = vmatpush2.bf16.msra.mxu1 %v17050_v3  ;;  %v17085_v1 = vld [vmem:[#allocation10 + $0x24c] ss:$48 sps:$4 sm:$0xff]  }
 0x104   :  { %2815 = vmatprep.subr.bf16.mxu0 %v17055_v2  ;;  %2858 = vmatprep.subr.bf16.mxu1 %v17058_v6  ;;  %v17088_v3 = vld [vmem:[#allocation10 + $0x84c] ss:$48 sps:$4 sm:$0xff]   ;;  %v17083_v6 = vld [vmem:[#allocation10 + $0x248] ss:$48 sps:$4 sm:$0xff]  }
 0x107   :  { %2816 = vmatpush2.bf16.msra.mxu0 %v17053_v7  ;;  %2859 = vmatpush2.bf16.msra.mxu1 %v17056_v8  ;;  %v17091_v7 = vld [vmem:[#allocation10 + $0x1ec] ss:$48 sps:$4 sm:$0xff]   ;;  %v17086_v8 = vld [vmem:[#allocation10 + $0x848] ss:$48 sps:$4 sm:$0xff]  }
 0x108   :  { %2817 = vmatprep.subr.bf16.mxu0 %v17061_v9  ;;  %2860 = vmatprep.subr.bf16.mxu1 %v17064_v11  ;;  %v17094_v9 = vld [vmem:[#allocation10 + $0x7ec] ss:$48 sps:$4 sm:$0xff]  }
 0x109   :  { %v17097_v11 = vld [vmem:[#allocation10 + $0x18c] ss:$48 sps:$4 sm:$0xff]  }
 0x10b   :  { %2818 = vmatpush2.bf16.msra.mxu0 %v17059_v10  ;;  %2861 = vmatpush2.bf16.msra.mxu1 %v17062_v12  ;;  %v17089_v10 = vld [vmem:[#allocation10 + $0x1e8] ss:$48 sps:$4 sm:$0xff]  }
 0x10c   :  { %2819 = vmatprep.subr.bf16.mxu0 %v17067_v13  ;;  %2862 = vmatprep.subr.bf16.mxu1 %v17070_v15  ;;  %v17092_v12 = vld [vmem:[#allocation10 + $0x7e8] ss:$48 sps:$4 sm:$0xff]   ;;  %v17100_v13 = vld [vmem:[#allocation10 + $0x78c] ss:$48 sps:$4 sm:$0xff]  }
 0x10d   :  { %v17103_v15 = vld [vmem:[#allocation10 + $0x12c] ss:$48 sps:$4 sm:$0xff]  }
 0x10f   :  { %2820 = vmatpush2.bf16.msra.mxu0 %v17065_v14  ;;  %2863 = vmatpush2.bf16.msra.mxu1 %v17068_v16  ;;  %v17095_v14 = vld [vmem:[#allocation10 + $0x188] ss:$48 sps:$4 sm:$0xff]  }
 0x110   :  { %2821 = vmatprep.subr.bf16.mxu0 %v17073_v17  ;;  %2864 = vmatprep.subr.bf16.mxu1 %v17076_v19  ;;  %v17098_v16 = vld [vmem:[#allocation10 + $0x788] ss:$48 sps:$4 sm:$0xff]   ;;  %v17106_v17 = vld [vmem:[#allocation10 + $0x72c] ss:$48 sps:$4 sm:$0xff]  }
 0x111   :  { %v17109_v19 = vld [vmem:[#allocation10 + $0xcc] ss:$48 sps:$4 sm:$0xff]  }
 0x113   :  { %2822 = vmatpush2.bf16.msra.mxu0 %v17071_v18  ;;  %2865 = vmatpush2.bf16.msra.mxu1 %v17074_v20  ;;  %v17101_v18 = vld [vmem:[#allocation10 + $0x128] ss:$48 sps:$4 sm:$0xff]  }
 0x114   :  { %2877 = vmatprep.subr.bf16.mxu0 %v17079_v21  ;;  %2920 = vmatprep.subr.bf16.mxu1 %v17082_v22  ;;  %v17104_v20 = vld [vmem:[#allocation10 + $0x728] ss:$48 sps:$4 sm:$0xff]   ;;  %v17112_v21 = vld [vmem:[#allocation10 + $0x6cc] ss:$48 sps:$4 sm:$0xff]  }
 0x115   :  { %v17107_v22 = vld [vmem:[#allocation10 + $0xc8] ss:$48 sps:$4 sm:$0xff]  }
 0x196   :  { %v355_v27 = vpop.f32.mrf.mxu0  ;;  %v398_v32 = vpop.f32.mrf.mxu1 }
 0x197   :  { %v356_v39 = vadd.f32 %v355_v27, %v269_v30  ;;  %v399_v47 = vadd.f32 %v398_v32, %v277_v34  ;;  %v17110_v27 = vld [vmem:[#allocation10 + $0x6c8] ss:$48 sps:$4 sm:$0xff]  }
 0x198   :  { %v357_v31 = vpop.f32.mrf.mxu0  ;;  %v400_v36 = vpop.f32.mrf.mxu1  ;;  %v17116_v32 = vld [vmem:[#allocation10 + $0x668] ss:$48 sps:$4 sm:$0xff]  }
 0x199   :  { %v358_v37 = vadd.f32 %v357_v31, %v273_v29  ;;  %v401_v44 = vadd.f32 %v400_v36, %v281_v33  ;;  %v19187_v55 = vadd.f32 %v407_v43, %v356_v39  ;;  %v19199_v61 = vadd.f32 %v409_v52, %v399_v47  ;;  %v17121_v31 = vld [vmem:[#allocation10 + $0xc] ss:$48 sps:$4 sm:$0xff]   ;;  %v17122_v36 = vld [vmem:[#allocation10 + $0x608] ss:$48 sps:$4 sm:$0xff]  }
 0x19a   :  { %v359_v35 = vpop.f32.mrf.mxu0  ;;  %v402_v42 = vpop.f32.mrf.mxu1  ;;  %v17133_v39 = vld [vmem:[#allocation10 + $0x54c] ss:$48 sps:$4 sm:$0xff]  }
 0x19b   :  { %v360_v38 = vadd.f32 %v359_v35, %v269_v30  ;;  %v403_v46 = vadd.f32 %v402_v42, %v277_v34  ;;  %v19183_v51 = vadd.f32 %v408_v40, %v358_v37  ;;  %v19191_v57 = vadd.f32 %v410_v49, %v401_v44  ;;  %v17113_v30 = vld [vmem:[#allocation10 + $0x68] ss:$48 sps:$4 sm:$0xff]   ;;  %v17127_v35 = vld [vmem:[#allocation10 + $0x5ac] ss:$48 sps:$4 sm:$0xff]  }
 0x19c   :  { %v361_v41 = vpop.f32.mrf.mxu0  ;;  %v404_v50 = vpop.f32.mrf.mxu1  ;;  %v17119_v34 = vld [vmem:[#allocation10 + $0x8] ss:$48 sps:$4 sm:$0xff]   ;;  %v17130_v37 = vld [vmem:[#allocation10 + $0xbac] ss:$48 sps:$4 sm:$0xff]  }
 0x19d   :  { %v362_v45 = vadd.f32 %v361_v41, %v273_v29  ;;  %v19181_v48 = vadd.f32 %v407_v43, %v360_v38  ;;  %v405_v54 = vadd.f32 %v404_v50, %v281_v33  ;;  %v19189_v56 = vadd.f32 %v409_v52, %v403_v46  ;;  %v17118_v29 = vld [vmem:[#allocation10 + $0x66c] ss:$48 sps:$4 sm:$0xff]   ;;  %v17125_v38 = vld [vmem:[#allocation10 + $0x5a8] ss:$48 sps:$4 sm:$0xff]  }
 0x19e   :  { %v17124_v33 = vld [vmem:[#allocation10 + $0x60c] ss:$48 sps:$4 sm:$0xff]   ;;  %v17131_v42 = vld [vmem:[#allocation10 + $0x548] ss:$48 sps:$4 sm:$0xff]  }
 0x19f   :  { %v19185_v53 = vadd.f32 %v408_v40, %v362_v45  ;;  %v19197_v59 = vadd.f32 %v410_v49, %v405_v54  ;;  %v19203_v62 = vpack.c.bf16 %v19181_v48, %v19187_v55  ;;  %v19212_v2 = vpack.c.bf16 %v19189_v56, %v19199_v61  ;;  %v17128_v40 = vld [vmem:[#allocation10 + $0xba8] ss:$48 sps:$4 sm:$0xff]   ;;  %v17136_v41 = vld [vmem:[#allocation10 + $0xb4c] ss:$48 sps:$4 sm:$0xff]  }
 0x1a0   :  { %v17139_v43 = vld [vmem:[#allocation10 + $0x4ec] ss:$48 sps:$4 sm:$0xff]   ;;  %v17134_v44 = vld [vmem:[#allocation10 + $0xb48] ss:$48 sps:$4 sm:$0xff]  }
 0x1a1   :  { %v19195_v58 = vpack.c.bf16 %v19185_v53, %v19183_v51  ;;  %20483 = vst [vmem:[#allocation39_spill] sm:$0xff] %v19197_v59  ;;  %v19207_v0 = vpack.c.bf16 %v19197_v59, %v19191_v57  ;;  %v17142_v45 = vld [vmem:[#allocation10 + $0xaec] ss:$48 sps:$4 sm:$0xff]   ;;  %v17137_v46 = vld [vmem:[#allocation10 + $0x4e8] ss:$48 sps:$4 sm:$0xff]  }
 0x1a2   :  { %v17145_v47 = vld [vmem:[#allocation10 + $0x48c] ss:$48 sps:$4 sm:$0xff]   ;;  %v17140_v49 = vld [vmem:[#allocation10 + $0xae8] ss:$48 sps:$4 sm:$0xff]  }
 0x1a3   :  { %2823 = vmatprep.mubr.bf16.mxu0 %v19195_v58  ;;  %2866 = vmatprep.mubr.bf16.mxu1 %v19207_v0  ;;  %v17148_v50 = vld [vmem:[#allocation10 + $0xa8c] ss:$48 sps:$4 sm:$0xff]   ;;  %v17143_v52 = vld [vmem:[#allocation10 + $0x488] ss:$48 sps:$4 sm:$0xff]  }
 0x1a4   :  { %2824 = vmatmul.mubr.bf16.vlgmr.msra.gmra.mxu0 %v19203_v62  ;;  %2867 = vmatmul.mubr.bf16.vlgmr.msra.gmra.mxu1 %v19212_v2  ;;  %v17151_v54 = vld [vmem:[#allocation10 + $0x42c] ss:$48 sps:$4 sm:$0xff]  }
 0x1a5   :  { %2878 = vmatpush1.bf16.msra.mxu0 %v17077_v60  ;;  %2909 = vmatprep.mubr.bf16.mxu0 %v19195_v58  ;;  %v17146_v60 = vld [vmem:[#allocation10 + $0xa88] ss:$48 sps:$4 sm:$0xff]  }
 0x1a6   :  { %2921 = vmatpush1.bf16.msra.mxu1 %v17080_v63  ;;  %2879 = vmatprep.subr.bf16.mxu0 %v17085_v1  ;;  %v17154_v63 = vld [vmem:[#allocation10 + $0xa2c] ss:$48 sps:$4 sm:$0xff]   ;;  %v17149_v1 = vld [vmem:[#allocation10 + $0x428] ss:$48 sps:$4 sm:$0xff]  }
 0x1a7   :  { %2952 = vmatprep.mubr.bf16.mxu1 %v19207_v0  ;;  %2922 = vmatprep.subr.bf16.mxu1 %v17088_v3  ;;  %v17157_v3 = vld [vmem:[#allocation10 + $0x3cc] ss:$48 sps:$4 sm:$0xff]  }
 0x1a9   :  { %2880 = vmatpush1.bf16.msra.mxu0 %v17083_v6  ;;  %v17152_v6 = vld [vmem:[#allocation10 + $0xa28] ss:$48 sps:$4 sm:$0xff]  }
 0x1aa   :  { %2881 = vmatprep.subr.bf16.mxu0 %v17091_v7  ;;  %2923 = vmatpush1.bf16.msra.mxu1 %v17086_v8  ;;  %v17160_v7 = vld [vmem:[#allocation10 + $0x9cc] ss:$48 sps:$4 sm:$0xff]   ;;  %v17155_v8 = vld [vmem:[#allocation10 + $0x3c8] ss:$48 sps:$4 sm:$0xff]  }
 0x1ab   :  { %2924 = vmatprep.subr.bf16.mxu1 %v17094_v9  ;;  %v17163_v9 = vld [vmem:[#allocation10 + $0x36c] ss:$48 sps:$4 sm:$0xff]  }
 0x1ad   :  { %2882 = vmatpush1.bf16.msra.mxu0 %v17089_v10  ;;  %v17158_v10 = vld [vmem:[#allocation10 + $0x9c8] ss:$48 sps:$4 sm:$0xff]  }
 0x1ae   :  { %2883 = vmatprep.subr.bf16.mxu0 %v17097_v11  ;;  %2925 = vmatpush1.bf16.msra.mxu1 %v17092_v12  ;;  %v17166_v11 = vld [vmem:[#allocation10 + $0x96c] ss:$48 sps:$4 sm:$0xff]   ;;  %v17161_v12 = vld [vmem:[#allocation10 + $0x368] ss:$48 sps:$4 sm:$0xff]  }
 0x1af   :  { %2926 = vmatprep.subr.bf16.mxu1 %v17100_v13  ;;  %v17169_v13 = vld [vmem:[#allocation10 + $0x30c] ss:$48 sps:$4 sm:$0xff]  }
 0x1b1   :  { %2884 = vmatpush1.bf16.msra.mxu0 %v17095_v14  ;;  %v17164_v14 = vld [vmem:[#allocation10 + $0x968] ss:$48 sps:$4 sm:$0xff]  }
 0x1b2   :  { %2885 = vmatprep.subr.bf16.mxu0 %v17103_v15  ;;  %2927 = vmatpush1.bf16.msra.mxu1 %v17098_v16  ;;  %v17172_v15 = vld [vmem:[#allocation10 + $0x90c] ss:$48 sps:$4 sm:$0xff]   ;;  %v17167_v16 = vld [vmem:[#allocation10 + $0x308] ss:$48 sps:$4 sm:$0xff]  }
 0x1b3   :  { %2928 = vmatprep.subr.bf16.mxu1 %v17106_v17  ;;  %v17175_v17 = vld [vmem:[#allocation10 + $0x2b4] ss:$48 sps:$4 sm:$0xff]  }
 0x1b5   :  { %2886 = vmatpush1.bf16.msra.mxu0 %v17101_v18  ;;  %v17170_v18 = vld [vmem:[#allocation10 + $0x908] ss:$48 sps:$4 sm:$0xff]  }
 0x1b6   :  { %2887 = vmatprep.subr.bf16.mxu0 %v17109_v19  ;;  %2929 = vmatpush1.bf16.msra.mxu1 %v17104_v20  ;;  %v17178_v19 = vld [vmem:[#allocation10 + $0x8b4] ss:$48 sps:$4 sm:$0xff]   ;;  %v17173_v20 = vld [vmem:[#allocation10 + $0x2b0] ss:$48 sps:$4 sm:$0xff]  }
 0x1b7   :  { %2930 = vmatprep.subr.bf16.mxu1 %v17112_v21  ;;  %v17181_v21 = vld [vmem:[#allocation10 + $0x254] ss:$48 sps:$4 sm:$0xff]  }
 0x1b9   :  { %2888 = vmatpush1.bf16.msra.mxu0 %v17107_v22  ;;  %v17176_v22 = vld [vmem:[#allocation10 + $0x8b0] ss:$48 sps:$4 sm:$0xff]  }
 0x1ba   :  { %2889 = vmatprep.subr.bf16.mxu0 %v17115_v25  ;;  %2931 = vmatpush1.bf16.msra.mxu1 %v17110_v27  ;;  %v17179_v25 = vld [vmem:[#allocation10 + $0x250] ss:$48 sps:$4 sm:$0xff]   ;;  %v17184_v27 = vld [vmem:[#allocation10 + $0x854] ss:$48 sps:$4 sm:$0xff]  }
 0x1bb   :  { %2932 = vmatprep.subr.bf16.mxu1 %v17118_v29  ;;  %v17182_v29 = vld [vmem:[#allocation10 + $0x850] ss:$48 sps:$4 sm:$0xff]  }
 0x1bd   :  { %2890 = vmatpush1.bf16.msra.mxu0 %v17113_v30  ;;  %v17187_v30 = vld [vmem:[#allocation10 + $0x1f4] ss:$48 sps:$4 sm:$0xff]  }
 0x1be   :  { %2891 = vmatprep.subr.bf16.mxu0 %v17121_v31  ;;  %2933 = vmatpush1.bf16.msra.mxu1 %v17116_v32  ;;  %v17185_v31 = vld [vmem:[#allocation10 + $0x1f0] ss:$48 sps:$4 sm:$0xff]   ;;  %v17190_v32 = vld [vmem:[#allocation10 + $0x7f4] ss:$48 sps:$4 sm:$0xff]  }
 0x1bf   :  { %2934 = vmatprep.subr.bf16.mxu1 %v17124_v33  ;;  %v17188_v33 = vld [vmem:[#allocation10 + $0x7f0] ss:$48 sps:$4 sm:$0xff]  }
 0x1c1   :  { %2892 = vmatpush1.bf16.msra.mxu0 %v17119_v34  ;;  %v17193_v34 = vld [vmem:[#allocation10 + $0x194] ss:$48 sps:$4 sm:$0xff]  }
 0x1c2   :  { %2893 = vmatprep.subr.bf16.mxu0 %v17127_v35  ;;  %2935 = vmatpush1.bf16.msra.mxu1 %v17122_v36  ;;  %v17191_v35 = vld [vmem:[#allocation10 + $0x190] ss:$48 sps:$4 sm:$0xff]   ;;  %v17196_v36 = vld [vmem:[#allocation10 + $0x794] ss:$48 sps:$4 sm:$0xff]  }
 0x1c3   :  { %2936 = vmatprep.subr.bf16.mxu1 %v17130_v37  ;;  %v17194_v37 = vld [vmem:[#allocation10 + $0x790] ss:$48 sps:$4 sm:$0xff]  }
 0x1c5   :  { %2894 = vmatpush2.bf16.msra.mxu0 %v17125_v38  ;;  %v17199_v38 = vld [vmem:[#allocation10 + $0x134] ss:$48 sps:$4 sm:$0xff]  }
 0x1c6   :  { %2895 = vmatprep.subr.bf16.mxu0 %v17133_v39  ;;  %2937 = vmatpush2.bf16.msra.mxu1 %v17128_v40  ;;  %v17197_v39 = vld [vmem:[#allocation10 + $0x130] ss:$48 sps:$4 sm:$0xff]   ;;  %v17202_v40 = vld [vmem:[#allocation10 + $0x734] ss:$48 sps:$4 sm:$0xff]  }
 0x1c7   :  { %2938 = vmatprep.subr.bf16.mxu1 %v17136_v41  ;;  %v17200_v41 = vld [vmem:[#allocation10 + $0x730] ss:$48 sps:$4 sm:$0xff]  }
 0x1c9   :  { %2896 = vmatpush2.bf16.msra.mxu0 %v17131_v42  ;;  %v17205_v42 = vld [vmem:[#allocation10 + $0xd4] ss:$48 sps:$4 sm:$0xff]  }
 0x1ca   :  { %2897 = vmatprep.subr.bf16.mxu0 %v17139_v43  ;;  %2939 = vmatpush2.bf16.msra.mxu1 %v17134_v44  ;;  %v17203_v43 = vld [vmem:[#allocation10 + $0xd0] ss:$48 sps:$4 sm:$0xff]   ;;  %v17208_v44 = vld [vmem:[#allocation10 + $0x6d4] ss:$48 sps:$4 sm:$0xff]  }
 0x1cb   :  { %2940 = vmatprep.subr.bf16.mxu1 %v17142_v45  ;;  %v17206_v45 = vld [vmem:[#allocation10 + $0x6d0] ss:$48 sps:$4 sm:$0xff]  }
 0x1cd   :  { %2898 = vmatpush2.bf16.msra.mxu0 %v17137_v46  ;;  %v17211_v46 = vld [vmem:[#allocation10 + $0x74] ss:$48 sps:$4 sm:$0xff]  }
 0x1ce   :  { %2899 = vmatprep.subr.bf16.mxu0 %v17145_v47  ;;  %2941 = vmatpush2.bf16.msra.mxu1 %v17140_v49  ;;  %v17209_v47 = vld [vmem:[#allocation10 + $0x70] ss:$48 sps:$4 sm:$0xff]   ;;  %v17214_v49 = vld [vmem:[#allocation10 + $0x674] ss:$48 sps:$4 sm:$0xff]  }
 0x1cf   :  { %2942 = vmatprep.subr.bf16.mxu1 %v17148_v50  ;;  %v17212_v50 = vld [vmem:[#allocation10 + $0x670] ss:$48 sps:$4 sm:$0xff]  }
 0x1d1   :  { %2900 = vmatpush2.bf16.msra.mxu0 %v17143_v52  ;;  %v17217_v52 = vld [vmem:[#allocation10 + $0x14] ss:$48 sps:$4 sm:$0xff]  }
 0x1d2   :  { %2901 = vmatprep.subr.bf16.mxu0 %v17151_v54  ;;  %2943 = vmatpush2.bf16.msra.mxu1 %v17146_v60  ;;  %v17215_v54 = vld [vmem:[#allocation10 + $0x10] ss:$48 sps:$4 sm:$0xff]   ;;  %v17220_v60 = vld [vmem:[#allocation10 + $0x614] ss:$48 sps:$4 sm:$0xff]  }
 0x1d3   :  { %2944 = vmatprep.subr.bf16.mxu1 %v17154_v63  ;;  %v17218_v63 = vld [vmem:[#allocation10 + $0x610] ss:$48 sps:$4 sm:$0xff]  }
 0x1d5   :  { %2902 = vmatpush2.bf16.msra.mxu0 %v17149_v1  ;;  %v17223_v1 = vld [vmem:[#allocation10 + $0x5b4] ss:$48 sps:$4 sm:$0xff]  }
 0x1d6   :  { %2903 = vmatprep.subr.bf16.mxu0 %v17157_v3  ;;  %2945 = vmatpush2.bf16.msra.mxu1 %v17152_v6  ;;  %v17221_v3 = vld [vmem:[#allocation10 + $0x5b0] ss:$48 sps:$4 sm:$0xff]   ;;  %v17226_v6 = vld [vmem:[#allocation10 + $0xbb4] ss:$48 sps:$4 sm:$0xff]  }
 0x1d7   :  { %2946 = vmatprep.subr.bf16.mxu1 %v17160_v7  ;;  %v17224_v7 = vld [vmem:[#allocation10 + $0xbb0] ss:$48 sps:$4 sm:$0xff]  }
 0x1d9   :  { %2904 = vmatpush2.bf16.msra.mxu0 %v17155_v8  ;;  %v17229_v8 = vld [vmem:[#allocation10 + $0x554] ss:$48 sps:$4 sm:$0xff]  }
 0x1da   :  { %2905 = vmatprep.subr.bf16.mxu0 %v17163_v9  ;;  %2947 = vmatpush2.bf16.msra.mxu1 %v17158_v10  ;;  %v17227_v9 = vld [vmem:[#allocation10 + $0x550] ss:$48 sps:$4 sm:$0xff]   ;;  %v17232_v10 = vld [vmem:[#allocation10 + $0xb54] ss:$48 sps:$4 sm:$0xff]  }
 0x1db   :  { %2948 = vmatprep.subr.bf16.mxu1 %v17166_v11  ;;  %v17230_v11 = vld [vmem:[#allocation10 + $0xb50] ss:$48 sps:$4 sm:$0xff]  }
 0x1dd   :  { %2906 = vmatpush2.bf16.msra.mxu0 %v17161_v12  ;;  %v17235_v12 = vld [vmem:[#allocation10 + $0x4f4] ss:$48 sps:$4 sm:$0xff]  }
 0x1de   :  { %2907 = vmatprep.subr.bf16.mxu0 %v17169_v13  ;;  %2949 = vmatpush2.bf16.msra.mxu1 %v17164_v14  ;;  %v17233_v13 = vld [vmem:[#allocation10 + $0x4f0] ss:$48 sps:$4 sm:$0xff]   ;;  %v17238_v14 = vld [vmem:[#allocation10 + $0xaf4] ss:$48 sps:$4 sm:$0xff]  }
 0x1df   :  { %2950 = vmatprep.subr.bf16.mxu1 %v17172_v15  ;;  %v17236_v15 = vld [vmem:[#allocation10 + $0xaf0] ss:$48 sps:$4 sm:$0xff]  }
 0x1e1   :  { %2908 = vmatpush2.bf16.msra.mxu0 %v17167_v16  ;;  %v17241_v16 = vld [vmem:[#allocation10 + $0x494] ss:$48 sps:$4 sm:$0xff]  }
 0x1e2   :  { %2963 = vmatprep.subr.bf16.mxu0 %v17175_v17  ;;  %2951 = vmatpush2.bf16.msra.mxu1 %v17170_v18  ;;  %v17239_v17 = vld [vmem:[#allocation10 + $0x490] ss:$48 sps:$4 sm:$0xff]   ;;  %v17244_v18 = vld [vmem:[#allocation10 + $0xa94] ss:$48 sps:$4 sm:$0xff]  }
 0x1e3   :  { %3006 = vmatprep.subr.bf16.mxu1 %v17178_v19  ;;  %v17242_v19 = vld [vmem:[#allocation10 + $0xa90] ss:$48 sps:$4 sm:$0xff]  }
 0x1e4   :  { %2910 = vmatmul.mubr.bf16.vlgmr.msra.gmra.mxu0 %v19203_v62 }
 0x1e5   :  { %2964 = vmatpush1.bf16.msra.mxu0 %v17173_v20  ;;  %2995 = vmatprep.mubr.bf16.mxu0 %v19195_v58  ;;  %v17247_v20 = vld [vmem:[#allocation10 + $0x434] ss:$48 sps:$4 sm:$0xff]  }
 0x1e6   :  { %2953 = vmatmul.mubr.bf16.vlgmr.msra.gmra.mxu1 %v19212_v2  ;;  %2965 = vmatprep.subr.bf16.mxu0 %v17181_v21  ;;  %v17245_v21 = vld [vmem:[#allocation10 + $0x430] ss:$48 sps:$4 sm:$0xff]  }
 0x1e7   :  { %3007 = vmatpush1.bf16.msra.mxu1 %v17176_v22  ;;  %3038 = vmatprep.mubr.bf16.mxu1 %v19207_v0  ;;  %v17250_v22 = vld [vmem:[#allocation10 + $0xa34] ss:$48 sps:$4 sm:$0xff]  }
 0x1e8   :  { %3008 = vmatprep.subr.bf16.mxu1 %v17184_v27  ;;  %v17253_v27 = vld [vmem:[#allocation10 + $0x3d4] ss:$48 sps:$4 sm:$0xff]  }
 0x1e9   :  { %2966 = vmatpush1.bf16.msra.mxu0 %v17179_v25  ;;  %v17248_v25 = vld [vmem:[#allocation10 + $0xa30] ss:$48 sps:$4 sm:$0xff]  }
 0x1ea   :  { %2967 = vmatprep.subr.bf16.mxu0 %v17187_v30  ;;  %v17256_v30 = vld [vmem:[#allocation10 + $0x9d4] ss:$48 sps:$4 sm:$0xff]  }
 0x1eb   :  { %3009 = vmatpush1.bf16.msra.mxu1 %v17182_v29  ;;  %v17251_v29 = vld [vmem:[#allocation10 + $0x3d0] ss:$48 sps:$4 sm:$0xff]  }
 0x1ec   :  { %3010 = vmatprep.subr.bf16.mxu1 %v17190_v32  ;;  %v17259_v32 = vld [vmem:[#allocation10 + $0x374] ss:$48 sps:$4 sm:$0xff]  }
 0x1ed   :  { %2968 = vmatpush1.bf16.msra.mxu0 %v17185_v31  ;;  %v17254_v31 = vld [vmem:[#allocation10 + $0x9d0] ss:$48 sps:$4 sm:$0xff]  }
 0x1ee   :  { %2969 = vmatprep.subr.bf16.mxu0 %v17193_v34  ;;  %v17262_v34 = vld [vmem:[#allocation10 + $0x974] ss:$48 sps:$4 sm:$0xff]  }
 0x1ef   :  { %3011 = vmatpush1.bf16.msra.mxu1 %v17188_v33  ;;  %v17257_v33 = vld [vmem:[#allocation10 + $0x370] ss:$48 sps:$4 sm:$0xff]  }
 0x1f0   :  { %3012 = vmatprep.subr.bf16.mxu1 %v17196_v36  ;;  %v17265_v36 = vld [vmem:[#allocation10 + $0x314] ss:$48 sps:$4 sm:$0xff]  }
 0x1f1   :  { %2970 = vmatpush1.bf16.msra.mxu0 %v17191_v35  ;;  %v17260_v35 = vld [vmem:[#allocation10 + $0x970] ss:$48 sps:$4 sm:$0xff]  }
 0x1f2   :  { %2971 = vmatprep.subr.bf16.mxu0 %v17199_v38  ;;  %v17268_v38 = vld [vmem:[#allocation10 + $0x914] ss:$48 sps:$4 sm:$0xff]  }
 0x1f3   :  { %3013 = vmatpush1.bf16.msra.mxu1 %v17194_v37  ;;  %v17263_v37 = vld [vmem:[#allocation10 + $0x310] ss:$48 sps:$4 sm:$0xff]  }
 0x1f4   :  { %3014 = vmatprep.subr.bf16.mxu1 %v17202_v40  ;;  %v17271_v40 = vld [vmem:[#allocation10 + $0x2bc] ss:$48 sps:$4 sm:$0xff]  }
 0x1f5   :  { %2972 = vmatpush1.bf16.msra.mxu0 %v17197_v39  ;;  %v17266_v39 = vld [vmem:[#allocation10 + $0x910] ss:$48 sps:$4 sm:$0xff]  }
 0x1f6   :  { %2973 = vmatprep.subr.bf16.mxu0 %v17205_v42  ;;  %v17274_v42 = vld [vmem:[#allocation10 + $0x8bc] ss:$48 sps:$4 sm:$0xff]  }
 0x1f7   :  { %3015 = vmatpush1.bf16.msra.mxu1 %v17200_v41  ;;  %v17269_v41 = vld [vmem:[#allocation10 + $0x2b8] ss:$48 sps:$4 sm:$0xff]  }
 0x1f8   :  { %3016 = vmatprep.subr.bf16.mxu1 %v17208_v44  ;;  %v17277_v44 = vld [vmem:[#allocation10 + $0x25c] ss:$48 sps:$4 sm:$0xff]  }
 0x1f9   :  { %2974 = vmatpush1.bf16.msra.mxu0 %v17203_v43  ;;  %v17272_v43 = vld [vmem:[#allocation10 + $0x8b8] ss:$48 sps:$4 sm:$0xff]  }
 0x1fa   :  { %2975 = vmatprep.subr.bf16.mxu0 %v17211_v46  ;;  %v17280_v46 = vld [vmem:[#allocation10 + $0x85c] ss:$48 sps:$4 sm:$0xff]  }
 0x1fb   :  { %3017 = vmatpush1.bf16.msra.mxu1 %v17206_v45  ;;  %v17275_v45 = vld [vmem:[#allocation10 + $0x258] ss:$48 sps:$4 sm:$0xff]  }
 0x1fc   :  { %3018 = vmatprep.subr.bf16.mxu1 %v17214_v49  ;;  %v17283_v49 = vld [vmem:[#allocation10 + $0x1fc] ss:$48 sps:$4 sm:$0xff]  }
 0x1fd   :  { %2976 = vmatpush1.bf16.msra.mxu0 %v17209_v47  ;;  %v17278_v47 = vld [vmem:[#allocation10 + $0x858] ss:$48 sps:$4 sm:$0xff]  }
 0x1fe   :  { %2977 = vmatprep.subr.bf16.mxu0 %v17217_v52  ;;  %v17286_v52 = vld [vmem:[#allocation10 + $0x7fc] ss:$48 sps:$4 sm:$0xff]  }
 0x1ff   :  { %3019 = vmatpush1.bf16.msra.mxu1 %v17212_v50  ;;  %v17281_v50 = vld [vmem:[#allocation10 + $0x1f8] ss:$48 sps:$4 sm:$0xff]  }
 0x200   :  { %3020 = vmatprep.subr.bf16.mxu1 %v17220_v60  ;;  %v17289_v60 = vld [vmem:[#allocation10 + $0x19c] ss:$48 sps:$4 sm:$0xff]  }
 0x201   :  { %2978 = vmatpush1.bf16.msra.mxu0 %v17215_v54  ;;  %v17284_v54 = vld [vmem:[#allocation10 + $0x7f8] ss:$48 sps:$4 sm:$0xff]  }
 0x202   :  { %2979 = vmatprep.subr.bf16.mxu0 %v17223_v1  ;;  %v17292_v1 = vld [vmem:[#allocation10 + $0x79c] ss:$48 sps:$4 sm:$0xff]  }
 0x203   :  { %3021 = vmatpush1.bf16.msra.mxu1 %v17218_v63  ;;  %v17287_v63 = vld [vmem:[#allocation10 + $0x198] ss:$48 sps:$4 sm:$0xff]  }
 0x204   :  { %3022 = vmatprep.subr.bf16.mxu1 %v17226_v6  ;;  %v17295_v6 = vld [vmem:[#allocation10 + $0x13c] ss:$48 sps:$4 sm:$0xff]  }
 0x205   :  { %2980 = vmatpush2.bf16.msra.mxu0 %v17221_v3  ;;  %v17290_v3 = vld [vmem:[#allocation10 + $0x798] ss:$48 sps:$4 sm:$0xff]  }
 0x206   :  { %2981 = vmatprep.subr.bf16.mxu0 %v17229_v8  ;;  %v17298_v8 = vld [vmem:[#allocation10 + $0x73c] ss:$48 sps:$4 sm:$0xff]  }
 0x207   :  { %3023 = vmatpush2.bf16.msra.mxu1 %v17224_v7  ;;  %v17293_v7 = vld [vmem:[#allocation10 + $0x138] ss:$48 sps:$4 sm:$0xff]  }
 0x208   :  { %3024 = vmatprep.subr.bf16.mxu1 %v17232_v10  ;;  %v17301_v10 = vld [vmem:[#allocation10 + $0xdc] ss:$48 sps:$4 sm:$0xff]  }
 0x209   :  { %2982 = vmatpush2.bf16.msra.mxu0 %v17227_v9  ;;  %v17296_v9 = vld [vmem:[#allocation10 + $0x738] ss:$48 sps:$4 sm:$0xff]  }
 0x20a   :  { %2983 = vmatprep.subr.bf16.mxu0 %v17235_v12  ;;  %v17304_v12 = vld [vmem:[#allocation10 + $0x6dc] ss:$48 sps:$4 sm:$0xff]  }
 0x20b   :  { %3025 = vmatpush2.bf16.msra.mxu1 %v17230_v11  ;;  %v17299_v11 = vld [vmem:[#allocation10 + $0xd8] ss:$48 sps:$4 sm:$0xff]  }
 0x20c   :  { %3026 = vmatprep.subr.bf16.mxu1 %v17238_v14  ;;  %v17307_v14 = vld [vmem:[#allocation10 + $0x7c] ss:$48 sps:$4 sm:$0xff]  }
 0x20d   :  { %2984 = vmatpush2.bf16.msra.mxu0 %v17233_v13  ;;  %v17302_v13 = vld [vmem:[#allocation10 + $0x6d8] ss:$48 sps:$4 sm:$0xff]  }
 0x20e   :  { %2985 = vmatprep.subr.bf16.mxu0 %v17241_v16  ;;  %v17310_v16 = vld [vmem:[#allocation10 + $0x67c] ss:$48 sps:$4 sm:$0xff]  }
 0x20f   :  { %3027 = vmatpush2.bf16.msra.mxu1 %v17236_v15  ;;  %v17305_v15 = vld [vmem:[#allocation10 + $0x78] ss:$48 sps:$4 sm:$0xff]  }
 0x210   :  { %3028 = vmatprep.subr.bf16.mxu1 %v17244_v18  ;;  %v17313_v18 = vld [vmem:[#allocation10 + $0x1c] ss:$48 sps:$4 sm:$0xff]  }
 0x211   :  { %2986 = vmatpush2.bf16.msra.mxu0 %v17239_v17  ;;  %v17308_v17 = vld [vmem:[#allocation10 + $0x678] ss:$48 sps:$4 sm:$0xff]  }
 0x212   :  { %2987 = vmatprep.subr.bf16.mxu0 %v17247_v20  ;;  %v17316_v20 = vld [vmem:[#allocation10 + $0x61c] ss:$48 sps:$4 sm:$0xff]  }
 0x213   :  { %3029 = vmatpush2.bf16.msra.mxu1 %v17242_v19  ;;  %v17311_v19 = vld [vmem:[#allocation10 + $0x18] ss:$48 sps:$4 sm:$0xff]  }
 0x214   :  { %3030 = vmatprep.subr.bf16.mxu1 %v17250_v22  ;;  %v17319_v22 = vld [vmem:[#allocation10 + $0x5bc] ss:$48 sps:$4 sm:$0xff]  }
 0x215   :  { %2988 = vmatpush2.bf16.msra.mxu0 %v17245_v21  ;;  %v17314_v21 = vld [vmem:[#allocation10 + $0x618] ss:$48 sps:$4 sm:$0xff]  }
 0x216   :  { %2989 = vmatprep.subr.bf16.mxu0 %v17253_v27  ;;  %v17322_v27 = vld [vmem:[#allocation10 + $0xbbc] ss:$48 sps:$4 sm:$0xff]  }
 0x217   :  { %3031 = vmatpush2.bf16.msra.mxu1 %v17248_v25  ;;  %v17317_v25 = vld [vmem:[#allocation10 + $0x5b8] ss:$48 sps:$4 sm:$0xff]  }
 0x218   :  { %3032 = vmatprep.subr.bf16.mxu1 %v17256_v30  ;;  %v17325_v30 = vld [vmem:[#allocation10 + $0x55c] ss:$48 sps:$4 sm:$0xff]  }
 0x219   :  { %2990 = vmatpush2.bf16.msra.mxu0 %v17251_v29  ;;  %v17320_v29 = vld [vmem:[#allocation10 + $0xbb8] ss:$48 sps:$4 sm:$0xff]  }
 0x21a   :  { %2991 = vmatprep.subr.bf16.mxu0 %v17259_v32  ;;  %v17328_v32 = vld [vmem:[#allocation10 + $0xb5c] ss:$48 sps:$4 sm:$0xff]  }
 0x21b   :  { %3033 = vmatpush2.bf16.msra.mxu1 %v17254_v31  ;;  %v17323_v31 = vld [vmem:[#allocation10 + $0x558] ss:$48 sps:$4 sm:$0xff]  }
 0x21c   :  { %3034 = vmatprep.subr.bf16.mxu1 %v17262_v34  ;;  %v17331_v34 = vld [vmem:[#allocation10 + $0x4fc] ss:$48 sps:$4 sm:$0xff]  }
 0x21d   :  { %2992 = vmatpush2.bf16.msra.mxu0 %v17257_v33  ;;  %v17326_v33 = vld [vmem:[#allocation10 + $0xb58] ss:$48 sps:$4 sm:$0xff]  }
 0x21e   :  { %2993 = vmatprep.subr.bf16.mxu0 %v17265_v36  ;;  %v17334_v36 = vld [vmem:[#allocation10 + $0xafc] ss:$48 sps:$4 sm:$0xff]  }
 0x21f   :  { %3035 = vmatpush2.bf16.msra.mxu1 %v17260_v35  ;;  %v17329_v35 = vld [vmem:[#allocation10 + $0x4f8] ss:$48 sps:$4 sm:$0xff]  }
 0x220   :  { %3036 = vmatprep.subr.bf16.mxu1 %v17268_v38  ;;  %v17337_v38 = vld [vmem:[#allocation10 + $0x49c] ss:$48 sps:$4 sm:$0xff]  }
 0x221   :  { %2994 = vmatpush2.bf16.msra.mxu0 %v17263_v37  ;;  %v17332_v37 = vld [vmem:[#allocation10 + $0xaf8] ss:$48 sps:$4 sm:$0xff]  }
 0x222   :  { %3049 = vmatprep.subr.bf16.mxu0 %v17271_v40  ;;  %v17340_v40 = vld [vmem:[#allocation10 + $0xa9c] ss:$48 sps:$4 sm:$0xff]  }
 0x223   :  { %3037 = vmatpush2.bf16.msra.mxu1 %v17266_v39  ;;  %v17335_v39 = vld [vmem:[#allocation10 + $0x498] ss:$48 sps:$4 sm:$0xff]  }
 0x224   :  { %2996 = vmatmul.mubr.bf16.vlgmr.msra.gmra.mxu0 %v19203_v62  ;;  %3092 = vmatprep.subr.bf16.mxu1 %v17274_v42  ;;  %v17343_v42 = vld [vmem:[#allocation10 + $0x43c] ss:$48 sps:$4 sm:$0xff]  }
 0x225   :  { %3050 = vmatpush1.bf16.msra.mxu0 %v17269_v41  ;;  %3081 = vmatprep.mubr.bf16.mxu0 %v19195_v58  ;;  %v17338_v41 = vld [vmem:[#allocation10 + $0xa98] ss:$48 sps:$4 sm:$0xff]  }
 0x226   :  { %3039 = vmatmul.mubr.bf16.vlgmr.msra.gmra.mxu1 %v19212_v2  ;;  %3051 = vmatprep.subr.bf16.mxu0 %v17277_v44  ;;  %v17346_v44 = vld [vmem:[#allocation10 + $0xa3c] ss:$48 sps:$4 sm:$0xff]  }
 0x227   :  { %3093 = vmatpush1.bf16.msra.mxu1 %v17272_v43  ;;  %3124 = vmatprep.mubr.bf16.mxu1 %v19207_v0  ;;  %v17341_v43 = vld [vmem:[#allocation10 + $0x438] ss:$48 sps:$4 sm:$0xff]  }
 0x228   :  { %3094 = vmatprep.subr.bf16.mxu1 %v17280_v46  ;;  %v17349_v46 = vld [vmem:[#allocation10 + $0x3dc] ss:$48 sps:$4 sm:$0xff]  }
 0x229   :  { %3052 = vmatpush1.bf16.msra.mxu0 %v17275_v45  ;;  %v17344_v45 = vld [vmem:[#allocation10 + $0xa38] ss:$48 sps:$4 sm:$0xff]  }
 0x22a   :  { %3053 = vmatprep.subr.bf16.mxu0 %v17283_v49  ;;  %v17352_v49 = vld [vmem:[#allocation10 + $0x9dc] ss:$48 sps:$4 sm:$0xff]  }
 0x22b   :  { %3095 = vmatpush1.bf16.msra.mxu1 %v17278_v47  ;;  %v17347_v47 = vld [vmem:[#allocation10 + $0x3d8] ss:$48 sps:$4 sm:$0xff]  }
 0x22c   :  { %3096 = vmatprep.subr.bf16.mxu1 %v17286_v52  ;;  %v17355_v52 = vld [vmem:[#allocation10 + $0x37c] ss:$48 sps:$4 sm:$0xff]  }
 0x22d   :  { %3054 = vmatpush1.bf16.msra.mxu0 %v17281_v50  ;;  %v17350_v50 = vld [vmem:[#allocation10 + $0x9d8] ss:$48 sps:$4 sm:$0xff]  }
 0x22e   :  { %3055 = vmatprep.subr.bf16.mxu0 %v17289_v60  ;;  %v17358_v60 = vld [vmem:[#allocation10 + $0x97c] ss:$48 sps:$4 sm:$0xff]  }
 0x22f   :  { %3097 = vmatpush1.bf16.msra.mxu1 %v17284_v54  ;;  %v17353_v54 = vld [vmem:[#allocation10 + $0x378] ss:$48 sps:$4 sm:$0xff]  }
 0x230   :  { %3098 = vmatprep.subr.bf16.mxu1 %v17292_v1  ;;  %v17361_v1 = vld [vmem:[#allocation10 + $0x31c] ss:$48 sps:$4 sm:$0xff]  }
 0x231   :  { %3056 = vmatpush1.bf16.msra.mxu0 %v17287_v63  ;;  %v17356_v63 = vld [vmem:[#allocation10 + $0x978] ss:$48 sps:$4 sm:$0xff]  }
 0x232   :  { %3057 = vmatprep.subr.bf16.mxu0 %v17295_v6  ;;  %v17364_v6 = vld [vmem:[#allocation10 + $0x91c] ss:$48 sps:$4 sm:$0xff]  }
 0x233   :  { %3099 = vmatpush1.bf16.msra.mxu1 %v17290_v3  ;;  %v17359_v3 = vld [vmem:[#allocation10 + $0x318] ss:$48 sps:$4 sm:$0xff]  }
 0x234   :  { %3100 = vmatprep.subr.bf16.mxu1 %v17298_v8  ;;  %v17367_v8 = vld [vmem:[#allocation10 + $0x2c4] ss:$48 sps:$4 sm:$0xff]  }
 0x235   :  { %3058 = vmatpush1.bf16.msra.mxu0 %v17293_v7  ;;  %v17362_v7 = vld [vmem:[#allocation10 + $0x918] ss:$48 sps:$4 sm:$0xff]  }
 0x236   :  { %3059 = vmatprep.subr.bf16.mxu0 %v17301_v10  ;;  %v17370_v10 = vld [vmem:[#allocation10 + $0x8c4] ss:$48 sps:$4 sm:$0xff]  }
 0x237   :  { %3101 = vmatpush1.bf16.msra.mxu1 %v17296_v9  ;;  %v17365_v9 = vld [vmem:[#allocation10 + $0x2c0] ss:$48 sps:$4 sm:$0xff]  }
 0x238   :  { %3102 = vmatprep.subr.bf16.mxu1 %v17304_v12  ;;  %v17373_v12 = vld [vmem:[#allocation10 + $0x264] ss:$48 sps:$4 sm:$0xff]  }
 0x239   :  { %3060 = vmatpush1.bf16.msra.mxu0 %v17299_v11  ;;  %v17368_v11 = vld [vmem:[#allocation10 + $0x8c0] ss:$48 sps:$4 sm:$0xff]  }
 0x23a   :  { %3061 = vmatprep.subr.bf16.mxu0 %v17307_v14  ;;  %v17371_v14 = vld [vmem:[#allocation10 + $0x260] ss:$48 sps:$4 sm:$0xff]  }
 0x23b   :  { %3103 = vmatpush1.bf16.msra.mxu1 %v17302_v13  ;;  %v17376_v13 = vld [vmem:[#allocation10 + $0x864] ss:$48 sps:$4 sm:$0xff]  }
 0x23c   :  { %3104 = vmatprep.subr.bf16.mxu1 %v17310_v16  ;;  %v17374_v16 = vld [vmem:[#allocation10 + $0x860] ss:$48 sps:$4 sm:$0xff]  }
 0x23d   :  { %3062 = vmatpush1.bf16.msra.mxu0 %v17305_v15  ;;  %v17379_v15 = vld [vmem:[#allocation10 + $0x204] ss:$48 sps:$4 sm:$0xff]  }
 0x23e   :  { %3063 = vmatprep.subr.bf16.mxu0 %v17313_v18  ;;  %v17377_v18 = vld [vmem:[#allocation10 + $0x200] ss:$48 sps:$4 sm:$0xff]  }
 0x23f   :  { %3105 = vmatpush1.bf16.msra.mxu1 %v17308_v17  ;;  %v17382_v17 = vld [vmem:[#allocation10 + $0x804] ss:$48 sps:$4 sm:$0xff]  }
 0x240   :  { %3106 = vmatprep.subr.bf16.mxu1 %v17316_v20  ;;  %v17380_v20 = vld [vmem:[#allocation10 + $0x800] ss:$48 sps:$4 sm:$0xff]  }
 0x241   :  { %3064 = vmatpush1.bf16.msra.mxu0 %v17311_v19  ;;  %v17385_v19 = vld [vmem:[#allocation10 + $0x1a4] ss:$48 sps:$4 sm:$0xff]  }
 0x242   :  { %3065 = vmatprep.subr.bf16.mxu0 %v17319_v22  ;;  %v17383_v22 = vld [vmem:[#allocation10 + $0x1a0] ss:$48 sps:$4 sm:$0xff]  }
 0x243   :  { %3107 = vmatpush1.bf16.msra.mxu1 %v17314_v21  ;;  %v17388_v21 = vld [vmem:[#allocation10 + $0x7a4] ss:$48 sps:$4 sm:$0xff]  }
 0x244   :  { %3108 = vmatprep.subr.bf16.mxu1 %v17322_v27  ;;  %v17386_v27 = vld [vmem:[#allocation10 + $0x7a0] ss:$48 sps:$4 sm:$0xff]  }
 0x245   :  { %3066 = vmatpush2.bf16.msra.mxu0 %v17317_v25  ;;  %v17391_v25 = vld [vmem:[#allocation10 + $0x144] ss:$48 sps:$4 sm:$0xff]  }
 0x246   :  { %3067 = vmatprep.subr.bf16.mxu0 %v17325_v30  ;;  %v17389_v30 = vld [vmem:[#allocation10 + $0x140] ss:$48 sps:$4 sm:$0xff]  }
 0x247   :  { %3109 = vmatpush2.bf16.msra.mxu1 %v17320_v29  ;;  %v17394_v29 = vld [vmem:[#allocation10 + $0x744] ss:$48 sps:$4 sm:$0xff]  }
 0x248   :  { %3110 = vmatprep.subr.bf16.mxu1 %v17328_v32  ;;  %v17392_v32 = vld [vmem:[#allocation10 + $0x740] ss:$48 sps:$4 sm:$0xff]  }
 0x249   :  { %3068 = vmatpush2.bf16.msra.mxu0 %v17323_v31  ;;  %v17397_v31 = vld [vmem:[#allocation10 + $0xe4] ss:$48 sps:$4 sm:$0xff]  }
 0x24a   :  { %3069 = vmatprep.subr.bf16.mxu0 %v17331_v34  ;;  %v17395_v34 = vld [vmem:[#allocation10 + $0xe0] ss:$48 sps:$4 sm:$0xff]  }
 0x24b   :  { %3111 = vmatpush2.bf16.msra.mxu1 %v17326_v33  ;;  %v17400_v33 = vld [vmem:[#allocation10 + $0x6e4] ss:$48 sps:$4 sm:$0xff]  }
 0x24c   :  { %3112 = vmatprep.subr.bf16.mxu1 %v17334_v36  ;;  %v17398_v36 = vld [vmem:[#allocation10 + $0x6e0] ss:$48 sps:$4 sm:$0xff]  }
 0x24d   :  { %3070 = vmatpush2.bf16.msra.mxu0 %v17329_v35  ;;  %v17403_v35 = vld [vmem:[#allocation10 + $0x84] ss:$48 sps:$4 sm:$0xff]  }
 0x24e   :  { %3071 = vmatprep.subr.bf16.mxu0 %v17337_v38  ;;  %v17401_v38 = vld [vmem:[#allocation10 + $0x80] ss:$48 sps:$4 sm:$0xff]  }
 0x24f   :  { %3113 = vmatpush2.bf16.msra.mxu1 %v17332_v37  ;;  %v17406_v37 = vld [vmem:[#allocation10 + $0x684] ss:$48 sps:$4 sm:$0xff]  }
 0x250   :  { %3114 = vmatprep.subr.bf16.mxu1 %v17340_v40  ;;  %v17404_v40 = vld [vmem:[#allocation10 + $0x680] ss:$48 sps:$4 sm:$0xff]  }
 0x251   :  { %3072 = vmatpush2.bf16.msra.mxu0 %v17335_v39  ;;  %v17409_v39 = vld [vmem:[#allocation10 + $0x24] ss:$48 sps:$4 sm:$0xff]  }
 0x252   :  { %3073 = vmatprep.subr.bf16.mxu0 %v17343_v42  ;;  %v17407_v42 = vld [vmem:[#allocation10 + $0x20] ss:$48 sps:$4 sm:$0xff]  }
 0x253   :  { %3115 = vmatpush2.bf16.msra.mxu1 %v17338_v41  ;;  %v17412_v41 = vld [vmem:[#allocation10 + $0x624] ss:$48 sps:$4 sm:$0xff]  }
 0x254   :  { %3116 = vmatprep.subr.bf16.mxu1 %v17346_v44  ;;  %v17410_v44 = vld [vmem:[#allocation10 + $0x620] ss:$48 sps:$4 sm:$0xff]  }
 0x255   :  { %3074 = vmatpush2.bf16.msra.mxu0 %v17341_v43  ;;  %v17415_v43 = vld [vmem:[#allocation10 + $0x5c4] ss:$48 sps:$4 sm:$0xff]  }
 0x256   :  { %3075 = vmatprep.subr.bf16.mxu0 %v17349_v46  ;;  %v17413_v46 = vld [vmem:[#allocation10 + $0x5c0] ss:$48 sps:$4 sm:$0xff]  }
 0x257   :  { %3117 = vmatpush2.bf16.msra.mxu1 %v17344_v45  ;;  %v17418_v45 = vld [vmem:[#allocation10 + $0xbc4] ss:$48 sps:$4 sm:$0xff]  }
 0x258   :  { %3118 = vmatprep.subr.bf16.mxu1 %v17352_v49  ;;  %v17416_v49 = vld [vmem:[#allocation10 + $0xbc0] ss:$48 sps:$4 sm:$0xff]  }
 0x259   :  { %3076 = vmatpush2.bf16.msra.mxu0 %v17347_v47  ;;  %v17421_v47 = vld [vmem:[#allocation10 + $0x564] ss:$48 sps:$4 sm:$0xff]  }
 0x25a   :  { %3077 = vmatprep.subr.bf16.mxu0 %v17355_v52  ;;  %v17419_v52 = vld [vmem:[#allocation10 + $0x560] ss:$48 sps:$4 sm:$0xff]  }
 0x25b   :  { %3119 = vmatpush2.bf16.msra.mxu1 %v17350_v50  ;;  %v17424_v50 = vld [vmem:[#allocation10 + $0xb64] ss:$48 sps:$4 sm:$0xff]  }
 0x25c   :  { %3120 = vmatprep.subr.bf16.mxu1 %v17358_v60  ;;  %v17422_v60 = vld [vmem:[#allocation10 + $0xb60] ss:$48 sps:$4 sm:$0xff]  }
 0x25d   :  { %3078 = vmatpush2.bf16.msra.mxu0 %v17353_v54  ;;  %v17427_v54 = vld [vmem:[#allocation10 + $0x504] ss:$48 sps:$4 sm:$0xff]  }
 0x25e   :  { %3079 = vmatprep.subr.bf16.mxu0 %v17361_v1  ;;  %v17425_v1 = vld [vmem:[#allocation10 + $0x500] ss:$48 sps:$4 sm:$0xff]  }
 0x25f   :  { %3121 = vmatpush2.bf16.msra.mxu1 %v17356_v63  ;;  %v17430_v63 = vld [vmem:[#allocation10 + $0xb04] ss:$48 sps:$4 sm:$0xff]  }
 0x260   :  { %3122 = vmatprep.subr.bf16.mxu1 %v17364_v6  ;;  %v17428_v6 = vld [vmem:[#allocation10 + $0xb00] ss:$48 sps:$4 sm:$0xff]  }
 0x261   :  { %3080 = vmatpush2.bf16.msra.mxu0 %v17359_v3  ;;  %v17433_v3 = vld [vmem:[#allocation10 + $0x4a4] ss:$48 sps:$4 sm:$0xff]  }
 0x262   :  { %3135 = vmatprep.subr.bf16.mxu0 %v17367_v8  ;;  %v17431_v8 = vld [vmem:[#allocation10 + $0x4a0] ss:$48 sps:$4 sm:$0xff]  }
 0x263   :  { %3123 = vmatpush2.bf16.msra.mxu1 %v17362_v7  ;;  %v17436_v7 = vld [vmem:[#allocation10 + $0xaa4] ss:$48 sps:$4 sm:$0xff]  }
 0x264   :  { %3082 = vmatmul.mubr.bf16.vlgmr.msra.gmra.mxu0 %v19203_v62  ;;  %3178 = vmatprep.subr.bf16.mxu1 %v17370_v10  ;;  %v17434_v10 = vld [vmem:[#allocation10 + $0xaa0] ss:$48 sps:$4 sm:$0xff]  }
 0x265   :  { %3136 = vmatpush1.bf16.msra.mxu0 %v17365_v9  ;;  %3167 = vmatprep.mubr.bf16.mxu0 %v19195_v58  ;;  %v17439_v9 = vld [vmem:[#allocation10 + $0x444] ss:$48 sps:$4 sm:$0xff]  }
 0x266   :  { %3125 = vmatmul.mubr.bf16.vlgmr.msra.gmra.mxu1 %v19212_v2  ;;  %3137 = vmatprep.subr.bf16.mxu0 %v17373_v12  ;;  %v17437_v12 = vld [vmem:[#allocation10 + $0x440] ss:$48 sps:$4 sm:$0xff]  }
 0x267   :  { %3179 = vmatpush1.bf16.msra.mxu1 %v17368_v11  ;;  %3210 = vmatprep.mubr.bf16.mxu1 %v19207_v0  ;;  %v17442_v11 = vld [vmem:[#allocation10 + $0xa44] ss:$48 sps:$4 sm:$0xff]  }
 0x268   :  { %3180 = vmatprep.subr.bf16.mxu1 %v17376_v13  ;;  %v17445_v13 = vld [vmem:[#allocation10 + $0x3e4] ss:$48 sps:$4 sm:$0xff]  }
 0x269   :  { %3138 = vmatpush1.bf16.msra.mxu0 %v17371_v14  ;;  %v17440_v14 = vld [vmem:[#allocation10 + $0xa40] ss:$48 sps:$4 sm:$0xff]  }
 0x26a   :  { %3139 = vmatprep.subr.bf16.mxu0 %v17379_v15  ;;  %v17448_v15 = vld [vmem:[#allocation10 + $0x9e4] ss:$48 sps:$4 sm:$0xff]  }
 0x26b   :  { %3181 = vmatpush1.bf16.msra.mxu1 %v17374_v16  ;;  %v17443_v16 = vld [vmem:[#allocation10 + $0x3e0] ss:$48 sps:$4 sm:$0xff]  }
 0x26c   :  { %3182 = vmatprep.subr.bf16.mxu1 %v17382_v17  ;;  %v17451_v17 = vld [vmem:[#allocation10 + $0x384] ss:$48 sps:$4 sm:$0xff]  }
 0x26d   :  { %3140 = vmatpush1.bf16.msra.mxu0 %v17377_v18  ;;  %v17446_v18 = vld [vmem:[#allocation10 + $0x9e0] ss:$48 sps:$4 sm:$0xff]  }
 0x26e   :  { %3141 = vmatprep.subr.bf16.mxu0 %v17385_v19  ;;  %v19231_v19 = vpop.f32.mrf.mxu0 }
 0x26f   :  { %3183 = vmatpush1.bf16.msra.mxu1 %v17380_v20  ;;  %v17454_v20 = vld [vmem:[#allocation10 + $0x984] ss:$48 sps:$4 sm:$0xff]  }
 0x270   :  { %3184 = vmatprep.subr.bf16.mxu1 %v17388_v21  ;;  %v17449_v21 = vld [vmem:[#allocation10 + $0x380] ss:$48 sps:$4 sm:$0xff]  }
 0x271   :  { %3142 = vmatpush1.bf16.msra.mxu0 %v17383_v22  ;;  %v19233_v22 = vpop.f32.mrf.mxu1 }
 0x272   :  { %3143 = vmatprep.subr.bf16.mxu0 %v17391_v25  ;;  %v17457_v25 = vld [vmem:[#allocation10 + $0x324] ss:$48 sps:$4 sm:$0xff]  }
 0x273   :  { %3185 = vmatpush1.bf16.msra.mxu1 %v17386_v27  ;;  %v17452_v27 = vld [vmem:[#allocation10 + $0x980] ss:$48 sps:$4 sm:$0xff]  }
 0x274   :  { %3186 = vmatprep.subr.bf16.mxu1 %v17394_v29  ;;  %v19235_v29 = vpop.f32.mrf.mxu0 }
 0x275   :  { %3144 = vmatpush1.bf16.msra.mxu0 %v17389_v30  ;;  %v17460_v30 = vld [vmem:[#allocation10 + $0x924] ss:$48 sps:$4 sm:$0xff]  }
 0x276   :  { %3145 = vmatprep.subr.bf16.mxu0 %v17397_v31  ;;  %v17455_v31 = vld [vmem:[#allocation10 + $0x320] ss:$48 sps:$4 sm:$0xff]  }
 0x277   :  { %3187 = vmatpush1.bf16.msra.mxu1 %v17392_v32  ;;  %v19237_v32 = vpop.f32.mrf.mxu1 }
 0x278   :  { %3188 = vmatprep.subr.bf16.mxu1 %v17400_v33  ;;  %v17463_v33 = vld [vmem:[#allocation10 + $0x2cc] ss:$48 sps:$4 sm:$0xff]  }
 0x279   :  { %3146 = vmatpush1.bf16.msra.mxu0 %v17395_v34  ;;  %v17458_v34 = vld [vmem:[#allocation10 + $0x920] ss:$48 sps:$4 sm:$0xff]  }
 0x27a   :  { %3147 = vmatprep.subr.bf16.mxu0 %v17403_v35  ;;  %v19239_v35 = vld [vmem:[#allocation11] sm:$0xff] }
 0x27b   :  { %3189 = vmatpush1.bf16.msra.mxu1 %v17398_v36  ;;  %v19241_v36 = vpop.f32.mrf.mxu0 }
 0x27c   :  { %3190 = vmatprep.subr.bf16.mxu1 %v17406_v37  ;;  %v17466_v37 = vld [vmem:[#allocation10 + $0x8cc] ss:$48 sps:$4 sm:$0xff]  }
 0x27d   :  { %3148 = vmatpush1.bf16.msra.mxu0 %v17401_v38  ;;  %v17461_v38 = vld [vmem:[#allocation10 + $0x2c8] ss:$48 sps:$4 sm:$0xff]  }
 0x27e   :  { %3149 = vmatprep.subr.bf16.mxu0 %v17409_v39  ;;  %v19243_v39 = vpop.f32.mrf.mxu1 }
 0x27f   :  { %3191 = vmatpush1.bf16.msra.mxu1 %v17404_v40  ;;  %v17469_v40 = vld [vmem:[#allocation10 + $0x26c] ss:$48 sps:$4 sm:$0xff]  }
 0x280   :  { %3192 = vmatprep.subr.bf16.mxu1 %v17412_v41  ;;  %v822_v41 = vrot.slane %v19239_v35, %v19175_v28 }
 0x281   :  { %3150 = vmatpush1.bf16.msra.mxu0 %v17407_v42  ;;  %v17464_v42 = vld [vmem:[#allocation10 + $0x8c8] ss:$48 sps:$4 sm:$0xff]  }
 0x282   :  { %3151 = vmatprep.subr.bf16.mxu0 %v17415_v43  ;;  %v19247_v43 = vpop.f32.mrf.mxu0 }
 0x283   :  { %3193 = vmatpush1.bf16.msra.mxu1 %v17410_v44  ;;  %v17472_v44 = vld [vmem:[#allocation10 + $0x86c] ss:$48 sps:$4 sm:$0xff]  }
 0x284   :  { %3194 = vmatprep.subr.bf16.mxu1 %v17418_v45  ;;  %v19251_v45 = vrot.slane %v19239_v35, %v19172_v26 }
 0x285   :  { %3152 = vmatpush2.bf16.msra.mxu0 %v17413_v46  ;;  %v17467_v46 = vld [vmem:[#allocation10 + $0x268] ss:$48 sps:$4 sm:$0xff]  }
 0x286   :  { %3153 = vmatprep.subr.bf16.mxu0 %v17421_v47  ;;  %v19253_v47 = vpop.f32.mrf.mxu1 }
 0x287   :  { %3195 = vmatpush2.bf16.msra.mxu1 %v17416_v49 }
 0x288   :  { %3196 = vmatprep.subr.bf16.mxu1 %v17424_v50  ;;  %v17475_v50 = vld [vmem:[#allocation10 + $0x20c] ss:$48 sps:$4 sm:$0xff]  }
 0x289   :  { %3154 = vmatpush2.bf16.msra.mxu0 %v17419_v52 }
 0x28a   :  { %3155 = vmatprep.subr.bf16.mxu0 %v17427_v54  ;;  %v17470_v54 = vld [vmem:[#allocation10 + $0x868] ss:$48 sps:$4 sm:$0xff]  }
 0x28b   :  { %3197 = vmatpush2.bf16.msra.mxu1 %v17422_v60 }
 0x28c   :  { %3198 = vmatprep.subr.bf16.mxu1 %v17430_v63 }
 0x28d   :  { %3156 = vmatpush2.bf16.msra.mxu0 %v17425_v1  ;;  %v17478_v1 = vld [vmem:[#allocation10 + $0x80c] ss:$48 sps:$4 sm:$0xff]  }
 0x28e   :  { %3157 = vmatprep.subr.bf16.mxu0 %v17433_v3 }
 0x28f   :  { %3199 = vmatpush2.bf16.msra.mxu1 %v17428_v6 }
 0x290   :  { %3200 = vmatprep.subr.bf16.mxu1 %v17436_v7  ;;  %v17473_v7 = vld [vmem:[#allocation10 + $0x208] ss:$48 sps:$4 sm:$0xff]  }
 0x291   :  { %3158 = vmatpush2.bf16.msra.mxu0 %v17431_v8 }
 0x292   :  { %3159 = vmatprep.subr.bf16.mxu0 %v17439_v9 }
 0x293   :  { %3201 = vmatpush2.bf16.msra.mxu1 %v17434_v10  ;;  %v17481_v10 = vld [vmem:[#allocation10 + $0x1ac] ss:$48 sps:$4 sm:$0xff]  }
 0x294   :  { %3202 = vmatprep.subr.bf16.mxu1 %v17442_v11 }
 0x295   :  { %3160 = vmatpush2.bf16.msra.mxu0 %v17437_v12  ;;  %v17476_v12 = vld [vmem:[#allocation10 + $0x808] ss:$48 sps:$4 sm:$0xff]  }
 0x296   :  { %3161 = vmatprep.subr.bf16.mxu0 %v17445_v13 }
 0x297   :  { %3203 = vmatpush2.bf16.msra.mxu1 %v17440_v14  ;;  %v17484_v14 = vld [vmem:[#allocation10 + $0x7ac] ss:$48 sps:$4 sm:$0xff]  }
 0x298   :  { %3204 = vmatprep.subr.bf16.mxu1 %v17448_v15 }
 0x299   :  { %3162 = vmatpush2.bf16.msra.mxu0 %v17443_v16 }
 0x29a   :  { %3163 = vmatprep.subr.bf16.mxu0 %v17451_v17  ;;  %v17479_v17 = vld [vmem:[#allocation10 + $0x1a8] ss:$48 sps:$4 sm:$0xff]  }
 0x29b   :  { %3205 = vmatpush2.bf16.msra.mxu1 %v17446_v18  ;;  %v17487_v18 = vld [vmem:[#allocation10 + $0x14c] ss:$48 sps:$4 sm:$0xff]  }
 0x29c   :  { %3206 = vmatprep.subr.bf16.mxu1 %v17454_v20  ;;  %v17490_v20 = vld [vmem:[#allocation10 + $0x74c] ss:$48 sps:$4 sm:$0xff]  }
 0x29d   :  { %3164 = vmatpush2.bf16.msra.mxu0 %v17449_v21  ;;  %v17485_v21 = vld [vmem:[#allocation10 + $0x148] ss:$48 sps:$4 sm:$0xff]  }
 0x29e   :  { %3165 = vmatprep.subr.bf16.mxu0 %v17457_v25  ;;  %v17488_v25 = vld [vmem:[#allocation10 + $0x748] ss:$48 sps:$4 sm:$0xff]  }
 0x29f   :  { %3207 = vmatpush2.bf16.msra.mxu1 %v17452_v27  ;;  %v17493_v27 = vld [vmem:[#allocation10 + $0xec] ss:$48 sps:$4 sm:$0xff]  }
 0x2a0   :  { %3208 = vmatprep.subr.bf16.mxu1 %v17460_v30  ;;  %v17496_v30 = vld [vmem:[#allocation10 + $0x6ec] ss:$48 sps:$4 sm:$0xff]  }
 0x2a1   :  { %3166 = vmatpush2.bf16.msra.mxu0 %v17455_v31  ;;  %v17491_v31 = vld [vmem:[#allocation10 + $0xe8] ss:$48 sps:$4 sm:$0xff]  }
 0x2a2   :  { %3221 = vmatprep.subr.bf16.mxu0 %v17463_v33  ;;  %v17499_v33 = vld [vmem:[#allocation10 + $0x8c] ss:$48 sps:$4 sm:$0xff]  }
 0x2a3   :  { %3209 = vmatpush2.bf16.msra.mxu1 %v17458_v34  ;;  %v17494_v34 = vld [vmem:[#allocation10 + $0x6e8] ss:$48 sps:$4 sm:$0xff]  }
 0x2a4   :  { %v2911_v49 = vpop.f32.mrf.mxu0  ;;  %3168 = vmatmul.mubr.bf16.vlgmr.msra.gmra.mxu0 %v19203_v62  ;;  %3264 = vmatprep.subr.bf16.mxu1 %v17466_v37  ;;  %v17502_v37 = vld [vmem:[#allocation10 + $0x68c] ss:$48 sps:$4 sm:$0xff]  }
 0x2a5   :  { %v2912_v52 = vadd.f32 %v2911_v49, %v822_v41  ;;  %3222 = vmatpush1.bf16.msra.mxu0 %v17461_v38  ;;  %3253 = vmatprep.mubr.bf16.mxu0 %v19195_v58  ;;  %v17497_v38 = vld [vmem:[#allocation10 + $0x88] ss:$48 sps:$4 sm:$0xff]  }
 0x2a6   :  { %v2913_v60 = vpop.f32.mrf.mxu0  ;;  %v2954_v63 = vpop.f32.mrf.mxu1  ;;  %3211 = vmatmul.mubr.bf16.vlgmr.msra.gmra.mxu1 %v19212_v2  ;;  %3223 = vmatprep.subr.bf16.mxu0 %v17469_v40  ;;  %v17505_v40 = vld [vmem:[#allocation10 + $0x2c] ss:$48 sps:$4 sm:$0xff]   ;;  %v17506_v49 = vld [vmem:[#allocation10 + $0x628] ss:$48 sps:$4 sm:$0xff]  }
 0x2a7   :  { %v2914_v3 = vadd.f32 %v2913_v60, %v19251_v45  ;;  %v19259_v6 = vadd.f32 %v2954_v63, %v2912_v52  ;;  %3265 = vmatpush1.bf16.msra.mxu1 %v17464_v42  ;;  %3296 = vmatprep.mubr.bf16.mxu1 %v19207_v0  ;;  %v17482_v0 = vld [vmem:[#allocation10 + $0x7a8] ss:$48 sps:$4 sm:$0xff]   ;;  %v17508_v42 = vld [vmem:[#allocation10 + $0x62c] ss:$48 sps:$4 sm:$0xff]  }
 0x2a8   :  { %v2915_v8 = vpop.f32.mrf.mxu0  ;;  %v2956_v9 = vpop.f32.mrf.mxu1  ;;  %3266 = vmatprep.subr.bf16.mxu1 %v17472_v44  ;;  %v17503_v44 = vld [vmem:[#allocation10 + $0x28] ss:$48 sps:$4 sm:$0xff]   ;;  %v17520_v63 = vld [vmem:[#allocation10 + $0xb6c] ss:$48 sps:$4 sm:$0xff]  }
 0x2a9   :  { %v2916_v58 = vadd.f32 %v2915_v8, %v822_v41  ;;  %v2957_v11 = vadd.f32 %v2956_v9, %v2914_v3  ;;  %3224 = vmatpush1.bf16.msra.mxu0 %v17467_v46  ;;  %v17500_v41 = vld [vmem:[#allocation10 + $0x688] ss:$48 sps:$4 sm:$0xff]   ;;  %v17511_v46 = vld [vmem:[#allocation10 + $0x5cc] ss:$48 sps:$4 sm:$0xff]  }
 0x2aa   :  { %v2958_v13 = vpop.f32.mrf.mxu1  ;;  %3225 = vmatprep.subr.bf16.mxu0 %v17475_v50  ;;  %v17514_v50 = vld [vmem:[#allocation10 + $0xbcc] ss:$48 sps:$4 sm:$0xff]   ;;  %v17509_v52 = vld [vmem:[#allocation10 + $0x5c8] ss:$48 sps:$4 sm:$0xff]  }
 0x2ab   :  { %v19263_v15 = vpack.c.bf16 %v2957_v11, %v19259_v6  ;;  %v19265_v16 = vadd.f32 %v2958_v13, %v2916_v58  ;;  %3267 = vmatpush1.bf16.msra.mxu1 %v17470_v54  ;;  %v17517_v54 = vld [vmem:[#allocation10 + $0x56c] ss:$48 sps:$4 sm:$0xff]   ;;  %v17512_v60 = vld [vmem:[#allocation10 + $0xbc8] ss:$48 sps:$4 sm:$0xff]  }
 0x2ac   :  { %3268 = vmatprep.subr.bf16.mxu1 %v17478_v1  ;;  %v17515_v1 = vld [vmem:[#allocation10 + $0x568] ss:$48 sps:$4 sm:$0xff]   ;;  %v17523_v3 = vld [vmem:[#allocation10 + $0x50c] ss:$48 sps:$4 sm:$0xff]  }
 0x2ad   :  { %3226 = vmatpush1.bf16.msra.mxu0 %v17473_v7  ;;  %v17518_v7 = vld [vmem:[#allocation10 + $0xb68] ss:$48 sps:$4 sm:$0xff]   ;;  %v17526_v8 = vld [vmem:[#allocation10 + $0xb0c] ss:$48 sps:$4 sm:$0xff]  }
 0x2ae   :  { %3227 = vmatprep.subr.bf16.mxu0 %v17481_v10  ;;  %v17521_v9 = vld [vmem:[#allocation10 + $0x508] ss:$48 sps:$4 sm:$0xff]   ;;  %v17529_v10 = vld [vmem:[#allocation10 + $0x4ac] ss:$48 sps:$4 sm:$0xff]  }
 0x2af   :  { %3269 = vmatpush1.bf16.msra.mxu1 %v17476_v12  ;;  %v17524_v58 = vld [vmem:[#allocation10 + $0xb08] ss:$48 sps:$4 sm:$0xff]   ;;  %v17532_v11 = vld [vmem:[#allocation10 + $0xaac] ss:$48 sps:$4 sm:$0xff]  }
 0x2b0   :  { %3270 = vmatprep.subr.bf16.mxu1 %v17484_v14  ;;  %v17527_v12 = vld [vmem:[#allocation10 + $0x4a8] ss:$48 sps:$4 sm:$0xff]   ;;  %v17535_v13 = vld [vmem:[#allocation10 + $0x44c] ss:$48 sps:$4 sm:$0xff]  }
 0x2b1   :  { %3228 = vmatpush1.bf16.msra.mxu0 %v17479_v17  ;;  %v17530_v14 = vld [vmem:[#allocation10 + $0xaa8] ss:$48 sps:$4 sm:$0xff]   ;;  %v17538_v17 = vld [vmem:[#allocation10 + $0xa4c] ss:$48 sps:$4 sm:$0xff]  }
 0x2b2   :  { %3229 = vmatprep.subr.bf16.mxu0 %v17487_v18  ;;  %v17541_v18 = vld [vmem:[#allocation10 + $0x3ec] ss:$48 sps:$4 sm:$0xff]  }
 0x2b3   :  { %3271 = vmatpush1.bf16.msra.mxu1 %v17482_v0  ;;  %v17533_v0 = vld [vmem:[#allocation10 + $0x448] ss:$48 sps:$4 sm:$0xff]  }
 0x2b4   :  { %3272 = vmatprep.subr.bf16.mxu1 %v17490_v20  ;;  %v17536_v20 = vld [vmem:[#allocation10 + $0xa48] ss:$48 sps:$4 sm:$0xff]  }
 0x2b5   :  { %3230 = vmatpush1.bf16.msra.mxu0 %v17485_v21  ;;  %v17544_v21 = vld [vmem:[#allocation10 + $0x9ec] ss:$48 sps:$4 sm:$0xff]  }
 0x2b6   :  { %3231 = vmatprep.subr.bf16.mxu0 %v17493_v27  ;;  %v17547_v27 = vld [vmem:[#allocation10 + $0x38c] ss:$48 sps:$4 sm:$0xff]  }
 0x2b7   :  { %3273 = vmatpush1.bf16.msra.mxu1 %v17488_v25  ;;  %v17539_v25 = vld [vmem:[#allocation10 + $0x3e8] ss:$48 sps:$4 sm:$0xff]  }
 0x2b8   :  { %3274 = vmatprep.subr.bf16.mxu1 %v17496_v30  ;;  %v17542_v30 = vld [vmem:[#allocation10 + $0x9e8] ss:$48 sps:$4 sm:$0xff]  }
 0x2b9   :  { %3232 = vmatpush1.bf16.msra.mxu0 %v17491_v31  ;;  %v17550_v31 = vld [vmem:[#allocation10 + $0x98c] ss:$48 sps:$4 sm:$0xff]  }
 0x2ba   :  { %3233 = vmatprep.subr.bf16.mxu0 %v17499_v33  ;;  %v17545_v33 = vld [vmem:[#allocation10 + $0x388] ss:$48 sps:$4 sm:$0xff]  }
 0x2bb   :  { %3275 = vmatpush1.bf16.msra.mxu1 %v17494_v34  ;;  %v17553_v34 = vld [vmem:[#allocation10 + $0x32c] ss:$48 sps:$4 sm:$0xff]  }
 0x2bc   :  { %3276 = vmatprep.subr.bf16.mxu1 %v17502_v37  ;;  %v17548_v37 = vld [vmem:[#allocation10 + $0x988] ss:$48 sps:$4 sm:$0xff]  }
 0x2bd   :  { %3234 = vmatpush1.bf16.msra.mxu0 %v17497_v38  ;;  %v17556_v38 = vld [vmem:[#allocation10 + $0x92c] ss:$48 sps:$4 sm:$0xff]  }
 0x2be   :  { %3235 = vmatprep.subr.bf16.mxu0 %v17505_v40  ;;  %v17551_v40 = vld [vmem:[#allocation10 + $0x328] ss:$48 sps:$4 sm:$0xff]  }
 0x2bf   :  { %3277 = vmatpush1.bf16.msra.mxu1 %v17500_v41  ;;  %v19268_v41 = vsub.s32 4, %v19152_v5 }
 0x2c0   :  { %3278 = vmatprep.subr.bf16.mxu1 %v17508_v42  ;;  %v17554_v42 = vld [vmem:[#allocation10 + $0x928] ss:$48 sps:$4 sm:$0xff]  }
 0x2c1   :  { %3236 = vmatpush1.bf16.msra.mxu0 %v17503_v44  ;;  %20484 = vst [vmem:[#allocation40_spill] sm:$0xff] %v19268_v41  ;;  %v19271_v44 = vsub.s32 5, %v19152_v5 }
 0x2c2   :  { %3237 = vmatprep.subr.bf16.mxu0 %v17511_v46  ;;  %v830_v46 = vrot.slane %v19239_v35, %v19268_v41 }
 0x2c3   :  { %3279 = vmatpush1.bf16.msra.mxu1 %v17506_v49  ;;  %20485 = vst [vmem:[#allocation41_spill] sm:$0xff] %v19271_v44  ;;  %v19275_v49 = vpop.f32.mrf.mxu0 }
 0x2c4   :  { %3280 = vmatprep.subr.bf16.mxu1 %v17514_v50  ;;  %v20448_v50 = vmov 0.0  }
 0x2c5   :  { %3238 = vmatpush2.bf16.msra.mxu0 %v17509_v52  ;;  %v834_v52 = vrot.slane %v19239_v35, %v19271_v44 }
 0x2c6   :  { %3239 = vmatprep.subr.bf16.mxu0 %v17517_v54  ;;  %v19280_v54 = vpop.f32.mrf.mxu1 }
 0x2c7   :  { %3281 = vmatpush2.bf16.msra.mxu1 %v17512_v60 }
 0x2c8   :  { %3282 = vmatprep.subr.bf16.mxu1 %v17520_v63 }
 0x2c9   :  { %3240 = vmatpush2.bf16.msra.mxu0 %v17515_v1 }
 0x2ca   :  { %3241 = vmatprep.subr.bf16.mxu0 %v17523_v3 }
 0x2cb   :  { %3283 = vmatpush2.bf16.msra.mxu1 %v17518_v7  ;;  %v818_v7 = vrot.slane %v19239_v35, %v19166_v23 }
 0x2cc   :  { %3284 = vmatprep.subr.bf16.mxu1 %v17526_v8 }
 0x2cd   :  { %3242 = vmatpush2.bf16.msra.mxu0 %v17521_v9 }
 0x2ce   :  { %3243 = vmatprep.subr.bf16.mxu0 %v17529_v10  ;;  %v814_v10 = vrot.slane %v19239_v35, %v19169_v24 }
 0x2cf   :  { %3285 = vmatpush2.bf16.msra.mxu1 %v17524_v58 }
 0x2d0   :  { %3286 = vmatprep.subr.bf16.mxu1 %v17532_v11 }
 0x2d1   :  { %3244 = vmatpush2.bf16.msra.mxu0 %v17527_v12 }
 0x2d2   :  { %3245 = vmatprep.subr.bf16.mxu0 %v17535_v13 }
 0x2d3   :  { %3287 = vmatpush2.bf16.msra.mxu1 %v17530_v14 }
 0x2d4   :  { %3288 = vmatprep.subr.bf16.mxu1 %v17538_v17 }
 0x2d5   :  { %3246 = vmatpush2.bf16.msra.mxu0 %v17533_v0 }
 0x2d6   :  { %3247 = vmatprep.subr.bf16.mxu0 %v17541_v18 }
 0x2d7   :  { %3289 = vmatpush2.bf16.msra.mxu1 %v17536_v20 }
 0x2d8   :  { %3290 = vmatprep.subr.bf16.mxu1 %v17544_v21  ;;  %v2826_v21 = vadd.f32 %v19231_v19, %v814_v10  ;;  %v2830_v19 = vadd.f32 %v19241_v36, %v814_v10  ;;  %v19334_v36 = vsub.s32 6, %v19152_v5 }
 0x2d9   :  { %3248 = vmatpush2.bf16.msra.mxu0 %v17539_v25 }
 0x2da   :  { %3249 = vmatprep.subr.bf16.mxu0 %v17547_v27  ;;  %20486 = vst [vmem:[#allocation42_spill] sm:$0xff] %v19334_v36 }
 0x2db   :  { %3291 = vmatpush2.bf16.msra.mxu1 %v17542_v30 }
 0x2dc   :  { %3292 = vmatprep.subr.bf16.mxu1 %v17550_v31 }
 0x2dd   :  { %3250 = vmatpush2.bf16.msra.mxu0 %v17545_v33  ;;  %v2832_v33 = vadd.f32 %v19247_v43, %v818_v7  ;;  %v19320_v43 = vadd.f32 %v19243_v39, %v2830_v19  ;;  %v19337_v39 = vsub.s32 7, %v19152_v5 }
 0x2de   :  { %3251 = vmatprep.subr.bf16.mxu0 %v17553_v34 }
 0x2df   :  { %3293 = vmatpush2.bf16.msra.mxu1 %v17548_v37  ;;  %20487 = vst [vmem:[#allocation43_spill] sm:$0xff] %v19337_v39 }
 0x2e0   :  { %3294 = vmatprep.subr.bf16.mxu1 %v17556_v38 }
 0x2e1   :  { %3252 = vmatpush2.bf16.msra.mxu0 %v17551_v40  ;;  %v19343_v40 = vrot.slane %v19239_v35, %v19337_v39 }
 0x2e2   :  { %16761 = vmatprep.subr.bf16.mxu0 %v20448_v50 }
 0x2e3   :  { %3295 = vmatpush2.bf16.msra.mxu1 %v17554_v42 }
 0x2e4   :  { %v2997_v60 = vpop.f32.mrf.mxu0  ;;  %3254 = vmatmul.mubr.bf16.vlgmr.msra.gmra.mxu0 %v19203_v62  ;;  %16767 = vmatprep.subr.bf16.mxu1 %v20448_v50 }
 0x2e5   :  { %v2998_v63 = vadd.f32 %v2997_v60, %v830_v46  ;;  %16763 = vmatprep.mubr.msk.bf16.mxu0 %vm18989_vm2, %v20448_v50 }
 0x2e6   :  { %v2999_v1 = vpop.f32.mrf.mxu0  ;;  %v3040_v3 = vpop.f32.mrf.mxu1  ;;  %3297 = vmatmul.mubr.bf16.vlgmr.msra.gmra.mxu1 %v19212_v2  ;;  %v2828_v2 = vadd.f32 %v19235_v29, %v818_v7  ;;  %v19309_v29 = vadd.f32 %v19233_v22, %v2826_v21 }
 0x2e7   :  { %v3000_v8 = vadd.f32 %v2999_v1, %v834_v52  ;;  %16769 = vmatprep.mubr.msk.bf16.mxu1 %vm18989_vm2, %v20448_v50  ;;  %v19293_v58 = vadd.f32 %v3040_v3, %v2998_v63 }
 0x2e8   :  { %v3001_v9 = vpop.f32.mrf.mxu0  ;;  %v3042_v62 = vpop.f32.mrf.mxu1  ;;  %v2871_v31 = vadd.f32 %v19237_v32, %v2828_v2  ;;  %v2875_v32 = vadd.f32 %v19253_v47, %v2832_v33  ;;  %v838_v47 = vrot.slane %v19239_v35, %v19334_v36  ;;  %v808_v35 = vld [vmem:[#allocation11 + $0x8] sm:$0xf] }
 0x2e9   :  { %v3002_v11 = vadd.f32 %v3001_v9, %v830_v46  ;;  %v3043_v12 = vadd.f32 %v3042_v62, %v3000_v8 }
 0x2ea   :  { %v3003_v13 = vpop.f32.mrf.mxu0  ;;  %v3044_v14 = vpop.f32.mrf.mxu1  ;;  %v19315_v38 = vpack.c.bf16 %v2871_v31, %v19309_v29  ;;  %v19327_v22 = vpack.c.bf16 %v2875_v32, %v19320_v43 }
 0x2eb   :  { %v19297_v17 = vpack.c.bf16 %v3043_v12, %v19293_v58  ;;  %v3004_v0 = vadd.f32 %v3003_v13, %v834_v52  ;;  %v3045_v18 = vadd.f32 %v3044_v14, %v3002_v11  ;;  %v846_v11 = vrot.slane %v808_v35, %v19169_v24 }
 0x2ec   :  { %v3046_v20 = vpop.f32.mrf.mxu1  ;;  %v850_v13 = vrot.slane %v808_v35, %v19166_v23 }
 0x2ed   :  { %v3047_v25 = vadd.f32 %v3046_v20, %v3004_v0  ;;  %v3386_v27 = vsel %vm3381_vm3, %v19297_v17, 0  ;;  %v16644_v30 = vpack.c.bf16 %v3045_v18, %v3045_v18 }
 0x2ee   :  { %16762 = vmatpush3.bf16.xpose.msra.mxu0 %v3386_v27 }
 0x2ef   :  { %v19304_v34 = vpack.c.bf16 %v3047_v25, %v3045_v18  ;;  %3665 = vrot.lane.b32.xlu1 %v16644_v30, %s18982_s3  ;;  %16773 = vmatprep.subr.bf16.mxu0 %v20448_v50 }
 0x2f1   :  { %v3432_v37 = vsel %vm3381_vm3, %v19304_v34, 0 }
 0x2f2   :  { %16768 = vmatpush3.bf16.xpose.msra.mxu1 %v3432_v37 }
 0x2f3   :  { %16779 = vmatprep.subr.bf16.mxu1 %v20448_v50 }
 0x2f5   :  { %16764 = vmatmul.mubr.msk.bf16.vlgmr.msra.gmra.mxu0 %vm3381_vm3, %v19315_v38 }
 0x2f6   :  { %16775 = vmatprep.mubr.msk.bf16.mxu0 %vm18989_vm2, %v20448_v50 }
 0x2f9   :  { %16770 = vmatmul.mubr.msk.bf16.vlgmr.msra.gmra.mxu1 %vm3381_vm3, %v19327_v22 }
 0x2fa   :  { %16781 = vmatprep.mubr.msk.bf16.mxu1 %vm18989_vm2, %v20448_v50 }
 0x324   :  { %v3083_v42 = vpop.f32.mrf.mxu0 }
 0x325   :  { %v3084_v46 = vadd.f32 %v3083_v42, %v838_v47 }
 0x326   :  { %v3085_v52 = vpop.f32.mrf.mxu0  ;;  %v3126_v60 = vpop.f32.mrf.mxu1 }
 0x327   :  { %v3086_v63 = vadd.f32 %v3085_v52, %v19343_v40  ;;  %v19346_v1 = vadd.f32 %v3126_v60, %v3084_v46 }
 0x328   :  { %v3087_v3 = vpop.f32.mrf.mxu0  ;;  %v3128_v7 = vpop.f32.mrf.mxu1 }
 0x329   :  { %v3088_v8 = vadd.f32 %v3087_v3, %v838_v47  ;;  %v3129_v5 = vadd.f32 %v3128_v7, %v3086_v63  ;;  %v854_v7 = vrot.slane %v808_v35, %v19175_v28 }
 0x32a   :  { %v3130_v9 = vpop.f32.mrf.mxu1  ;;  %v19354_v12 = vpop.f32.mrf.mxu0 }
 0x32b   :  { %v19349_v62 = vpack.c.bf16 %v3129_v5, %v19346_v1  ;;  %v19351_v10 = vadd.f32 %v3130_v9, %v3088_v8  ;;  %v19377_v8 = vrot.slane %v808_v35, %v19172_v26 }
 0x32c   :  { %v19357_v14 = vpop.f32.mrf.mxu1 }
 0x364   :  { %v3169_v2 = vpop.f32.mrf.mxu0 }
 0x365   :  { %v3170_v0 = vadd.f32 %v3169_v2, %v846_v11 }
 0x366   :  { %v3171_v18 = vpop.f32.mrf.mxu0  ;;  %v3212_v20 = vpop.f32.mrf.mxu1 }
 0x367   :  { %v3172_v21 = vadd.f32 %v3171_v18, %v850_v13  ;;  %v19359_v30 = vadd.f32 %v3212_v20, %v3170_v0 }
 0x368   :  { %v3173_v25 = vpop.f32.mrf.mxu0  ;;  %v3214_v27 = vpop.f32.mrf.mxu1 }
 0x369   :  { %v3174_v31 = vadd.f32 %v3173_v25, %v846_v11  ;;  %v3215_v33 = vadd.f32 %v3214_v27, %v3172_v21 }
 0x36a   :  { %v3175_v19 = vpop.f32.mrf.mxu0  ;;  %v3216_v37 = vpop.f32.mrf.mxu1 }
 0x36b   :  { %v19362_v32 = vpack.c.bf16 %v3215_v33, %v19359_v30  ;;  %v3176_v47 = vadd.f32 %v3175_v19, %v850_v13  ;;  %v19364_v46 = vadd.f32 %v3216_v37, %v3174_v31  ;;  %v19389_v19 = vld [vmem:[#allocation3] ss:$0 sm:$0xff] }
 0x36c   :  { %v3218_v42 = vpop.f32.mrf.mxu1 }
 0x36d   :  { %v3219_v52 = vadd.f32 %v3218_v42, %v3176_v47  ;;  %v3504_v60 = vsel %vm3502_vm4, %v19362_v32, 0 }
 0x36e   :  { %16774 = vmatpush3.bf16.msra.mxu0 %v3504_v60  ;;  %v19394_v60 = vld [vmem:[#allocation3 + $0x1] ss:$0 sm:$0xff] }
 0x36f   :  { %v19369_v63 = vpack.c.bf16 %v3219_v52, %v19364_v46  ;;  %16785 = vmatprep.subr.bf16.mxu0 %v20448_v50 }
 0x371   :  { %v3550_v3 = vsel %vm3502_vm4, %v19369_v63, 0 }
 0x372   :  { %16780 = vmatpush3.bf16.msra.mxu1 %v3550_v3 }
 0x373   :  { %16791 = vmatprep.subr.bf16.mxu1 %v20448_v50 }
 0x3a4   :  { %v3255_v5 = vpop.f32.mrf.mxu0 }
 0x3a5   :  { %v3256_v9 = vadd.f32 %v3255_v5, %v854_v7 }
 0x3a6   :  { %v3257_v11 = vpop.f32.mrf.mxu0  ;;  %v3298_v13 = vpop.f32.mrf.mxu1 }
 0x3a7   :  { %v3258_v2 = vadd.f32 %v3257_v11, %v19377_v8  ;;  %v19380_v0 = vadd.f32 %v3298_v13, %v3256_v9 }
 0x3a8   :  { %v3259_v18 = vpop.f32.mrf.mxu0  ;;  %v3300_v20 = vpop.f32.mrf.mxu1 }
 0x3a9   :  { %v3260_v21 = vadd.f32 %v3259_v18, %v854_v7  ;;  %v3301_v25 = vadd.f32 %v3300_v20, %v3258_v2 }
 0x3aa   :  { %v3302_v27 = vpop.f32.mrf.mxu1  ;;  %v19387_v35 = vpop.f32.mrf.mxu0 }
 0x3ab   :  { %v19383_v31 = vpack.c.bf16 %v3301_v25, %v19380_v0  ;;  %v19385_v33 = vadd.f32 %v3302_v27, %v3260_v21  ;;  %v16642_v21 = vpack.c.bf16 %v19293_v58, %v19293_v58  ;;  %v16641_v58 = vpack.c.bf16 %v19309_v29, %v19309_v29 }
 0x3ac   :  { %v19392_v42 = vpop.f32.mrf.mxu1 }
 0x3b5   :  { %v3422_v37 = vpop.f32.mrf.mxu0 }
 0x3b6   :  { %v3423_v47 = vadd.f32 %v19389_v19, %v3422_v37 }
 0x3b7   :  { %v16765_v52 = vpop.f32.mrf.mxu0 }
 0x3b8   :  { %v3475_v3 = vsel %vm3474_vm5, %v3423_v47, -inf }
 0x3b9   :  { %v3468_v7 = vpop.f32.mrf.mxu1  ;;  %3476 = vmax.xlane.f32.xlu0 %v3475_v3  ;;  %v3425_v5 = vpop.f32.mrf.mxu0 }
 0x3ba   :  { %v3469_v9 = vadd.f32 %v19394_v60, %v3468_v7 }
 0x3bb   :  { %v16766_v11 = vpop.f32.mrf.mxu0  ;;  %v16771_v13 = vpop.f32.mrf.mxu1 }
 0x3bc   :  { %v3478_v2 = vsel %vm3474_vm5, %v3469_v9, -inf }
 0x3bd   :  { %v3471_v18 = vpop.f32.mrf.mxu1  ;;  %3479 = vmax.xlane.f32.xlu0 %v3478_v2 }
 0x3bf   :  { %v16772_v20 = vpop.f32.mrf.mxu1 }
 0x3d3   :  { %3613 = vrot.lane.b32.xlu0 %v16642_v21, %s18982_s3 }
 0x442   :  { %v3477_v25 = vpop.xlane.xlu0 %3476 }
 0x443   :  { %v3481_v27 = vsub.f32 %v3423_v47, %v3477_v25  ;;  %v16643_v47 = vpack.c.bf16 %v19320_v43, %v19320_v43 }
 0x445   :  { %v3483_v37 = vmul.f32 1.442695, %v3481_v27 }
 0x446   :  { %v3480_v52 = vpop.xlane.xlu0 %3479 }
 0x447   :  { %18549 = vpow2.f32 %v3483_v37  ;;  %v3482_v3 = vsub.f32 %v3469_v9, %v3480_v52  ;;  %v3666_v9 = vpop.permute.xlu1 %3665 }
 0x449   :  { %v3485_v5 = vmul.f32 1.442695, %v3482_v3 }
 0x44a   :  { %v3614_v27 = vpop.permute.xlu0 %3613 }
 0x44b   :  { %18551 = vpow2.f32 %v3485_v5  ;;  %v3619_v3 = vsel %vm3381_vm3, %v3614_v27, 0  ;;  %v3671_v5 = vsel %vm3381_vm3, %v3666_v9, 0 }
 0x454   :  { %v18550_v7 = vpop.eup %18549 }
 0x455   :  { %v3487_v11 = vsel %vm3474_vm5, %v18550_v7, 0.0 }
 0x456   :  { %3488 = vadd.xlane.f32.xlu1 %v3487_v11 }
 0x458   :  { %v18552_v13 = vpop.eup %18551 }
 0x459   :  { %v3490_v2 = vsel %vm3474_vm5, %v18552_v13, 0.0 }
 0x45a   :  { %3491 = vadd.xlane.f32.xlu1 %v3490_v2 }
 0x46b   :  { %3610 = vrot.lane.b32.xlu1 %v16641_v58, %s18982_s3 }
 0x46f   :  { %3662 = vrot.lane.b32.xlu1 %v16643_v47, %s18982_s3 }
 0x4df   :  { %v3489_v18 = vpop.xlane.xlu1 %3488 }
 0x4e0   :  { %18553 = vrcp.f32 %v3489_v18 }
 0x4e3   :  { %v3492_v20 = vpop.xlane.xlu1 %3491 }
 0x4e4   :  { %18555 = vrcp.f32 %v3492_v20 }
 0x4ed   :  { %v18554_v21 = vpop.eup %18553 }
 0x4ee   :  { %v3495_v25 = vmul.f32 %v18554_v21, %v18550_v7  ;;  %v3611_v7 = vpop.permute.xlu1 %3610 }
 0x4f0   :  { %v3497_v37 = vpack.c.bf16 %v3495_v25, %v3495_v25 }
 0x4f1   :  { %v18556_v52 = vpop.eup %18555 }
 0x4f2   :  { %16776 = vmatmul.mubr.msk.bf16.vlgmr.msra.gmra.mxu0 %vm3474_vm5, %v3497_v37  ;;  %v3496_v29 = vmul.f32 %v18556_v52, %v18552_v13  ;;  %v3663_v11 = vpop.permute.xlu1 %3662 }
 0x4f3   :  { %16786 = vmatpush3.bf16.xpose.msra.mxu0 %v3619_v3  ;;  %16787 = vmatprep.mubr.msk.bf16.mxu0 %vm18989_vm2, %v20448_v50 }
 0x4f4   :  { %v3498_v43 = vpack.c.bf16 %v3496_v29, %v3496_v29  ;;  %16797 = vmatprep.subr.bf16.mxu0 %v20448_v50 }
 0x4f6   :  { %16782 = vmatmul.mubr.msk.bf16.vlgmr.msra.gmra.mxu1 %vm3474_vm5, %v3498_v43 }
 0x4f7   :  { %16792 = vmatpush3.bf16.xpose.msra.mxu1 %v3671_v5  ;;  %16793 = vmatprep.mubr.msk.bf16.mxu1 %vm18989_vm2, %v20448_v50 }
 0x4f8   :  { %16803 = vmatprep.subr.bf16.mxu1 %v20448_v50 }
 0x4fa   :  { %16788 = vmatmul.mubr.msk.bf16.vlgmr.msra.gmra.mxu0 %vm3381_vm3, %v3611_v7 }
 0x4fb   :  { %16799 = vmatprep.mubr.msk.bf16.mxu0 %vm18989_vm2, %v20448_v50 }
 0x4fe   :  { %16794 = vmatmul.mubr.msk.bf16.vlgmr.msra.gmra.mxu1 %vm3381_vm3, %v3663_v11 }
 0x4ff   :  { %16805 = vmatprep.mubr.msk.bf16.mxu1 %vm18989_vm2, %v20448_v50 }
 0x5b2   :  { %v3540_v13 = vpop.f32.mrf.mxu0 }
 0x5b4   :  { %v16777_v2 = vpop.f32.mrf.mxu0 }
 0x5b6   :  { %v3543_v58 = vpop.f32.mrf.mxu0  ;;  %v3586_v47 = vpop.f32.mrf.mxu1 }
 0x5b7   :  { %v19426_v9 = vpack.c.bf16 %v3586_v47, %v3540_v13  ;;  %v16646_v47 = vpack.c.bf16 %v19364_v46, %v19364_v46 }
 0x5b8   :  { %v16778_v18 = vpop.f32.mrf.mxu0  ;;  %v16783_v20 = vpop.f32.mrf.mxu1 }
 0x5ba   :  { %v3589_v21 = vpop.f32.mrf.mxu1  ;;  %v3655_v25 = vpop.f32.mrf.mxu0 }
 0x5bb   :  { %v3656_v27 = vadd.f32 %v19389_v19, %v3655_v25 }
 0x5bc   :  { %v16784_v37 = vpop.f32.mrf.mxu1  ;;  %v16789_v52 = vpop.f32.mrf.mxu0 }
 0x5bd   :  { %v3713_v3 = vsel %vm3474_vm5, %v3656_v27, -inf }
 0x5be   :  { %v3707_v29 = vpop.f32.mrf.mxu1  ;;  %3714 = vmax.xlane.f32.xlu0 %v3713_v3  ;;  %v3658_v43 = vpop.f32.mrf.mxu0 }
 0x5bf   :  { %v3708_v5 = vadd.f32 %v19394_v60, %v3707_v29 }
 0x5c0   :  { %v16790_v7 = vpop.f32.mrf.mxu0  ;;  %v16795_v11 = vpop.f32.mrf.mxu1 }
 0x5c1   :  { %v3716_v13 = vsel %vm3474_vm5, %v3708_v5, -inf }
 0x5c2   :  { %3717 = vmax.xlane.f32.xlu1 %v3716_v13  ;;  %v3710_v2 = vpop.f32.mrf.mxu1 }
 0x5c4   :  { %v16796_v58 = vpop.f32.mrf.mxu1 }
 0x5c5   :  { %v17559_v58 = vld [vmem:[#allocation13 + $0xe4] ss:$16 sps:$4 sm:$0xff]  }
 0x5d3   :  { %3787 = vrot.lane.b32.xlu1 %v16646_v47, %s18982_s3 }
 0x647   :  { %v3715_v18 = vpop.xlane.xlu0 %3714 }
 0x648   :  { %v3719_v20 = vsub.f32 %v3656_v27, %v3715_v18  ;;  %v16645_v27 = vpack.c.bf16 %v19359_v30, %v19359_v30 }
 0x64a   :  { %v3721_v21 = vmul.f32 1.442695, %v3719_v20 }
 0x64b   :  { %v3718_v25 = vpop.xlane.xlu1 %3717 }
 0x64c   :  { %18557 = vpow2.f32 %v3721_v21  ;;  %v3720_v37 = vsub.f32 %v3708_v5, %v3718_v25  ;;  %v17562_v5 = vld [vmem:[#allocation13 + $0xec] ss:$16 sps:$4 sm:$0xff]   ;;  %v17557_v25 = vld [vmem:[#allocation13 + $0xe0] ss:$16 sps:$4 sm:$0xff]  }
 0x64e   :  { %v3723_v52 = vmul.f32 1.442695, %v3720_v37 }
 0x64f   :  { %v3788_v3 = vpop.permute.xlu1 %3787 }
 0x650   :  { %18559 = vpow2.f32 %v3723_v52  ;;  %v3793_v29 = vsel %vm3502_vm4, %v3788_v3, 0  ;;  %v17565_v52 = vld [vmem:[#allocation13 + $0xc4] ss:$16 sps:$4 sm:$0xff]  }
 0x651   :  { %16804 = vmatpush3.bf16.msra.mxu1 %v3793_v29  ;;  %v17560_v29 = vld [vmem:[#allocation13 + $0xe8] ss:$16 sps:$4 sm:$0xff]  }
 0x652   :  { %3986 = vmatprep.subr.bf16.mxu1 %v17562_v5  ;;  %v17571_v5 = vld [vmem:[#allocation13 + $0xa4] ss:$16 sps:$4 sm:$0xff]  }
 0x659   :  { %v18558_v43 = vpop.eup %18557 }
 0x65a   :  { %v3725_v7 = vsel %vm3474_vm5, %v18558_v43, 0.0 }
 0x65b   :  { %3726 = vadd.xlane.f32.xlu0 %v3725_v7  ;;  %v17563_v7 = vld [vmem:[#allocation13 + $0xc0] ss:$16 sps:$4 sm:$0xff]  }
 0x65d   :  { %v18560_v11 = vpop.eup %18559 }
 0x65e   :  { %v3728_v46 = vsel %vm3474_vm5, %v18560_v11, 0.0 }
 0x65f   :  { %3729 = vadd.xlane.f32.xlu0 %v3728_v46 }
 0x675   :  { %3738 = vrot.lane.b32.xlu0 %v16645_v27, %s18982_s3  ;;  %v17568_v27 = vld [vmem:[#allocation13 + $0xcc] ss:$16 sps:$4 sm:$0xff]  }
 0x6e4   :  { %v3727_v13 = vpop.xlane.xlu0 %3726 }
 0x6e5   :  { %18561 = vrcp.f32 %v3727_v13  ;;  %v17569_v13 = vld [vmem:[#allocation13 + $0xa0] ss:$16 sps:$4 sm:$0xff]  }
 0x6e8   :  { %v3730_v2 = vpop.xlane.xlu0 %3729 }
 0x6e9   :  { %18563 = vrcp.f32 %v3730_v2  ;;  %v17574_v2 = vld [vmem:[#allocation13 + $0xac] ss:$16 sps:$4 sm:$0xff]  }
 0x6ec   :  { %v3739_v47 = vpop.permute.xlu0 %3738 }
 0x6ed   :  { %v3744_v18 = vsel %vm3502_vm4, %v3739_v47, 0  ;;  %v17580_v47 = vld [vmem:[#allocation13 + $0x8c] ss:$16 sps:$4 sm:$0xff]  }
 0x6ee   :  { %16798 = vmatpush3.bf16.msra.mxu0 %v3744_v18  ;;  %v17575_v18 = vld [vmem:[#allocation13 + $0x80] ss:$16 sps:$4 sm:$0xff]  }
 0x6ef   :  { %3943 = vmatprep.subr.bf16.mxu0 %v17559_v58  ;;  %v17577_v58 = vld [vmem:[#allocation13 + $0x84] ss:$16 sps:$4 sm:$0xff]  }
 0x6f2   :  { %v18562_v20 = vpop.eup %18561 }
 0x6f3   :  { %v3733_v21 = vmul.f32 %v18562_v20, %v18558_v43  ;;  %v17566_v43 = vld [vmem:[#allocation13 + $0xc8] ss:$16 sps:$4 sm:$0xff]  }
 0x6f4   :  { %v17578_v20 = vld [vmem:[#allocation13 + $0x88] ss:$16 sps:$4 sm:$0xff]  }
 0x6f5   :  { %v3735_v37 = vpack.c.bf16 %v3733_v21, %v3733_v21  ;;  %v17583_v21 = vld [vmem:[#allocation13 + $0x64] ss:$16 sps:$4 sm:$0xff]  }
 0x6f6   :  { %v18564_v30 = vpop.eup %18563 }
 0x6f7   :  { %16800 = vmatmul.mubr.msk.bf16.vlgmr.msra.gmra.mxu0 %vm3474_vm5, %v3735_v37  ;;  %v3734_v3 = vmul.f32 %v18564_v30, %v18560_v11  ;;  %v17572_v11 = vld [vmem:[#allocation13 + $0xa8] ss:$16 sps:$4 sm:$0xff]  }
 0x6f8   :  { %3944 = vmatpush1.bf16.msra.mxu0 %v17557_v25  ;;  %3967 = vmatprep.mubr.bf16.mxu0 %v20450_v4  ;;  %v17586_v25 = vld [vmem:[#allocation13 + $0x6c] ss:$16 sps:$4 sm:$0xff]  }
 0x6f9   :  { %v3736_v46 = vpack.c.bf16 %v3734_v3, %v3734_v3  ;;  %3945 = vmatprep.subr.bf16.mxu0 %v17565_v52 }
 0x6fb   :  { %16806 = vmatmul.mubr.msk.bf16.vlgmr.msra.gmra.mxu1 %vm3474_vm5, %v3736_v46 }
 0x6fc   :  { %3987 = vmatpush1.bf16.msra.mxu1 %v17560_v29  ;;  %3946 = vmatpush1.bf16.msra.mxu0 %v17563_v7  ;;  %v17581_v29 = vld [vmem:[#allocation13 + $0x60] ss:$16 sps:$4 sm:$0xff]   ;;  %v17584_v7 = vld [vmem:[#allocation13 + $0x68] ss:$16 sps:$4 sm:$0xff]  }
 0x6fd   :  { %3988 = vmatprep.subr.bf16.mxu1 %v17568_v27  ;;  %3947 = vmatprep.subr.bf16.mxu0 %v17571_v5  ;;  %v17589_v27 = vld [vmem:[#allocation13 + $0x44] ss:$16 sps:$4 sm:$0xff]   ;;  %v17592_v5 = vld [vmem:[#allocation13 + $0x4c] ss:$16 sps:$4 sm:$0xff]  }
 0x6fe   :  { %4010 = vmatprep.mubr.bf16.mxu1 %v20450_v4 }
 0x700   :  { %3989 = vmatpush1.bf16.msra.mxu1 %v17566_v43  ;;  %3948 = vmatpush1.bf16.msra.mxu0 %v17569_v13 }
 0x701   :  { %3990 = vmatprep.subr.bf16.mxu1 %v17574_v2  ;;  %3949 = vmatprep.subr.bf16.mxu0 %v17577_v58  ;;  %v17590_v58 = vld [vmem:[#allocation13 + $0x48] ss:$16 sps:$4 sm:$0xff]  }
 0x704   :  { %3991 = vmatpush1.bf16.msra.mxu1 %v17572_v11  ;;  %3950 = vmatpush1.bf16.msra.mxu0 %v17575_v18  ;;  %v17587_v11 = vld [vmem:[#allocation13 + $0x40] ss:$16 sps:$4 sm:$0xff]   ;;  %v17598_v18 = vld [vmem:[#allocation13 + $0x2c] ss:$16 sps:$4 sm:$0xff]  }
 0x705   :  { %3992 = vmatprep.subr.bf16.mxu1 %v17580_v47  ;;  %4112 = vmatprep.subr.bf16.mxu0 %v17583_v21  ;;  %v17595_v47 = vld [vmem:[#allocation13 + $0x24] ss:$16 sps:$4 sm:$0xff]   ;;  %v17593_v21 = vld [vmem:[#allocation13 + $0x20] ss:$16 sps:$4 sm:$0xff]  }
 0x708   :  { %3993 = vmatpush1.bf16.msra.mxu1 %v17578_v20 }
 0x709   :  { %4155 = vmatprep.subr.bf16.mxu1 %v17586_v25  ;;  %v17596_v25 = vld [vmem:[#allocation13 + $0x28] ss:$16 sps:$4 sm:$0xff]  }
 0x7b7   :  { %v3780_v37 = vpop.f32.mrf.mxu0 }
 0x7b9   :  { %v16801_v52 = vpop.f32.mrf.mxu0 }
 0x7ba   :  { %v17604_v52 = vld [vmem:[#allocation13 + $0xc] ss:$16 sps:$4 sm:$0xff]  }
 0x7bb   :  { %v3783_v30 = vpop.f32.mrf.mxu0  ;;  %v3829_v3 = vpop.f32.mrf.mxu1 }
 0x7bc   :  { %v3835_v46 = vpack.c.bf16 %v3829_v3, %v3780_v37  ;;  %v17601_v37 = vld [vmem:[#allocation13 + $0x4] ss:$16 sps:$4 sm:$0xff]   ;;  %v17599_v30 = vld [vmem:[#allocation13] ss:$16 sps:$4 sm:$0xff]   ;;  %v17602_v3 = vld [vmem:[#allocation13 + $0x8] ss:$16 sps:$4 sm:$0xff]  }
 0x7bd   :  { %v16802_v43 = vpop.f32.mrf.mxu0  ;;  %v16807_v13 = vpop.f32.mrf.mxu1 }
 0x7be   :  { %15414 = vmatmul.mubr.msk.bf16.vlgmr.msra.gmra.mxu0 %vm3381_vm3, %v3835_v46  ;;  %15415 = vmatmul.mubr.msk.bf16.vlgmr.msra.gmra.mxu1 %vm3381_vm3, %v3835_v46  ;;  %v4190_v43 = vrot.slane %v19315_v38, 4  ;;  %v4238_v13 = vrot.slane %v19327_v22, 4 }
 0x7bf   :  { %4113 = vmatpush1.bf16.msra.mxu0 %v17581_v29  ;;  %4156 = vmatpush1.bf16.msra.mxu1 %v17584_v7  ;;  %v3832_v2 = vpop.f32.mrf.mxu1  ;;  %v4191_v29 = vrot.slane %v19297_v17, 4  ;;  %v4239_v7 = vrot.slane %v19304_v34, 4 }
 0x7c0   :  { %4114 = vmatprep.subr.bf16.mxu0 %v17589_v27  ;;  %4157 = vmatprep.subr.bf16.mxu1 %v17592_v5  ;;  %v4310_v5 = vrot.slane %v19362_v32, 4 }
 0x7c1   :  { %v16808_v20 = vpop.f32.mrf.mxu1  ;;  %4136 = vmatprep.mubr.bf16.mxu0 %v20450_v4  ;;  %4179 = vmatprep.mubr.bf16.mxu1 %v20450_v4  ;;  %v4196_v46 = vsel %vm3381_vm3, %v4191_v29, 0  ;;  %v4244_v27 = vsel %vm3381_vm3, %v4239_v7, 0 }
 0x7c2   :  { %v4315_v2 = vsel %vm3502_vm4, %v4310_v5, 0 }
 0x7c3   :  { %4115 = vmatpush1.bf16.msra.mxu0 %v17587_v11  ;;  %4158 = vmatpush1.bf16.msra.mxu1 %v17590_v58 }
 0x7c4   :  { %4116 = vmatprep.subr.bf16.mxu0 %v17595_v47  ;;  %4159 = vmatprep.subr.bf16.mxu1 %v17598_v18 }
 0x7c7   :  { %4117 = vmatpush1.bf16.msra.mxu0 %v17593_v21  ;;  %4160 = vmatpush1.bf16.msra.mxu1 %v17596_v25 }
 0x7c8   :  { %4118 = vmatprep.subr.bf16.mxu0 %v17601_v37  ;;  %4161 = vmatprep.subr.bf16.mxu1 %v17604_v52 }
 0x7cb   :  { %4119 = vmatpush1.bf16.msra.mxu0 %v17599_v30  ;;  %4162 = vmatpush1.bf16.msra.mxu1 %v17602_v3 }
 0x7cc   :  { %16809 = vmatprep.subr.bf16.mxu0 %v20448_v50  ;;  %16815 = vmatprep.subr.bf16.mxu1 %v20448_v50 }
 0x7ce   :  { %15432 = vmatmul.mubr.msk.bf16.vlgmr.msra.gmra.mxu0 %vm3381_vm3, %v19426_v9  ;;  %15433 = vmatmul.mubr.msk.bf16.vlgmr.msra.gmra.mxu1 %vm3381_vm3, %v19426_v9  ;;  %v4357_v9 = vrot.slane %v19369_v63, 4 }
 0x7cf   :  { %16810 = vmatpush3.bf16.xpose.msra.mxu0 %v4196_v46  ;;  %16816 = vmatpush3.bf16.xpose.msra.mxu1 %v4244_v27 }
 0x7d0   :  { %16811 = vmatprep.mubr.msk.bf16.mxu0 %vm18989_vm2, %v20448_v50  ;;  %16817 = vmatprep.mubr.msk.bf16.mxu1 %vm18989_vm2, %v20448_v50  ;;  %v4362_v11 = vsel %vm3502_vm4, %v4357_v9, 0 }
 0x7d1   :  { %16821 = vmatprep.subr.bf16.mxu0 %v20448_v50  ;;  %16827 = vmatprep.subr.bf16.mxu1 %v20448_v50 }
 0x7d6   :  { %16812 = vmatmul.mubr.msk.bf16.vlgmr.msra.gmra.mxu0 %vm3381_vm3, %v4190_v43  ;;  %16818 = vmatmul.mubr.msk.bf16.vlgmr.msra.gmra.mxu1 %vm3381_vm3, %v4238_v13 }
 0x7d7   :  { %16822 = vmatpush3.bf16.msra.mxu0 %v4315_v2  ;;  %16828 = vmatpush3.bf16.msra.mxu1 %v4362_v11 }
 0x7d8   :  { %16823 = vmatprep.mubr.msk.bf16.mxu0 %vm18989_vm2, %v20448_v50  ;;  %16829 = vmatprep.mubr.msk.bf16.mxu1 %vm18989_vm2, %v20448_v50 }
 0x87e   :  { %v3969_v58 = vpop.f32.mrf.mxu0  ;;  %v4012_v47 = vpop.f32.mrf.mxu1 }
 0x880   :  { %v3971_v18 = vpop.f32.mrf.mxu0  ;;  %v4014_v20 = vpop.f32.mrf.mxu1 }
 0x882   :  { %v3973_v21 = vpop.f32.mrf.mxu0  ;;  %v4016_v25 = vpop.f32.mrf.mxu1 }
 0x884   :  { %v19478_v37 = vpop.f32.mrf.mxu0  ;;  %v19480_v52 = vpop.f32.mrf.mxu1 }
 0x88e   :  { %v4138_v30 = vpop.f32.mrf.mxu0  ;;  %v4181_v3 = vpop.f32.mrf.mxu1 }
 0x88f   :  { %v19482_v29 = vadd.f32 %v4138_v30, %v3969_v58  ;;  %v19484_v7 = vadd.f32 %v4181_v3, %v4012_v47 }
 0x890   :  { %v4140_v46 = vpop.f32.mrf.mxu0  ;;  %v4183_v27 = vpop.f32.mrf.mxu1 }
 0x891   :  { %v19486_v5 = vadd.f32 %v4140_v46, %v3971_v18  ;;  %v19488_v9 = vadd.f32 %v4183_v27, %v4014_v20 }
 0x892   :  { %v4142_v43 = vpop.f32.mrf.mxu0  ;;  %v4185_v13 = vpop.f32.mrf.mxu1 }
 0x893   :  { %v19490_v2 = vadd.f32 %v4142_v43, %v3973_v21  ;;  %v19492_v11 = vadd.f32 %v4185_v13, %v4016_v25 }
 0x894   :  { %v19494_v50 = vpop.f32.mrf.mxu0  ;;  %v19496_v4 = vpop.f32.mrf.mxu1 }
 0x896   :  { %v4232_v58 = vpop.f32.mrf.mxu0  ;;  %v4280_v30 = vpop.f32.mrf.mxu1 }
 0x897   :  { %v4233_v47 = vadd.f32 %v19389_v19, %v4232_v58  ;;  %v4281_v3 = vadd.f32 %v19394_v60, %v4280_v30 }
 0x898   :  { %v16813_v18 = vpop.f32.mrf.mxu0  ;;  %v16819_v46 = vpop.f32.mrf.mxu1 }
 0x899   :  { %v4289_v20 = vsel %vm3474_vm5, %v4281_v3, -inf  ;;  %v4286_v27 = vsel %vm3474_vm5, %v4233_v47, -inf }
 0x89a   :  { %4290 = vmax.xlane.f32.xlu0 %v4289_v20  ;;  %v4283_v21 = vpop.f32.mrf.mxu1  ;;  %4287 = vmax.xlane.f32.xlu1 %v4286_v27  ;;  %v4235_v25 = vpop.f32.mrf.mxu0  ;;  %v17608_v27 = vld [vmem:[#allocation13 + $0x168] ss:$16 sps:$4 sm:$0xff]  }
 0x89b   :  { %v17605_v21 = vld [vmem:[#allocation13 + $0x160] ss:$16 sps:$4 sm:$0xff]   ;;  %v17616_v25 = vld [vmem:[#allocation13 + $0x14c] ss:$16 sps:$4 sm:$0xff]  }
 0x89c   :  { %v16814_v43 = vpop.f32.mrf.mxu0  ;;  %v16820_v13 = vpop.f32.mrf.mxu1 }
 0x89d   :  { %v17613_v43 = vld [vmem:[#allocation13 + $0x144] ss:$16 sps:$4 sm:$0xff]   ;;  %v17611_v13 = vld [vmem:[#allocation13 + $0x140] ss:$16 sps:$4 sm:$0xff]  }
 0x923   :  { %v4291_v39 = vpop.xlane.xlu0 %4290  ;;  %v4288_v44 = vpop.xlane.xlu1 %4287 }
 0x924   :  { %v4293_v36 = vsub.f32 %v4281_v3, %v4291_v39  ;;  %v4292_v41 = vsub.f32 %v4233_v47, %v4288_v44 }
 0x926   :  { %v4296_v59 = vmul.f32 1.442695, %v4293_v36  ;;  %v4294_v58 = vmul.f32 1.442695, %v4292_v41  ;;  %v17610_v41 = vld [vmem:[#allocation13 + $0x16c] ss:$16 sps:$4 sm:$0xff]  }
 0x927   :  { %4555 = vmatprep.subr.bf16.mxu1 %v17610_v41  ;;  %v17625_v41 = vld [vmem:[#allocation13 + $0x104] ss:$16 sps:$4 sm:$0xff]  }
 0x928   :  { %18565 = vpow2.f32 %v4296_v59  ;;  %v17607_v59 = vld [vmem:[#allocation13 + $0x164] ss:$16 sps:$4 sm:$0xff]  }
 0x929   :  { %18567 = vpow2.f32 %v4294_v58  ;;  %4512 = vmatprep.subr.bf16.mxu0 %v17607_v59  ;;  %v17622_v58 = vld [vmem:[#allocation13 + $0x12c] ss:$16 sps:$4 sm:$0xff]  }
 0x92a   :  { %v17628_v59 = vld [vmem:[#allocation13 + $0x10c] ss:$16 sps:$4 sm:$0xff]  }
 0x935   :  { %v18566_v30 = vpop.eup %18565 }
 0x936   :  { %v18568_v18 = vpop.eup %18567  ;;  %v4301_v46 = vsel %vm3474_vm5, %v18566_v30, 0.0 }
 0x937   :  { %4302 = vadd.xlane.f32.xlu1 %v4301_v46  ;;  %v4298_v20 = vsel %vm3474_vm5, %v18568_v18, 0.0  ;;  %v17619_v46 = vld [vmem:[#allocation13 + $0x124] ss:$16 sps:$4 sm:$0xff]  }
 0x938   :  { %4299 = vadd.xlane.f32.xlu0 %v4298_v20  ;;  %v17617_v20 = vld [vmem:[#allocation13 + $0x120] ss:$16 sps:$4 sm:$0xff]  }
 0x948   :  { %4653 = vrot.lane.b32.xlu1 %v19304_v34, %s18982_s3 }
 0x94c   :  { %4598 = vrot.lane.b32.xlu1 %v19315_v38, %s18982_s3 }
 0x94e   :  { %4601 = vrot.lane.b32.xlu0 %v19297_v17, %s18982_s3 }
 0x950   :  { %4650 = vrot.lane.b32.xlu1 %v19327_v22, %s18982_s3  ;;  %v17614_v22 = vld [vmem:[#allocation13 + $0x148] ss:$16 sps:$4 sm:$0xff]  }
 0x9c0   :  { %v4303_v44 = vpop.xlane.xlu1 %4302 }
 0x9c1   :  { %v4300_v36 = vpop.xlane.xlu0 %4299  ;;  %18569 = vrcp.f32 %v4303_v44  ;;  %v17626_v44 = vld [vmem:[#allocation13 + $0x108] ss:$16 sps:$4 sm:$0xff]  }
 0x9c2   :  { %18571 = vrcp.f32 %v4300_v36  ;;  %v17623_v36 = vld [vmem:[#allocation13 + $0x100] ss:$16 sps:$4 sm:$0xff]  }
 0x9ce   :  { %v18570_v39 = vpop.eup %18569 }
 0x9cf   :  { %v18572_v47 = vpop.eup %18571  ;;  %v4307_v34 = vmul.f32 %v18570_v39, %v18566_v30  ;;  %v20488_v30 = vmov 0   ;;  %v20489_v39 = vmov 0.0  }
 0x9d0   :  { %v4306_v3 = vmul.f32 %v18572_v47, %v18568_v18  ;;  %v17620_v18 = vld [vmem:[#allocation13 + $0x128] ss:$16 sps:$4 sm:$0xff]   ;;  %v4654_v47 = vpop.permute.xlu1 %4653 }
 0x9d1   :  { %v4309_v38 = vpack.c.bf16 %v4307_v34, %v4307_v34  ;;  %v4602_v34 = vpop.permute.xlu0 %4601 }
 0x9d2   :  { %v4308_v17 = vpack.c.bf16 %v4306_v3, %v4306_v3  ;;  %v4603_v3 = vrot.slane %v4602_v34, 4 }
 0x9d3   :  { %16830 = vmatmul.mubr.msk.bf16.vlgmr.msra.gmra.mxu1 %vm3474_vm5, %v4309_v38 }
 0x9d4   :  { %16824 = vmatmul.mubr.msk.bf16.vlgmr.msra.gmra.mxu0 %vm3474_vm5, %v4308_v17  ;;  %4556 = vmatpush1.bf16.msra.mxu1 %v17608_v27  ;;  %v4655_v27 = vrot.slane %v4654_v47, 4 }
 0x9d5   :  { %4513 = vmatpush1.bf16.msra.mxu0 %v17605_v21  ;;  %4557 = vmatprep.subr.bf16.mxu1 %v17616_v25  ;;  %v4599_v21 = vpop.permute.xlu1 %4598 }
 0x9d6   :  { %4514 = vmatprep.subr.bf16.mxu0 %v17613_v43  ;;  %4536 = vmatprep.mubr.bf16.mxu0 %v20488_v30 }
 0x9d7   :  { %4579 = vmatprep.mubr.bf16.mxu1 %v20488_v30 }
 0x9d8   :  { %4558 = vmatpush1.bf16.msra.mxu1 %v17614_v22 }
 0x9d9   :  { %4515 = vmatpush1.bf16.msra.mxu0 %v17611_v13  ;;  %4559 = vmatprep.subr.bf16.mxu1 %v17622_v58  ;;  %v4608_v13 = vsel %vm3381_vm3, %v4603_v3, 0  ;;  %v4660_v58 = vsel %vm3381_vm3, %v4655_v27, 0 }
 0x9da   :  { %4516 = vmatprep.subr.bf16.mxu0 %v17619_v46 }
 0x9dc   :  { %4560 = vmatpush1.bf16.msra.mxu1 %v17620_v18 }
 0x9dd   :  { %4517 = vmatpush1.bf16.msra.mxu0 %v17617_v20  ;;  %4561 = vmatprep.subr.bf16.mxu1 %v17628_v59  ;;  %v4651_v59 = vpop.permute.xlu1 %4650 }
 0x9de   :  { %4518 = vmatprep.subr.bf16.mxu0 %v17625_v41 }
 0x9e0   :  { %4562 = vmatpush1.bf16.msra.mxu1 %v17626_v44  ;;  %v4600_v44 = vrot.slane %v4599_v21, 4 }
 0x9e1   :  { %4519 = vmatpush1.bf16.msra.mxu0 %v17623_v36  ;;  %16839 = vmatprep.subr.bf16.mxu1 %v20489_v39  ;;  %v4652_v36 = vrot.slane %v4651_v59, 4 }
 0x9e2   :  { %16833 = vmatprep.subr.bf16.mxu0 %v20489_v39 }
 0xa93   :  { %v4398_v38 = vpop.f32.mrf.mxu1 }
 0xa94   :  { %v4351_v25 = vpop.f32.mrf.mxu0 }
 0xa95   :  { %v4404_v17 = vpack.c.bf16 %v4398_v38, %v4351_v25  ;;  %v16831_v43 = vpop.f32.mrf.mxu1 }
 0xa96   :  { %v16825_v22 = vpop.f32.mrf.mxu0 }
 0xa97   :  { %15454 = vmatmul.mubr.msk.bf16.vlgmr.msra.gmra.mxu0 %vm3381_vm3, %v4404_v17  ;;  %15455 = vmatmul.mubr.msk.bf16.vlgmr.msra.gmra.mxu1 %vm3381_vm3, %v4404_v17  ;;  %v4401_v46 = vpop.f32.mrf.mxu1 }
 0xa98   :  { %16834 = vmatpush3.bf16.xpose.msra.mxu0 %v4608_v13  ;;  %16840 = vmatpush3.bf16.xpose.msra.mxu1 %v4660_v58  ;;  %v4354_v18 = vpop.f32.mrf.mxu0 }
 0xa99   :  { %v16832_v20 = vpop.f32.mrf.mxu1  ;;  %16835 = vmatprep.mubr.msk.bf16.mxu0 %vm18989_vm2, %v20489_v39  ;;  %16841 = vmatprep.mubr.msk.bf16.mxu1 %vm18989_vm2, %v20489_v39 }
 0xa9a   :  { %v16826_v41 = vpop.f32.mrf.mxu0  ;;  %16851 = vmatprep.subr.bf16.mxu1 %v20489_v39  ;;  %16845 = vmatprep.subr.bf16.mxu0 %v20489_v39 }
 0xa9f   :  { %16836 = vmatmul.mubr.msk.bf16.vlgmr.msra.gmra.mxu0 %vm3381_vm3, %v4600_v44  ;;  %16842 = vmatmul.mubr.msk.bf16.vlgmr.msra.gmra.mxu1 %vm3381_vm3, %v4652_v36 }
 0xaa0   :  { %16847 = vmatprep.mubr.msk.bf16.mxu0 %vm18989_vm2, %v20489_v39  ;;  %16853 = vmatprep.mubr.msk.bf16.mxu1 %vm18989_vm2, %v20489_v39 }
 0xb57   :  { %v4538_v47 = vpop.f32.mrf.mxu0  ;;  %v4581_v34 = vpop.f32.mrf.mxu1 }
 0xb58   :  { %v19535_v3 = vadd.f32 %v4538_v47, %v19482_v29  ;;  %v19538_v27 = vadd.f32 %v4581_v34, %v19484_v7 }
 0xb59   :  { %v4540_v38 = vpop.f32.mrf.mxu0  ;;  %v4583_v21 = vpop.f32.mrf.mxu1 }
 0xb5a   :  { %v19541_v25 = vadd.f32 %v4540_v38, %v19486_v5  ;;  %v19544_v17 = vadd.f32 %v4583_v21, %v19488_v9 }
 0xb5b   :  { %v4542_v43 = vpop.f32.mrf.mxu0  ;;  %v4585_v22 = vpop.f32.mrf.mxu1 }
 0xb5c   :  { %v19547_v13 = vadd.f32 %v4542_v43, %v19490_v2  ;;  %v19550_v58 = vadd.f32 %v4585_v22, %v19492_v11 }
 0xb5d   :  { %v19552_v29 = vpop.f32.mrf.mxu0  ;;  %v19554_v7 = vpop.f32.mrf.mxu1 }
 0xb5f   :  { %v4644_v46 = vpop.f32.mrf.mxu0  ;;  %v4696_v18 = vpop.f32.mrf.mxu1 }
 0xb60   :  { %v4645_v5 = vadd.f32 %v19389_v19, %v4644_v46  ;;  %v4697_v20 = vadd.f32 %v19394_v60, %v4696_v18 }
 0xb61   :  { %v16837_v9 = vpop.f32.mrf.mxu0  ;;  %v16843_v59 = vpop.f32.mrf.mxu1 }
 0xb62   :  { %v4705_v41 = vsel %vm3474_vm5, %v4697_v20, -inf  ;;  %v4702_v2 = vsel %vm3474_vm5, %v4645_v5, -inf }
 0xb63   :  { %4706 = vmax.xlane.f32.xlu1 %v4705_v41  ;;  %v4699_v44 = vpop.f32.mrf.mxu1  ;;  %4703 = vmax.xlane.f32.xlu0 %v4702_v2  ;;  %v4647_v11 = vpop.f32.mrf.mxu0 }
 0xb65   :  { %v16838_v36 = vpop.f32.mrf.mxu0  ;;  %v16844_v47 = vpop.f32.mrf.mxu1 }
 0xb66   :  { %v17631_v47 = vld [vmem:[#allocation13 + $0x1e4] ss:$16 sps:$4 sm:$0xff]  }
 0xb74   :  { %4775 = vrot.lane.b32.xlu1 %v19369_v63, %s18982_s3 }
 0xbec   :  { %v4707_v34 = vpop.xlane.xlu1 %4706  ;;  %v4704_v38 = vpop.xlane.xlu0 %4703 }
 0xbed   :  { %v4709_v19 = vsub.f32 %v4697_v20, %v4707_v34  ;;  %v4708_v21 = vsub.f32 %v4645_v5, %v4704_v38  ;;  %v17634_v5 = vld [vmem:[#allocation13 + $0x1ec] ss:$16 sps:$4 sm:$0xff]  }
 0xbef   :  { %v4710_v43 = vmul.f32 1.442695, %v4708_v21  ;;  %v4712_v22 = vmul.f32 1.442695, %v4709_v19  ;;  %v17629_v21 = vld [vmem:[#allocation13 + $0x1e0] ss:$16 sps:$4 sm:$0xff]  }
 0xbf0   :  { %v4776_v46 = vpop.permute.xlu1 %4775 }
 0xbf1   :  { %v4777_v18 = vrot.slane %v4776_v46, 4  ;;  %18573 = vpow2.f32 %v4710_v43 }
 0xbf2   :  { %18575 = vpow2.f32 %v4712_v22  ;;  %v17637_v22 = vld [vmem:[#allocation13 + $0x1c4] ss:$16 sps:$4 sm:$0xff]  }
 0xbf3   :  { %v4782_v9 = vsel %vm3502_vm4, %v4777_v18, 0  ;;  %v17632_v18 = vld [vmem:[#allocation13 + $0x1e8] ss:$16 sps:$4 sm:$0xff]  }
 0xbf4   :  { %16852 = vmatpush3.bf16.msra.mxu1 %v4782_v9  ;;  %v17635_v9 = vld [vmem:[#allocation13 + $0x1c0] ss:$16 sps:$4 sm:$0xff]  }
 0xbf5   :  { %4975 = vmatprep.subr.bf16.mxu1 %v17634_v5  ;;  %v17643_v5 = vld [vmem:[#allocation13 + $0x1a4] ss:$16 sps:$4 sm:$0xff]  }
 0xbfe   :  { %v18574_v59 = vpop.eup %18573 }
 0xbff   :  { %v4714_v41 = vsel %vm3474_vm5, %v18574_v59, 0.0  ;;  %v18576_v2 = vpop.eup %18575 }
 0xc00   :  { %4715 = vadd.xlane.f32.xlu0 %v4714_v41  ;;  %v4717_v63 = vsel %vm3474_vm5, %v18576_v2, 0.0 }
 0xc04   :  { %4718 = vadd.xlane.f32.xlu0 %v4717_v63  ;;  %v17640_v63 = vld [vmem:[#allocation13 + $0x1cc] ss:$16 sps:$4 sm:$0xff]  }
 0xc1a   :  { %4726 = vrot.lane.b32.xlu0 %v19362_v32, %s18982_s3 }
 0xc89   :  { %v4716_v20 = vpop.xlane.xlu0 %4715 }
 0xc8a   :  { %18577 = vrcp.f32 %v4716_v20  ;;  %v17641_v20 = vld [vmem:[#allocation13 + $0x1a0] ss:$16 sps:$4 sm:$0xff]  }
 0xc8d   :  { %v4719_v44 = vpop.xlane.xlu0 %4718 }
 0xc8e   :  { %18579 = vrcp.f32 %v4719_v44  ;;  %v17646_v44 = vld [vmem:[#allocation13 + $0x1ac] ss:$16 sps:$4 sm:$0xff]  }
 0xc91   :  { %v4727_v11 = vpop.permute.xlu0 %4726 }
 0xc92   :  { %v4728_v36 = vrot.slane %v4727_v11, 4  ;;  %v17649_v11 = vld [vmem:[#allocation13 + $0x184] ss:$16 sps:$4 sm:$0xff]  }
 0xc94   :  { %v4733_v34 = vsel %vm3502_vm4, %v4728_v36, 0  ;;  %v17652_v36 = vld [vmem:[#allocation13 + $0x18c] ss:$16 sps:$4 sm:$0xff]  }
 0xc95   :  { %16846 = vmatpush3.bf16.msra.mxu0 %v4733_v34  ;;  %v17650_v34 = vld [vmem:[#allocation13 + $0x188] ss:$16 sps:$4 sm:$0xff]  }
 0xc96   :  { %4932 = vmatprep.subr.bf16.mxu0 %v17631_v47  ;;  %v17647_v47 = vld [vmem:[#allocation13 + $0x180] ss:$16 sps:$4 sm:$0xff]  }
 0xc97   :  { %v18578_v38 = vpop.eup %18577 }
 0xc98   :  { %v4722_v19 = vmul.f32 %v18578_v38, %v18574_v59  ;;  %v17638_v59 = vld [vmem:[#allocation13 + $0x1c8] ss:$16 sps:$4 sm:$0xff]   ;;  %v3090_v38 = vadd.f32 %v19354_v12, %v19343_v40  ;;  %v5022_v12 = vsel %vm3381_vm3, %v19349_v62, 0 }
 0xc9a   :  { %v4724_v43 = vpack.c.bf16 %v4722_v19, %v4722_v19  ;;  %v3133_v19 = vadd.f32 %v19357_v14, %v3090_v38 }
 0xc9b   :  { %v18580_v46 = vpop.eup %18579 }
 0xc9c   :  { %16848 = vmatmul.mubr.msk.bf16.vlgmr.msra.gmra.mxu0 %vm3474_vm5, %v4724_v43  ;;  %v4723_v32 = vmul.f32 %v18580_v46, %v18576_v2  ;;  %v17644_v2 = vld [vmem:[#allocation13 + $0x1a8] ss:$16 sps:$4 sm:$0xff]   ;;  %v3262_v46 = vadd.f32 %v19387_v35, %v19377_v8 }
 0xc9d   :  { %4933 = vmatpush1.bf16.msra.mxu0 %v17629_v21  ;;  %4956 = vmatprep.mubr.bf16.mxu0 %v20488_v30 }
 0xc9e   :  { %v4725_v41 = vpack.c.bf16 %v4723_v32, %v4723_v32  ;;  %4934 = vmatprep.subr.bf16.mxu0 %v17637_v22  ;;  %v19578_v22 = vpack.c.bf16 %v3133_v19, %v19351_v10  ;;  %v3305_v40 = vadd.f32 %v19392_v42, %v3262_v46 }
 0xca0   :  { %16854 = vmatmul.mubr.msk.bf16.vlgmr.msra.gmra.mxu1 %vm3474_vm5, %v4725_v41  ;;  %v5068_v14 = vsel %vm3381_vm3, %v19578_v22, 0  ;;  %v19599_v35 = vpack.c.bf16 %v3305_v40, %v19385_v33 }
 0xca1   :  { %4976 = vmatpush1.bf16.msra.mxu1 %v17632_v18  ;;  %4935 = vmatpush1.bf16.msra.mxu0 %v17635_v9  ;;  %v2918_v9 = vadd.f32 %v19275_v49, %v19251_v45 }
 0xca2   :  { %4977 = vmatprep.subr.bf16.mxu1 %v17640_v63  ;;  %4936 = vmatprep.subr.bf16.mxu0 %v17643_v5 }
 0xca3   :  { %4999 = vmatprep.mubr.bf16.mxu1 %v20488_v30  ;;  %v2961_v45 = vadd.f32 %v19280_v54, %v2918_v9  ;;  %v5138_v54 = vsel %vm3502_vm4, %v19383_v31, 0  ;;  %v19638_v9 = vld [vmem:[#allocation3] ss:$0 sm:$0xff] }
 0xca5   :  { %4978 = vmatpush1.bf16.msra.mxu1 %v17638_v59  ;;  %4937 = vmatpush1.bf16.msra.mxu0 %v17641_v20  ;;  %v19602_v42 = vpack.c.bf16 %v2961_v45, %v19265_v16  ;;  %v5184_v59 = vsel %vm3502_vm4, %v19599_v35, 0 }
 0xca6   :  { %4979 = vmatprep.subr.bf16.mxu1 %v17646_v44  ;;  %4938 = vmatprep.subr.bf16.mxu0 %v17649_v11 }
 0xca9   :  { %4980 = vmatpush1.bf16.msra.mxu1 %v17644_v2  ;;  %4939 = vmatpush1.bf16.msra.mxu0 %v17647_v47 }
 0xcaa   :  { %4981 = vmatprep.subr.bf16.mxu1 %v17652_v36  ;;  %16857 = vmatprep.subr.bf16.mxu0 %v20489_v39 }
 0xcad   :  { %4982 = vmatpush1.bf16.msra.mxu1 %v17650_v34 }
 0xcae   :  { %16863 = vmatprep.subr.bf16.mxu1 %v20489_v39 }
 0xd5c   :  { %v4769_v21 = vpop.f32.mrf.mxu0 }
 0xd5e   :  { %v16849_v43 = vpop.f32.mrf.mxu0 }
 0xd60   :  { %v4772_v32 = vpop.f32.mrf.mxu0  ;;  %v4818_v18 = vpop.f32.mrf.mxu1 }
 0xd61   :  { %v4824_v41 = vpack.c.bf16 %v4818_v18, %v4769_v21 }
 0xd62   :  { %v16850_v63 = vpop.f32.mrf.mxu0  ;;  %v16855_v5 = vpop.f32.mrf.mxu1 }
 0xd63   :  { %15476 = vmatmul.mubr.msk.bf16.vlgmr.msra.gmra.mxu0 %vm3381_vm3, %v4824_v41  ;;  %15477 = vmatmul.mubr.msk.bf16.vlgmr.msra.gmra.mxu1 %vm3381_vm3, %v4824_v41 }
 0xd64   :  { %16858 = vmatpush3.bf16.xpose.msra.mxu0 %v5022_v12  ;;  %16864 = vmatpush3.bf16.xpose.msra.mxu1 %v5068_v14  ;;  %v4821_v8 = vpop.f32.mrf.mxu1 }
 0xd65   :  { %16859 = vmatprep.mubr.msk.bf16.mxu0 %vm18989_vm2, %v20489_v39  ;;  %16865 = vmatprep.mubr.msk.bf16.mxu1 %vm18989_vm2, %v20489_v39 }
 0xd66   :  { %v16856_v49 = vpop.f32.mrf.mxu1  ;;  %16869 = vmatprep.subr.bf16.mxu0 %v20489_v39  ;;  %16875 = vmatprep.subr.bf16.mxu1 %v20489_v39 }
 0xd6b   :  { %16860 = vmatmul.mubr.msk.bf16.vlgmr.msra.gmra.mxu0 %vm3381_vm3, %v19263_v15  ;;  %16866 = vmatmul.mubr.msk.bf16.vlgmr.msra.gmra.mxu1 %vm3381_vm3, %v19602_v42 }
 0xd6c   :  { %16870 = vmatpush3.bf16.msra.mxu0 %v5138_v54  ;;  %16876 = vmatpush3.bf16.msra.mxu1 %v5184_v59 }
 0xd6d   :  { %16871 = vmatprep.mubr.msk.bf16.mxu0 %vm18989_vm2, %v20489_v39  ;;  %16877 = vmatprep.mubr.msk.bf16.mxu1 %vm18989_vm2, %v20489_v39 }
 0xe23   :  { %v4958_v20 = vpop.f32.mrf.mxu0  ;;  %v5001_v44 = vpop.f32.mrf.mxu1 }
 0xe24   :  { %v19617_v2 = vadd.f32 %v4958_v20, %v19535_v3  ;;  %v19620_v11 = vadd.f32 %v5001_v44, %v19538_v27 }
 0xe25   :  { %v4960_v36 = vpop.f32.mrf.mxu0  ;;  %v5003_v47 = vpop.f32.mrf.mxu1 }
 0xe26   :  { %v19623_v34 = vadd.f32 %v4960_v36, %v19541_v25  ;;  %v19626_v38 = vadd.f32 %v5003_v47, %v19544_v17 }
 0xe27   :  { %v4962_v19 = vpop.f32.mrf.mxu0  ;;  %v5005_v21 = vpop.f32.mrf.mxu1 }
 0xe28   :  { %v19629_v43 = vadd.f32 %v4962_v19, %v19547_v13  ;;  %v19632_v46 = vadd.f32 %v5005_v21, %v19550_v58  ;;  %v16650_v19 = vpack.c.bf16 %v19351_v10, %v19351_v10  ;;  %v16647_v21 = vpack.c.bf16 %v19259_v6, %v19259_v6 }
 0xe29   :  { %v19634_v3 = vpop.f32.mrf.mxu0  ;;  %v19636_v27 = vpop.f32.mrf.mxu1 }
 0xe2b   :  { %v5058_v32 = vpop.f32.mrf.mxu0  ;;  %v5104_v18 = vpop.f32.mrf.mxu1 }
 0xe2c   :  { %v5059_v25 = vadd.f32 %v19638_v9, %v5058_v32  ;;  %v5105_v17 = vadd.f32 %v19394_v60, %v5104_v18  ;;  %v16648_v32 = vpack.c.bf16 %v19346_v1, %v19346_v1  ;;  %v16649_v18 = vpack.c.bf16 %v19265_v16, %v19265_v16  ;;  %v17656_v1 = vld [vmem:[#allocation13 + $0x268] ss:$16 sps:$4 sm:$0xff]   ;;  %v17661_v16 = vld [vmem:[#allocation13 + $0x244] ss:$16 sps:$4 sm:$0xff]  }
 0xe2d   :  { %v16861_v41 = vpop.f32.mrf.mxu0  ;;  %v16867_v63 = vpop.f32.mrf.mxu1 }
 0xe2e   :  { %v5113_v13 = vsel %vm3474_vm5, %v5105_v17, -inf  ;;  %v5110_v5 = vsel %vm3474_vm5, %v5059_v25, -inf }
 0xe2f   :  { %5114 = vmax.xlane.f32.xlu0 %v5113_v13  ;;  %v5107_v58 = vpop.f32.mrf.mxu1  ;;  %5111 = vmax.xlane.f32.xlu1 %v5110_v5  ;;  %v5061_v40 = vpop.f32.mrf.mxu0 }
 0xe30   :  { %v17653_v40 = vld [vmem:[#allocation13 + $0x260] ss:$16 sps:$4 sm:$0xff]  }
 0xe31   :  { %v16862_v12 = vpop.f32.mrf.mxu0  ;;  %v16868_v14 = vpop.f32.mrf.mxu1 }
 0xe32   :  { %v17664_v12 = vld [vmem:[#allocation13 + $0x24c] ss:$16 sps:$4 sm:$0xff]  }
 0xeb8   :  { %v5115_v8 = vpop.xlane.xlu0 %5114  ;;  %v5112_v45 = vpop.xlane.xlu1 %5111 }
 0xeb9   :  { %v5117_v49 = vsub.f32 %v5105_v17, %v5115_v8  ;;  %v5116_v54 = vsub.f32 %v5059_v25, %v5112_v45  ;;  %v17655_v25 = vld [vmem:[#allocation13 + $0x264] ss:$16 sps:$4 sm:$0xff]   ;;  %v17658_v17 = vld [vmem:[#allocation13 + $0x26c] ss:$16 sps:$4 sm:$0xff]   ;;  %v17662_v8 = vld [vmem:[#allocation13 + $0x248] ss:$16 sps:$4 sm:$0xff]  }
 0xeba   :  { %5334 = vmatprep.subr.bf16.mxu0 %v17655_v25  ;;  %5377 = vmatprep.subr.bf16.mxu1 %v17658_v17  ;;  %v17659_v45 = vld [vmem:[#allocation13 + $0x240] ss:$16 sps:$4 sm:$0xff]  }
 0xebb   :  { %v5120_v59 = vmul.f32 1.442695, %v5117_v49  ;;  %v5118_v20 = vmul.f32 1.442695, %v5116_v54  ;;  %v17670_v49 = vld [vmem:[#allocation13 + $0x22c] ss:$16 sps:$4 sm:$0xff]  }
 0xebc   :  { %v17667_v54 = vld [vmem:[#allocation13 + $0x224] ss:$16 sps:$4 sm:$0xff]  }
 0xebd   :  { %18581 = vpow2.f32 %v5120_v59  ;;  %v17668_v59 = vld [vmem:[#allocation13 + $0x228] ss:$16 sps:$4 sm:$0xff]  }
 0xebe   :  { %18583 = vpow2.f32 %v5118_v20  ;;  %v17665_v20 = vld [vmem:[#allocation13 + $0x220] ss:$16 sps:$4 sm:$0xff]  }
 0xeca   :  { %v18582_v60 = vpop.eup %18581 }
 0xecb   :  { %v18584_v44 = vpop.eup %18583  ;;  %v5125_v36 = vsel %vm3474_vm5, %v18582_v60, 0.0 }
 0xecc   :  { %5126 = vadd.xlane.f32.xlu1 %v5125_v36  ;;  %v5122_v47 = vsel %vm3474_vm5, %v18584_v44, 0.0  ;;  %v17674_v36 = vld [vmem:[#allocation13 + $0x208] ss:$16 sps:$4 sm:$0xff]  }
 0xecd   :  { %5123 = vadd.xlane.f32.xlu0 %v5122_v47  ;;  %v17671_v47 = vld [vmem:[#allocation13 + $0x200] ss:$16 sps:$4 sm:$0xff]  }
 0xedd   :  { %5476 = vrot.lane.b32.xlu1 %v16650_v19, %s18982_s3 }
 0xee1   :  { %5421 = vrot.lane.b32.xlu1 %v16647_v21, %s18982_s3 }
 0xee3   :  { %5424 = vrot.lane.b32.xlu0 %v16648_v32, %s18982_s3 }
 0xee5   :  { %5473 = vrot.lane.b32.xlu1 %v16649_v18, %s18982_s3 }
 0xf55   :  { %v5127_v10 = vpop.xlane.xlu1 %5126 }
 0xf56   :  { %v5124_v41 = vpop.xlane.xlu0 %5123  ;;  %18585 = vrcp.f32 %v5127_v10 }
 0xf57   :  { %18587 = vrcp.f32 %v5124_v41 }
 0xf59   :  { %v5477_v19 = vpop.permute.xlu1 %5476 }
 0xf5a   :  { %v5425_v32 = vpop.permute.xlu0 %5424 }
 0xf5b   :  { %v5430_v41 = vsel %vm3381_vm3, %v5425_v32, 0 }
 0xf63   :  { %v18586_v6 = vpop.eup %18585 }
 0xf64   :  { %v18588_v63 = vpop.eup %18587  ;;  %v5131_v13 = vmul.f32 %v18586_v6, %v18582_v60  ;;  %v17676_v60 = vld [vmem:[#allocation13 + $0x20c] ss:$16 sps:$4 sm:$0xff]   ;;  %v5482_v6 = vsel %vm3381_vm3, %v5477_v19, 0 }
 0xf65   :  { %v5130_v5 = vmul.f32 %v18588_v63, %v18584_v44  ;;  %v17673_v44 = vld [vmem:[#allocation13 + $0x204] ss:$16 sps:$4 sm:$0xff]  }
 0xf66   :  { %v5133_v58 = vpack.c.bf16 %v5131_v13, %v5131_v13  ;;  %v5422_v13 = vpop.permute.xlu1 %5421 }
 0xf67   :  { %v5132_v14 = vpack.c.bf16 %v5130_v5, %v5130_v5 }
 0xf68   :  { %16878 = vmatmul.mubr.msk.bf16.vlgmr.msra.gmra.mxu1 %vm3474_vm5, %v5133_v58 }
 0xf69   :  { %16872 = vmatmul.mubr.msk.bf16.vlgmr.msra.gmra.mxu0 %vm3474_vm5, %v5132_v14  ;;  %5378 = vmatpush1.bf16.msra.mxu1 %v17656_v1 }
 0xf6a   :  { %5335 = vmatpush1.bf16.msra.mxu0 %v17653_v40  ;;  %5379 = vmatprep.subr.bf16.mxu1 %v17664_v12  ;;  %v5474_v40 = vpop.permute.xlu1 %5473 }
 0xf6b   :  { %5336 = vmatprep.subr.bf16.mxu0 %v17661_v16  ;;  %5358 = vmatprep.mubr.bf16.mxu0 %v20488_v30 }
 0xf6c   :  { %5401 = vmatprep.mubr.bf16.mxu1 %v20488_v30 }
 0xf6d   :  { %5380 = vmatpush1.bf16.msra.mxu1 %v17662_v8 }
 0xf6e   :  { %5337 = vmatpush1.bf16.msra.mxu0 %v17659_v45  ;;  %5381 = vmatprep.subr.bf16.mxu1 %v17670_v49 }
 0xf6f   :  { %5338 = vmatprep.subr.bf16.mxu0 %v17667_v54 }
 0xf71   :  { %5382 = vmatpush1.bf16.msra.mxu1 %v17668_v59 }
 0xf72   :  { %5339 = vmatpush1.bf16.msra.mxu0 %v17665_v20  ;;  %5383 = vmatprep.subr.bf16.mxu1 %v17676_v60 }
 0xf73   :  { %5340 = vmatprep.subr.bf16.mxu0 %v17673_v44 }
 0xf75   :  { %5384 = vmatpush1.bf16.msra.mxu1 %v17674_v36 }
 0xf76   :  { %5341 = vmatpush1.bf16.msra.mxu0 %v17671_v47  ;;  %16887 = vmatprep.subr.bf16.mxu1 %v20489_v39 }
 0xf77   :  { %16881 = vmatprep.subr.bf16.mxu0 %v20489_v39 }
0x1028   :  { %v5220_v21 = vpop.f32.mrf.mxu1 }
0x1029   :  { %v5174_v18 = vpop.f32.mrf.mxu0 }
0x102a   :  { %v5226_v25 = vpack.c.bf16 %v5220_v21, %v5174_v18  ;;  %v16879_v17 = vpop.f32.mrf.mxu1  ;;  %v19703_v21 = vld [vmem:[#allocation3 + $0x1] ss:$0 sm:$0xff] }
0x102b   :  { %v16873_v10 = vpop.f32.mrf.mxu0 }
0x102c   :  { %15498 = vmatmul.mubr.msk.bf16.vlgmr.msra.gmra.mxu0 %vm3381_vm3, %v5226_v25  ;;  %15499 = vmatmul.mubr.msk.bf16.vlgmr.msra.gmra.mxu1 %vm3381_vm3, %v5226_v25  ;;  %v5223_v63 = vpop.f32.mrf.mxu1 }
0x102d   :  { %16882 = vmatpush3.bf16.xpose.msra.mxu0 %v5430_v41  ;;  %16888 = vmatpush3.bf16.xpose.msra.mxu1 %v5482_v6  ;;  %v5177_v5 = vpop.f32.mrf.mxu0  ;;  %v16652_v6 = vpack.c.bf16 %v19385_v33, %v19385_v33 }
0x102e   :  { %v16880_v1 = vpop.f32.mrf.mxu1  ;;  %16883 = vmatprep.mubr.msk.bf16.mxu0 %vm18989_vm2, %v20489_v39  ;;  %16889 = vmatprep.mubr.msk.bf16.mxu1 %vm18989_vm2, %v20489_v39 }
0x102f   :  { %v16874_v58 = vpop.f32.mrf.mxu0  ;;  %16899 = vmatprep.subr.bf16.mxu1 %v20489_v39  ;;  %16893 = vmatprep.subr.bf16.mxu0 %v20489_v39 }
0x1034   :  { %16884 = vmatmul.mubr.msk.bf16.vlgmr.msra.gmra.mxu0 %vm3381_vm3, %v5422_v13  ;;  %16890 = vmatmul.mubr.msk.bf16.vlgmr.msra.gmra.mxu1 %vm3381_vm3, %v5474_v40 }
0x1035   :  { %16895 = vmatprep.mubr.msk.bf16.mxu0 %vm18989_vm2, %v20489_v39  ;;  %16901 = vmatprep.mubr.msk.bf16.mxu1 %vm18989_vm2, %v20489_v39 }
0x10ec   :  { %v5360_v12 = vpop.f32.mrf.mxu0  ;;  %v5403_v14 = vpop.f32.mrf.mxu1 }
0x10ed   :  { %v19681_v16 = vadd.f32 %v5360_v12, %v19617_v2  ;;  %v19684_v8 = vadd.f32 %v5403_v14, %v19620_v11 }
0x10ee   :  { %v5362_v45 = vpop.f32.mrf.mxu0  ;;  %v5405_v49 = vpop.f32.mrf.mxu1 }
0x10ef   :  { %v19687_v54 = vadd.f32 %v5362_v45, %v19623_v34  ;;  %v19690_v59 = vadd.f32 %v5405_v49, %v19626_v38 }
0x10f0   :  { %v5364_v20 = vpop.f32.mrf.mxu0  ;;  %v5407_v60 = vpop.f32.mrf.mxu1 }
0x10f1   :  { %v19693_v44 = vadd.f32 %v5364_v20, %v19629_v43  ;;  %v19696_v36 = vadd.f32 %v5407_v60, %v19632_v46  ;;  %v16651_v60 = vpack.c.bf16 %v19380_v0, %v19380_v0 }
0x10f2   :  { %v19698_v2 = vpop.f32.mrf.mxu0  ;;  %v19700_v11 = vpop.f32.mrf.mxu1 }
0x10f4   :  { %v5466_v47 = vpop.f32.mrf.mxu0  ;;  %v5518_v19 = vpop.f32.mrf.mxu1 }
0x10f5   :  { %v5467_v34 = vadd.f32 %v19638_v9, %v5466_v47  ;;  %v5519_v38 = vadd.f32 %v19703_v21, %v5518_v19  ;;  %v17682_v47 = vld [vmem:[#allocation13 + $0x2ec] ss:$16 sps:$4 sm:$0xff]  }
0x10f6   :  { %v16885_v32 = vpop.f32.mrf.mxu0  ;;  %v16891_v18 = vpop.f32.mrf.mxu1 }
0x10f7   :  { %v5527_v43 = vsel %vm3474_vm5, %v5519_v38, -inf  ;;  %v5524_v25 = vsel %vm3474_vm5, %v5467_v34, -inf }
0x10f8   :  { %5528 = vmax.xlane.f32.xlu1 %v5527_v43  ;;  %v5521_v46 = vpop.f32.mrf.mxu1  ;;  %5525 = vmax.xlane.f32.xlu0 %v5524_v25  ;;  %v5469_v17 = vpop.f32.mrf.mxu0 }
0x10f9   :  { %v17677_v46 = vld [vmem:[#allocation13 + $0x2e0] ss:$16 sps:$4 sm:$0xff]  }
0x10fa   :  { %v16886_v10 = vpop.f32.mrf.mxu0  ;;  %v16892_v41 = vpop.f32.mrf.mxu1 }
0x10fb   :  { %v17685_v10 = vld [vmem:[#allocation13 + $0x2c4] ss:$16 sps:$4 sm:$0xff]  }
0x1109   :  { %5598 = vrot.lane.b32.xlu1 %v16652_v6, %s18982_s3  ;;  %v17680_v6 = vld [vmem:[#allocation13 + $0x2e8] ss:$16 sps:$4 sm:$0xff]  }
0x1181   :  { %v5529_v63 = vpop.xlane.xlu1 %5528  ;;  %v5526_v13 = vpop.xlane.xlu0 %5525 }
0x1182   :  { %v5531_v5 = vsub.f32 %v5519_v38, %v5529_v63  ;;  %v5530_v1 = vsub.f32 %v5467_v34, %v5526_v13  ;;  %v17679_v38 = vld [vmem:[#allocation13 + $0x2e4] ss:$16 sps:$4 sm:$0xff]   ;;  %v17683_v63 = vld [vmem:[#allocation13 + $0x2c0] ss:$16 sps:$4 sm:$0xff]  }
0x1184   :  { %v5532_v58 = vmul.f32 1.442695, %v5530_v1  ;;  %v5534_v40 = vmul.f32 1.442695, %v5531_v5  ;;  %v17688_v5 = vld [vmem:[#allocation13 + $0x2cc] ss:$16 sps:$4 sm:$0xff]  }
0x1185   :  { %v5599_v12 = vpop.permute.xlu1 %5598  ;;  %v17691_v1 = vld [vmem:[#allocation13 + $0x2a4] ss:$16 sps:$4 sm:$0xff]  }
0x1186   :  { %v5604_v14 = vsel %vm3502_vm4, %v5599_v12, 0  ;;  %18589 = vpow2.f32 %v5532_v58  ;;  %v17686_v58 = vld [vmem:[#allocation13 + $0x2c8] ss:$16 sps:$4 sm:$0xff]   ;;  %v17694_v12 = vld [vmem:[#allocation13 + $0x2ac] ss:$16 sps:$4 sm:$0xff]  }
0x1187   :  { %16900 = vmatpush3.bf16.msra.mxu1 %v5604_v14  ;;  %18591 = vpow2.f32 %v5534_v40  ;;  %v17689_v40 = vld [vmem:[#allocation13 + $0x2a0] ss:$16 sps:$4 sm:$0xff]   ;;  %v17692_v14 = vld [vmem:[#allocation13 + $0x2a8] ss:$16 sps:$4 sm:$0xff]  }
0x1188   :  { %5797 = vmatprep.subr.bf16.mxu1 %v17682_v47 }
0x1193   :  { %v18590_v45 = vpop.eup %18589 }
0x1194   :  { %v5536_v49 = vsel %vm3474_vm5, %v18590_v45, 0.0  ;;  %v18592_v20 = vpop.eup %18591 }
0x1195   :  { %5537 = vadd.xlane.f32.xlu0 %v5536_v49  ;;  %v5539_v33 = vsel %vm3474_vm5, %v18592_v20, 0.0  ;;  %v17700_v49 = vld [vmem:[#allocation13 + $0x28c] ss:$16 sps:$4 sm:$0xff]  }
0x1199   :  { %5540 = vadd.xlane.f32.xlu0 %v5539_v33  ;;  %v17698_v33 = vld [vmem:[#allocation13 + $0x288] ss:$16 sps:$4 sm:$0xff]  }
0x11af   :  { %5549 = vrot.lane.b32.xlu0 %v16651_v60, %s18982_s3 }
0x121e   :  { %v5538_v19 = vpop.xlane.xlu0 %5537 }
0x121f   :  { %18593 = vrcp.f32 %v5538_v19  ;;  %v5841_v19 = vrot.slane %v19349_v62, 4 }
0x1222   :  { %v5541_v34 = vpop.xlane.xlu0 %5540 }
0x1223   :  { %18595 = vrcp.f32 %v5541_v34  ;;  %v5889_v34 = vrot.slane %v19578_v22, 4 }
0x1226   :  { %v5550_v32 = vpop.permute.xlu0 %5549 }
0x1227   :  { %v5555_v18 = vsel %vm3502_vm4, %v5550_v32, 0 }
0x1228   :  { %16894 = vmatpush3.bf16.msra.mxu0 %v5555_v18 }
0x1229   :  { %5754 = vmatprep.subr.bf16.mxu0 %v17679_v38 }
0x122c   :  { %v18594_v43 = vpop.eup %18593 }
0x122d   :  { %v5544_v25 = vmul.f32 %v18594_v43, %v18590_v45  ;;  %v17697_v45 = vld [vmem:[#allocation13 + $0x284] ss:$16 sps:$4 sm:$0xff]  }
0x122f   :  { %v5546_v17 = vpack.c.bf16 %v5544_v25, %v5544_v25 }
0x1230   :  { %v18596_v0 = vpop.eup %18595 }
0x1231   :  { %16896 = vmatmul.mubr.msk.bf16.vlgmr.msra.gmra.mxu0 %vm3474_vm5, %v5546_v17  ;;  %v5545_v41 = vmul.f32 %v18596_v0, %v18592_v20  ;;  %v17695_v20 = vld [vmem:[#allocation13 + $0x280] ss:$16 sps:$4 sm:$0xff]   ;;  %v5894_v17 = vsel %vm3381_vm3, %v5889_v34, 0 }
0x1232   :  { %5755 = vmatpush1.bf16.msra.mxu0 %v17677_v46  ;;  %5778 = vmatprep.mubr.bf16.mxu0 %v20488_v30  ;;  %v5846_v46 = vsel %vm3381_vm3, %v5841_v19, 0 }
0x1233   :  { %v5547_v13 = vpack.c.bf16 %v5545_v41, %v5545_v41  ;;  %5756 = vmatprep.subr.bf16.mxu0 %v17685_v10  ;;  %v5960_v41 = vrot.slane %v19383_v31, 4 }
0x1235   :  { %16902 = vmatmul.mubr.msk.bf16.vlgmr.msra.gmra.mxu1 %vm3474_vm5, %v5547_v13  ;;  %v5888_v13 = vrot.slane %v19602_v42, 4 }
0x1236   :  { %5798 = vmatpush1.bf16.msra.mxu1 %v17680_v6  ;;  %5757 = vmatpush1.bf16.msra.mxu0 %v17683_v63  ;;  %v6007_v6 = vrot.slane %v19599_v35, 4  ;;  %v5840_v63 = vrot.slane %v19263_v15, 4 }
0x1237   :  { %5799 = vmatprep.subr.bf16.mxu1 %v17688_v5  ;;  %5758 = vmatprep.subr.bf16.mxu0 %v17691_v1  ;;  %v5965_v5 = vsel %vm3502_vm4, %v5960_v41, 0 }
0x1238   :  { %5821 = vmatprep.mubr.bf16.mxu1 %v20488_v30  ;;  %v6012_v1 = vsel %vm3502_vm4, %v6007_v6, 0 }
0x123a   :  { %5800 = vmatpush1.bf16.msra.mxu1 %v17686_v58  ;;  %5759 = vmatpush1.bf16.msra.mxu0 %v17689_v40  ;;  %v4145_v58 = vadd.f32 %v19494_v50, %v19478_v37  ;;  %v4188_v40 = vadd.f32 %v19496_v4, %v19480_v52 }
0x123b   :  { %5801 = vmatprep.subr.bf16.mxu1 %v17694_v12  ;;  %5760 = vmatprep.subr.bf16.mxu0 %v17697_v45 }
0x123c   :  { %v4595_v45 = vadd.f32 %v19552_v29, %v4145_v58 }
0x123e   :  { %5802 = vmatpush1.bf16.msra.mxu1 %v17692_v14  ;;  %5761 = vmatpush1.bf16.msra.mxu0 %v17695_v20  ;;  %v5015_v19 = vadd.f32 %v19634_v3, %v4595_v45  ;;  %v17706_v45 = vld [vmem:[#allocation13 + $0x36c] ss:$16 sps:$4 sm:$0xff]  }
0x123f   :  { %5803 = vmatprep.subr.bf16.mxu1 %v17700_v49  ;;  %16905 = vmatprep.subr.bf16.mxu0 %v20489_v39  ;;  %v4597_v49 = vadd.f32 %v19554_v7, %v4188_v40 }
0x1240   :  { %v5417_v7 = vadd.f32 %v19698_v2, %v5015_v19 }
0x1241   :  { %v5017_v50 = vadd.f32 %v19636_v27, %v4597_v49 }
0x1242   :  { %5804 = vmatpush1.bf16.msra.mxu1 %v17698_v33 }
0x1243   :  { %16911 = vmatprep.subr.bf16.mxu1 %v20489_v39 }
0x12f1   :  { %v5591_v60 = vpop.f32.mrf.mxu0 }
0x12f3   :  { %v16897_v47 = vpop.f32.mrf.mxu0 }
0x12f5   :  { %v5594_v38 = vpop.f32.mrf.mxu0  ;;  %v5640_v32 = vpop.f32.mrf.mxu1 }
0x12f6   :  { %v5646_v18 = vpack.c.bf16 %v5640_v32, %v5591_v60 }
0x12f7   :  { %v16898_v43 = vpop.f32.mrf.mxu0  ;;  %v16903_v25 = vpop.f32.mrf.mxu1 }
0x12f8   :  { %15526 = vmatmul.mubr.msk.bf16.vlgmr.msra.gmra.mxu0 %vm3381_vm3, %v5646_v18  ;;  %15527 = vmatmul.mubr.msk.bf16.vlgmr.msra.gmra.mxu1 %vm3381_vm3, %v5646_v18 }
0x12f9   :  { %16906 = vmatpush3.bf16.xpose.msra.mxu0 %v5846_v46  ;;  %16912 = vmatpush3.bf16.xpose.msra.mxu1 %v5894_v17  ;;  %v5643_v10 = vpop.f32.mrf.mxu1 }
0x12fa   :  { %16907 = vmatprep.mubr.msk.bf16.mxu0 %vm18989_vm2, %v20489_v39  ;;  %16913 = vmatprep.mubr.msk.bf16.mxu1 %vm18989_vm2, %v20489_v39 }
0x12fb   :  { %v16904_v0 = vpop.f32.mrf.mxu1  ;;  %16917 = vmatprep.subr.bf16.mxu0 %v20489_v39  ;;  %16923 = vmatprep.subr.bf16.mxu1 %v20489_v39 }
0x1300   :  { %16908 = vmatmul.mubr.msk.bf16.vlgmr.msra.gmra.mxu0 %vm3381_vm3, %v5840_v63  ;;  %16914 = vmatmul.mubr.msk.bf16.vlgmr.msra.gmra.mxu1 %vm3381_vm3, %v5888_v13 }
0x1301   :  { %16918 = vmatpush3.bf16.msra.mxu0 %v5965_v5  ;;  %16924 = vmatpush3.bf16.msra.mxu1 %v6012_v1 }
0x1302   :  { %16919 = vmatprep.mubr.msk.bf16.mxu0 %vm18989_vm2, %v20489_v39  ;;  %16925 = vmatprep.mubr.msk.bf16.mxu1 %vm18989_vm2, %v20489_v39 }
0x1303   :  { %6205 = vmatprep.subr.bf16.mxu1 %v17706_v45 }
0x13b8   :  { %v5780_v12 = vpop.f32.mrf.mxu0  ;;  %v5823_v14 = vpop.f32.mrf.mxu1 }
0x13b9   :  { %v19755_v20 = vadd.f32 %v5780_v12, %v19681_v16  ;;  %v19758_v33 = vadd.f32 %v5823_v14, %v19684_v8  ;;  %v5419_v16 = vadd.f32 %v19700_v11, %v5017_v50  ;;  %v17703_v14 = vld [vmem:[#allocation13 + $0x364] ss:$16 sps:$4 sm:$0xff]  }
0x13ba   :  { %v5782_v60 = vpop.f32.mrf.mxu0  ;;  %v5825_v47 = vpop.f32.mrf.mxu1  ;;  %6162 = vmatprep.subr.bf16.mxu0 %v17703_v14 }
0x13bb   :  { %v19763_v4 = vadd.f32 %v5782_v60, %v19687_v54  ;;  %v19766_v37 = vadd.f32 %v5825_v47, %v19690_v59 }
0x13bc   :  { %v5784_v52 = vpop.f32.mrf.mxu0  ;;  %v5827_v29 = vpop.f32.mrf.mxu1 }
0x13bd   :  { %v19771_v8 = vadd.f32 %v5784_v52, %v19693_v44  ;;  %v19774_v34 = vadd.f32 %v5827_v29, %v19696_v36  ;;  %v17704_v52 = vld [vmem:[#allocation13 + $0x368] ss:$16 sps:$4 sm:$0xff]   ;;  %v17701_v29 = vld [vmem:[#allocation13 + $0x360] ss:$16 sps:$4 sm:$0xff]  }
0x13be   :  { %v5786_v3 = vpop.f32.mrf.mxu0  ;;  %v5829_v27 = vpop.f32.mrf.mxu1 }
0x13bf   :  { %v19776_v38 = vadd.f32 %v5786_v3, %v5417_v7  ;;  %v19778_v54 = vadd.f32 %v5829_v27, %v5419_v16  ;;  %v17712_v7 = vld [vmem:[#allocation13 + $0x34c] ss:$16 sps:$4 sm:$0xff]   ;;  %v17709_v16 = vld [vmem:[#allocation13 + $0x344] ss:$16 sps:$4 sm:$0xff]   ;;  %v17707_v3 = vld [vmem:[#allocation13 + $0x340] ss:$16 sps:$4 sm:$0xff]  }
0x13c0   :  { %v5882_v59 = vpop.f32.mrf.mxu0  ;;  %v5930_v32 = vpop.f32.mrf.mxu1  ;;  %v17718_v27 = vld [vmem:[#allocation13 + $0x32c] ss:$16 sps:$4 sm:$0xff]  }
0x13c1   :  { %v5883_v18 = vadd.f32 %v19638_v9, %v5882_v59  ;;  %v5931_v2 = vadd.f32 %v19703_v21, %v5930_v32  ;;  %v17715_v59 = vld [vmem:[#allocation13 + $0x324] ss:$16 sps:$4 sm:$0xff]   ;;  %v17716_v32 = vld [vmem:[#allocation13 + $0x328] ss:$16 sps:$4 sm:$0xff]  }
0x13c2   :  { %v16909_v43 = vpop.f32.mrf.mxu0  ;;  %v16915_v11 = vpop.f32.mrf.mxu1 }
0x13c3   :  { %v5939_v44 = vsel %vm3474_vm5, %v5931_v2, -inf  ;;  %v5936_v25 = vsel %vm3474_vm5, %v5883_v18, -inf  ;;  %v17721_v43 = vld [vmem:[#allocation13 + $0x304] ss:$16 sps:$4 sm:$0xff]   ;;  %v17722_v11 = vld [vmem:[#allocation13 + $0x308] ss:$16 sps:$4 sm:$0xff]  }
0x13c4   :  { %5940 = vmax.xlane.f32.xlu0 %v5939_v44  ;;  %v5933_v36 = vpop.f32.mrf.mxu1  ;;  %5937 = vmax.xlane.f32.xlu1 %v5936_v25  ;;  %v5885_v46 = vpop.f32.mrf.mxu0  ;;  %v17719_v44 = vld [vmem:[#allocation13 + $0x300] ss:$16 sps:$4 sm:$0xff]  }
0x13c6   :  { %v16910_v17 = vpop.f32.mrf.mxu0  ;;  %v16916_v10 = vpop.f32.mrf.mxu1 }
0x144d   :  { %v5941_v0 = vpop.xlane.xlu0 %5940  ;;  %v5938_v41 = vpop.xlane.xlu1 %5937 }
0x144e   :  { %v5943_v6 = vsub.f32 %v5931_v2, %v5941_v0  ;;  %v5942_v63 = vsub.f32 %v5883_v18, %v5938_v41  ;;  %v17713_v18 = vld [vmem:[#allocation13 + $0x320] ss:$16 sps:$4 sm:$0xff]   ;;  %v17724_v2 = vld [vmem:[#allocation13 + $0x30c] ss:$16 sps:$4 sm:$0xff]  }
0x1450   :  { %v5946_v13 = vmul.f32 1.442695, %v5943_v6  ;;  %v5944_v5 = vmul.f32 1.442695, %v5942_v63 }
0x1452   :  { %18597 = vpow2.f32 %v5946_v13 }
0x1453   :  { %18599 = vpow2.f32 %v5944_v5 }
0x145f   :  { %v18598_v1 = vpop.eup %18597 }
0x1460   :  { %v18600_v58 = vpop.eup %18599  ;;  %v5951_v40 = vsel %vm3474_vm5, %v18598_v1, 0.0 }
0x1461   :  { %5952 = vadd.xlane.f32.xlu1 %v5951_v40  ;;  %v5948_v12 = vsel %vm3474_vm5, %v18600_v58, 0.0 }
0x1462   :  { %5949 = vadd.xlane.f32.xlu0 %v5948_v12 }
0x1472   :  { %6303 = vrot.lane.b32.xlu1 %v19578_v22, %s18982_s3 }
0x1476   :  { %6248 = vrot.lane.b32.xlu1 %v19263_v15, %s18982_s3 }
0x1478   :  { %6251 = vrot.lane.b32.xlu0 %v19349_v62, %s18982_s3 }
0x147a   :  { %6300 = vrot.lane.b32.xlu1 %v19602_v42, %s18982_s3  ;;  %v17710_v42 = vld [vmem:[#allocation13 + $0x348] ss:$16 sps:$4 sm:$0xff]  }
0x14ea   :  { %v5953_v49 = vpop.xlane.xlu1 %5952 }
0x14eb   :  { %v5950_v60 = vpop.xlane.xlu0 %5949  ;;  %18601 = vrcp.f32 %v5953_v49 }
0x14ec   :  { %18603 = vrcp.f32 %v5950_v60 }
0x14ee   :  { %v6304_v25 = vpop.permute.xlu1 %6303 }
0x14ef   :  { %v6252_v36 = vpop.permute.xlu0 %6251  ;;  %v6305_v17 = vrot.slane %v6304_v25, 4 }
0x14f0   :  { %v6253_v46 = vrot.slane %v6252_v36, 4 }
0x14f2   :  { %v6249_v0 = vpop.permute.xlu1 %6248  ;;  %v6258_v5 = vsel %vm3381_vm3, %v6253_v46, 0 }
0x14f3   :  { %v6250_v49 = vrot.slane %v6249_v0, 4 }
0x14f6   :  { %v6301_v14 = vpop.permute.xlu1 %6300 }
0x14f7   :  { %v6302_v60 = vrot.slane %v6301_v14, 4 }
0x14f8   :  { %v18602_v47 = vpop.eup %18601 }
0x14f9   :  { %v18604_v19 = vpop.eup %18603  ;;  %v5957_v22 = vmul.f32 %v18602_v47, %v18598_v1  ;;  %v6310_v1 = vsel %vm3381_vm3, %v6305_v17, 0 }
0x14fa   :  { %v5956_v50 = vmul.f32 %v18604_v19, %v18600_v58 }
0x14fb   :  { %v5959_v15 = vpack.c.bf16 %v5957_v22, %v5957_v22 }
0x14fc   :  { %v5958_v62 = vpack.c.bf16 %v5956_v50, %v5956_v50 }
0x14fd   :  { %16926 = vmatmul.mubr.msk.bf16.vlgmr.msra.gmra.mxu1 %vm3474_vm5, %v5959_v15 }
0x14fe   :  { %16920 = vmatmul.mubr.msk.bf16.vlgmr.msra.gmra.mxu0 %vm3474_vm5, %v5958_v62  ;;  %6206 = vmatpush1.bf16.msra.mxu1 %v17704_v52 }
0x14ff   :  { %6163 = vmatpush1.bf16.msra.mxu0 %v17701_v29  ;;  %6207 = vmatprep.subr.bf16.mxu1 %v17712_v7 }
0x1500   :  { %6164 = vmatprep.subr.bf16.mxu0 %v17709_v16  ;;  %6186 = vmatprep.mubr.bf16.mxu0 %v20488_v30 }
0x1501   :  { %6229 = vmatprep.mubr.bf16.mxu1 %v20488_v30 }
0x1502   :  { %6208 = vmatpush1.bf16.msra.mxu1 %v17710_v42 }
0x1503   :  { %6165 = vmatpush1.bf16.msra.mxu0 %v17707_v3  ;;  %6209 = vmatprep.subr.bf16.mxu1 %v17718_v27 }
0x1504   :  { %6166 = vmatprep.subr.bf16.mxu0 %v17715_v59 }
0x1506   :  { %6210 = vmatpush1.bf16.msra.mxu1 %v17716_v32 }
0x1507   :  { %6167 = vmatpush1.bf16.msra.mxu0 %v17713_v18  ;;  %6211 = vmatprep.subr.bf16.mxu1 %v17724_v2 }
0x1508   :  { %6168 = vmatprep.subr.bf16.mxu0 %v17721_v43 }
0x150a   :  { %6212 = vmatpush1.bf16.msra.mxu1 %v17722_v11 }
0x150b   :  { %6169 = vmatpush1.bf16.msra.mxu0 %v17719_v44  ;;  %16935 = vmatprep.subr.bf16.mxu1 %v20489_v39 }
0x150c   :  { %16929 = vmatprep.subr.bf16.mxu0 %v20489_v39 }
0x15bd   :  { %v6048_v10 = vpop.f32.mrf.mxu1 }
0x15be   :  { %v6001_v41 = vpop.f32.mrf.mxu0 }
0x15bf   :  { %v6054_v6 = vpack.c.bf16 %v6048_v10, %v6001_v41  ;;  %v16927_v63 = vpop.f32.mrf.mxu1 }
0x15c0   :  { %v16921_v13 = vpop.f32.mrf.mxu0 }
0x15c1   :  { %15548 = vmatmul.mubr.msk.bf16.vlgmr.msra.gmra.mxu0 %vm3381_vm3, %v6054_v6  ;;  %15549 = vmatmul.mubr.msk.bf16.vlgmr.msra.gmra.mxu1 %vm3381_vm3, %v6054_v6  ;;  %v6051_v58 = vpop.f32.mrf.mxu1  ;;  %v17730_v13 = vld [vmem:[#allocation13 + $0x3ec] ss:$16 sps:$4 sm:$0xff]  }
0x15c2   :  { %16930 = vmatpush3.bf16.xpose.msra.mxu0 %v6258_v5  ;;  %16936 = vmatpush3.bf16.xpose.msra.mxu1 %v6310_v1  ;;  %v6004_v40 = vpop.f32.mrf.mxu0 }
0x15c3   :  { %v16928_v12 = vpop.f32.mrf.mxu1  ;;  %16931 = vmatprep.mubr.msk.bf16.mxu0 %vm18989_vm2, %v20489_v39  ;;  %16937 = vmatprep.mubr.msk.bf16.mxu1 %vm18989_vm2, %v20489_v39 }
0x15c4   :  { %v16922_v45 = vpop.f32.mrf.mxu0  ;;  %16947 = vmatprep.subr.bf16.mxu1 %v20489_v39  ;;  %16941 = vmatprep.subr.bf16.mxu0 %v20489_v39  ;;  %v17727_v12 = vld [vmem:[#allocation13 + $0x3e4] ss:$16 sps:$4 sm:$0xff]  }
0x15c9   :  { %16932 = vmatmul.mubr.msk.bf16.vlgmr.msra.gmra.mxu0 %vm3381_vm3, %v6250_v49  ;;  %16938 = vmatmul.mubr.msk.bf16.vlgmr.msra.gmra.mxu1 %vm3381_vm3, %v6302_v60  ;;  %v17725_v60 = vld [vmem:[#allocation13 + $0x3e0] ss:$16 sps:$4 sm:$0xff]  }
0x15ca   :  { %16943 = vmatprep.mubr.msk.bf16.mxu0 %vm18989_vm2, %v20489_v39  ;;  %16949 = vmatprep.mubr.msk.bf16.mxu1 %vm18989_vm2, %v20489_v39 }
0x1681   :  { %v6188_v47 = vpop.f32.mrf.mxu0  ;;  %v6231_v19 = vpop.f32.mrf.mxu1 }
0x1682   :  { %v19817_v22 = vadd.f32 %v6188_v47, %v19755_v20  ;;  %v19820_v50 = vadd.f32 %v6231_v19, %v19758_v33  ;;  %v17733_v19 = vld [vmem:[#allocation13 + $0x3c4] ss:$16 sps:$4 sm:$0xff]  }
0x1683   :  { %v6190_v52 = vpop.f32.mrf.mxu0  ;;  %v6233_v15 = vpop.f32.mrf.mxu1 }
0x1684   :  { %v19823_v29 = vadd.f32 %v6190_v52, %v19763_v4  ;;  %v19826_v7 = vadd.f32 %v6233_v15, %v19766_v37  ;;  %v17728_v15 = vld [vmem:[#allocation13 + $0x3e8] ss:$16 sps:$4 sm:$0xff]  }
0x1685   :  { %v6192_v62 = vpop.f32.mrf.mxu0  ;;  %v6235_v16 = vpop.f32.mrf.mxu1 }
0x1686   :  { %v19829_v39 = vadd.f32 %v6192_v62, %v19771_v8  ;;  %v19832_v42 = vadd.f32 %v6235_v16, %v19774_v34  ;;  %v17731_v62 = vld [vmem:[#allocation13 + $0x3c0] ss:$16 sps:$4 sm:$0xff]  }
0x1687   :  { %v6194_v20 = vpop.f32.mrf.mxu0  ;;  %v6237_v3 = vpop.f32.mrf.mxu1 }
0x1688   :  { %v19835_v33 = vadd.f32 %v6194_v20, %v19776_v38  ;;  %v19838_v27 = vadd.f32 %v6237_v3, %v19778_v54  ;;  %v17736_v20 = vld [vmem:[#allocation13 + $0x3cc] ss:$16 sps:$4 sm:$0xff]   ;;  %v17739_v3 = vld [vmem:[#allocation13 + $0x3a4] ss:$16 sps:$4 sm:$0xff]  }
0x1689   :  { %v6294_v4 = vpop.f32.mrf.mxu0  ;;  %v6346_v59 = vpop.f32.mrf.mxu1 }
0x168a   :  { %v6295_v37 = vadd.f32 %v19638_v9, %v6294_v4  ;;  %v6347_v32 = vadd.f32 %v19703_v21, %v6346_v59  ;;  %v17734_v4 = vld [vmem:[#allocation13 + $0x3c8] ss:$16 sps:$4 sm:$0xff]   ;;  %v17737_v59 = vld [vmem:[#allocation13 + $0x3a0] ss:$16 sps:$4 sm:$0xff]  }
0x168b   :  { %v16933_v18 = vpop.f32.mrf.mxu0  ;;  %v16939_v8 = vpop.f32.mrf.mxu1 }
0x168c   :  { %v6355_v2 = vsel %vm3474_vm5, %v6347_v32, -inf  ;;  %v6352_v34 = vsel %vm3474_vm5, %v6295_v37, -inf  ;;  %v17745_v18 = vld [vmem:[#allocation13 + $0x384] ss:$16 sps:$4 sm:$0xff]   ;;  %v17748_v8 = vld [vmem:[#allocation13 + $0x38c] ss:$16 sps:$4 sm:$0xff]  }
0x168d   :  { %6356 = vmax.xlane.f32.xlu1 %v6355_v2  ;;  %v6349_v43 = vpop.f32.mrf.mxu1  ;;  %6353 = vmax.xlane.f32.xlu0 %v6352_v34  ;;  %v6297_v38 = vpop.f32.mrf.mxu0  ;;  %v17743_v2 = vld [vmem:[#allocation13 + $0x380] ss:$16 sps:$4 sm:$0xff]   ;;  %v17746_v34 = vld [vmem:[#allocation13 + $0x388] ss:$16 sps:$4 sm:$0xff]  }
0x168f   :  { %v16934_v11 = vpop.f32.mrf.mxu0  ;;  %v16940_v44 = vpop.f32.mrf.mxu1 }
0x169e   :  { %6425 = vrot.lane.b32.xlu1 %v19599_v35, %s18982_s3 }
0x1716   :  { %v6357_v54 = vpop.xlane.xlu1 %6356  ;;  %v6354_v25 = vpop.xlane.xlu0 %6353 }
0x1717   :  { %v6359_v9 = vsub.f32 %v6347_v32, %v6357_v54  ;;  %v6358_v36 = vsub.f32 %v6295_v37, %v6354_v25  ;;  %v17742_v37 = vld [vmem:[#allocation13 + $0x3ac] ss:$16 sps:$4 sm:$0xff]   ;;  %v17740_v32 = vld [vmem:[#allocation13 + $0x3a8] ss:$16 sps:$4 sm:$0xff]  }
0x1719   :  { %v6360_v21 = vmul.f32 1.442695, %v6358_v36  ;;  %v6362_v46 = vmul.f32 1.442695, %v6359_v9 }
0x171a   :  { %v6426_v17 = vpop.permute.xlu1 %6425 }
0x171b   :  { %v6427_v10 = vrot.slane %v6426_v17, 4  ;;  %18605 = vpow2.f32 %v6360_v21  ;;  %v6668_v21 = vld [vmem:[#allocation14] sm:$0xf] }
0x171c   :  { %18607 = vpow2.f32 %v6362_v46  ;;  %v6673_v46 = vrot.slane %v6668_v21, %v19169_v24 }
0x171d   :  { %v6432_v0 = vsel %vm3502_vm4, %v6427_v10, 0 }
0x171e   :  { %16948 = vmatpush3.bf16.msra.mxu1 %v6432_v0 }
0x171f   :  { %6625 = vmatprep.subr.bf16.mxu1 %v17730_v13 }
0x1728   :  { %v18606_v41 = vpop.eup %18605 }
0x1729   :  { %v6364_v6 = vsel %vm3474_vm5, %v18606_v41, 0.0  ;;  %v18608_v63 = vpop.eup %18607 }
0x172a   :  { %6365 = vadd.xlane.f32.xlu0 %v6364_v6  ;;  %v6367_v35 = vsel %vm3474_vm5, %v18608_v63, 0.0  ;;  %v6681_v6 = vrot.slane %v6668_v21, %v19175_v28 }
0x172e   :  { %6368 = vadd.xlane.f32.xlu0 %v6367_v35 }
0x1744   :  { %6376 = vrot.lane.b32.xlu0 %v19383_v31, %s18982_s3 }
0x17b3   :  { %v6366_v5 = vpop.xlane.xlu0 %6365 }
0x17b4   :  { %18609 = vrcp.f32 %v6366_v5  ;;  %v6685_v5 = vrot.slane %v6668_v21, %v19172_v26 }
0x17b7   :  { %v6369_v1 = vpop.xlane.xlu0 %6368 }
0x17b8   :  { %18611 = vrcp.f32 %v6369_v1 }
0x17bb   :  { %v6377_v58 = vpop.permute.xlu0 %6376 }
0x17bc   :  { %v6378_v40 = vrot.slane %v6377_v58, 4 }
0x17be   :  { %v6383_v14 = vsel %vm3502_vm4, %v6378_v40, 0 }
0x17bf   :  { %16942 = vmatpush3.bf16.msra.mxu0 %v6383_v14 }
0x17c0   :  { %6582 = vmatprep.subr.bf16.mxu0 %v17727_v12 }
0x17c1   :  { %v18610_v45 = vpop.eup %18609 }
0x17c2   :  { %v6372_v49 = vmul.f32 %v18610_v45, %v18606_v41 }
0x17c4   :  { %v6374_v47 = vpack.c.bf16 %v6372_v49, %v6372_v49 }
0x17c5   :  { %v18612_v52 = vpop.eup %18611 }
0x17c6   :  { %v6373_v31 = vmul.f32 %v18612_v52, %v18608_v63  ;;  %16944 = vmatmul.mubr.msk.bf16.vlgmr.msra.gmra.mxu0 %vm3474_vm5, %v6374_v47  ;;  %v6677_v63 = vrot.slane %v6668_v21, %v19166_v23  ;;  %v7159_v21 = vld [vmem:[#allocation19 + $0xa80] sm:$0xff] }
0x17c7   :  { %6583 = vmatpush1.bf16.msra.mxu0 %v17725_v60  ;;  %6606 = vmatprep.mubr.bf16.mxu0 %v20488_v30 }
0x17c8   :  { %v6375_v16 = vpack.c.bf16 %v6373_v31, %v6373_v31  ;;  %6584 = vmatprep.subr.bf16.mxu0 %v17733_v19 }
0x17ca   :  { %16950 = vmatmul.mubr.msk.bf16.vlgmr.msra.gmra.mxu1 %vm3474_vm5, %v6375_v16 }
0x17cb   :  { %6626 = vmatpush1.bf16.msra.mxu1 %v17728_v15  ;;  %6585 = vmatpush1.bf16.msra.mxu0 %v17731_v62 }
0x17cc   :  { %6627 = vmatprep.subr.bf16.mxu1 %v17736_v20  ;;  %6586 = vmatprep.subr.bf16.mxu0 %v17739_v3 }
0x17cd   :  { %6649 = vmatprep.mubr.bf16.mxu1 %v20488_v30 }
0x17cf   :  { %6628 = vmatpush1.bf16.msra.mxu1 %v17734_v4  ;;  %6587 = vmatpush1.bf16.msra.mxu0 %v17737_v59 }
0x17d0   :  { %6629 = vmatprep.subr.bf16.mxu1 %v17742_v37  ;;  %6588 = vmatprep.subr.bf16.mxu0 %v17745_v18  ;;  %v6935_v37 = vld [vmem:[#allocation19 + $0x380] sm:$0xff] }
0x17d1   :  { %v7191_v18 = vld [vmem:[#allocation19 + $0xb80] sm:$0xff] }
0x17d3   :  { %6630 = vmatpush1.bf16.msra.mxu1 %v17740_v32  ;;  %6589 = vmatpush1.bf16.msra.mxu0 %v17743_v2  ;;  %v6943_v32 = vld [vmem:[#allocation19 + $0x3c0] sm:$0xff] }
0x17d4   :  { %6631 = vmatprep.subr.bf16.mxu1 %v17748_v8  ;;  %v15684_v8 = vcombine.low %v6935_v37, %v6943_v32  ;;  %v7199_v2 = vld [vmem:[#allocation19 + $0xbc0] sm:$0xff] }
0x17d7   :  { %6632 = vmatpush1.bf16.msra.mxu1 %v17746_v34  ;;  %v6919_v34 = vld [vmem:[#allocation19 + $0x300] sm:$0xff] }
0x1886   :  { %v6419_v43 = vpop.f32.mrf.mxu0 }
0x1888   :  { %v16945_v38 = vpop.f32.mrf.mxu0 }
0x1889   :  { %v15940_v38 = vcombine.low %v7191_v18, %v7199_v2 }
0x188a   :  { %v6422_v11 = vpop.f32.mrf.mxu0  ;;  %v6468_v44 = vpop.f32.mrf.mxu1 }
0x188b   :  { %v6474_v54 = vpack.c.bf16 %v6468_v44, %v6419_v43  ;;  %v6927_v43 = vld [vmem:[#allocation19 + $0x340] sm:$0xff]  ;;  %v15941_v11 = vcombine.high %v7191_v18, %v7199_v2 }
0x188c   :  { %v16946_v25 = vpop.f32.mrf.mxu0  ;;  %v16951_v30 = vpop.f32.mrf.mxu1  ;;  %v15669_v44 = vcombine.high %v6919_v34, %v6927_v43  ;;  %v6823_v18 = vld [vmem:[#allocation19] sm:$0xff] }
0x188d   :  { %15570 = vmatmul.mubr.msk.bf16.vlgmr.msra.gmra.mxu0 %vm3381_vm3, %v6474_v54  ;;  %15571 = vmatmul.mubr.msk.bf16.vlgmr.msra.gmra.mxu1 %vm3381_vm3, %v6474_v54  ;;  %v7175_v54 = vld [vmem:[#allocation19 + $0xb00] sm:$0xff] }
0x188e   :  { %v6471_v9 = vpop.f32.mrf.mxu1  ;;  %v7183_v25 = vld [vmem:[#allocation19 + $0xb40] sm:$0xff]  ;;  %10022 = vmatprep.subr.bf16.mxu1 %v15941_v11 }
0x188f   :  { %v6903_v30 = vld [vmem:[#allocation19 + $0x280] sm:$0xff]  ;;  %v15925_v9 = vcombine.high %v7175_v54, %v7183_v25  ;;  %10023 = vmatpush1.bf16.msra.mxu1 %v15940_v38 }
0x1890   :  { %v16952_v36 = vpop.f32.mrf.mxu1  ;;  %v7087_v2 = vld [vmem:[#allocation19 + $0x840] sm:$0xff] }
0x1891   :  { %v6911_v36 = vld [vmem:[#allocation19 + $0x2c0] sm:$0xff]  ;;  %10024 = vmatprep.subr.bf16.mxu1 %v15925_v9 }
0x194d   :  { %v6608_v17 = vpop.f32.mrf.mxu0  ;;  %v6651_v10 = vpop.f32.mrf.mxu1 }
0x194e   :  { %v6660_v0 = vadd.f32 %v6608_v17, %v19817_v22  ;;  %v6662_v41 = vadd.f32 %v6651_v10, %v19820_v50  ;;  %v15668_v17 = vcombine.low %v6919_v34, %v6927_v43  ;;  %v15924_v10 = vcombine.low %v7175_v54, %v7183_v25  ;;  %v7071_v54 = vld [vmem:[#allocation19 + $0x7c0] sm:$0xff] }
0x194f   :  { %v6610_v35 = vpop.f32.mrf.mxu0  ;;  %v6653_v13 = vpop.f32.mrf.mxu1  ;;  %v7319_v25 = vld [vmem:[#allocation19 + $0xf80] sm:$0xff] }
0x1950   :  { %v6690_v1 = vadd.f32 %v6673_v46, %v6660_v0  ;;  %v6661_v58 = vadd.f32 %v6610_v35, %v19823_v29  ;;  %v6663_v40 = vadd.f32 %v6653_v13, %v19826_v7  ;;  %v6692_v45 = vadd.f32 %v6681_v6, %v6662_v41  ;;  %v7143_v35 = vld [vmem:[#allocation19 + $0xa00] sm:$0xff]  ;;  %10025 = vmatpush1.bf16.msra.mxu1 %v15924_v10 }
0x1951   :  { %v6612_v12 = vpop.f32.mrf.mxu0  ;;  %v6655_v14 = vpop.f32.mrf.mxu1  ;;  %v15653_v0 = vcombine.high %v6903_v30, %v6911_v36  ;;  %v7151_v13 = vld [vmem:[#allocation19 + $0xa40] sm:$0xff] }
0x1952   :  { %v6691_v49 = vadd.f32 %v6677_v63, %v6661_v58  ;;  %v6693_v22 = vadd.f32 %v6685_v5, %v6663_v40  ;;  %v6664_v50 = vadd.f32 %v6612_v12, %v19829_v39  ;;  %v6666_v60 = vadd.f32 %v6655_v14, %v19832_v42  ;;  %v6871_v12 = vld [vmem:[#allocation19 + $0x180] sm:$0xff] }
0x1953   :  { %v6614_v47 = vpop.f32.mrf.mxu0  ;;  %v6657_v19 = vpop.f32.mrf.mxu1  ;;  %v19869_v52 = vadd.f32 %v6690_v1, %v19187_v55  ;;  %v19877_v62 = vadd.f32 %v6692_v45, %v19199_v61  ;;  %v15893_v40 = vcombine.high %v7143_v35, %v7151_v13  ;;  %v6879_v14 = vld [vmem:[#allocation19 + $0x1c0] sm:$0xff] }
0x1954   :  { %v19872_v31 = vadd.f32 %v6691_v49, %v19183_v51  ;;  %v6665_v29 = vadd.f32 %v6614_v47, %v19835_v33  ;;  %v6667_v7 = vadd.f32 %v6657_v19, %v19838_v27  ;;  %v6694_v15 = vadd.f32 %v6673_v46, %v6664_v50  ;;  %v7167_v46 = vld [vmem:[#allocation19 + $0xac0] sm:$0xff] }
0x1955   :  { %v6696_v16 = vadd.f32 %v6681_v6, %v6666_v60  ;;  %v19882_v20 = vadd.f32 %v6693_v22, %v19191_v57  ;;  %v20490_v57 = vld [vmem:[#allocation39_spill] sm:$0xff]  ;;  %v15909_v41 = vcombine.high %v7159_v21, %v7167_v46  ;;  %v6887_v6 = vld [vmem:[#allocation19 + $0x200] sm:$0xff]  ;;  %v15908_v1 = vcombine.low %v7159_v21, %v7167_v46 }
0x1956   :  { %v6695_v39 = vadd.f32 %v6677_v63, %v6665_v29  ;;  %v6708_v42 = vadd.f32 %v19872_v31, %v19869_v52  ;;  %v19885_v55 = vadd.f32 %v6694_v15, %v19181_v48  ;;  %v6697_v33 = vadd.f32 %v6685_v5, %v6667_v7  ;;  %v6895_v63 = vld [vmem:[#allocation19 + $0x240] sm:$0xff] }
0x1957   :  { %v19892_v61 = vadd.f32 %v6696_v16, %v19189_v56  ;;  %v15685_v56 = vcombine.high %v6935_v37, %v6943_v32  ;;  %v15652_v5 = vcombine.low %v6903_v30, %v6911_v36  ;;  %v15637_v58 = vcombine.high %v6887_v6, %v6895_v63  ;;  %10026 = vmatprep.subr.bf16.mxu1 %v15909_v41  ;;  %v7127_v45 = vld [vmem:[#allocation19 + $0x980] sm:$0xff] }
0x1958   :  { %v19888_v51 = vadd.f32 %v6695_v39, %v19185_v53  ;;  %v6709_v27 = vadd.f32 %v6708_v42, %v19877_v62  ;;  %v19898_v59 = vadd.f32 %v6697_v33, %v20490_v57  ;;  %v7135_v49 = vld [vmem:[#allocation19 + $0x9c0] sm:$0xff]  ;;  %v15636_v22 = vcombine.low %v6887_v6, %v6895_v63  ;;  %10027 = vmatpush1.bf16.msra.mxu1 %v15908_v1 }
0x1959   :  { %9979 = vmatprep.subr.bf16.mxu0 %v15685_v56  ;;  %v15892_v50 = vcombine.low %v7143_v35, %v7151_v13  ;;  %v15621_v60 = vcombine.high %v6871_v12, %v6879_v14  ;;  %10028 = vmatprep.subr.bf16.mxu1 %v15893_v40  ;;  %v15877_v47 = vcombine.high %v7127_v45, %v7135_v49  ;;  %v6855_v19 = vld [vmem:[#allocation19 + $0x100] sm:$0xff] }
0x195a   :  { %v6710_v3 = vadd.f32 %v6709_v27, %v19882_v20  ;;  %v6713_v4 = vadd.f32 %v19888_v51, %v19885_v55  ;;  %9980 = vmatpush1.bf16.msra.mxu0 %v15684_v8  ;;  %v6863_v29 = vld [vmem:[#allocation19 + $0x140] sm:$0xff]  ;;  %v15620_v16 = vcombine.low %v6871_v12, %v6879_v14  ;;  %v15876_v39 = vcombine.low %v7127_v45, %v7135_v49 }
0x195b   :  { %9981 = vmatprep.subr.bf16.mxu0 %v15669_v44  ;;  %v7111_v7 = vld [vmem:[#allocation19 + $0x900] sm:$0xff]  ;;  %v15605_v42 = vcombine.high %v6855_v19, %v6863_v29 }
0x195c   :  { %6711 = vadd.xlane.f32.xlu1 %v6710_v3  ;;  %v6714_v48 = vadd.f32 %v6713_v4, %v19892_v61  ;;  %v7119_v15 = vld [vmem:[#allocation19 + $0x940] sm:$0xff]  ;;  %10029 = vmatpush1.bf16.msra.mxu1 %v15892_v50 }
0x195d   :  { %10030 = vmatprep.subr.bf16.mxu1 %v15877_v47  ;;  %v15861_v33 = vcombine.high %v7111_v7, %v7119_v15  ;;  %v6839_v27 = vld [vmem:[#allocation19 + $0x80] sm:$0xff] }
0x195e   :  { %v6715_v53 = vadd.f32 %v6714_v48, %v19898_v59  ;;  %9982 = vmatpush1.bf16.msra.mxu0 %v15668_v17  ;;  %v6847_v3 = vld [vmem:[#allocation19 + $0xc0] sm:$0xff]  ;;  %v15604_v48 = vcombine.low %v6855_v19, %v6863_v29 }
0x195f   :  { %9983 = vmatprep.subr.bf16.mxu0 %v15653_v0  ;;  %v7095_v4 = vld [vmem:[#allocation19 + $0x880] sm:$0xff]  ;;  %v15589_v37 = vcombine.high %v6839_v27, %v6847_v3  ;;  %v15588_v34 = vcombine.low %v6839_v27, %v6847_v3 }
0x1960   :  { %6716 = vadd.xlane.f32.xlu0 %v6715_v53  ;;  %v7103_v57 = vld [vmem:[#allocation19 + $0x8c0] sm:$0xff]  ;;  %10031 = vmatpush1.bf16.msra.mxu1 %v15876_v39  ;;  %v15860_v53 = vcombine.low %v7111_v7, %v7119_v15 }
0x1961   :  { %10032 = vmatprep.subr.bf16.mxu1 %v15861_v33  ;;  %v15845_v32 = vcombine.high %v7095_v4, %v7103_v57  ;;  %v6831_v8 = vld [vmem:[#allocation19 + $0x40] sm:$0xff]  ;;  %v15844_v43 = vcombine.low %v7095_v4, %v7103_v57 }
0x1962   :  { %9984 = vmatpush1.bf16.msra.mxu0 %v15652_v5  ;;  %v7079_v56 = vld [vmem:[#allocation19 + $0x800] sm:$0xff]  ;;  %v15573_v38 = vcombine.high %v6823_v18, %v6831_v8  ;;  %v15572_v9 = vcombine.low %v6823_v18, %v6831_v8 }
0x1963   :  { %9985 = vmatprep.subr.bf16.mxu0 %v15637_v58  ;;  %v15829_v11 = vcombine.high %v7079_v56, %v7087_v2  ;;  %v7063_v44 = vld [vmem:[#allocation19 + $0x780] sm:$0xff]  ;;  %v15828_v36 = vcombine.low %v7079_v56, %v7087_v2 }
0x1964   :  { %10033 = vmatpush1.bf16.msra.mxu1 %v15860_v53  ;;  %v7327_v30 = vld [vmem:[#allocation19 + $0xfc0] sm:$0xff]  ;;  %v15813_v21 = vcombine.high %v7063_v44, %v7071_v54  ;;  %v15812_v17 = vcombine.low %v7063_v44, %v7071_v54 }
0x1965   :  { %10034 = vmatprep.subr.bf16.mxu1 %v15845_v32  ;;  %v16069_v46 = vcombine.high %v7319_v25, %v7327_v30  ;;  %v16068_v10 = vcombine.low %v7319_v25, %v7327_v30  ;;  %v7055_v29 = vld [vmem:[#allocation19 + $0x740] sm:$0xff] }
0x1966   :  { %9986 = vmatpush1.bf16.msra.mxu0 %v15636_v22  ;;  %v7303_v7 = vld [vmem:[#allocation19 + $0xf00] sm:$0xff] }
0x1967   :  { %9987 = vmatprep.subr.bf16.mxu0 %v15621_v60  ;;  %v7031_v27 = vld [vmem:[#allocation19 + $0x680] sm:$0xff] }
0x1968   :  { %10035 = vmatpush1.bf16.msra.mxu1 %v15844_v43  ;;  %v7039_v3 = vld [vmem:[#allocation19 + $0x6c0] sm:$0xff] }
0x1969   :  { %10036 = vmatprep.subr.bf16.mxu1 %v15829_v11  ;;  %v7287_v4 = vld [vmem:[#allocation19 + $0xe80] sm:$0xff]  ;;  %v15781_v57 = vcombine.high %v7031_v27, %v7039_v3  ;;  %v15780_v53 = vcombine.low %v7031_v27, %v7039_v3  ;;  %v19950_v27 = vld [vmem:[#allocation19 + $0xbc8] sm:$0xff] }
0x196a   :  { %9988 = vmatpush1.bf16.msra.mxu0 %v15620_v16  ;;  %v7311_v16 = vld [vmem:[#allocation19 + $0xf40] sm:$0xff] }
0x196b   :  { %9989 = vmatprep.subr.bf16.mxu0 %v15605_v42  ;;  %v16052_v42 = vcombine.low %v7303_v7, %v7311_v16  ;;  %v16053_v33 = vcombine.high %v7303_v7, %v7311_v16  ;;  %v7015_v18 = vld [vmem:[#allocation19 + $0x600] sm:$0xff]  ;;  %v19942_v16 = vld [vmem:[#allocation19 + $0x388] sm:$0xff] }
0x196c   :  { %10037 = vmatpush1.bf16.msra.mxu1 %v15828_v36  ;;  %v7023_v8 = vld [vmem:[#allocation19 + $0x640] sm:$0xff] }
0x196d   :  { %10038 = vmatprep.subr.bf16.mxu1 %v16069_v46  ;;  %v7271_v56 = vld [vmem:[#allocation19 + $0xe00] sm:$0xff]  ;;  %v15764_v2 = vcombine.low %v7015_v18, %v7023_v8 }
0x196e   :  { %9990 = vmatpush1.bf16.msra.mxu0 %v15604_v48  ;;  %v7295_v48 = vld [vmem:[#allocation19 + $0xec0] sm:$0xff] }
0x196f   :  { %9991 = vmatprep.subr.bf16.mxu0 %v15589_v37  ;;  %v16036_v37 = vcombine.low %v7287_v4, %v7295_v48  ;;  %v16037_v32 = vcombine.high %v7287_v4, %v7295_v48  ;;  %v7279_v43 = vld [vmem:[#allocation19 + $0xe40] sm:$0xff] }
0x1970   :  { %10039 = vmatpush2.bf16.msra.mxu1 %v16068_v10  ;;  %v7007_v11 = vld [vmem:[#allocation19 + $0x5c0] sm:$0xff]  ;;  %v16020_v44 = vcombine.low %v7271_v56, %v7279_v43  ;;  %v16021_v54 = vcombine.high %v7271_v56, %v7279_v43  ;;  %v6706_v56 = vld [vmem:[#allocation16] sm:$0xf] }
0x1971   :  { %10040 = vmatprep.subr.bf16.mxu1 %v16053_v33  ;;  %v7255_v30 = vld [vmem:[#allocation19 + $0xd80] sm:$0xff] }
0x1972   :  { %9992 = vmatpush1.bf16.msra.mxu0 %v15588_v34  ;;  %v15765_v34 = vcombine.high %v7015_v18, %v7023_v8  ;;  %v6983_v36 = vld [vmem:[#allocation19 + $0x500] sm:$0xff] }
0x1973   :  { %9993 = vmatprep.subr.bf16.mxu0 %v15573_v38  ;;  %v6999_v38 = vld [vmem:[#allocation19 + $0x580] sm:$0xff] }
0x1974   :  { %10041 = vmatpush2.bf16.msra.mxu1 %v16052_v42  ;;  %v15749_v25 = vcombine.high %v6999_v38, %v7007_v11  ;;  %v6991_v46 = vld [vmem:[#allocation19 + $0x540] sm:$0xff]  ;;  %v19946_v42 = vld [vmem:[#allocation19 + $0xb88] sm:$0xff] }
0x1975   :  { %10042 = vmatprep.subr.bf16.mxu1 %v16037_v32  ;;  %v7247_v10 = vld [vmem:[#allocation19 + $0xd40] sm:$0xff]  ;;  %v15942_v4 = vcombine.low %v19946_v42, %v19950_v27 }
0x1976   :  { %9994 = vmatpush1.bf16.msra.mxu0 %v15572_v9  ;;  %v7263_v9 = vld [vmem:[#allocation19 + $0xdc0] sm:$0xff] }
0x1977   :  { %9995 = vmatprep.subr.bf16.mxu0 %v15813_v21  ;;  %v16005_v21 = vcombine.high %v7255_v30, %v7263_v9 }
0x1978   :  { %10043 = vmatpush2.bf16.msra.mxu1 %v16036_v37 }
0x1979   :  { %10044 = vmatprep.subr.bf16.mxu1 %v16021_v54 }
0x197a   :  { %9996 = vmatpush2.bf16.msra.mxu0 %v15812_v17  ;;  %v7239_v17 = vld [vmem:[#allocation19 + $0xd00] sm:$0xff] }
0x197c   :  { %10045 = vmatpush2.bf16.msra.mxu1 %v16020_v44  ;;  %v6777_v44 = vrot.slane %v6706_v56, %v19172_v26 }
0x197d   :  { %10046 = vmatprep.subr.bf16.mxu1 %v16005_v21 }
0x19e5   :  { %v6712_v0 = vpop.xlane.xlu1 %6711 }
0x19e6   :  { %v6719_v41 = vmul.f32 0.001953125, %v6712_v0  ;;  %v15748_v0 = vcombine.low %v6999_v38, %v7007_v11  ;;  %v6769_v38 = vrot.slane %v6706_v56, %v19166_v23 }
0x19e8   :  { %v19903_v6 = vsub.f32 %v19869_v52, %v6719_v41  ;;  %v19906_v63 = vsub.f32 %v19872_v31, %v6719_v41  ;;  %v19909_v35 = vsub.f32 %v19877_v62, %v6719_v41  ;;  %v19912_v5 = vsub.f32 %v19882_v20, %v6719_v41 }
0x19e9   :  { %v6717_v13 = vpop.xlane.xlu0 %6716  ;;  %v16004_v41 = vcombine.low %v7255_v30, %v7263_v9  ;;  %v6773_v9 = vrot.slane %v6706_v56, %v19175_v28 }
0x19ea   :  { %v6720_v1 = vmul.f32 0.001953125, %v6717_v13  ;;  %v6729_v58 = vmul.f32 %v19903_v6, %v19903_v6  ;;  %v6730_v40 = vmul.f32 %v19906_v63, %v19906_v63  ;;  %v6731_v52 = vmul.f32 %v19909_v35, %v19909_v35 }
0x19eb   :  { %v6732_v14 = vmul.f32 %v19912_v5, %v19912_v5  ;;  %v15733_v13 = vcombine.high %v6983_v36, %v6991_v46  ;;  %10047 = vmatpush2.bf16.msra.mxu1 %v16004_v41 }
0x19ec   :  { %v19921_v31 = vsub.f32 %v19885_v55, %v6720_v1  ;;  %v19924_v62 = vsub.f32 %v19888_v51, %v6720_v1  ;;  %v6737_v12 = vadd.f32 %v6730_v40, %v6729_v58  ;;  %v19927_v20 = vsub.f32 %v19892_v61, %v6720_v1  ;;  %v6967_v58 = vld [vmem:[#allocation19 + $0x480] sm:$0xff] }
0x19ed   :  { %v19932_v49 = vsub.f32 %v19898_v59, %v6720_v1  ;;  %v7047_v59 = vld [vmem:[#allocation19 + $0x700] sm:$0xff]  ;;  %v15989_v1 = vcombine.high %v7239_v17, %v7247_v10 }
0x19ee   :  { %v6738_v45 = vadd.f32 %v6737_v12, %v6731_v52  ;;  %v6733_v22 = vmul.f32 %v19921_v31, %v19921_v31  ;;  %v6734_v55 = vmul.f32 %v19924_v62, %v19924_v62  ;;  %v6735_v51 = vmul.f32 %v19927_v20, %v19927_v20  ;;  %v6975_v40 = vld [vmem:[#allocation19 + $0x4c0] sm:$0xff] }
0x19ef   :  { %v6736_v61 = vmul.f32 %v19932_v49, %v19932_v49  ;;  %v15797_v15 = vcombine.high %v7047_v59, %v7055_v29  ;;  %v15796_v39 = vcombine.low %v7047_v59, %v7055_v29  ;;  %v7223_v52 = vld [vmem:[#allocation19 + $0xc80] sm:$0xff]  ;;  %10048 = vmatprep.subr.bf16.mxu1 %v15989_v1 }
0x19f0   :  { %v6739_v50 = vadd.f32 %v6738_v45, %v6732_v14  ;;  %v6742_v60 = vadd.f32 %v6734_v55, %v6733_v22  ;;  %v7231_v12 = vld [vmem:[#allocation19 + $0xcc0] sm:$0xff]  ;;  %v15732_v14 = vcombine.low %v6983_v36, %v6991_v46  ;;  %v15988_v45 = vcombine.low %v7239_v17, %v7247_v10 }
0x19f1   :  { %9997 = vmatprep.subr.bf16.mxu0 %v15797_v15  ;;  %v15717_v22 = vcombine.high %v6967_v58, %v6975_v40  ;;  %v15973_v55 = vcombine.high %v7223_v52, %v7231_v12 }
0x19f2   :  { %6740 = vadd.xlane.f32.xlu0 %v6739_v50  ;;  %v6743_v47 = vadd.f32 %v6742_v60, %v6735_v51  ;;  %9998 = vmatpush2.bf16.msra.mxu0 %v15796_v39  ;;  %v6951_v50 = vld [vmem:[#allocation19 + $0x400] sm:$0xff]  ;;  %v19944_v39 = vld [vmem:[#allocation19 + $0x3c8] sm:$0xff] }
0x19f3   :  { %9999 = vmatprep.subr.bf16.mxu0 %v15781_v57  ;;  %v6959_v51 = vld [vmem:[#allocation19 + $0x440] sm:$0xff]  ;;  %10049 = vmatpush2.bf16.msra.mxu1 %v15988_v45  ;;  %v15687_v33 = vcombine.high %v19942_v16, %v19944_v39  ;;  %v15686_v3 = vcombine.low %v19942_v16, %v19944_v39  ;;  %v15943_v57 = vcombine.high %v19946_v42, %v19950_v27 }
0x19f4   :  { %v6744_v19 = vadd.f32 %v6743_v47, %v6736_v61  ;;  %v7207_v60 = vld [vmem:[#allocation19 + $0xc00] sm:$0xff]  ;;  %v15716_v47 = vcombine.low %v6967_v58, %v6975_v40  ;;  %v15701_v59 = vcombine.high %v6951_v50, %v6959_v51  ;;  %10050 = vmatprep.subr.bf16.mxu1 %v15973_v55  ;;  %v15700_v7 = vcombine.low %v6951_v50, %v6959_v51  ;;  %v6928_v51 = vld [vmem:[#allocation19 + $0x348] sm:$0xff] }
0x19f5   :  { %v7215_v61 = vld [vmem:[#allocation19 + $0xc40] sm:$0xff] }
0x19f6   :  { %6745 = vadd.xlane.f32.xlu1 %v6744_v19  ;;  %10000 = vmatpush2.bf16.msra.mxu0 %v15780_v53  ;;  %v15972_v19 = vcombine.low %v7223_v52, %v7231_v12  ;;  %v15957_v29 = vcombine.high %v7207_v60, %v7215_v61  ;;  %v15956_v15 = vcombine.low %v7207_v60, %v7215_v61  ;;  %v7176_v60 = vld [vmem:[#allocation19 + $0xb08] sm:$0xff] }
0x19f7   :  { %10001 = vmatprep.subr.bf16.mxu0 %v15765_v34  ;;  %v6707_v34 = vld [vmem:[#allocation17] sm:$0xf]  ;;  %v7184_v61 = vld [vmem:[#allocation19 + $0xb48] sm:$0xff] }
0x19f8   :  { %10051 = vmatpush2.bf16.msra.mxu1 %v15972_v19  ;;  %v6798_v21 = vrot.slane %v6707_v34, %v19166_v23  ;;  %v6806_v46 = vrot.slane %v6707_v34, %v19172_v26  ;;  %v6802_v17 = vrot.slane %v6707_v34, %v19175_v28 }
0x19f9   :  { %10052 = vmatprep.subr.bf16.mxu1 %v15957_v29 }
0x19fa   :  { %10002 = vmatpush2.bf16.msra.mxu0 %v15764_v2 }
0x19fb   :  { %10003 = vmatprep.subr.bf16.mxu0 %v15749_v25  ;;  %v6765_v25 = vrot.slane %v6706_v56, %v19169_v24  ;;  %v6888_v56 = vld [vmem:[#allocation19 + $0x208] sm:$0xff] }
0x19fc   :  { %10053 = vmatpush2.bf16.msra.mxu1 %v15956_v15 }
0x19fd   :  { %10108 = vmatprep.subr.bf16.mxu1 %v15943_v57  ;;  %v6912_v57 = vld [vmem:[#allocation19 + $0x2c8] sm:$0xff] }
0x19fe   :  { %10004 = vmatpush2.bf16.msra.mxu0 %v15748_v0 }
0x19ff   :  { %10005 = vmatprep.subr.bf16.mxu0 %v15733_v13 }
0x1a02   :  { %10006 = vmatpush2.bf16.msra.mxu0 %v15732_v14 }
0x1a03   :  { %10007 = vmatprep.subr.bf16.mxu0 %v15717_v22 }
0x1a06   :  { %10008 = vmatpush2.bf16.msra.mxu0 %v15716_v47 }
0x1a07   :  { %10009 = vmatprep.subr.bf16.mxu0 %v15701_v59 }
0x1a0a   :  { %10010 = vmatpush2.bf16.msra.mxu0 %v15700_v7  ;;  %v6904_v7 = vld [vmem:[#allocation19 + $0x288] sm:$0xff] }
0x1a0b   :  { %10065 = vmatprep.subr.bf16.mxu0 %v15687_v33  ;;  %v15927_v33 = vcombine.high %v7176_v60, %v7184_v61  ;;  %v15654_v16 = vcombine.low %v6904_v7, %v6912_v57 }
0x1a7b   :  { %v6741_v48 = vpop.xlane.xlu0 %6740 }
0x1a7c   :  { %v6747_v53 = vmul.f32 0.001953125, %v6741_v48  ;;  %v7160_v48 = vld [vmem:[#allocation19 + $0xa88] sm:$0xff] }
0x1a7e   :  { %v6749_v37 = vadd.f32 1e-05, %v6747_v53  ;;  %v7168_v53 = vld [vmem:[#allocation19 + $0xac8] sm:$0xff] }
0x1a7f   :  { %v6746_v32 = vpop.xlane.xlu1 %6745  ;;  %v15910_v39 = vcombine.low %v7160_v48, %v7168_v53 }
0x1a80   :  { %18613 = vrsqrt.f32 %v6749_v37  ;;  %v6748_v18 = vmul.f32 0.001953125, %v6746_v32  ;;  %v15926_v32 = vcombine.low %v7176_v60, %v7184_v61 }
0x1a82   :  { %v6750_v8 = vadd.f32 1e-05, %v6748_v18  ;;  %v15655_v18 = vcombine.high %v6904_v7, %v6912_v57  ;;  %v7072_v57 = vld [vmem:[#allocation19 + $0x7c8] sm:$0xff] }
0x1a84   :  { %18615 = vrsqrt.f32 %v6750_v8  ;;  %v15911_v8 = vcombine.high %v7160_v48, %v7168_v53  ;;  %v7320_v48 = vld [vmem:[#allocation19 + $0xf88] sm:$0xff] }
0x1a85   :  { %v7328_v53 = vld [vmem:[#allocation19 + $0xfc8] sm:$0xff] }
0x1a8d   :  { %v18614_v2 = vpop.eup %18613 }
0x1a8e   :  { %v6754_v43 = vmul.f32 %v18614_v2, %v19906_v63  ;;  %v6756_v11 = vmul.f32 %v18614_v2, %v19912_v5  ;;  %v6753_v54 = vmul.f32 %v18614_v2, %v19903_v6  ;;  %v6755_v30 = vmul.f32 %v18614_v2, %v19909_v35  ;;  %v6896_v2 = vld [vmem:[#allocation19 + $0x248] sm:$0xff] }
0x1a8f   :  { %v6794_v63 = vrot.slane %v6707_v34, %v19169_v24  ;;  %v7144_v34 = vld [vmem:[#allocation19 + $0xa08] sm:$0xff]  ;;  %v15639_v42 = vcombine.high %v6888_v56, %v6896_v2 }
0x1a90   :  { %v6783_v10 = vmul.f32 %v6769_v38, %v6754_v43  ;;  %v6785_v0 = vmul.f32 %v6777_v44, %v6756_v11  ;;  %v6782_v35 = vmul.f32 %v6765_v25, %v6753_v54  ;;  %v6784_v1 = vmul.f32 %v6773_v9, %v6755_v30  ;;  %v7152_v43 = vld [vmem:[#allocation19 + $0xa48] sm:$0xff] }
0x1a91   :  { %v18616_v36 = vpop.eup %18615  ;;  %v15895_v27 = vcombine.high %v7144_v34, %v7152_v43  ;;  %v7136_v11 = vld [vmem:[#allocation19 + $0x9c8] sm:$0xff]  ;;  %v15894_v54 = vcombine.low %v7144_v34, %v7152_v43 }
0x1a92   :  { %v6758_v5 = vmul.f32 %v18616_v36, %v19924_v62  ;;  %v6760_v6 = vmul.f32 %v18616_v36, %v19932_v49  ;;  %v6757_v41 = vmul.f32 %v18616_v36, %v19921_v31  ;;  %v6759_v13 = vmul.f32 %v18616_v36, %v19927_v20  ;;  %v6920_v49 = vld [vmem:[#allocation19 + $0x308] sm:$0xff] }
0x1a93   :  { %v19974_v14 = vadd.f32 %v6798_v21, %v6783_v10  ;;  %v19978_v22 = vadd.f32 %v6806_v46, %v6785_v0  ;;  %v19982_v55 = vadd.f32 %v6794_v63, %v6782_v35  ;;  %v19986_v50 = vadd.f32 %v6802_v17, %v6784_v1  ;;  %v6864_v36 = vld [vmem:[#allocation19 + $0x148] sm:$0xff] }
0x1a94   :  { %v6787_v58 = vmul.f32 %v6769_v38, %v6758_v5  ;;  %v6789_v40 = vmul.f32 %v6777_v44, %v6760_v6  ;;  %v6786_v52 = vmul.f32 %v6765_v25, %v6757_v41  ;;  %v6788_v12 = vmul.f32 %v6773_v9, %v6759_v13  ;;  %v7128_v38 = vld [vmem:[#allocation19 + $0x988] sm:$0xff] }
0x1a95   :  { %20491 = vst [vmem:[#allocation39_spill] sm:$0xff] %v19974_v14  ;;  %20493 = vst [vmem:[#allocation45_spill] sm:$0xff] %v19978_v22  ;;  %v15671_v15 = vcombine.high %v6920_v49, %v6928_v51  ;;  %v15670_v37 = vcombine.low %v6920_v49, %v6928_v51  ;;  %v15638_v44 = vcombine.low %v6888_v56, %v6896_v2  ;;  %v6856_v9 = vld [vmem:[#allocation19 + $0x108] sm:$0xff] }
0x1a96   :  { %v19976_v45 = vadd.f32 %v6798_v21, %v6787_v58  ;;  %v19980_v62 = vadd.f32 %v6806_v46, %v6789_v40  ;;  %20495 = vst [vmem:[#allocation47_spill] sm:$0xff] %v19982_v55  ;;  %v19984_v31 = vadd.f32 %v6794_v63, %v6786_v52  ;;  %20497 = vst [vmem:[#allocation49_spill] sm:$0xff] %v19986_v50  ;;  %v7112_v21 = vld [vmem:[#allocation19 + $0x908] sm:$0xff] }
0x1a97   :  { %v19988_v20 = vadd.f32 %v6802_v17, %v6788_v12  ;;  %v15879_v30 = vcombine.high %v7128_v38, %v7136_v11  ;;  %v7120_v46 = vld [vmem:[#allocation19 + $0x948] sm:$0xff]  ;;  %v15878_v17 = vcombine.low %v7128_v38, %v7136_v11  ;;  %v15607_v5 = vcombine.high %v6856_v9, %v6864_v36 }
0x1a98   :  { %20492 = vst [vmem:[#allocation44_spill] sm:$0xff] %v19976_v45  ;;  %20494 = vst [vmem:[#allocation46_spill] sm:$0xff] %v19980_v62  ;;  %v19992_v47 = vpack.c.bf16 %v19976_v45, %v19974_v14  ;;  %v19996_v19 = vpack.c.bf16 %v19980_v62, %v19978_v22  ;;  %v20000_v59 = vpack.c.bf16 %v19984_v31, %v19982_v55  ;;  %v6840_v6 = vld [vmem:[#allocation19 + $0x88] sm:$0xff] }
0x1a99   :  { %20496 = vst [vmem:[#allocation48_spill] sm:$0xff] %v19984_v31  ;;  %20498 = vst [vmem:[#allocation50_spill] sm:$0xff] %v19988_v20  ;;  %v20004_v29 = vpack.c.bf16 %v19988_v20, %v19986_v50  ;;  %v15863_v10 = vcombine.high %v7112_v21, %v7120_v46  ;;  %v6848_v0 = vld [vmem:[#allocation19 + $0xc8] sm:$0xff]  ;;  %v15606_v13 = vcombine.low %v6856_v9, %v6864_v36 }
0x1a9a   :  { %10011 = vmatprep.mubr.bf16.mxu0 %v19992_v47  ;;  %10054 = vmatprep.mubr.bf16.mxu1 %v19996_v19  ;;  %v7096_v41 = vld [vmem:[#allocation19 + $0x888] sm:$0xff]  ;;  %v15862_v1 = vcombine.low %v7112_v21, %v7120_v46  ;;  %v15591_v58 = vcombine.high %v6840_v6, %v6848_v0  ;;  %v15590_v60 = vcombine.low %v6840_v6, %v6848_v0 }
0x1a9b   :  { %10012 = vmatmul.mubr.bf16.vlgmr.msra.gmra.mxu0 %v20000_v59  ;;  %10055 = vmatmul.mubr.bf16.vlgmr.msra.gmra.mxu1 %v20004_v29  ;;  %v7104_v35 = vld [vmem:[#allocation19 + $0x8c8] sm:$0xff] }
0x1a9c   :  { %10066 = vmatpush1.bf16.msra.mxu0 %v15686_v3  ;;  %10109 = vmatpush1.bf16.msra.mxu1 %v15942_v4  ;;  %v6872_v3 = vld [vmem:[#allocation19 + $0x188] sm:$0xff]  ;;  %v15847_v40 = vcombine.high %v7096_v41, %v7104_v35  ;;  %v15846_v61 = vcombine.low %v7096_v41, %v7104_v35 }
0x1a9d   :  { %10097 = vmatprep.mubr.bf16.mxu0 %v19992_v47  ;;  %10140 = vmatprep.mubr.bf16.mxu1 %v19996_v19  ;;  %v6880_v4 = vld [vmem:[#allocation19 + $0x1c8] sm:$0xff] }
0x1a9e   :  { %10067 = vmatprep.subr.bf16.mxu0 %v15671_v15  ;;  %10110 = vmatprep.subr.bf16.mxu1 %v15927_v33  ;;  %v15623_v25 = vcombine.high %v6872_v3, %v6880_v4  ;;  %v15622_v63 = vcombine.low %v6872_v3, %v6880_v4  ;;  %v6824_v52 = vld [vmem:[#allocation19 + $0x8] sm:$0xff] }
0x1a9f   :  { %v6832_v12 = vld [vmem:[#allocation19 + $0x48] sm:$0xff] }
0x1aa0   :  { %10068 = vmatpush1.bf16.msra.mxu0 %v15670_v37  ;;  %10111 = vmatpush1.bf16.msra.mxu1 %v15926_v32  ;;  %v7080_v49 = vld [vmem:[#allocation19 + $0x808] sm:$0xff]  ;;  %v15575_v7 = vcombine.high %v6824_v52, %v6832_v12  ;;  %v15574_v37 = vcombine.low %v6824_v52, %v6832_v12 }
0x1aa1   :  { %10069 = vmatprep.subr.bf16.mxu0 %v15655_v18  ;;  %10112 = vmatprep.subr.bf16.mxu1 %v15911_v8  ;;  %v7088_v51 = vld [vmem:[#allocation19 + $0x848] sm:$0xff]  ;;  %v16071_v8 = vcombine.high %v7320_v48, %v7328_v53 }
0x1aa2   :  { %v15831_v15 = vcombine.high %v7080_v49, %v7088_v51  ;;  %v7064_v33 = vld [vmem:[#allocation19 + $0x788] sm:$0xff]  ;;  %v15830_v32 = vcombine.low %v7080_v49, %v7088_v51 }
0x1aa3   :  { %v15815_v18 = vcombine.high %v7064_v33, %v7072_v57  ;;  %v7048_v56 = vld [vmem:[#allocation19 + $0x708] sm:$0xff] }
0x1aa4   :  { %10070 = vmatpush1.bf16.msra.mxu0 %v15654_v16  ;;  %10113 = vmatpush1.bf16.msra.mxu1 %v15910_v39  ;;  %v7056_v2 = vld [vmem:[#allocation19 + $0x748] sm:$0xff]  ;;  %v15814_v16 = vcombine.low %v7064_v33, %v7072_v57  ;;  %v16070_v39 = vcombine.low %v7320_v48, %v7328_v53 }
0x1aa5   :  { %10071 = vmatprep.subr.bf16.mxu0 %v15639_v42  ;;  %10114 = vmatprep.subr.bf16.mxu1 %v15895_v27  ;;  %v7304_v34 = vld [vmem:[#allocation19 + $0xf08] sm:$0xff]  ;;  %v15799_v42 = vcombine.high %v7048_v56, %v7056_v2 }
0x1aa6   :  { %v7312_v43 = vld [vmem:[#allocation19 + $0xf48] sm:$0xff] }
0x1aa7   :  { %v16055_v27 = vcombine.high %v7304_v34, %v7312_v43  ;;  %v7032_v3 = vld [vmem:[#allocation19 + $0x688] sm:$0xff] }
0x1aa8   :  { %10072 = vmatpush1.bf16.msra.mxu0 %v15638_v44  ;;  %10115 = vmatpush1.bf16.msra.mxu1 %v15894_v54  ;;  %v7040_v4 = vld [vmem:[#allocation19 + $0x6c8] sm:$0xff]  ;;  %v15798_v44 = vcombine.low %v7048_v56, %v7056_v2  ;;  %v16054_v54 = vcombine.low %v7304_v34, %v7312_v43 }
0x1aa9   :  { %10073 = vmatprep.subr.bf16.mxu0 %v15623_v25  ;;  %10116 = vmatprep.subr.bf16.mxu1 %v15879_v30  ;;  %v7288_v38 = vld [vmem:[#allocation19 + $0xe88] sm:$0xff]  ;;  %v15783_v25 = vcombine.high %v7032_v3, %v7040_v4 }
0x1aaa   :  { %v7296_v11 = vld [vmem:[#allocation19 + $0xec8] sm:$0xff] }
0x1aab   :  { %v16039_v30 = vcombine.high %v7288_v38, %v7296_v11  ;;  %v7016_v9 = vld [vmem:[#allocation19 + $0x608] sm:$0xff] }
0x1aac   :  { %10074 = vmatpush1.bf16.msra.mxu0 %v15622_v63  ;;  %10117 = vmatpush1.bf16.msra.mxu1 %v15878_v17  ;;  %v7024_v36 = vld [vmem:[#allocation19 + $0x648] sm:$0xff]  ;;  %v15782_v63 = vcombine.low %v7032_v3, %v7040_v4  ;;  %v16038_v17 = vcombine.low %v7288_v38, %v7296_v11  ;;  %v6937_v3 = vld [vmem:[#allocation19 + $0x390] sm:$0xff] }
0x1aad   :  { %10075 = vmatprep.subr.bf16.mxu0 %v15607_v5  ;;  %10118 = vmatprep.subr.bf16.mxu1 %v15863_v10  ;;  %v7272_v21 = vld [vmem:[#allocation19 + $0xe08] sm:$0xff]  ;;  %v15767_v5 = vcombine.high %v7016_v9, %v7024_v36  ;;  %v6945_v4 = vld [vmem:[#allocation19 + $0x3d0] sm:$0xff] }
0x1aae   :  { %v7280_v46 = vld [vmem:[#allocation19 + $0xe48] sm:$0xff]  ;;  %v7193_v38 = vld [vmem:[#allocation19 + $0xb90] sm:$0xff] }
0x1aaf   :  { %v16023_v10 = vcombine.high %v7272_v21, %v7280_v46  ;;  %v7000_v6 = vld [vmem:[#allocation19 + $0x588] sm:$0xff]  ;;  %v7201_v11 = vld [vmem:[#allocation19 + $0xbd0] sm:$0xff] }
0x1ab0   :  { %10076 = vmatpush1.bf16.msra.mxu0 %v15606_v13  ;;  %10119 = vmatpush1.bf16.msra.mxu1 %v15862_v1  ;;  %v7008_v0 = vld [vmem:[#allocation19 + $0x5c8] sm:$0xff]  ;;  %v15766_v13 = vcombine.low %v7016_v9, %v7024_v36  ;;  %v16022_v1 = vcombine.low %v7272_v21, %v7280_v46  ;;  %v6921_v9 = vld [vmem:[#allocation19 + $0x310] sm:$0xff] }
0x1ab1   :  { %10077 = vmatprep.subr.bf16.mxu0 %v15591_v58  ;;  %10120 = vmatprep.subr.bf16.mxu1 %v15847_v40  ;;  %v7256_v41 = vld [vmem:[#allocation19 + $0xd88] sm:$0xff]  ;;  %v15751_v58 = vcombine.high %v7000_v6, %v7008_v0  ;;  %v6929_v36 = vld [vmem:[#allocation19 + $0x350] sm:$0xff] }
0x1ab2   :  { %v7264_v35 = vld [vmem:[#allocation19 + $0xdc8] sm:$0xff]  ;;  %v7177_v21 = vld [vmem:[#allocation19 + $0xb10] sm:$0xff] }
0x1ab3   :  { %v16007_v40 = vcombine.high %v7256_v41, %v7264_v35  ;;  %v6984_v52 = vld [vmem:[#allocation19 + $0x508] sm:$0xff]  ;;  %v7185_v46 = vld [vmem:[#allocation19 + $0xb50] sm:$0xff] }
0x1ab4   :  { %10078 = vmatpush1.bf16.msra.mxu0 %v15590_v60  ;;  %10121 = vmatpush1.bf16.msra.mxu1 %v15846_v61  ;;  %v6992_v12 = vld [vmem:[#allocation19 + $0x548] sm:$0xff]  ;;  %v15750_v60 = vcombine.low %v7000_v6, %v7008_v0  ;;  %v16006_v61 = vcombine.low %v7256_v41, %v7264_v35  ;;  %v6905_v6 = vld [vmem:[#allocation19 + $0x290] sm:$0xff] }
0x1ab5   :  { %10079 = vmatprep.subr.bf16.mxu0 %v15575_v7  ;;  %10122 = vmatprep.subr.bf16.mxu1 %v15831_v15  ;;  %v7240_v49 = vld [vmem:[#allocation19 + $0xd08] sm:$0xff]  ;;  %v15735_v7 = vcombine.high %v6984_v52, %v6992_v12  ;;  %v6913_v0 = vld [vmem:[#allocation19 + $0x2d0] sm:$0xff] }
0x1ab6   :  { %v7248_v51 = vld [vmem:[#allocation19 + $0xd48] sm:$0xff]  ;;  %v7161_v41 = vld [vmem:[#allocation19 + $0xa90] sm:$0xff] }
0x1ab7   :  { %v15991_v15 = vcombine.high %v7240_v49, %v7248_v51  ;;  %v6968_v33 = vld [vmem:[#allocation19 + $0x488] sm:$0xff]  ;;  %v7169_v35 = vld [vmem:[#allocation19 + $0xad0] sm:$0xff] }
0x1ab8   :  { %10080 = vmatpush1.bf16.msra.mxu0 %v15574_v37  ;;  %10123 = vmatpush1.bf16.msra.mxu1 %v15830_v32  ;;  %v6976_v57 = vld [vmem:[#allocation19 + $0x4c8] sm:$0xff]  ;;  %v15734_v37 = vcombine.low %v6984_v52, %v6992_v12  ;;  %v15990_v32 = vcombine.low %v7240_v49, %v7248_v51  ;;  %v6889_v52 = vld [vmem:[#allocation19 + $0x210] sm:$0xff] }
0x1ab9   :  { %10081 = vmatprep.subr.bf16.mxu0 %v15815_v18  ;;  %10124 = vmatprep.subr.bf16.mxu1 %v16071_v8  ;;  %v7224_v48 = vld [vmem:[#allocation19 + $0xc88] sm:$0xff]  ;;  %v15719_v18 = vcombine.high %v6968_v33, %v6976_v57  ;;  %v6897_v12 = vld [vmem:[#allocation19 + $0x250] sm:$0xff] }
0x1aba   :  { %v7232_v53 = vld [vmem:[#allocation19 + $0xcc8] sm:$0xff]  ;;  %v7145_v49 = vld [vmem:[#allocation19 + $0xa10] sm:$0xff] }
0x1abb   :  { %v15975_v8 = vcombine.high %v7224_v48, %v7232_v53  ;;  %v6952_v56 = vld [vmem:[#allocation19 + $0x408] sm:$0xff]  ;;  %v7153_v51 = vld [vmem:[#allocation19 + $0xa50] sm:$0xff] }
0x1abc   :  { %10082 = vmatpush2.bf16.msra.mxu0 %v15814_v16  ;;  %10125 = vmatpush2.bf16.msra.mxu1 %v16070_v39  ;;  %v6960_v2 = vld [vmem:[#allocation19 + $0x448] sm:$0xff]  ;;  %v15718_v16 = vcombine.low %v6968_v33, %v6976_v57  ;;  %v15974_v39 = vcombine.low %v7224_v48, %v7232_v53  ;;  %v6873_v33 = vld [vmem:[#allocation19 + $0x190] sm:$0xff] }
0x1abd   :  { %10083 = vmatprep.subr.bf16.mxu0 %v15799_v42  ;;  %10126 = vmatprep.subr.bf16.mxu1 %v16055_v27  ;;  %v7208_v34 = vld [vmem:[#allocation19 + $0xc08] sm:$0xff]  ;;  %v15703_v42 = vcombine.high %v6952_v56, %v6960_v2  ;;  %v6881_v57 = vld [vmem:[#allocation19 + $0x1d0] sm:$0xff] }
0x1abe   :  { %v7216_v43 = vld [vmem:[#allocation19 + $0xc48] sm:$0xff]  ;;  %v7129_v48 = vld [vmem:[#allocation19 + $0x990] sm:$0xff] }
0x1abf   :  { %v15959_v27 = vcombine.high %v7208_v34, %v7216_v43  ;;  %v7137_v53 = vld [vmem:[#allocation19 + $0x9d0] sm:$0xff] }
0x1ac0   :  { %10084 = vmatpush2.bf16.msra.mxu0 %v15798_v44  ;;  %10127 = vmatpush2.bf16.msra.mxu1 %v16054_v54  ;;  %v15702_v44 = vcombine.low %v6952_v56, %v6960_v2  ;;  %v15958_v54 = vcombine.low %v7208_v34, %v7216_v43  ;;  %v6857_v56 = vld [vmem:[#allocation19 + $0x110] sm:$0xff] }
0x1ac1   :  { %10085 = vmatprep.subr.bf16.mxu0 %v15783_v25  ;;  %10128 = vmatprep.subr.bf16.mxu1 %v16039_v30  ;;  %v15689_v25 = vcombine.high %v6937_v3, %v6945_v4  ;;  %v15945_v30 = vcombine.high %v7193_v38, %v7201_v11  ;;  %v6865_v2 = vld [vmem:[#allocation19 + $0x150] sm:$0xff] }
0x1ac2   :  { %v7113_v34 = vld [vmem:[#allocation19 + $0x910] sm:$0xff] }
0x1ac3   :  { %v7121_v43 = vld [vmem:[#allocation19 + $0x950] sm:$0xff] }
0x1ac4   :  { %10086 = vmatpush2.bf16.msra.mxu0 %v15782_v63  ;;  %10129 = vmatpush2.bf16.msra.mxu1 %v16038_v17  ;;  %v15688_v63 = vcombine.low %v6937_v3, %v6945_v4  ;;  %v15944_v17 = vcombine.low %v7193_v38, %v7201_v11  ;;  %v6841_v3 = vld [vmem:[#allocation19 + $0x90] sm:$0xff] }
0x1ac5   :  { %10087 = vmatprep.subr.bf16.mxu0 %v15767_v5  ;;  %10130 = vmatprep.subr.bf16.mxu1 %v16023_v10  ;;  %v15673_v5 = vcombine.high %v6921_v9, %v6929_v36  ;;  %v15929_v10 = vcombine.high %v7177_v21, %v7185_v46  ;;  %v6849_v4 = vld [vmem:[#allocation19 + $0xd0] sm:$0xff] }
0x1ac6   :  { %v7097_v38 = vld [vmem:[#allocation19 + $0x890] sm:$0xff] }
0x1ac7   :  { %v7105_v11 = vld [vmem:[#allocation19 + $0x8d0] sm:$0xff] }
0x1ac8   :  { %10088 = vmatpush2.bf16.msra.mxu0 %v15766_v13  ;;  %10131 = vmatpush2.bf16.msra.mxu1 %v16022_v1  ;;  %v15672_v13 = vcombine.low %v6921_v9, %v6929_v36  ;;  %v15928_v1 = vcombine.low %v7177_v21, %v7185_v46  ;;  %v6825_v9 = vld [vmem:[#allocation19 + $0x10] sm:$0xff] }
0x1ac9   :  { %10089 = vmatprep.subr.bf16.mxu0 %v15751_v58  ;;  %10132 = vmatprep.subr.bf16.mxu1 %v16007_v40  ;;  %v15657_v58 = vcombine.high %v6905_v6, %v6913_v0  ;;  %v15913_v40 = vcombine.high %v7161_v41, %v7169_v35  ;;  %v6833_v36 = vld [vmem:[#allocation19 + $0x50] sm:$0xff] }
0x1aca   :  { %v7081_v21 = vld [vmem:[#allocation19 + $0x810] sm:$0xff] }
0x1acb   :  { %v7089_v46 = vld [vmem:[#allocation19 + $0x850] sm:$0xff] }
0x1acc   :  { %10090 = vmatpush2.bf16.msra.mxu0 %v15750_v60  ;;  %10133 = vmatpush2.bf16.msra.mxu1 %v16006_v61  ;;  %v15656_v60 = vcombine.low %v6905_v6, %v6913_v0  ;;  %v15912_v61 = vcombine.low %v7161_v41, %v7169_v35  ;;  %v7065_v6 = vld [vmem:[#allocation19 + $0x790] sm:$0xff] }
0x1acd   :  { %10091 = vmatprep.subr.bf16.mxu0 %v15735_v7  ;;  %10134 = vmatprep.subr.bf16.mxu1 %v15991_v15  ;;  %v15641_v7 = vcombine.high %v6889_v52, %v6897_v12  ;;  %v15897_v15 = vcombine.high %v7145_v49, %v7153_v51  ;;  %v7073_v0 = vld [vmem:[#allocation19 + $0x7d0] sm:$0xff] }
0x1ace   :  { %v7321_v41 = vld [vmem:[#allocation19 + $0xf90] sm:$0xff] }
0x1acf   :  { %v7329_v35 = vld [vmem:[#allocation19 + $0xfd0] sm:$0xff] }
0x1ad0   :  { %10092 = vmatpush2.bf16.msra.mxu0 %v15734_v37  ;;  %10135 = vmatpush2.bf16.msra.mxu1 %v15990_v32  ;;  %v15640_v37 = vcombine.low %v6889_v52, %v6897_v12  ;;  %v15896_v32 = vcombine.low %v7145_v49, %v7153_v51  ;;  %v7049_v52 = vld [vmem:[#allocation19 + $0x710] sm:$0xff] }
0x1ad1   :  { %10093 = vmatprep.subr.bf16.mxu0 %v15719_v18  ;;  %10136 = vmatprep.subr.bf16.mxu1 %v15975_v8  ;;  %v15625_v18 = vcombine.high %v6873_v33, %v6881_v57  ;;  %v15881_v8 = vcombine.high %v7129_v48, %v7137_v53  ;;  %v7057_v12 = vld [vmem:[#allocation19 + $0x750] sm:$0xff] }
0x1ad2   :  { %v7305_v49 = vld [vmem:[#allocation19 + $0xf10] sm:$0xff] }
0x1ad3   :  { %v7313_v51 = vld [vmem:[#allocation19 + $0xf50] sm:$0xff] }
0x1ad4   :  { %10094 = vmatpush2.bf16.msra.mxu0 %v15718_v16  ;;  %10137 = vmatpush2.bf16.msra.mxu1 %v15974_v39  ;;  %v15624_v16 = vcombine.low %v6873_v33, %v6881_v57  ;;  %v15880_v39 = vcombine.low %v7129_v48, %v7137_v53  ;;  %v7033_v33 = vld [vmem:[#allocation19 + $0x690] sm:$0xff] }
0x1ad5   :  { %10095 = vmatprep.subr.bf16.mxu0 %v15703_v42  ;;  %10138 = vmatprep.subr.bf16.mxu1 %v15959_v27  ;;  %v15609_v42 = vcombine.high %v6857_v56, %v6865_v2  ;;  %v15865_v27 = vcombine.high %v7113_v34, %v7121_v43  ;;  %v7041_v57 = vld [vmem:[#allocation19 + $0x6d0] sm:$0xff] }
0x1ad6   :  { %v7289_v48 = vld [vmem:[#allocation19 + $0xe90] sm:$0xff] }
0x1ad7   :  { %v7297_v53 = vld [vmem:[#allocation19 + $0xed0] sm:$0xff] }
0x1ad8   :  { %10096 = vmatpush2.bf16.msra.mxu0 %v15702_v44  ;;  %10139 = vmatpush2.bf16.msra.mxu1 %v15958_v54  ;;  %v15608_v44 = vcombine.low %v6857_v56, %v6865_v2  ;;  %v15864_v54 = vcombine.low %v7113_v34, %v7121_v43  ;;  %v7017_v56 = vld [vmem:[#allocation19 + $0x610] sm:$0xff] }
0x1ad9   :  { %10151 = vmatprep.subr.bf16.mxu0 %v15689_v25  ;;  %10194 = vmatprep.subr.bf16.mxu1 %v15945_v30  ;;  %v15593_v25 = vcombine.high %v6841_v3, %v6849_v4  ;;  %v15849_v30 = vcombine.high %v7097_v38, %v7105_v11  ;;  %v7025_v2 = vld [vmem:[#allocation19 + $0x650] sm:$0xff] }
0x1ada   :  { %v7273_v34 = vld [vmem:[#allocation19 + $0xe10] sm:$0xff] }
0x1adb   :  { %10098 = vmatmul.mubr.bf16.vlgmr.msra.gmra.mxu0 %v20000_v59  ;;  %10141 = vmatmul.mubr.bf16.vlgmr.msra.gmra.mxu1 %v20004_v29  ;;  %v7281_v43 = vld [vmem:[#allocation19 + $0xe50] sm:$0xff] }
0x1adc   :  { %10152 = vmatpush1.bf16.msra.mxu0 %v15688_v63  ;;  %10183 = vmatprep.mubr.bf16.mxu0 %v19992_v47  ;;  %v15592_v63 = vcombine.low %v6841_v3, %v6849_v4  ;;  %v7001_v3 = vld [vmem:[#allocation19 + $0x590] sm:$0xff] }
0x1add   :  { %10195 = vmatpush1.bf16.msra.mxu1 %v15944_v17  ;;  %10226 = vmatprep.mubr.bf16.mxu1 %v19996_v19  ;;  %v15848_v17 = vcombine.low %v7097_v38, %v7105_v11  ;;  %v7009_v4 = vld [vmem:[#allocation19 + $0x5d0] sm:$0xff] }
0x1ade   :  { %10153 = vmatprep.subr.bf16.mxu0 %v15673_v5  ;;  %10196 = vmatprep.subr.bf16.mxu1 %v15929_v10  ;;  %v15577_v5 = vcombine.high %v6825_v9, %v6833_v36  ;;  %v15833_v10 = vcombine.high %v7081_v21, %v7089_v46  ;;  %v7257_v38 = vld [vmem:[#allocation19 + $0xd90] sm:$0xff] }
0x1adf   :  { %v7265_v11 = vld [vmem:[#allocation19 + $0xdd0] sm:$0xff] }
0x1ae0   :  { %10154 = vmatpush1.bf16.msra.mxu0 %v15672_v13  ;;  %v15576_v13 = vcombine.low %v6825_v9, %v6833_v36  ;;  %v6985_v9 = vld [vmem:[#allocation19 + $0x510] sm:$0xff] }
0x1ae1   :  { %10197 = vmatpush1.bf16.msra.mxu1 %v15928_v1  ;;  %10155 = vmatprep.subr.bf16.mxu0 %v15657_v58  ;;  %v15832_v1 = vcombine.low %v7081_v21, %v7089_v46  ;;  %v15817_v58 = vcombine.high %v7065_v6, %v7073_v0  ;;  %v6993_v36 = vld [vmem:[#allocation19 + $0x550] sm:$0xff] }
0x1ae2   :  { %10198 = vmatprep.subr.bf16.mxu1 %v15913_v40  ;;  %v16073_v40 = vcombine.high %v7321_v41, %v7329_v35  ;;  %v7241_v21 = vld [vmem:[#allocation19 + $0xd10] sm:$0xff] }
0x1ae3   :  { %v7249_v46 = vld [vmem:[#allocation19 + $0xd50] sm:$0xff] }
0x1ae4   :  { %10156 = vmatpush1.bf16.msra.mxu0 %v15656_v60  ;;  %v15816_v60 = vcombine.low %v7065_v6, %v7073_v0  ;;  %v6969_v6 = vld [vmem:[#allocation19 + $0x490] sm:$0xff] }
0x1ae5   :  { %10199 = vmatpush1.bf16.msra.mxu1 %v15912_v61  ;;  %10157 = vmatprep.subr.bf16.mxu0 %v15641_v7  ;;  %v16072_v61 = vcombine.low %v7321_v41, %v7329_v35  ;;  %v15801_v7 = vcombine.high %v7049_v52, %v7057_v12  ;;  %v6977_v0 = vld [vmem:[#allocation19 + $0x4d0] sm:$0xff] }
0x1ae6   :  { %10200 = vmatprep.subr.bf16.mxu1 %v15897_v15  ;;  %v16057_v15 = vcombine.high %v7305_v49, %v7313_v51  ;;  %v7225_v41 = vld [vmem:[#allocation19 + $0xc90] sm:$0xff] }
0x1ae7   :  { %v7233_v35 = vld [vmem:[#allocation19 + $0xcd0] sm:$0xff] }
0x1ae8   :  { %10158 = vmatpush1.bf16.msra.mxu0 %v15640_v37  ;;  %v15800_v37 = vcombine.low %v7049_v52, %v7057_v12  ;;  %v6953_v52 = vld [vmem:[#allocation19 + $0x410] sm:$0xff] }
0x1ae9   :  { %10201 = vmatpush1.bf16.msra.mxu1 %v15896_v32  ;;  %10159 = vmatprep.subr.bf16.mxu0 %v15625_v18  ;;  %v16056_v32 = vcombine.low %v7305_v49, %v7313_v51  ;;  %v15785_v18 = vcombine.high %v7033_v33, %v7041_v57  ;;  %v6961_v12 = vld [vmem:[#allocation19 + $0x450] sm:$0xff] }
0x1aea   :  { %10202 = vmatprep.subr.bf16.mxu1 %v15881_v8  ;;  %v16041_v8 = vcombine.high %v7289_v48, %v7297_v53  ;;  %v7209_v49 = vld [vmem:[#allocation19 + $0xc10] sm:$0xff] }
0x1aeb   :  { %v7217_v51 = vld [vmem:[#allocation19 + $0xc50] sm:$0xff] }
0x1aec   :  { %10160 = vmatpush1.bf16.msra.mxu0 %v15624_v16  ;;  %v15784_v16 = vcombine.low %v7033_v33, %v7041_v57  ;;  %v6938_v33 = vld [vmem:[#allocation19 + $0x398] sm:$0xff] }
0x1aed   :  { %10203 = vmatpush1.bf16.msra.mxu1 %v15880_v39  ;;  %10161 = vmatprep.subr.bf16.mxu0 %v15609_v42  ;;  %v16040_v39 = vcombine.low %v7289_v48, %v7297_v53  ;;  %v15769_v42 = vcombine.high %v7017_v56, %v7025_v2  ;;  %v6946_v57 = vld [vmem:[#allocation19 + $0x3d8] sm:$0xff] }
0x1aee   :  { %10204 = vmatprep.subr.bf16.mxu1 %v15865_v27  ;;  %v16025_v27 = vcombine.high %v7273_v34, %v7281_v43  ;;  %v7194_v48 = vld [vmem:[#allocation19 + $0xb98] sm:$0xff] }
0x1aef   :  { %v7202_v53 = vld [vmem:[#allocation19 + $0xbd8] sm:$0xff] }
0x1af0   :  { %10162 = vmatpush1.bf16.msra.mxu0 %v15608_v44  ;;  %v15768_v44 = vcombine.low %v7017_v56, %v7025_v2  ;;  %v6922_v56 = vld [vmem:[#allocation19 + $0x318] sm:$0xff] }
0x1af1   :  { %10205 = vmatpush1.bf16.msra.mxu1 %v15864_v54  ;;  %10163 = vmatprep.subr.bf16.mxu0 %v15593_v25  ;;  %v16024_v54 = vcombine.low %v7273_v34, %v7281_v43  ;;  %v15753_v25 = vcombine.high %v7001_v3, %v7009_v4  ;;  %v6930_v2 = vld [vmem:[#allocation19 + $0x358] sm:$0xff]  ;;  %v15690_v34 = vcombine.low %v6938_v33, %v6946_v57 }
0x1af2   :  { %10206 = vmatprep.subr.bf16.mxu1 %v15849_v30  ;;  %v16009_v30 = vcombine.high %v7257_v38, %v7265_v11  ;;  %v7178_v43 = vld [vmem:[#allocation19 + $0xb18] sm:$0xff] }
0x1af4   :  { %10164 = vmatpush1.bf16.msra.mxu0 %v15592_v63  ;;  %v15752_v63 = vcombine.low %v7001_v3, %v7009_v4  ;;  %v6914_v3 = vld [vmem:[#allocation19 + $0x2d8] sm:$0xff] }
0x1af5   :  { %10207 = vmatpush1.bf16.msra.mxu1 %v15848_v17  ;;  %10165 = vmatprep.subr.bf16.mxu0 %v15577_v5  ;;  %v16008_v17 = vcombine.low %v7257_v38, %v7265_v11  ;;  %v15737_v5 = vcombine.high %v6985_v9, %v6993_v36  ;;  %v7162_v38 = vld [vmem:[#allocation19 + $0xa98] sm:$0xff] }
0x1af6   :  { %10208 = vmatprep.subr.bf16.mxu1 %v15833_v10  ;;  %v15993_v10 = vcombine.high %v7241_v21, %v7249_v46  ;;  %v7170_v11 = vld [vmem:[#allocation19 + $0xad8] sm:$0xff] }
0x1af8   :  { %10166 = vmatpush1.bf16.msra.mxu0 %v15576_v13  ;;  %v15736_v13 = vcombine.low %v6985_v9, %v6993_v36  ;;  %v6890_v9 = vld [vmem:[#allocation19 + $0x218] sm:$0xff] }
0x1af9   :  { %10209 = vmatpush1.bf16.msra.mxu1 %v15832_v1  ;;  %10167 = vmatprep.subr.bf16.mxu0 %v15817_v58  ;;  %v15992_v1 = vcombine.low %v7241_v21, %v7249_v46  ;;  %v15721_v58 = vcombine.high %v6969_v6, %v6977_v0  ;;  %v6898_v36 = vld [vmem:[#allocation19 + $0x258] sm:$0xff] }
0x1afa   :  { %10210 = vmatprep.subr.bf16.mxu1 %v16073_v40  ;;  %v15977_v40 = vcombine.high %v7225_v41, %v7233_v35  ;;  %v7146_v21 = vld [vmem:[#allocation19 + $0xa18] sm:$0xff] }
0x1afb   :  { %v7154_v46 = vld [vmem:[#allocation19 + $0xa58] sm:$0xff] }
0x1afc   :  { %10168 = vmatpush2.bf16.msra.mxu0 %v15816_v60  ;;  %v15720_v60 = vcombine.low %v6969_v6, %v6977_v0  ;;  %v6874_v6 = vld [vmem:[#allocation19 + $0x198] sm:$0xff] }
0x1afd   :  { %10211 = vmatpush2.bf16.msra.mxu1 %v16072_v61  ;;  %10169 = vmatprep.subr.bf16.mxu0 %v15801_v7  ;;  %v15976_v61 = vcombine.low %v7225_v41, %v7233_v35  ;;  %v15705_v7 = vcombine.high %v6953_v52, %v6961_v12  ;;  %v6882_v0 = vld [vmem:[#allocation19 + $0x1d8] sm:$0xff] }
0x1afe   :  { %10212 = vmatprep.subr.bf16.mxu1 %v16057_v15  ;;  %v15961_v15 = vcombine.high %v7209_v49, %v7217_v51  ;;  %v7130_v41 = vld [vmem:[#allocation19 + $0x998] sm:$0xff] }
0x1aff   :  { %v7138_v35 = vld [vmem:[#allocation19 + $0x9d8] sm:$0xff] }
0x1b00   :  { %10170 = vmatpush2.bf16.msra.mxu0 %v15800_v37  ;;  %v15704_v37 = vcombine.low %v6953_v52, %v6961_v12  ;;  %v6858_v52 = vld [vmem:[#allocation19 + $0x118] sm:$0xff] }
0x1b01   :  { %10213 = vmatpush2.bf16.msra.mxu1 %v16056_v32  ;;  %10171 = vmatprep.subr.bf16.mxu0 %v15785_v18  ;;  %v15960_v32 = vcombine.low %v7209_v49, %v7217_v51  ;;  %v15691_v18 = vcombine.high %v6938_v33, %v6946_v57  ;;  %v6866_v12 = vld [vmem:[#allocation19 + $0x158] sm:$0xff] }
0x1b02   :  { %10214 = vmatprep.subr.bf16.mxu1 %v16041_v8  ;;  %v15947_v8 = vcombine.high %v7194_v48, %v7202_v53  ;;  %v7114_v49 = vld [vmem:[#allocation19 + $0x918] sm:$0xff] }
0x1b03   :  { %v7122_v51 = vld [vmem:[#allocation19 + $0x958] sm:$0xff] }
0x1b04   :  { %10172 = vmatpush2.bf16.msra.mxu0 %v15784_v16  ;;  %v7186_v16 = vld [vmem:[#allocation19 + $0xb58] sm:$0xff] }
0x1b05   :  { %10215 = vmatpush2.bf16.msra.mxu1 %v16040_v39  ;;  %10173 = vmatprep.subr.bf16.mxu0 %v15769_v42  ;;  %v15946_v39 = vcombine.low %v7194_v48, %v7202_v53  ;;  %v15675_v42 = vcombine.high %v6922_v56, %v6930_v2  ;;  %v15931_v4 = vcombine.high %v7178_v43, %v7186_v16  ;;  %v6842_v33 = vld [vmem:[#allocation19 + $0x98] sm:$0xff] }
0x1b06   :  { %10216 = vmatprep.subr.bf16.mxu1 %v16025_v27  ;;  %v6906_v27 = vld [vmem:[#allocation19 + $0x298] sm:$0xff] }
0x1b07   :  { %v6850_v57 = vld [vmem:[#allocation19 + $0xd8] sm:$0xff] }
0x1b08   :  { %10174 = vmatpush2.bf16.msra.mxu0 %v15768_v44  ;;  %v15674_v44 = vcombine.low %v6922_v56, %v6930_v2  ;;  %v7098_v48 = vld [vmem:[#allocation19 + $0x898] sm:$0xff] }
0x1b09   :  { %10217 = vmatpush2.bf16.msra.mxu1 %v16024_v54  ;;  %10175 = vmatprep.subr.bf16.mxu0 %v15753_v25  ;;  %v15930_v54 = vcombine.low %v7178_v43, %v7186_v16  ;;  %v15659_v25 = vcombine.high %v6906_v27, %v6914_v3  ;;  %v7106_v53 = vld [vmem:[#allocation19 + $0x8d8] sm:$0xff]  ;;  %v15594_v16 = vcombine.low %v6842_v33, %v6850_v57 }
0x1b0a   :  { %10218 = vmatprep.subr.bf16.mxu1 %v16009_v30  ;;  %v15915_v30 = vcombine.high %v7162_v38, %v7170_v11  ;;  %v6826_v56 = vld [vmem:[#allocation19 + $0x18] sm:$0xff] }
0x1b0b   :  { %v6834_v2 = vld [vmem:[#allocation19 + $0x58] sm:$0xff] }
0x1b0c   :  { %10176 = vmatpush2.bf16.msra.mxu0 %v15752_v63  ;;  %v15658_v63 = vcombine.low %v6906_v27, %v6914_v3  ;;  %v7090_v43 = vld [vmem:[#allocation19 + $0x858] sm:$0xff] }
0x1b0d   :  { %10219 = vmatpush2.bf16.msra.mxu1 %v16008_v17  ;;  %10177 = vmatprep.subr.bf16.mxu0 %v15737_v5  ;;  %v15914_v17 = vcombine.low %v7162_v38, %v7170_v11  ;;  %v15643_v5 = vcombine.high %v6890_v9, %v6898_v36  ;;  %v7066_v3 = vld [vmem:[#allocation19 + $0x798] sm:$0xff] }
0x1b0e   :  { %10220 = vmatprep.subr.bf16.mxu1 %v15993_v10  ;;  %v15899_v10 = vcombine.high %v7146_v21, %v7154_v46  ;;  %v7322_v38 = vld [vmem:[#allocation19 + $0xf98] sm:$0xff] }
0x1b0f   :  { %v7330_v11 = vld [vmem:[#allocation19 + $0xfd8] sm:$0xff] }
0x1b10   :  { %10178 = vmatpush2.bf16.msra.mxu0 %v15736_v13  ;;  %v15642_v13 = vcombine.low %v6890_v9, %v6898_v36  ;;  %v7050_v9 = vld [vmem:[#allocation19 + $0x718] sm:$0xff] }
0x1b11   :  { %10221 = vmatpush2.bf16.msra.mxu1 %v15992_v1  ;;  %10179 = vmatprep.subr.bf16.mxu0 %v15721_v58  ;;  %v15898_v1 = vcombine.low %v7146_v21, %v7154_v46  ;;  %v15627_v58 = vcombine.high %v6874_v6, %v6882_v0  ;;  %v7058_v36 = vld [vmem:[#allocation19 + $0x758] sm:$0xff] }
0x1b12   :  { %10222 = vmatprep.subr.bf16.mxu1 %v15977_v40  ;;  %v15883_v40 = vcombine.high %v7130_v41, %v7138_v35  ;;  %v7306_v21 = vld [vmem:[#allocation19 + $0xf18] sm:$0xff] }
0x1b13   :  { %v7314_v46 = vld [vmem:[#allocation19 + $0xf58] sm:$0xff] }
0x1b14   :  { %10180 = vmatpush2.bf16.msra.mxu0 %v15720_v60  ;;  %v15626_v60 = vcombine.low %v6874_v6, %v6882_v0  ;;  %v7034_v6 = vld [vmem:[#allocation19 + $0x698] sm:$0xff] }
0x1b15   :  { %10223 = vmatpush2.bf16.msra.mxu1 %v15976_v61  ;;  %10181 = vmatprep.subr.bf16.mxu0 %v15705_v7  ;;  %v15882_v61 = vcombine.low %v7130_v41, %v7138_v35  ;;  %v15611_v7 = vcombine.high %v6858_v52, %v6866_v12  ;;  %v7042_v0 = vld [vmem:[#allocation19 + $0x6d8] sm:$0xff] }
0x1b16   :  { %10224 = vmatprep.subr.bf16.mxu1 %v15961_v15  ;;  %v15867_v15 = vcombine.high %v7114_v49, %v7122_v51  ;;  %v7290_v41 = vld [vmem:[#allocation19 + $0xe98] sm:$0xff] }
0x1b17   :  { %v7298_v35 = vld [vmem:[#allocation19 + $0xed8] sm:$0xff] }
0x1b18   :  { %10182 = vmatpush2.bf16.msra.mxu0 %v15704_v37  ;;  %v15610_v37 = vcombine.low %v6858_v52, %v6866_v12  ;;  %v7018_v52 = vld [vmem:[#allocation19 + $0x618] sm:$0xff] }
0x1b19   :  { %10225 = vmatpush2.bf16.msra.mxu1 %v15960_v32  ;;  %10237 = vmatprep.subr.bf16.mxu0 %v15691_v18  ;;  %v15866_v32 = vcombine.low %v7114_v49, %v7122_v51  ;;  %v15595_v18 = vcombine.high %v6842_v33, %v6850_v57  ;;  %v7026_v12 = vld [vmem:[#allocation19 + $0x658] sm:$0xff] }
0x1b1a   :  { %10280 = vmatprep.subr.bf16.mxu1 %v15947_v8  ;;  %v15851_v8 = vcombine.high %v7098_v48, %v7106_v53  ;;  %v7274_v49 = vld [vmem:[#allocation19 + $0xe18] sm:$0xff] }
0x1b1b   :  { %10184 = vmatmul.mubr.bf16.vlgmr.msra.gmra.mxu0 %v20000_v59  ;;  %v7282_v51 = vld [vmem:[#allocation19 + $0xe58] sm:$0xff] }
0x1b1c   :  { %10227 = vmatmul.mubr.bf16.vlgmr.msra.gmra.mxu1 %v20004_v29  ;;  %10238 = vmatpush1.bf16.msra.mxu0 %v15690_v34  ;;  %v7082_v34 = vld [vmem:[#allocation19 + $0x818] sm:$0xff] }
0x1b1d   :  { %10269 = vmatprep.mubr.bf16.mxu0 %v19992_v47  ;;  %10281 = vmatpush1.bf16.msra.mxu1 %v15946_v39  ;;  %v15850_v39 = vcombine.low %v7098_v48, %v7106_v53  ;;  %v15835_v27 = vcombine.high %v7082_v34, %v7090_v43  ;;  %v7002_v33 = vld [vmem:[#allocation19 + $0x598] sm:$0xff] }
0x1b1e   :  { %10312 = vmatprep.mubr.bf16.mxu1 %v19996_v19  ;;  %10239 = vmatprep.subr.bf16.mxu0 %v15675_v42  ;;  %v15579_v42 = vcombine.high %v6826_v56, %v6834_v2  ;;  %v7010_v57 = vld [vmem:[#allocation19 + $0x5d8] sm:$0xff] }
0x1b1f   :  { %10282 = vmatprep.subr.bf16.mxu1 %v15931_v4  ;;  %v7074_v4 = vld [vmem:[#allocation19 + $0x7d8] sm:$0xff] }
0x1b20   :  { %10240 = vmatpush1.bf16.msra.mxu0 %v15674_v44  ;;  %v15578_v44 = vcombine.low %v6826_v56, %v6834_v2  ;;  %v7258_v48 = vld [vmem:[#allocation19 + $0xd98] sm:$0xff] }
0x1b21   :  { %10283 = vmatpush1.bf16.msra.mxu1 %v15930_v54  ;;  %10241 = vmatprep.subr.bf16.mxu0 %v15659_v25  ;;  %v15834_v54 = vcombine.low %v7082_v34, %v7090_v43  ;;  %v15819_v25 = vcombine.high %v7066_v3, %v7074_v4  ;;  %v7266_v53 = vld [vmem:[#allocation19 + $0xdd8] sm:$0xff] }
0x1b22   :  { %10284 = vmatprep.subr.bf16.mxu1 %v15915_v30  ;;  %v16075_v30 = vcombine.high %v7322_v38, %v7330_v11  ;;  %v6986_v56 = vld [vmem:[#allocation19 + $0x518] sm:$0xff] }
0x1b23   :  { %v6994_v2 = vld [vmem:[#allocation19 + $0x558] sm:$0xff] }
0x1b24   :  { %10242 = vmatpush1.bf16.msra.mxu0 %v15658_v63  ;;  %v15818_v63 = vcombine.low %v7066_v3, %v7074_v4  ;;  %v7242_v34 = vld [vmem:[#allocation19 + $0xd18] sm:$0xff] }
0x1b25   :  { %10285 = vmatpush1.bf16.msra.mxu1 %v15914_v17  ;;  %10243 = vmatprep.subr.bf16.mxu0 %v15643_v5  ;;  %v16074_v17 = vcombine.low %v7322_v38, %v7330_v11  ;;  %v15803_v5 = vcombine.high %v7050_v9, %v7058_v36  ;;  %v7250_v43 = vld [vmem:[#allocation19 + $0xd58] sm:$0xff] }
0x1b26   :  { %10286 = vmatprep.subr.bf16.mxu1 %v15899_v10  ;;  %v16059_v10 = vcombine.high %v7306_v21, %v7314_v46  ;;  %v6970_v3 = vld [vmem:[#allocation19 + $0x498] sm:$0xff] }
0x1b27   :  { %v6978_v4 = vld [vmem:[#allocation19 + $0x4d8] sm:$0xff] }
0x1b28   :  { %10244 = vmatpush1.bf16.msra.mxu0 %v15642_v13  ;;  %v15802_v13 = vcombine.low %v7050_v9, %v7058_v36  ;;  %v7226_v38 = vld [vmem:[#allocation19 + $0xc98] sm:$0xff] }
0x1b29   :  { %10287 = vmatpush1.bf16.msra.mxu1 %v15898_v1  ;;  %10245 = vmatprep.subr.bf16.mxu0 %v15627_v58  ;;  %v16058_v1 = vcombine.low %v7306_v21, %v7314_v46  ;;  %v15787_v58 = vcombine.high %v7034_v6, %v7042_v0  ;;  %v7234_v11 = vld [vmem:[#allocation19 + $0xcd8] sm:$0xff] }
0x1b2a   :  { %10288 = vmatprep.subr.bf16.mxu1 %v15883_v40  ;;  %v16043_v40 = vcombine.high %v7290_v41, %v7298_v35  ;;  %v6954_v9 = vld [vmem:[#allocation19 + $0x418] sm:$0xff] }
0x1b2b   :  { %v6962_v36 = vld [vmem:[#allocation19 + $0x458] sm:$0xff] }
0x1b2c   :  { %10246 = vmatpush1.bf16.msra.mxu0 %v15626_v60  ;;  %v15786_v60 = vcombine.low %v7034_v6, %v7042_v0  ;;  %v7210_v21 = vld [vmem:[#allocation19 + $0xc18] sm:$0xff]  ;;  %v6939_v6 = vld [vmem:[#allocation19 + $0x3a0] sm:$0xff] }
0x1b2d   :  { %10289 = vmatpush1.bf16.msra.mxu1 %v15882_v61  ;;  %10247 = vmatprep.subr.bf16.mxu0 %v15611_v7  ;;  %v16042_v61 = vcombine.low %v7290_v41, %v7298_v35  ;;  %v15771_v7 = vcombine.high %v7018_v52, %v7026_v12  ;;  %v7218_v46 = vld [vmem:[#allocation19 + $0xc58] sm:$0xff]  ;;  %v6947_v0 = vld [vmem:[#allocation19 + $0x3e0] sm:$0xff] }
0x1b2e   :  { %10290 = vmatprep.subr.bf16.mxu1 %v15867_v15  ;;  %v16027_v15 = vcombine.high %v7274_v49, %v7282_v51  ;;  %v7195_v41 = vld [vmem:[#allocation19 + $0xba0] sm:$0xff] }
0x1b2f   :  { %v7203_v35 = vld [vmem:[#allocation19 + $0xbe0] sm:$0xff] }
0x1b30   :  { %10248 = vmatpush1.bf16.msra.mxu0 %v15610_v37  ;;  %v15770_v37 = vcombine.low %v7018_v52, %v7026_v12  ;;  %v15949_v52 = vcombine.high %v7195_v41, %v7203_v35  ;;  %v6923_v12 = vld [vmem:[#allocation19 + $0x320] sm:$0xff] }
0x1b31   :  { %10291 = vmatpush1.bf16.msra.mxu1 %v15866_v32  ;;  %10249 = vmatprep.subr.bf16.mxu0 %v15595_v18  ;;  %v16026_v32 = vcombine.low %v7274_v49, %v7282_v51  ;;  %v15755_v18 = vcombine.high %v7002_v33, %v7010_v57  ;;  %v6931_v49 = vld [vmem:[#allocation19 + $0x360] sm:$0xff]  ;;  %v15692_v51 = vcombine.low %v6939_v6, %v6947_v0 }
0x1b32   :  { %10292 = vmatprep.subr.bf16.mxu1 %v15851_v8  ;;  %v16011_v8 = vcombine.high %v7258_v48, %v7266_v53 }
0x1b34   :  { %10250 = vmatpush1.bf16.msra.mxu0 %v15594_v16  ;;  %v15754_v16 = vcombine.low %v7002_v33, %v7010_v57  ;;  %v15677_v33 = vcombine.high %v6923_v12, %v6931_v49  ;;  %v6907_v57 = vld [vmem:[#allocation19 + $0x2a0] sm:$0xff] }
0x1b35   :  { %10293 = vmatpush1.bf16.msra.mxu1 %v15850_v39  ;;  %10251 = vmatprep.subr.bf16.mxu0 %v15579_v42  ;;  %v16010_v39 = vcombine.low %v7258_v48, %v7266_v53  ;;  %v15739_v42 = vcombine.high %v6986_v56, %v6994_v2  ;;  %v6915_v48 = vld [vmem:[#allocation19 + $0x2e0] sm:$0xff] }
0x1b36   :  { %10294 = vmatprep.subr.bf16.mxu1 %v15835_v27  ;;  %v15995_v27 = vcombine.high %v7242_v34, %v7250_v43 }
0x1b38   :  { %10252 = vmatpush1.bf16.msra.mxu0 %v15578_v44  ;;  %v15738_v44 = vcombine.low %v6986_v56, %v6994_v2  ;;  %v15676_v2 = vcombine.low %v6923_v12, %v6931_v49  ;;  %v6867_v12 = vld [vmem:[#allocation19 + $0x160] sm:$0xff] }
0x1b39   :  { %10295 = vmatpush1.bf16.msra.mxu1 %v15834_v54  ;;  %10253 = vmatprep.subr.bf16.mxu0 %v15819_v25  ;;  %v15994_v54 = vcombine.low %v7242_v34, %v7250_v43  ;;  %v15723_v25 = vcombine.high %v6970_v3, %v6978_v4  ;;  %v7115_v49 = vld [vmem:[#allocation19 + $0x920] sm:$0xff] }
0x1b3a   :  { %10296 = vmatprep.subr.bf16.mxu1 %v16075_v30  ;;  %v15979_v30 = vcombine.high %v7226_v38, %v7234_v11 }
0x1b3c   :  { %10254 = vmatpush2.bf16.msra.mxu0 %v15818_v63  ;;  %v15722_v63 = vcombine.low %v6970_v3, %v6978_v4  ;;  %v6891_v3 = vld [vmem:[#allocation19 + $0x220] sm:$0xff] }
0x1b3d   :  { %10297 = vmatpush2.bf16.msra.mxu1 %v16074_v17  ;;  %10255 = vmatprep.subr.bf16.mxu0 %v15803_v5  ;;  %v15978_v17 = vcombine.low %v7226_v38, %v7234_v11  ;;  %v15707_v5 = vcombine.high %v6954_v9, %v6962_v36  ;;  %v6899_v4 = vld [vmem:[#allocation19 + $0x260] sm:$0xff] }
0x1b3e   :  { %10298 = vmatprep.subr.bf16.mxu1 %v16059_v10  ;;  %v15963_v10 = vcombine.high %v7210_v21, %v7218_v46  ;;  %v7147_v11 = vld [vmem:[#allocation19 + $0xa20] sm:$0xff] }
0x1b40   :  { %10256 = vmatpush2.bf16.msra.mxu0 %v15802_v13  ;;  %v15706_v13 = vcombine.low %v6954_v9, %v6962_v36  ;;  %v15645_v36 = vcombine.high %v6891_v3, %v6899_v4 }
0x1b41   :  { %10299 = vmatpush2.bf16.msra.mxu1 %v16058_v1  ;;  %10257 = vmatprep.subr.bf16.mxu0 %v15787_v58  ;;  %v15962_v1 = vcombine.low %v7210_v21, %v7218_v46  ;;  %v15693_v58 = vcombine.high %v6939_v6, %v6947_v0 }
0x1b42   :  { %10300 = vmatprep.subr.bf16.mxu1 %v16043_v40  ;;  %v20026_v40 = vld [vmem:[#allocation20] sm:$0xff] }
0x1b44   :  { %10258 = vmatpush2.bf16.msra.mxu0 %v15786_v60  ;;  %v7342_v60 = vrot.slane %v20026_v40, %v19169_v24 }
0x1b45   :  { %10301 = vmatpush2.bf16.msra.mxu1 %v16042_v61  ;;  %10259 = vmatprep.subr.bf16.mxu0 %v15771_v7  ;;  %v7179_v61 = vld [vmem:[#allocation19 + $0xb20] sm:$0xff] }
0x1b46   :  { %10302 = vmatprep.subr.bf16.mxu1 %v16027_v15  ;;  %v7187_v7 = vld [vmem:[#allocation19 + $0xb60] sm:$0xff]  ;;  %v15948_v15 = vcombine.low %v7195_v41, %v7203_v35  ;;  %v15644_v41 = vcombine.low %v6891_v3, %v6899_v4 }
0x1b48   :  { %10260 = vmatpush2.bf16.msra.mxu0 %v15770_v37 }
0x1b49   :  { %10303 = vmatpush2.bf16.msra.mxu1 %v16026_v32  ;;  %10261 = vmatprep.subr.bf16.mxu0 %v15755_v18  ;;  %v15933_v32 = vcombine.high %v7179_v61, %v7187_v7  ;;  %v7163_v18 = vld [vmem:[#allocation19 + $0xaa0] sm:$0xff] }
0x1b4a   :  { %10304 = vmatprep.subr.bf16.mxu1 %v16011_v8  ;;  %v7171_v8 = vld [vmem:[#allocation19 + $0xae0] sm:$0xff] }
0x1b4b   :  { %v15916_v9 = vcombine.low %v7163_v18, %v7171_v8 }
0x1b4c   :  { %10262 = vmatpush2.bf16.msra.mxu0 %v15754_v16  ;;  %v15932_v16 = vcombine.low %v7179_v61, %v7187_v7 }
0x1b4d   :  { %10305 = vmatpush2.bf16.msra.mxu1 %v16010_v39  ;;  %10263 = vmatprep.subr.bf16.mxu0 %v15739_v42  ;;  %v15661_v39 = vcombine.high %v6907_v57, %v6915_v48 }
0x1b4e   :  { %10306 = vmatprep.subr.bf16.mxu1 %v15995_v27  ;;  %v15917_v27 = vcombine.high %v7163_v18, %v7171_v8 }
0x1b50   :  { %10264 = vmatpush2.bf16.msra.mxu0 %v15738_v44  ;;  %v7155_v44 = vld [vmem:[#allocation19 + $0xa60] sm:$0xff] }
0x1b51   :  { %10307 = vmatpush2.bf16.msra.mxu1 %v15994_v54  ;;  %10265 = vmatprep.subr.bf16.mxu0 %v15723_v25  ;;  %v15660_v25 = vcombine.low %v6907_v57, %v6915_v48  ;;  %v15901_v46 = vcombine.high %v7147_v11, %v7155_v44  ;;  %v15900_v35 = vcombine.low %v7147_v11, %v7155_v44  ;;  %v6851_v57 = vld [vmem:[#allocation19 + $0xe0] sm:$0xff] }
0x1b52   :  { %10308 = vmatprep.subr.bf16.mxu1 %v15979_v30  ;;  %v7099_v48 = vld [vmem:[#allocation19 + $0x8a0] sm:$0xff] }
0x1b53   :  { %v7075_v11 = vld [vmem:[#allocation19 + $0x7e0] sm:$0xff] }
0x1b54   :  { %10266 = vmatpush2.bf16.msra.mxu0 %v15722_v63  ;;  %v6875_v63 = vld [vmem:[#allocation19 + $0x1a0] sm:$0xff] }
0x1b55   :  { %10309 = vmatpush2.bf16.msra.mxu1 %v15978_v17  ;;  %10267 = vmatprep.subr.bf16.mxu0 %v15707_v5  ;;  %v6883_v17 = vld [vmem:[#allocation19 + $0x1e0] sm:$0xff] }
0x1b56   :  { %10310 = vmatprep.subr.bf16.mxu1 %v15963_v10  ;;  %v7131_v5 = vld [vmem:[#allocation19 + $0x9a0] sm:$0xff] }
0x1b57   :  { %v7139_v10 = vld [vmem:[#allocation19 + $0x9e0] sm:$0xff] }
0x1b58   :  { %10268 = vmatpush2.bf16.msra.mxu0 %v15706_v13  ;;  %v15629_v13 = vcombine.high %v6875_v63, %v6883_v17  ;;  %v15884_v61 = vcombine.low %v7131_v5, %v7139_v10  ;;  %v7323_v44 = vld [vmem:[#allocation19 + $0xfa0] sm:$0xff] }
0x1b59   :  { %10311 = vmatpush2.bf16.msra.mxu1 %v15962_v1  ;;  %10323 = vmatprep.subr.bf16.mxu0 %v15693_v58  ;;  %v15885_v58 = vcombine.high %v7131_v5, %v7139_v10 }
0x1b5a   :  { %10366 = vmatprep.subr.bf16.mxu1 %v15949_v52  ;;  %v6859_v52 = vld [vmem:[#allocation19 + $0x120] sm:$0xff] }
0x1b5b   :  { %10270 = vmatmul.mubr.bf16.vlgmr.msra.gmra.mxu0 %v20000_v59  ;;  %v10013_v53 = vpop.f32.mrf.mxu0  ;;  %v10056_v37 = vpop.f32.mrf.mxu1  ;;  %v15613_v7 = vcombine.high %v6859_v52, %v6867_v12 }
0x1b5c   :  { %10313 = vmatmul.mubr.bf16.vlgmr.msra.gmra.mxu1 %v20004_v29  ;;  %v10014_v56 = vadd.f32 %v10013_v53, %v7342_v60  ;;  %10324 = vmatpush1.bf16.msra.mxu0 %v15692_v51  ;;  %v7123_v51 = vld [vmem:[#allocation19 + $0x960] sm:$0xff] }
0x1b5d   :  { %10355 = vmatprep.mubr.bf16.mxu0 %v19992_v47  ;;  %10367 = vmatpush1.bf16.msra.mxu1 %v15948_v15  ;;  %v20033_v34 = vpop.f32.mrf.mxu0  ;;  %v20035_v43 = vpop.f32.mrf.mxu1  ;;  %v15869_v15 = vcombine.high %v7115_v49, %v7123_v51  ;;  %v7107_v53 = vld [vmem:[#allocation19 + $0x8e0] sm:$0xff] }
0x1b5e   :  { %v10057_v42 = vadd.f32 %v10056_v37, %v10014_v56  ;;  %10398 = vmatprep.mubr.bf16.mxu1 %v19996_v19  ;;  %10325 = vmatprep.subr.bf16.mxu0 %v15677_v33  ;;  %v6843_v33 = vld [vmem:[#allocation19 + $0xa0] sm:$0xff]  ;;  %v15612_v37 = vcombine.low %v6859_v52, %v6867_v12  ;;  %v15853_v8 = vcombine.high %v7099_v48, %v7107_v53 }
0x1b5f   :  { %10368 = vmatprep.subr.bf16.mxu1 %v15933_v32  ;;  %v10017_v38 = vpop.f32.mrf.mxu0  ;;  %v10060_v30 = vpop.f32.mrf.mxu1  ;;  %v15868_v32 = vcombine.low %v7115_v49, %v7123_v51  ;;  %v15597_v18 = vcombine.high %v6843_v33, %v6851_v57  ;;  %v6827_v56 = vld [vmem:[#allocation19 + $0x20] sm:$0xff] }
0x1b60   :  { %v10018_v54 = vadd.f32 %v10017_v38, %v7342_v60  ;;  %10326 = vmatpush1.bf16.msra.mxu0 %v15676_v2  ;;  %v10667_v6 = vmax.f32 %v10057_v42, 0.0  ;;  %v15628_v60 = vcombine.low %v6875_v63, %v6883_v17  ;;  %v6835_v2 = vld [vmem:[#allocation19 + $0x60] sm:$0xff]  ;;  %v15596_v42 = vcombine.low %v6843_v33, %v6851_v57 }
0x1b61   :  { %10369 = vmatpush1.bf16.msra.mxu1 %v15932_v16  ;;  %10327 = vmatprep.subr.bf16.mxu0 %v15661_v39  ;;  %v7083_v16 = vld [vmem:[#allocation19 + $0x820] sm:$0xff]  ;;  %v15581_v3 = vcombine.high %v6827_v56, %v6835_v2 }
0x1b62   :  { %v10061_v21 = vadd.f32 %v10060_v30, %v10018_v54  ;;  %10370 = vmatprep.subr.bf16.mxu1 %v15917_v27  ;;  %v7091_v39 = vld [vmem:[#allocation19 + $0x860] sm:$0xff]  ;;  %v15852_v27 = vcombine.low %v7099_v48, %v7107_v53 }
0x1b63   :  { %v15837_v4 = vcombine.high %v7083_v16, %v7091_v39  ;;  %v7067_v38 = vld [vmem:[#allocation19 + $0x7a0] sm:$0xff]  ;;  %v15836_v30 = vcombine.low %v7083_v16, %v7091_v39 }
0x1b64   :  { %v10683_v0 = vmax.f32 %v10061_v21, 0.0  ;;  %10328 = vmatpush1.bf16.msra.mxu0 %v15660_v25  ;;  %v7331_v54 = vld [vmem:[#allocation19 + $0xfe0] sm:$0xff]  ;;  %v15580_v25 = vcombine.low %v6827_v56, %v6835_v2  ;;  %v15820_v5 = vcombine.low %v7067_v38, %v7075_v11 }
0x1b65   :  { %10371 = vmatpush1.bf16.msra.mxu1 %v15916_v9  ;;  %10329 = vmatprep.subr.bf16.mxu0 %v15645_v36  ;;  %v15821_v9 = vcombine.high %v7067_v38, %v7075_v11  ;;  %v16077_v36 = vcombine.high %v7323_v44, %v7331_v54  ;;  %v7051_v21 = vld [vmem:[#allocation19 + $0x720] sm:$0xff]  ;;  %v16076_v10 = vcombine.low %v7323_v44, %v7331_v54 }
0x1b66   :  { %v20038_v1 = vpack.c.bf16 %v10683_v0, %v10667_v6  ;;  %10372 = vmatprep.subr.bf16.mxu1 %v15901_v46  ;;  %v7059_v46 = vld [vmem:[#allocation19 + $0x760] sm:$0xff] }
0x1b67   :  { %v7307_v63 = vld [vmem:[#allocation19 + $0xf20] sm:$0xff]  ;;  %v15805_v6 = vcombine.high %v7051_v21, %v7059_v46  ;;  %v15804_v52 = vcombine.low %v7051_v21, %v7059_v46 }
0x1b68   :  { %10330 = vmatpush1.bf16.msra.mxu0 %v15644_v41  ;;  %v7315_v17 = vld [vmem:[#allocation19 + $0xf60] sm:$0xff] }
0x1b69   :  { %10373 = vmatpush1.bf16.msra.mxu1 %v15900_v35  ;;  %10331 = vmatprep.subr.bf16.mxu0 %v15629_v13  ;;  %v16061_v0 = vcombine.high %v7307_v63, %v7315_v17  ;;  %v7035_v41 = vld [vmem:[#allocation19 + $0x6a0] sm:$0xff]  ;;  %v16060_v12 = vcombine.low %v7307_v63, %v7315_v17 }
0x1b6a   :  { %10374 = vmatprep.subr.bf16.mxu1 %v15885_v58  ;;  %v7043_v35 = vld [vmem:[#allocation19 + $0x6e0] sm:$0xff] }
0x1b6b   :  { %v7291_v13 = vld [vmem:[#allocation19 + $0xea0] sm:$0xff]  ;;  %v15789_v49 = vcombine.high %v7035_v41, %v7043_v35  ;;  %v15788_v33 = vcombine.low %v7035_v41, %v7043_v35 }
0x1b6c   :  { %10332 = vmatpush1.bf16.msra.mxu0 %v15628_v60  ;;  %v7299_v58 = vld [vmem:[#allocation19 + $0xee0] sm:$0xff] }
0x1b6d   :  { %10375 = vmatpush1.bf16.msra.mxu1 %v15884_v61  ;;  %10333 = vmatprep.subr.bf16.mxu0 %v15613_v7  ;;  %v16045_v51 = vcombine.high %v7291_v13, %v7299_v58  ;;  %v7019_v60 = vld [vmem:[#allocation19 + $0x620] sm:$0xff]  ;;  %v16044_v57 = vcombine.low %v7291_v13, %v7299_v58 }
0x1b6e   :  { %10376 = vmatprep.subr.bf16.mxu1 %v15869_v15  ;;  %v7027_v61 = vld [vmem:[#allocation19 + $0x660] sm:$0xff] }
0x1b6f   :  { %v7275_v7 = vld [vmem:[#allocation19 + $0xe20] sm:$0xff]  ;;  %v15773_v48 = vcombine.high %v7019_v60, %v7027_v61  ;;  %v15772_v56 = vcombine.low %v7019_v60, %v7027_v61 }
0x1b70   :  { %10334 = vmatpush1.bf16.msra.mxu0 %v15612_v37  ;;  %v7283_v15 = vld [vmem:[#allocation19 + $0xe60] sm:$0xff] }
0x1b71   :  { %10377 = vmatpush1.bf16.msra.mxu1 %v15868_v32  ;;  %10335 = vmatprep.subr.bf16.mxu0 %v15597_v18  ;;  %v16029_v53 = vcombine.high %v7275_v7, %v7283_v15  ;;  %v7003_v37 = vld [vmem:[#allocation19 + $0x5a0] sm:$0xff]  ;;  %v16028_v2 = vcombine.low %v7275_v7, %v7283_v15 }
0x1b72   :  { %10378 = vmatprep.subr.bf16.mxu1 %v15853_v8  ;;  %v7011_v32 = vld [vmem:[#allocation19 + $0x5e0] sm:$0xff] }
0x1b73   :  { %v7259_v18 = vld [vmem:[#allocation19 + $0xda0] sm:$0xff]  ;;  %v15757_v16 = vcombine.high %v7003_v37, %v7011_v32  ;;  %v15756_v38 = vcombine.low %v7003_v37, %v7011_v32  ;;  %v7180_v37 = vld [vmem:[#allocation19 + $0xb28] sm:$0xff] }
0x1b74   :  { %10336 = vmatpush1.bf16.msra.mxu0 %v15596_v42  ;;  %v7267_v8 = vld [vmem:[#allocation19 + $0xde0] sm:$0xff]  ;;  %v7188_v32 = vld [vmem:[#allocation19 + $0xb68] sm:$0xff] }
0x1b75   :  { %10379 = vmatpush1.bf16.msra.mxu1 %v15852_v27  ;;  %10337 = vmatprep.subr.bf16.mxu0 %v15581_v3  ;;  %v16013_v39 = vcombine.high %v7259_v18, %v7267_v8  ;;  %v6987_v42 = vld [vmem:[#allocation19 + $0x520] sm:$0xff]  ;;  %v16012_v11 = vcombine.low %v7259_v18, %v7267_v8  ;;  %v20042_v18 = vpop.f32.mrf.mxu0  ;;  %v20044_v8 = vpop.f32.mrf.mxu1 }
0x1b76   :  { %10380 = vmatprep.subr.bf16.mxu1 %v15837_v4  ;;  %v6995_v27 = vld [vmem:[#allocation19 + $0x560] sm:$0xff] }
0x1b77   :  { %v7243_v3 = vld [vmem:[#allocation19 + $0xd20] sm:$0xff]  ;;  %v15741_v44 = vcombine.high %v6987_v42, %v6995_v27  ;;  %v15740_v21 = vcombine.low %v6987_v42, %v6995_v27 }
0x1b78   :  { %10338 = vmatpush1.bf16.msra.mxu0 %v15580_v25  ;;  %v7251_v4 = vld [vmem:[#allocation19 + $0xd60] sm:$0xff] }
0x1b79   :  { %10381 = vmatpush1.bf16.msra.mxu1 %v15836_v30  ;;  %10339 = vmatprep.subr.bf16.mxu0 %v15821_v9  ;;  %v15997_v54 = vcombine.high %v7243_v3, %v7251_v4  ;;  %v6971_v25 = vld [vmem:[#allocation19 + $0x4a0] sm:$0xff]  ;;  %v15996_v46 = vcombine.low %v7243_v3, %v7251_v4  ;;  %v15935_v3 = vcombine.high %v7180_v37, %v7188_v32  ;;  %v7164_v4 = vld [vmem:[#allocation19 + $0xaa8] sm:$0xff] }
0x1b7a   :  { %10382 = vmatprep.subr.bf16.mxu1 %v16077_v36  ;;  %v6979_v30 = vld [vmem:[#allocation19 + $0x4e0] sm:$0xff] }
0x1b7b   :  { %v7227_v9 = vld [vmem:[#allocation19 + $0xca0] sm:$0xff]  ;;  %v15725_v63 = vcombine.high %v6971_v25, %v6979_v30  ;;  %v15724_v41 = vcombine.low %v6971_v25, %v6979_v30  ;;  %v15934_v30 = vcombine.low %v7180_v37, %v7188_v32  ;;  %v6860_v37 = vld [vmem:[#allocation19 + $0x128] sm:$0xff] }
0x1b7c   :  { %10340 = vmatpush2.bf16.msra.mxu0 %v15820_v5  ;;  %v7235_v36 = vld [vmem:[#allocation19 + $0xce0] sm:$0xff]  ;;  %v6868_v32 = vld [vmem:[#allocation19 + $0x168] sm:$0xff] }
0x1b7d   :  { %10383 = vmatpush2.bf16.msra.mxu1 %v16076_v10  ;;  %10341 = vmatprep.subr.bf16.mxu0 %v15805_v6  ;;  %v15981_v17 = vcombine.high %v7227_v9, %v7235_v36  ;;  %v6955_v5 = vld [vmem:[#allocation19 + $0x420] sm:$0xff]  ;;  %v15980_v35 = vcombine.low %v7227_v9, %v7235_v36 }
0x1b7e   :  { %10384 = vmatprep.subr.bf16.mxu1 %v16061_v0  ;;  %v6963_v10 = vld [vmem:[#allocation19 + $0x460] sm:$0xff] }
0x1b7f   :  { %v7211_v6 = vld [vmem:[#allocation19 + $0xc20] sm:$0xff]  ;;  %v15709_v13 = vcombine.high %v6955_v5, %v6963_v10  ;;  %v15708_v60 = vcombine.low %v6955_v5, %v6963_v10  ;;  %v7148_v5 = vld [vmem:[#allocation19 + $0xa28] sm:$0xff] }
0x1b80   :  { %10342 = vmatpush2.bf16.msra.mxu0 %v15804_v52  ;;  %v7219_v0 = vld [vmem:[#allocation19 + $0xc60] sm:$0xff]  ;;  %v6940_v52 = vld [vmem:[#allocation19 + $0x3a8] sm:$0xff] }
0x1b81   :  { %10385 = vmatpush2.bf16.msra.mxu1 %v16060_v12  ;;  %10343 = vmatprep.subr.bf16.mxu0 %v15789_v49  ;;  %v15965_v58 = vcombine.high %v7211_v6, %v7219_v0  ;;  %v6948_v12 = vld [vmem:[#allocation19 + $0x3e8] sm:$0xff]  ;;  %v15964_v61 = vcombine.low %v7211_v6, %v7219_v0 }
0x1b82   :  { %10386 = vmatprep.subr.bf16.mxu1 %v16045_v51  ;;  %v7196_v49 = vld [vmem:[#allocation19 + $0xba8] sm:$0xff]  ;;  %v15695_v7 = vcombine.high %v6940_v52, %v6948_v12 }
0x1b83   :  { %v7204_v51 = vld [vmem:[#allocation19 + $0xbe8] sm:$0xff] }
0x1b84   :  { %10344 = vmatpush2.bf16.msra.mxu0 %v15788_v33  ;;  %v15951_v15 = vcombine.high %v7196_v49, %v7204_v51  ;;  %v6924_v33 = vld [vmem:[#allocation19 + $0x328] sm:$0xff] }
0x1b85   :  { %10387 = vmatpush2.bf16.msra.mxu1 %v16044_v57  ;;  %10345 = vmatprep.subr.bf16.mxu0 %v15773_v48  ;;  %v6932_v57 = vld [vmem:[#allocation19 + $0x368] sm:$0xff]  ;;  %v7350_v48 = vrot.slane %v20026_v40, %v19175_v28 }
0x1b86   :  { %10388 = vmatprep.subr.bf16.mxu1 %v16029_v53  ;;  %v15694_v53 = vcombine.low %v6940_v52, %v6948_v12  ;;  %v7156_v10 = vld [vmem:[#allocation19 + $0xa68] sm:$0xff] }
0x1b87   :  { %v15903_v52 = vcombine.high %v7148_v5, %v7156_v10  ;;  %v6876_v12 = vld [vmem:[#allocation19 + $0x1a8] sm:$0xff] }
0x1b88   :  { %10346 = vmatpush2.bf16.msra.mxu0 %v15772_v56  ;;  %v15950_v56 = vcombine.low %v7196_v49, %v7204_v51  ;;  %v6884_v49 = vld [vmem:[#allocation19 + $0x1e8] sm:$0xff] }
0x1b89   :  { %10389 = vmatpush2.bf16.msra.mxu1 %v16028_v2  ;;  %10347 = vmatprep.subr.bf16.mxu0 %v15757_v16  ;;  %v15679_v2 = vcombine.high %v6924_v33, %v6932_v57  ;;  %v6908_v16 = vld [vmem:[#allocation19 + $0x2a8] sm:$0xff] }
0x1b8a   :  { %10390 = vmatprep.subr.bf16.mxu1 %v16013_v39  ;;  %v6916_v39 = vld [vmem:[#allocation19 + $0x2e8] sm:$0xff] }
0x1b8b   :  { %v15663_v9 = vcombine.high %v6908_v16, %v6916_v39  ;;  %v15662_v0 = vcombine.low %v6908_v16, %v6916_v39  ;;  %v7132_v51 = vld [vmem:[#allocation19 + $0x9a8] sm:$0xff]  ;;  %v15630_v16 = vcombine.low %v6876_v12, %v6884_v49 }
0x1b8c   :  { %10348 = vmatpush2.bf16.msra.mxu0 %v15756_v38  ;;  %v7172_v38 = vld [vmem:[#allocation19 + $0xae8] sm:$0xff] }
0x1b8d   :  { %10391 = vmatpush2.bf16.msra.mxu1 %v16012_v11  ;;  %10349 = vmatprep.subr.bf16.mxu0 %v15741_v44  ;;  %v15678_v44 = vcombine.low %v6924_v33, %v6932_v57  ;;  %v15902_v33 = vcombine.low %v7148_v5, %v7156_v10  ;;  %v15631_v57 = vcombine.high %v6876_v12, %v6884_v49 }
0x1b8e   :  { %10392 = vmatprep.subr.bf16.mxu1 %v15997_v54 }
0x1b90   :  { %10350 = vmatpush2.bf16.msra.mxu0 %v15740_v21  ;;  %v15919_v21 = vcombine.high %v7164_v4, %v7172_v38 }
0x1b91   :  { %10393 = vmatpush2.bf16.msra.mxu1 %v15996_v46  ;;  %10351 = vmatprep.subr.bf16.mxu0 %v15725_v63  ;;  %v6892_v46 = vld [vmem:[#allocation19 + $0x228] sm:$0xff] }
0x1b92   :  { %10394 = vmatprep.subr.bf16.mxu1 %v15981_v17  ;;  %v6900_v63 = vld [vmem:[#allocation19 + $0x268] sm:$0xff] }
0x1b94   :  { %10352 = vmatpush2.bf16.msra.mxu0 %v15724_v41 }
0x1b95   :  { %10395 = vmatpush2.bf16.msra.mxu1 %v15980_v35  ;;  %10353 = vmatprep.subr.bf16.mxu0 %v15709_v13  ;;  %v15918_v35 = vcombine.low %v7164_v4, %v7172_v38  ;;  %v15647_v13 = vcombine.high %v6892_v46, %v6900_v63  ;;  %v6852_v4 = vld [vmem:[#allocation19 + $0xe8] sm:$0xff] }
0x1b96   :  { %10396 = vmatprep.subr.bf16.mxu1 %v15965_v58  ;;  %v7100_v38 = vld [vmem:[#allocation19 + $0x8a8] sm:$0xff] }
0x1b98   :  { %10354 = vmatpush2.bf16.msra.mxu0 %v15708_v60  ;;  %v7140_v60 = vld [vmem:[#allocation19 + $0x9e8] sm:$0xff] }
0x1b99   :  { %10397 = vmatpush2.bf16.msra.mxu1 %v15964_v61  ;;  %10409 = vmatprep.subr.bf16.mxu0 %v15695_v7  ;;  %v15886_v39 = vcombine.low %v7132_v51, %v7140_v60 }
0x1b9a   :  { %10452 = vmatprep.subr.bf16.mxu1 %v15951_v15  ;;  %v15646_v15 = vcombine.low %v6892_v46, %v6900_v63  ;;  %v6836_v46 = vld [vmem:[#allocation19 + $0x68] sm:$0xff] }
0x1b9b   :  { %v10099_v42 = vpop.f32.mrf.mxu0  ;;  %v10142_v27 = vpop.f32.mrf.mxu1  ;;  %10356 = vmatmul.mubr.bf16.vlgmr.msra.gmra.mxu0 %v20000_v59  ;;  %v7084_v63 = vld [vmem:[#allocation19 + $0x828] sm:$0xff] }
0x1b9c   :  { %v10100_v11 = vadd.f32 %v10099_v42, %v7350_v48  ;;  %10399 = vmatmul.mubr.bf16.vlgmr.msra.gmra.mxu1 %v20004_v29  ;;  %10410 = vmatpush1.bf16.msra.mxu0 %v15694_v53  ;;  %v15887_v53 = vcombine.high %v7132_v51, %v7140_v60  ;;  %v15615_v42 = vcombine.high %v6860_v37, %v6868_v32  ;;  %v7052_v60 = vld [vmem:[#allocation19 + $0x728] sm:$0xff] }
0x1b9d   :  { %10441 = vmatprep.mubr.bf16.mxu0 %v19992_v47  ;;  %10453 = vmatpush1.bf16.msra.mxu1 %v15950_v56  ;;  %v20049_v54 = vpop.f32.mrf.mxu0  ;;  %v20051_v25 = vpop.f32.mrf.mxu1  ;;  %v7116_v56 = vld [vmem:[#allocation19 + $0x928] sm:$0xff] }
0x1b9e   :  { %v10143_v36 = vadd.f32 %v10142_v27, %v10100_v11  ;;  %10484 = vmatprep.mubr.bf16.mxu1 %v19996_v19  ;;  %10411 = vmatprep.subr.bf16.mxu0 %v15679_v2  ;;  %v7124_v2 = vld [vmem:[#allocation19 + $0x968] sm:$0xff] }
0x1b9f   :  { %v10103_v17 = vpop.f32.mrf.mxu0  ;;  %10454 = vmatprep.subr.bf16.mxu1 %v15935_v3  ;;  %v10146_v41 = vpop.f32.mrf.mxu1  ;;  %v15871_v27 = vcombine.high %v7116_v56, %v7124_v2  ;;  %v6844_v3 = vld [vmem:[#allocation19 + $0xa8] sm:$0xff] }
0x1ba0   :  { %v10104_v6 = vadd.f32 %v10103_v17, %v7350_v48  ;;  %10412 = vmatpush1.bf16.msra.mxu0 %v15678_v44  ;;  %v10669_v61 = vmax.f32 %v10143_v36, 0.0  ;;  %v7108_v11 = vld [vmem:[#allocation19 + $0x8e8] sm:$0xff]  ;;  %v15614_v44 = vcombine.low %v6860_v37, %v6868_v32  ;;  %v15598_v5 = vcombine.low %v6844_v3, %v6852_v4 }
0x1ba1   :  { %10455 = vmatpush1.bf16.msra.mxu1 %v15934_v30  ;;  %10413 = vmatprep.subr.bf16.mxu0 %v15663_v9  ;;  %v15870_v30 = vcombine.low %v7116_v56, %v7124_v2  ;;  %v15599_v9 = vcombine.high %v6844_v3, %v6852_v4  ;;  %v15855_v36 = vcombine.high %v7100_v38, %v7108_v11  ;;  %v7092_v17 = vld [vmem:[#allocation19 + $0x868] sm:$0xff] }
0x1ba2   :  { %v10147_v58 = vadd.f32 %v10146_v41, %v10104_v6  ;;  %10456 = vmatprep.subr.bf16.mxu1 %v15919_v21  ;;  %v6828_v21 = vld [vmem:[#allocation19 + $0x28] sm:$0xff]  ;;  %v15854_v10 = vcombine.low %v7100_v38, %v7108_v11  ;;  %v15838_v12 = vcombine.low %v7084_v63, %v7092_v17 }
0x1ba3   :  { %v15583_v6 = vcombine.high %v6828_v21, %v6836_v46  ;;  %v7068_v41 = vld [vmem:[#allocation19 + $0x7a8] sm:$0xff] }
0x1ba4   :  { %v10685_v7 = vmax.f32 %v10147_v58, 0.0  ;;  %10414 = vmatpush1.bf16.msra.mxu0 %v15662_v0  ;;  %v15839_v0 = vcombine.high %v7084_v63, %v7092_v17  ;;  %v7332_v58 = vld [vmem:[#allocation19 + $0xfe8] sm:$0xff] }
0x1ba5   :  { %10457 = vmatpush1.bf16.msra.mxu1 %v15918_v35  ;;  %10415 = vmatprep.subr.bf16.mxu0 %v15647_v13  ;;  %v7076_v35 = vld [vmem:[#allocation19 + $0x7e8] sm:$0xff] }
0x1ba6   :  { %v20054_v48 = vpack.c.bf16 %v10685_v7, %v10669_v61  ;;  %10458 = vmatprep.subr.bf16.mxu1 %v15903_v52  ;;  %v7324_v13 = vld [vmem:[#allocation19 + $0xfa8] sm:$0xff]  ;;  %v15582_v52 = vcombine.low %v6828_v21, %v6836_v46  ;;  %v15823_v49 = vcombine.high %v7068_v41, %v7076_v35 }
0x1ba7   :  { %v16079_v51 = vcombine.high %v7324_v13, %v7332_v58  ;;  %v7060_v61 = vld [vmem:[#allocation19 + $0x768] sm:$0xff] }
0x1ba8   :  { %10416 = vmatpush1.bf16.msra.mxu0 %v15646_v15  ;;  %v7308_v7 = vld [vmem:[#allocation19 + $0xf28] sm:$0xff] }
0x1ba9   :  { %10459 = vmatpush1.bf16.msra.mxu1 %v15902_v33  ;;  %10417 = vmatprep.subr.bf16.mxu0 %v15631_v57  ;;  %v7316_v15 = vld [vmem:[#allocation19 + $0xf68] sm:$0xff]  ;;  %v15822_v33 = vcombine.low %v7068_v41, %v7076_v35  ;;  %v16078_v57 = vcombine.low %v7324_v13, %v7332_v58 }
0x1baa   :  { %10460 = vmatprep.subr.bf16.mxu1 %v15887_v53  ;;  %v15807_v53 = vcombine.high %v7052_v60, %v7060_v61  ;;  %v16063_v37 = vcombine.high %v7308_v7, %v7316_v15  ;;  %v7036_v32 = vld [vmem:[#allocation19 + $0x6a8] sm:$0xff] }
0x1bab   :  { %v7044_v56 = vld [vmem:[#allocation19 + $0x6e8] sm:$0xff] }
0x1bac   :  { %10418 = vmatpush1.bf16.msra.mxu0 %v15630_v16  ;;  %v7292_v2 = vld [vmem:[#allocation19 + $0xea8] sm:$0xff] }
0x1bad   :  { %10461 = vmatpush1.bf16.msra.mxu1 %v15886_v39  ;;  %10419 = vmatprep.subr.bf16.mxu0 %v15615_v42  ;;  %v7300_v16 = vld [vmem:[#allocation19 + $0xee8] sm:$0xff]  ;;  %v15806_v39 = vcombine.low %v7052_v60, %v7060_v61  ;;  %v16062_v42 = vcombine.low %v7308_v7, %v7316_v15 }
0x1bae   :  { %10462 = vmatprep.subr.bf16.mxu1 %v15871_v27  ;;  %v15791_v27 = vcombine.high %v7036_v32, %v7044_v56  ;;  %v16047_v3 = vcombine.high %v7292_v2, %v7300_v16  ;;  %v7020_v4 = vld [vmem:[#allocation19 + $0x628] sm:$0xff] }
0x1baf   :  { %v7028_v38 = vld [vmem:[#allocation19 + $0x668] sm:$0xff] }
0x1bb0   :  { %10420 = vmatpush1.bf16.msra.mxu0 %v15614_v44  ;;  %v7276_v11 = vld [vmem:[#allocation19 + $0xe28] sm:$0xff] }
0x1bb1   :  { %10463 = vmatpush1.bf16.msra.mxu1 %v15870_v30  ;;  %10421 = vmatprep.subr.bf16.mxu0 %v15599_v9  ;;  %v7284_v44 = vld [vmem:[#allocation19 + $0xe68] sm:$0xff]  ;;  %v15790_v30 = vcombine.low %v7036_v32, %v7044_v56  ;;  %v16046_v9 = vcombine.low %v7292_v2, %v7300_v16 }
0x1bb2   :  { %10464 = vmatprep.subr.bf16.mxu1 %v15855_v36  ;;  %v15775_v36 = vcombine.high %v7020_v4, %v7028_v38  ;;  %v16031_v21 = vcombine.high %v7276_v11, %v7284_v44  ;;  %v7004_v46 = vld [vmem:[#allocation19 + $0x5a8] sm:$0xff] }
0x1bb3   :  { %v7012_v63 = vld [vmem:[#allocation19 + $0x5e8] sm:$0xff] }
0x1bb4   :  { %10422 = vmatpush1.bf16.msra.mxu0 %v15598_v5  ;;  %v7260_v17 = vld [vmem:[#allocation19 + $0xda8] sm:$0xff] }
0x1bb5   :  { %10465 = vmatpush1.bf16.msra.mxu1 %v15854_v10  ;;  %10423 = vmatprep.subr.bf16.mxu0 %v15583_v6  ;;  %v7268_v5 = vld [vmem:[#allocation19 + $0xde8] sm:$0xff]  ;;  %v15774_v10 = vcombine.low %v7020_v4, %v7028_v38  ;;  %v16030_v6 = vcombine.low %v7276_v11, %v7284_v44  ;;  %v6941_v38 = vld [vmem:[#allocation19 + $0x3b0] sm:$0xff] }
0x1bb6   :  { %10466 = vmatprep.subr.bf16.mxu1 %v15839_v0  ;;  %v15759_v0 = vcombine.high %v7004_v46, %v7012_v63  ;;  %v16015_v41 = vcombine.high %v7260_v17, %v7268_v5  ;;  %v6988_v35 = vld [vmem:[#allocation19 + $0x528] sm:$0xff]  ;;  %v6949_v11 = vld [vmem:[#allocation19 + $0x3f0] sm:$0xff] }
0x1bb7   :  { %v6996_v13 = vld [vmem:[#allocation19 + $0x568] sm:$0xff]  ;;  %v7197_v44 = vld [vmem:[#allocation19 + $0xbb0] sm:$0xff] }
0x1bb8   :  { %10424 = vmatpush1.bf16.msra.mxu0 %v15582_v52  ;;  %v7244_v58 = vld [vmem:[#allocation19 + $0xd28] sm:$0xff] }
0x1bb9   :  { %10467 = vmatpush1.bf16.msra.mxu1 %v15838_v12  ;;  %10425 = vmatprep.subr.bf16.mxu0 %v15823_v49  ;;  %v7252_v52 = vld [vmem:[#allocation19 + $0xd68] sm:$0xff]  ;;  %v15758_v12 = vcombine.low %v7004_v46, %v7012_v63  ;;  %v16014_v49 = vcombine.low %v7260_v17, %v7268_v5  ;;  %v6925_v63 = vld [vmem:[#allocation19 + $0x330] sm:$0xff] }
0x1bba   :  { %10468 = vmatprep.subr.bf16.mxu1 %v16079_v51  ;;  %v15743_v51 = vcombine.high %v6988_v35, %v6996_v13  ;;  %v15999_v60 = vcombine.high %v7244_v58, %v7252_v52  ;;  %v6972_v61 = vld [vmem:[#allocation19 + $0x4a8] sm:$0xff]  ;;  %v6933_v17 = vld [vmem:[#allocation19 + $0x370] sm:$0xff] }
0x1bbb   :  { %v6980_v7 = vld [vmem:[#allocation19 + $0x4e8] sm:$0xff]  ;;  %v20499_v5 = vld [vmem:[#allocation40_spill] sm:$0xff] }
0x1bbc   :  { %10426 = vmatpush2.bf16.msra.mxu0 %v15822_v33  ;;  %v7228_v15 = vld [vmem:[#allocation19 + $0xca8] sm:$0xff] }
0x1bbd   :  { %10469 = vmatpush2.bf16.msra.mxu1 %v16078_v57  ;;  %10427 = vmatprep.subr.bf16.mxu0 %v15807_v53  ;;  %v7236_v33 = vld [vmem:[#allocation19 + $0xce8] sm:$0xff]  ;;  %v15742_v57 = vcombine.low %v6988_v35, %v6996_v13  ;;  %v15998_v53 = vcombine.low %v7244_v58, %v7252_v52  ;;  %v20058_v35 = vpop.f32.mrf.mxu0  ;;  %v20060_v58 = vpop.f32.mrf.mxu1  ;;  %v15681_v52 = vcombine.high %v6925_v63, %v6933_v17 }
0x1bbe   :  { %10470 = vmatprep.subr.bf16.mxu1 %v16063_v37  ;;  %v15727_v37 = vcombine.high %v6972_v61, %v6980_v7  ;;  %v15983_v32 = vcombine.high %v7228_v15, %v7236_v33  ;;  %v6956_v56 = vld [vmem:[#allocation19 + $0x428] sm:$0xff] }
0x1bbf   :  { %v6964_v2 = vld [vmem:[#allocation19 + $0x468] sm:$0xff] }
0x1bc0   :  { %10428 = vmatpush2.bf16.msra.mxu0 %v15806_v39  ;;  %v7212_v16 = vld [vmem:[#allocation19 + $0xc28] sm:$0xff] }
0x1bc1   :  { %10471 = vmatpush2.bf16.msra.mxu1 %v16062_v42  ;;  %10429 = vmatprep.subr.bf16.mxu0 %v15791_v27  ;;  %v7220_v39 = vld [vmem:[#allocation19 + $0xc68] sm:$0xff]  ;;  %v15726_v42 = vcombine.low %v6972_v61, %v6980_v7  ;;  %v15982_v27 = vcombine.low %v7228_v15, %v7236_v33  ;;  %v7165_v61 = vld [vmem:[#allocation19 + $0xab0] sm:$0xff]  ;;  %v15680_v33 = vcombine.low %v6925_v63, %v6933_v17 }
0x1bc2   :  { %10472 = vmatprep.subr.bf16.mxu1 %v16047_v3  ;;  %v15711_v3 = vcombine.high %v6956_v56, %v6964_v2  ;;  %v15967_v4 = vcombine.high %v7212_v16, %v7220_v39  ;;  %v7133_v63 = vld [vmem:[#allocation19 + $0x9b0] sm:$0xff] }
0x1bc3   :  { %v7141_v17 = vld [vmem:[#allocation19 + $0x9f0] sm:$0xff] }
0x1bc4   :  { %10430 = vmatpush2.bf16.msra.mxu0 %v15790_v30  ;;  %v7205_v30 = vld [vmem:[#allocation19 + $0xbf0] sm:$0xff] }
0x1bc5   :  { %10473 = vmatpush2.bf16.msra.mxu1 %v16046_v9  ;;  %10431 = vmatprep.subr.bf16.mxu0 %v15775_v36  ;;  %v15710_v9 = vcombine.low %v6956_v56, %v6964_v2  ;;  %v15966_v36 = vcombine.low %v7212_v16, %v7220_v39  ;;  %v15953_v46 = vcombine.high %v7197_v44, %v7205_v30  ;;  %v6893_v16 = vld [vmem:[#allocation19 + $0x230] sm:$0xff] }
0x1bc6   :  { %10474 = vmatprep.subr.bf16.mxu1 %v16031_v21  ;;  %v15697_v21 = vcombine.high %v6941_v38, %v6949_v11  ;;  %v15952_v13 = vcombine.low %v7197_v44, %v7205_v30  ;;  %v6901_v39 = vld [vmem:[#allocation19 + $0x270] sm:$0xff] }
0x1bc7   :  { %v15649_v30 = vcombine.high %v6893_v16, %v6901_v39 }
0x1bc8   :  { %10432 = vmatpush2.bf16.msra.mxu0 %v15774_v10  ;;  %v7358_v10 = vrot.slane %v20026_v40, %v20499_v5  ;;  %v7173_v40 = vld [vmem:[#allocation19 + $0xaf0] sm:$0xff] }
0x1bc9   :  { %10475 = vmatpush2.bf16.msra.mxu1 %v16030_v6  ;;  %10433 = vmatprep.subr.bf16.mxu0 %v15759_v0  ;;  %v15696_v6 = vcombine.low %v6941_v38, %v6949_v11  ;;  %v7181_v0 = vld [vmem:[#allocation19 + $0xb30] sm:$0xff]  ;;  %v15921_v2 = vcombine.high %v7165_v61, %v7173_v40  ;;  %v15920_v44 = vcombine.low %v7165_v61, %v7173_v40 }
0x1bca   :  { %10476 = vmatprep.subr.bf16.mxu1 %v16015_v41  ;;  %v7189_v41 = vld [vmem:[#allocation19 + $0xb70] sm:$0xff] }
0x1bcb   :  { %v7125_v61 = vld [vmem:[#allocation19 + $0x970] sm:$0xff] }
0x1bcc   :  { %10434 = vmatpush2.bf16.msra.mxu0 %v15758_v12  ;;  %v6909_v12 = vld [vmem:[#allocation19 + $0x2b0] sm:$0xff] }
0x1bcd   :  { %10477 = vmatpush2.bf16.msra.mxu1 %v16014_v49  ;;  %10435 = vmatprep.subr.bf16.mxu0 %v15743_v51  ;;  %v6917_v49 = vld [vmem:[#allocation19 + $0x2f0] sm:$0xff] }
0x1bce   :  { %10478 = vmatprep.subr.bf16.mxu1 %v15999_v60  ;;  %v15937_v60 = vcombine.high %v7181_v0, %v7189_v41  ;;  %v15664_v38 = vcombine.low %v6909_v12, %v6917_v49 }
0x1bd0   :  { %10436 = vmatpush2.bf16.msra.mxu0 %v15742_v57 }
0x1bd1   :  { %10479 = vmatpush2.bf16.msra.mxu1 %v15998_v53  ;;  %10437 = vmatprep.subr.bf16.mxu0 %v15727_v37  ;;  %v15936_v53 = vcombine.low %v7181_v0, %v7189_v41  ;;  %v15665_v37 = vcombine.high %v6909_v12, %v6917_v49  ;;  %v15648_v41 = vcombine.low %v6893_v16, %v6901_v39  ;;  %v6861_v49 = vld [vmem:[#allocation19 + $0x130] sm:$0xff] }
0x1bd2   :  { %10480 = vmatprep.subr.bf16.mxu1 %v15983_v32  ;;  %v15889_v12 = vcombine.high %v7133_v63, %v7141_v17 }
0x1bd4   :  { %10438 = vmatpush2.bf16.msra.mxu0 %v15726_v42 }
0x1bd5   :  { %10481 = vmatpush2.bf16.msra.mxu1 %v15982_v27  ;;  %10439 = vmatprep.subr.bf16.mxu0 %v15711_v3  ;;  %v7149_v27 = vld [vmem:[#allocation19 + $0xa30] sm:$0xff] }
0x1bd6   :  { %10482 = vmatprep.subr.bf16.mxu1 %v15967_v4  ;;  %v7157_v3 = vld [vmem:[#allocation19 + $0xa70] sm:$0xff] }
0x1bd8   :  { %10440 = vmatpush2.bf16.msra.mxu0 %v15710_v9 }
0x1bd9   :  { %10483 = vmatpush2.bf16.msra.mxu1 %v15966_v36  ;;  %10495 = vmatprep.subr.bf16.mxu0 %v15697_v21  ;;  %v15905_v36 = vcombine.high %v7149_v27, %v7157_v3  ;;  %v6877_v21 = vld [vmem:[#allocation19 + $0x1b0] sm:$0xff] }
0x1bda   :  { %10538 = vmatprep.subr.bf16.mxu1 %v15953_v46  ;;  %v6885_v46 = vld [vmem:[#allocation19 + $0x1f0] sm:$0xff] }
0x1bdb   :  { %v10185_v51 = vpop.f32.mrf.mxu0  ;;  %10442 = vmatmul.mubr.bf16.vlgmr.msra.gmra.mxu0 %v20000_v59  ;;  %v15632_v40 = vcombine.low %v6877_v21, %v6885_v46 }
0x1bdc   :  { %v10186_v7 = vadd.f32 %v10185_v51, %v7358_v10  ;;  %v10228_v15 = vpop.f32.mrf.mxu1  ;;  %10485 = vmatmul.mubr.bf16.vlgmr.msra.gmra.mxu1 %v20004_v29  ;;  %10496 = vmatpush1.bf16.msra.mxu0 %v15696_v6  ;;  %v6869_v51 = vld [vmem:[#allocation19 + $0x170] sm:$0xff] }
0x1bdd   :  { %10527 = vmatprep.mubr.bf16.mxu0 %v19992_v47  ;;  %10539 = vmatpush1.bf16.msra.mxu1 %v15952_v13  ;;  %v20065_v57 = vpop.f32.mrf.mxu0  ;;  %v15633_v13 = vcombine.high %v6877_v21, %v6885_v46  ;;  %v15616_v16 = vcombine.low %v6861_v49, %v6869_v51  ;;  %v7069_v21 = vld [vmem:[#allocation19 + $0x7b0] sm:$0xff] }
0x1bde   :  { %v10229_v32 = vadd.f32 %v10228_v15, %v10186_v7  ;;  %10570 = vmatprep.mubr.bf16.mxu1 %v19996_v19  ;;  %v20068_v56 = vpop.f32.mrf.mxu1  ;;  %10497 = vmatprep.subr.bf16.mxu0 %v15681_v52  ;;  %v15888_v7 = vcombine.low %v7133_v63, %v7141_v17  ;;  %v15617_v15 = vcombine.high %v6861_v49, %v6869_v51  ;;  %v7077_v46 = vld [vmem:[#allocation19 + $0x7f0] sm:$0xff] }
0x1bdf   :  { %v10189_v42 = vpop.f32.mrf.mxu0  ;;  %10540 = vmatprep.subr.bf16.mxu1 %v15937_v60  ;;  %v7117_v60 = vld [vmem:[#allocation19 + $0x930] sm:$0xff] }
0x1be0   :  { %v10190_v4 = vadd.f32 %v10189_v42, %v7358_v10  ;;  %10498 = vmatpush1.bf16.msra.mxu0 %v15680_v33  ;;  %v10232_v11 = vpop.f32.mrf.mxu1  ;;  %v10671_v6 = vmax.f32 %v10229_v32, 0.0  ;;  %v15904_v10 = vcombine.low %v7149_v27, %v7157_v3  ;;  %v15873_v33 = vcombine.high %v7117_v60, %v7125_v61  ;;  %v7101_v32 = vld [vmem:[#allocation19 + $0x8b0] sm:$0xff] }
0x1be1   :  { %10541 = vmatpush1.bf16.msra.mxu1 %v15936_v53  ;;  %10499 = vmatprep.subr.bf16.mxu0 %v15665_v37  ;;  %v6845_v53 = vld [vmem:[#allocation19 + $0xb0] sm:$0xff]  ;;  %v15872_v39 = vcombine.low %v7117_v60, %v7125_v61  ;;  %v15824_v60 = vcombine.low %v7069_v21, %v7077_v46 }
0x1be2   :  { %v10233_v9 = vadd.f32 %v10232_v11, %v10190_v4  ;;  %10542 = vmatprep.subr.bf16.mxu1 %v15921_v2  ;;  %v6853_v37 = vld [vmem:[#allocation19 + $0xf0] sm:$0xff] }
0x1be3   :  { %v7109_v2 = vld [vmem:[#allocation19 + $0x8f0] sm:$0xff]  ;;  %v15601_v42 = vcombine.high %v6845_v53, %v6853_v37 }
0x1be4   :  { %v10687_v0 = vmax.f32 %v10233_v9, 0.0  ;;  %10500 = vmatpush1.bf16.msra.mxu0 %v15664_v38  ;;  %v15857_v27 = vcombine.high %v7101_v32, %v7109_v2  ;;  %v6829_v3 = vld [vmem:[#allocation19 + $0x30] sm:$0xff] }
0x1be5   :  { %10543 = vmatpush1.bf16.msra.mxu1 %v15920_v44  ;;  %10501 = vmatprep.subr.bf16.mxu0 %v15649_v30  ;;  %v6837_v4 = vld [vmem:[#allocation19 + $0x70] sm:$0xff]  ;;  %v15600_v44 = vcombine.low %v6845_v53, %v6853_v37  ;;  %v15856_v30 = vcombine.low %v7101_v32, %v7109_v2 }
0x1be6   :  { %v20070_v52 = vpack.c.bf16 %v10687_v0, %v10671_v6  ;;  %10544 = vmatprep.subr.bf16.mxu1 %v15905_v36  ;;  %v7085_v38 = vld [vmem:[#allocation19 + $0x830] sm:$0xff]  ;;  %v15585_v9 = vcombine.high %v6829_v3, %v6837_v4  ;;  %v15584_v6 = vcombine.low %v6829_v3, %v6837_v4 }
0x1be7   :  { %v7093_v11 = vld [vmem:[#allocation19 + $0x870] sm:$0xff] }
0x1be8   :  { %10502 = vmatpush1.bf16.msra.mxu0 %v15648_v41  ;;  %v15841_v36 = vcombine.high %v7085_v38, %v7093_v11  ;;  %v7325_v63 = vld [vmem:[#allocation19 + $0xfb0] sm:$0xff]  ;;  %v15840_v0 = vcombine.low %v7085_v38, %v7093_v11  ;;  %v15825_v41 = vcombine.high %v7069_v21, %v7077_v46 }
0x1be9   :  { %10545 = vmatpush1.bf16.msra.mxu1 %v15904_v10  ;;  %10503 = vmatprep.subr.bf16.mxu0 %v15633_v13  ;;  %v7333_v17 = vld [vmem:[#allocation19 + $0xff0] sm:$0xff] }
0x1bea   :  { %10546 = vmatprep.subr.bf16.mxu1 %v15889_v12  ;;  %v16081_v10 = vcombine.high %v7325_v63, %v7333_v17  ;;  %v7053_v13 = vld [vmem:[#allocation19 + $0x730] sm:$0xff]  ;;  %v16080_v61 = vcombine.low %v7325_v63, %v7333_v17 }
0x1beb   :  { %v7061_v12 = vld [vmem:[#allocation19 + $0x770] sm:$0xff] }
0x1bec   :  { %10504 = vmatpush1.bf16.msra.mxu0 %v15632_v40  ;;  %v7309_v49 = vld [vmem:[#allocation19 + $0xf30] sm:$0xff]  ;;  %v15809_v40 = vcombine.high %v7053_v13, %v7061_v12  ;;  %v15808_v32 = vcombine.low %v7053_v13, %v7061_v12 }
0x1bed   :  { %10547 = vmatpush1.bf16.msra.mxu1 %v15888_v7  ;;  %10505 = vmatprep.subr.bf16.mxu0 %v15617_v15  ;;  %v7317_v51 = vld [vmem:[#allocation19 + $0xf70] sm:$0xff] }
0x1bee   :  { %10548 = vmatprep.subr.bf16.mxu1 %v15873_v33  ;;  %v16065_v7 = vcombine.high %v7309_v49, %v7317_v51  ;;  %v7037_v15 = vld [vmem:[#allocation19 + $0x6b0] sm:$0xff]  ;;  %v16064_v2 = vcombine.low %v7309_v49, %v7317_v51 }
0x1bef   :  { %v7045_v33 = vld [vmem:[#allocation19 + $0x6f0] sm:$0xff] }
0x1bf0   :  { %10506 = vmatpush1.bf16.msra.mxu0 %v15616_v16  ;;  %v7293_v53 = vld [vmem:[#allocation19 + $0xeb0] sm:$0xff]  ;;  %v15793_v16 = vcombine.high %v7037_v15, %v7045_v33  ;;  %v15792_v38 = vcombine.low %v7037_v15, %v7045_v33 }
0x1bf1   :  { %10549 = vmatpush1.bf16.msra.mxu1 %v15872_v39  ;;  %10507 = vmatprep.subr.bf16.mxu0 %v15601_v42  ;;  %v7301_v37 = vld [vmem:[#allocation19 + $0xef0] sm:$0xff] }
0x1bf2   :  { %10550 = vmatprep.subr.bf16.mxu1 %v15857_v27  ;;  %v16049_v39 = vcombine.high %v7293_v53, %v7301_v37  ;;  %v7021_v42 = vld [vmem:[#allocation19 + $0x630] sm:$0xff]  ;;  %v16048_v11 = vcombine.low %v7293_v53, %v7301_v37 }
0x1bf3   :  { %v7029_v27 = vld [vmem:[#allocation19 + $0x670] sm:$0xff] }
0x1bf4   :  { %10508 = vmatpush1.bf16.msra.mxu0 %v15600_v44  ;;  %v7277_v3 = vld [vmem:[#allocation19 + $0xe30] sm:$0xff]  ;;  %v15777_v44 = vcombine.high %v7021_v42, %v7029_v27  ;;  %v15776_v63 = vcombine.low %v7021_v42, %v7029_v27 }
0x1bf5   :  { %10551 = vmatpush1.bf16.msra.mxu1 %v15856_v30  ;;  %10509 = vmatprep.subr.bf16.mxu0 %v15585_v9  ;;  %v7285_v4 = vld [vmem:[#allocation19 + $0xe70] sm:$0xff] }
0x1bf6   :  { %10552 = vmatprep.subr.bf16.mxu1 %v15841_v36  ;;  %v16033_v30 = vcombine.high %v7277_v3, %v7285_v4  ;;  %v7005_v9 = vld [vmem:[#allocation19 + $0x5b0] sm:$0xff]  ;;  %v16032_v17 = vcombine.low %v7277_v3, %v7285_v4 }
0x1bf7   :  { %v7013_v36 = vld [vmem:[#allocation19 + $0x5f0] sm:$0xff] }
0x1bf8   :  { %10510 = vmatpush1.bf16.msra.mxu0 %v15584_v6  ;;  %v7261_v21 = vld [vmem:[#allocation19 + $0xdb0] sm:$0xff]  ;;  %v15761_v6 = vcombine.high %v7005_v9, %v7013_v36  ;;  %v15760_v49 = vcombine.low %v7005_v9, %v7013_v36  ;;  %v7198_v9 = vld [vmem:[#allocation19 + $0xbb8] sm:$0xff] }
0x1bf9   :  { %10553 = vmatpush1.bf16.msra.mxu1 %v15840_v0  ;;  %10511 = vmatprep.subr.bf16.mxu0 %v15825_v41  ;;  %v7269_v46 = vld [vmem:[#allocation19 + $0xdf0] sm:$0xff]  ;;  %v7206_v36 = vld [vmem:[#allocation19 + $0xbf8] sm:$0xff] }
0x1bfa   :  { %10554 = vmatprep.subr.bf16.mxu1 %v16081_v10  ;;  %v16017_v0 = vcombine.high %v7261_v21, %v7269_v46  ;;  %v6989_v41 = vld [vmem:[#allocation19 + $0x530] sm:$0xff]  ;;  %v16016_v51 = vcombine.low %v7261_v21, %v7269_v46 }
0x1bfb   :  { %v6997_v10 = vld [vmem:[#allocation19 + $0x570] sm:$0xff] }
0x1bfc   :  { %10512 = vmatpush2.bf16.msra.mxu0 %v15824_v60  ;;  %v7245_v13 = vld [vmem:[#allocation19 + $0xd30] sm:$0xff]  ;;  %v15745_v60 = vcombine.high %v6989_v41, %v6997_v10  ;;  %v15744_v53 = vcombine.low %v6989_v41, %v6997_v10  ;;  %v20072_v41 = vld [vmem:[#allocation20] sm:$0xff] }
0x1bfd   :  { %10555 = vmatpush2.bf16.msra.mxu1 %v16080_v61  ;;  %10513 = vmatprep.subr.bf16.mxu0 %v15809_v40  ;;  %v7253_v12 = vld [vmem:[#allocation19 + $0xd70] sm:$0xff]  ;;  %v20500_v10 = vld [vmem:[#allocation42_spill] sm:$0xff] }
0x1bfe   :  { %10556 = vmatprep.subr.bf16.mxu1 %v16065_v7  ;;  %v16001_v61 = vcombine.high %v7245_v13, %v7253_v12  ;;  %v6973_v40 = vld [vmem:[#allocation19 + $0x4b0] sm:$0xff]  ;;  %v16000_v37 = vcombine.low %v7245_v13, %v7253_v12  ;;  %v7366_v13 = vrot.slane %v20072_v41, %v20500_v10 }
0x1bff   :  { %v6981_v7 = vld [vmem:[#allocation19 + $0x4f0] sm:$0xff] }
0x1c00   :  { %10514 = vmatpush2.bf16.msra.mxu0 %v15808_v32  ;;  %v7229_v15 = vld [vmem:[#allocation19 + $0xcb0] sm:$0xff]  ;;  %v15729_v32 = vcombine.high %v6973_v40, %v6981_v7  ;;  %v15728_v3 = vcombine.low %v6973_v40, %v6981_v7  ;;  %v20078_v40 = vpop.f32.mrf.mxu1 }
0x1c01   :  { %10557 = vmatpush2.bf16.msra.mxu1 %v16064_v2  ;;  %10515 = vmatprep.subr.bf16.mxu0 %v15793_v16  ;;  %v7237_v33 = vld [vmem:[#allocation19 + $0xcf0] sm:$0xff] }
0x1c02   :  { %10558 = vmatprep.subr.bf16.mxu1 %v16049_v39  ;;  %v15985_v2 = vcombine.high %v7229_v15, %v7237_v33  ;;  %v6957_v16 = vld [vmem:[#allocation19 + $0x430] sm:$0xff]  ;;  %v15984_v4 = vcombine.low %v7229_v15, %v7237_v33  ;;  %v6910_v15 = vld [vmem:[#allocation19 + $0x2b8] sm:$0xff] }
0x1c03   :  { %v6965_v39 = vld [vmem:[#allocation19 + $0x470] sm:$0xff]  ;;  %v6918_v33 = vld [vmem:[#allocation19 + $0x2f8] sm:$0xff] }
0x1c04   :  { %10516 = vmatpush2.bf16.msra.mxu0 %v15792_v38  ;;  %v7213_v42 = vld [vmem:[#allocation19 + $0xc30] sm:$0xff]  ;;  %v15713_v38 = vcombine.high %v6957_v16, %v6965_v39  ;;  %v15712_v21 = vcombine.low %v6957_v16, %v6965_v39 }
0x1c05   :  { %10559 = vmatpush2.bf16.msra.mxu1 %v16048_v11  ;;  %10517 = vmatprep.subr.bf16.mxu0 %v15777_v44  ;;  %v7221_v27 = vld [vmem:[#allocation19 + $0xc70] sm:$0xff]  ;;  %v6942_v44 = vld [vmem:[#allocation19 + $0x3b8] sm:$0xff] }
0x1c06   :  { %10560 = vmatprep.subr.bf16.mxu1 %v16033_v30  ;;  %v15969_v11 = vcombine.high %v7213_v42, %v7221_v27  ;;  %v6950_v30 = vld [vmem:[#allocation19 + $0x3f8] sm:$0xff]  ;;  %v15968_v46 = vcombine.low %v7213_v42, %v7221_v27 }
0x1c07   :  { %v15698_v12 = vcombine.low %v6942_v44, %v6950_v30 }
0x1c08   :  { %10518 = vmatpush2.bf16.msra.mxu0 %v15776_v63  ;;  %v15699_v63 = vcombine.high %v6942_v44, %v6950_v30  ;;  %v6894_v30 = vld [vmem:[#allocation19 + $0x238] sm:$0xff] }
0x1c09   :  { %10561 = vmatpush2.bf16.msra.mxu1 %v16032_v17  ;;  %10519 = vmatprep.subr.bf16.mxu0 %v15761_v6  ;;  %v15955_v17 = vcombine.high %v7198_v9, %v7206_v36  ;;  %v6926_v6 = vld [vmem:[#allocation19 + $0x338] sm:$0xff] }
0x1c0a   :  { %10562 = vmatprep.subr.bf16.mxu1 %v16017_v0  ;;  %v6934_v0 = vld [vmem:[#allocation19 + $0x378] sm:$0xff] }
0x1c0b   :  { %v15683_v7 = vcombine.high %v6926_v6, %v6934_v0  ;;  %v15682_v42 = vcombine.low %v6926_v6, %v6934_v0 }
0x1c0c   :  { %10520 = vmatpush2.bf16.msra.mxu0 %v15760_v49  ;;  %v7182_v49 = vld [vmem:[#allocation19 + $0xb38] sm:$0xff] }
0x1c0d   :  { %10563 = vmatpush2.bf16.msra.mxu1 %v16016_v51  ;;  %10521 = vmatprep.subr.bf16.mxu0 %v15745_v60  ;;  %v7190_v51 = vld [vmem:[#allocation19 + $0xb78] sm:$0xff]  ;;  %v20076_v60 = vpop.f32.mrf.mxu0 }
0x1c0e   :  { %10564 = vmatprep.subr.bf16.mxu1 %v16001_v61  ;;  %v15954_v61 = vcombine.low %v7198_v9, %v7206_v36  ;;  %v6902_v9 = vld [vmem:[#allocation19 + $0x278] sm:$0xff] }
0x1c0f   :  { %v15651_v0 = vcombine.high %v6894_v30, %v6902_v9 }
0x1c10   :  { %10522 = vmatpush2.bf16.msra.mxu0 %v15744_v53 }
0x1c11   :  { %10565 = vmatpush2.bf16.msra.mxu1 %v16000_v37  ;;  %10523 = vmatprep.subr.bf16.mxu0 %v15729_v32  ;;  %v15939_v37 = vcombine.high %v7182_v49, %v7190_v51  ;;  %v7166_v32 = vld [vmem:[#allocation19 + $0xab8] sm:$0xff] }
0x1c12   :  { %10566 = vmatprep.subr.bf16.mxu1 %v15985_v2  ;;  %v7174_v2 = vld [vmem:[#allocation19 + $0xaf8] sm:$0xff] }
0x1c13   :  { %v15923_v44 = vcombine.high %v7166_v32, %v7174_v2  ;;  %v15922_v6 = vcombine.low %v7166_v32, %v7174_v2  ;;  %v6862_v2 = vld [vmem:[#allocation19 + $0x138] sm:$0xff] }
0x1c14   :  { %10524 = vmatpush2.bf16.msra.mxu0 %v15728_v3  ;;  %v15938_v3 = vcombine.low %v7182_v49, %v7190_v51  ;;  %v6878_v49 = vld [vmem:[#allocation19 + $0x1b8] sm:$0xff] }
0x1c15   :  { %10567 = vmatpush2.bf16.msra.mxu1 %v15984_v4  ;;  %10525 = vmatprep.subr.bf16.mxu0 %v15713_v38  ;;  %v15667_v4 = vcombine.high %v6910_v15, %v6918_v33  ;;  %v6886_v51 = vld [vmem:[#allocation19 + $0x1f8] sm:$0xff] }
0x1c16   :  { %10568 = vmatprep.subr.bf16.mxu1 %v15969_v11 }
0x1c18   :  { %10526 = vmatpush2.bf16.msra.mxu0 %v15712_v21  ;;  %v7150_v21 = vld [vmem:[#allocation19 + $0xa38] sm:$0xff] }
0x1c19   :  { %10569 = vmatpush2.bf16.msra.mxu1 %v15968_v46  ;;  %10581 = vmatprep.subr.bf16.mxu0 %v15699_v63  ;;  %v7158_v46 = vld [vmem:[#allocation19 + $0xa78] sm:$0xff] }
0x1c1a   :  { %10624 = vmatprep.subr.bf16.mxu1 %v15955_v17 }
0x1c1b   :  { %v10271_v53 = vpop.f32.mrf.mxu0  ;;  %10528 = vmatmul.mubr.bf16.vlgmr.msra.gmra.mxu0 %v20000_v59 }
0x1c1c   :  { %v10272_v16 = vadd.f32 %v10271_v53, %v7366_v13  ;;  %v10314_v39 = vpop.f32.mrf.mxu1  ;;  %10571 = vmatmul.mubr.bf16.vlgmr.msra.gmra.mxu1 %v20004_v29  ;;  %10582 = vmatpush1.bf16.msra.mxu0 %v15698_v12 }
0x1c1d   :  { %10613 = vmatprep.mubr.bf16.mxu0 %v19992_v47  ;;  %10625 = vmatpush1.bf16.msra.mxu1 %v15954_v61  ;;  %v20083_v27 = vpop.f32.mrf.mxu0  ;;  %v15666_v47 = vcombine.low %v6910_v15, %v6918_v33  ;;  %v7134_v61 = vld [vmem:[#allocation19 + $0x9b8] sm:$0xff]  ;;  %v15635_v15 = vcombine.high %v6878_v49, %v6886_v51 }
0x1c1e   :  { %v10315_v38 = vadd.f32 %v10314_v39, %v10272_v16  ;;  %10656 = vmatprep.mubr.bf16.mxu1 %v19996_v19  ;;  %v20086_v11 = vpop.f32.mrf.mxu1  ;;  %10583 = vmatprep.subr.bf16.mxu0 %v15683_v7  ;;  %v15907_v19 = vcombine.high %v7150_v21, %v7158_v46  ;;  %v7142_v7 = vld [vmem:[#allocation19 + $0x9f8] sm:$0xff] }
0x1c1f   :  { %v10275_v36 = vpop.f32.mrf.mxu0  ;;  %10626 = vmatprep.subr.bf16.mxu1 %v15939_v37  ;;  %v15650_v37 = vcombine.low %v6894_v30, %v6902_v9  ;;  %v15891_v32 = vcombine.high %v7134_v61, %v7142_v7  ;;  %v6870_v39 = vld [vmem:[#allocation19 + $0x178] sm:$0xff] }
0x1c20   :  { %v10276_v63 = vadd.f32 %v10275_v36, %v7366_v13  ;;  %10584 = vmatpush1.bf16.msra.mxu0 %v15682_v42  ;;  %v10318_v17 = vpop.f32.mrf.mxu1  ;;  %v10673_v53 = vmax.f32 %v10315_v38, 0.0  ;;  %v15906_v13 = vcombine.low %v7150_v21, %v7158_v46  ;;  %v7118_v42 = vld [vmem:[#allocation19 + $0x938] sm:$0xff]  ;;  %v15890_v38 = vcombine.low %v7134_v61, %v7142_v7 }
0x1c21   :  { %10627 = vmatpush1.bf16.msra.mxu1 %v15938_v3  ;;  %10585 = vmatprep.subr.bf16.mxu0 %v15667_v4  ;;  %v7126_v3 = vld [vmem:[#allocation19 + $0x978] sm:$0xff]  ;;  %v15634_v4 = vcombine.low %v6878_v49, %v6886_v51 }
0x1c22   :  { %v10319_v12 = vadd.f32 %v10318_v17, %v10276_v63  ;;  %10628 = vmatprep.subr.bf16.mxu1 %v15923_v44  ;;  %v15619_v44 = vcombine.high %v6862_v2, %v6870_v39  ;;  %v15875_v30 = vcombine.high %v7118_v42, %v7126_v3  ;;  %v6846_v9 = vld [vmem:[#allocation19 + $0xb8] sm:$0xff]  ;;  %v15618_v63 = vcombine.low %v6862_v2, %v6870_v39 }
0x1c23   :  { %v6854_v36 = vld [vmem:[#allocation19 + $0xf8] sm:$0xff] }
0x1c24   :  { %v10689_v16 = vmax.f32 %v10319_v12, 0.0  ;;  %10586 = vmatpush1.bf16.msra.mxu0 %v15666_v47  ;;  %v7102_v21 = vld [vmem:[#allocation19 + $0x8b8] sm:$0xff]  ;;  %v15874_v47 = vcombine.low %v7118_v42, %v7126_v3  ;;  %v15603_v17 = vcombine.high %v6846_v9, %v6854_v36  ;;  %v15602_v51 = vcombine.low %v6846_v9, %v6854_v36 }
0x1c25   :  { %10629 = vmatpush1.bf16.msra.mxu1 %v15922_v6  ;;  %10587 = vmatprep.subr.bf16.mxu0 %v15651_v0  ;;  %v7110_v46 = vld [vmem:[#allocation19 + $0x8f8] sm:$0xff] }
0x1c26   :  { %v20088_v33 = vpack.c.bf16 %v10689_v16, %v10673_v53  ;;  %10630 = vmatprep.subr.bf16.mxu1 %v15907_v19  ;;  %v15859_v6 = vcombine.high %v7102_v21, %v7110_v46  ;;  %v6830_v0 = vld [vmem:[#allocation19 + $0x38] sm:$0xff]  ;;  %v15858_v61 = vcombine.low %v7102_v21, %v7110_v46 }
0x1c27   :  { %v6838_v12 = vld [vmem:[#allocation19 + $0x78] sm:$0xff] }
0x1c28   :  { %10588 = vmatpush1.bf16.msra.mxu0 %v15650_v37  ;;  %v7086_v19 = vld [vmem:[#allocation19 + $0x838] sm:$0xff]  ;;  %v15587_v7 = vcombine.high %v6830_v0, %v6838_v12 }
0x1c29   :  { %10631 = vmatpush1.bf16.msra.mxu1 %v15906_v13  ;;  %10589 = vmatprep.subr.bf16.mxu0 %v15635_v15  ;;  %v7094_v49 = vld [vmem:[#allocation19 + $0x878] sm:$0xff] }
0x1c2a   :  { %10632 = vmatprep.subr.bf16.mxu1 %v15891_v32  ;;  %v15843_v53 = vcombine.high %v7086_v19, %v7094_v49  ;;  %v7070_v16 = vld [vmem:[#allocation19 + $0x7b8] sm:$0xff]  ;;  %v15586_v32 = vcombine.low %v6830_v0, %v6838_v12  ;;  %v15842_v2 = vcombine.low %v7086_v19, %v7094_v49 }
0x1c2b   :  { %v7078_v37 = vld [vmem:[#allocation19 + $0x7f8] sm:$0xff] }
0x1c2c   :  { %10590 = vmatpush1.bf16.msra.mxu0 %v15634_v4  ;;  %v7326_v13 = vld [vmem:[#allocation19 + $0xfb8] sm:$0xff]  ;;  %v15827_v39 = vcombine.high %v7070_v16, %v7078_v37 }
0x1c2d   :  { %10633 = vmatpush1.bf16.msra.mxu1 %v15890_v38  ;;  %10591 = vmatprep.subr.bf16.mxu0 %v15619_v44  ;;  %v7334_v15 = vld [vmem:[#allocation19 + $0xff8] sm:$0xff] }
0x1c2e   :  { %10634 = vmatprep.subr.bf16.mxu1 %v15875_v30  ;;  %v16083_v42 = vcombine.high %v7326_v13, %v7334_v15  ;;  %v7054_v3 = vld [vmem:[#allocation19 + $0x738] sm:$0xff]  ;;  %v15826_v30 = vcombine.low %v7070_v16, %v7078_v37  ;;  %v16082_v9 = vcombine.low %v7326_v13, %v7334_v15 }
0x1c2f   :  { %v7062_v4 = vld [vmem:[#allocation19 + $0x778] sm:$0xff] }
0x1c30   :  { %10592 = vmatpush1.bf16.msra.mxu0 %v15618_v63  ;;  %v7310_v38 = vld [vmem:[#allocation19 + $0xf38] sm:$0xff]  ;;  %v15811_v36 = vcombine.high %v7054_v3, %v7062_v4 }
0x1c31   :  { %10635 = vmatpush1.bf16.msra.mxu1 %v15874_v47  ;;  %10593 = vmatprep.subr.bf16.mxu0 %v15603_v17  ;;  %v7318_v44 = vld [vmem:[#allocation19 + $0xf78] sm:$0xff] }
0x1c32   :  { %10636 = vmatprep.subr.bf16.mxu1 %v15859_v6  ;;  %v16067_v21 = vcombine.high %v7310_v38, %v7318_v44  ;;  %v7038_v46 = vld [vmem:[#allocation19 + $0x6b8] sm:$0xff]  ;;  %v15810_v6 = vcombine.low %v7054_v3, %v7062_v4  ;;  %v16066_v0 = vcombine.low %v7310_v38, %v7318_v44 }
0x1c33   :  { %v7046_v63 = vld [vmem:[#allocation19 + $0x6f8] sm:$0xff] }
0x1c34   :  { %10594 = vmatpush1.bf16.msra.mxu0 %v15602_v51  ;;  %v7294_v47 = vld [vmem:[#allocation19 + $0xeb8] sm:$0xff]  ;;  %v15795_v12 = vcombine.high %v7038_v46, %v7046_v63 }
0x1c35   :  { %10637 = vmatpush1.bf16.msra.mxu1 %v15858_v61  ;;  %10595 = vmatprep.subr.bf16.mxu0 %v15587_v7  ;;  %v7302_v17 = vld [vmem:[#allocation19 + $0xef8] sm:$0xff] }
0x1c36   :  { %10638 = vmatprep.subr.bf16.mxu1 %v15843_v53  ;;  %v16051_v19 = vcombine.high %v7294_v47, %v7302_v17  ;;  %v7022_v49 = vld [vmem:[#allocation19 + $0x638] sm:$0xff]  ;;  %v15794_v53 = vcombine.low %v7038_v46, %v7046_v63  ;;  %v16050_v16 = vcombine.low %v7294_v47, %v7302_v17 }
0x1c37   :  { %v7030_v51 = vld [vmem:[#allocation19 + $0x678] sm:$0xff] }
0x1c38   :  { %10596 = vmatpush1.bf16.msra.mxu0 %v15586_v32  ;;  %v7278_v61 = vld [vmem:[#allocation19 + $0xe38] sm:$0xff]  ;;  %v15779_v37 = vcombine.high %v7022_v49, %v7030_v51 }
0x1c39   :  { %10639 = vmatpush1.bf16.msra.mxu1 %v15842_v2  ;;  %10597 = vmatprep.subr.bf16.mxu0 %v15827_v39  ;;  %v7286_v7 = vld [vmem:[#allocation19 + $0xe78] sm:$0xff] }
0x1c3a   :  { %10640 = vmatprep.subr.bf16.mxu1 %v16083_v42  ;;  %v16035_v13 = vcombine.high %v7278_v61, %v7286_v7  ;;  %v7006_v15 = vld [vmem:[#allocation19 + $0x5b8] sm:$0xff]  ;;  %v15778_v42 = vcombine.low %v7022_v49, %v7030_v51  ;;  %v16034_v3 = vcombine.low %v7278_v61, %v7286_v7  ;;  %v7346_v49 = vrot.slane %v20072_v41, %v19166_v23 }
0x1c3b   :  { %v7014_v32 = vld [vmem:[#allocation19 + $0x5f8] sm:$0xff]  ;;  %v7354_v7 = vrot.slane %v20072_v41, %v19172_v26 }
0x1c3c   :  { %10598 = vmatpush2.bf16.msra.mxu0 %v15826_v30  ;;  %v7262_v2 = vld [vmem:[#allocation19 + $0xdb8] sm:$0xff]  ;;  %v15763_v4 = vcombine.high %v7006_v15, %v7014_v32 }
0x1c3d   :  { %10641 = vmatpush2.bf16.msra.mxu1 %v16082_v9  ;;  %10599 = vmatprep.subr.bf16.mxu0 %v15811_v36  ;;  %v7270_v39 = vld [vmem:[#allocation19 + $0xdf8] sm:$0xff] }
0x1c3e   :  { %10642 = vmatprep.subr.bf16.mxu1 %v16067_v21  ;;  %v16019_v38 = vcombine.high %v7262_v2, %v7270_v39  ;;  %v6990_v44 = vld [vmem:[#allocation19 + $0x538] sm:$0xff]  ;;  %v15762_v21 = vcombine.low %v7006_v15, %v7014_v32  ;;  %v16018_v46 = vcombine.low %v7262_v2, %v7270_v39  ;;  %v10106_v2 = vadd.f32 %v20058_v35, %v7354_v7 }
0x1c3f   :  { %v6998_v30 = vld [vmem:[#allocation19 + $0x578] sm:$0xff] }
0x1c40   :  { %10600 = vmatpush2.bf16.msra.mxu0 %v15810_v6  ;;  %v7246_v9 = vld [vmem:[#allocation19 + $0xd38] sm:$0xff]  ;;  %v15747_v63 = vcombine.high %v6990_v44, %v6998_v30 }
0x1c41   :  { %10643 = vmatpush2.bf16.msra.mxu1 %v16066_v0  ;;  %10601 = vmatprep.subr.bf16.mxu0 %v15795_v12  ;;  %v7254_v36 = vld [vmem:[#allocation19 + $0xd78] sm:$0xff] }
0x1c42   :  { %10644 = vmatprep.subr.bf16.mxu1 %v16051_v19  ;;  %v16003_v47 = vcombine.high %v7246_v9, %v7254_v36  ;;  %v6974_v17 = vld [vmem:[#allocation19 + $0x4b8] sm:$0xff]  ;;  %v15746_v19 = vcombine.low %v6990_v44, %v6998_v30  ;;  %v16002_v51 = vcombine.low %v7246_v9, %v7254_v36 }
0x1c43   :  { %v6982_v6 = vld [vmem:[#allocation19 + $0x4f8] sm:$0xff] }
0x1c44   :  { %10602 = vmatpush2.bf16.msra.mxu0 %v15794_v53  ;;  %v7230_v0 = vld [vmem:[#allocation19 + $0xcb8] sm:$0xff]  ;;  %v15731_v61 = vcombine.high %v6974_v17, %v6982_v6  ;;  %v15730_v39 = vcombine.low %v6974_v17, %v6982_v6  ;;  %v20106_v6 = vpop.f32.mrf.mxu0 }
0x1c45   :  { %10645 = vmatpush2.bf16.msra.mxu1 %v16050_v16  ;;  %10603 = vmatprep.subr.bf16.mxu0 %v15779_v37  ;;  %v7238_v12 = vld [vmem:[#allocation19 + $0xcf8] sm:$0xff] }
0x1c46   :  { %10646 = vmatprep.subr.bf16.mxu1 %v16035_v13  ;;  %v15987_v53 = vcombine.high %v7230_v0, %v7238_v12  ;;  %v6958_v16 = vld [vmem:[#allocation19 + $0x438] sm:$0xff]  ;;  %v10020_v13 = vadd.f32 %v20042_v18, %v7346_v49  ;;  %v10149_v18 = vadd.f32 %v20060_v58, %v10106_v2  ;;  %v17749_v58 = vld [vmem:[#allocation22 + $0xe0] ss:$16 sps:$4 sm:$0xff]   ;;  %v17766_v2 = vld [vmem:[#allocation22 + $0x2a4] ss:$16 sps:$4 sm:$0xff]  }
0x1c47   :  { %v6966_v37 = vld [vmem:[#allocation19 + $0x478] sm:$0xff] }
0x1c48   :  { %10604 = vmatpush2.bf16.msra.mxu0 %v15778_v42  ;;  %v7214_v15 = vld [vmem:[#allocation19 + $0xc38] sm:$0xff]  ;;  %v10016_v42 = vadd.f32 %v20033_v34, %v7346_v49  ;;  %v10063_v30 = vadd.f32 %v20044_v8, %v10020_v13  ;;  %v15714_v9 = vcombine.low %v6958_v16, %v6966_v37  ;;  %v20101_v34 = vld [vmem:[#allocation20 + $0x8] sm:$0xff]  ;;  %v17758_v13 = vld [vmem:[#allocation22 + $0x2c0] ss:$16 sps:$4 sm:$0xff]  }
0x1c49   :  { %10647 = vmatpush2.bf16.msra.mxu1 %v16034_v3  ;;  %10605 = vmatprep.subr.bf16.mxu0 %v15763_v4  ;;  %v7222_v32 = vld [vmem:[#allocation19 + $0xc78] sm:$0xff]  ;;  %v15986_v3 = vcombine.low %v7230_v0, %v7238_v12  ;;  %v15715_v4 = vcombine.high %v6958_v16, %v6966_v37  ;;  %v7374_v8 = vrot.slane %v20101_v34, %v19169_v24  ;;  %v20108_v12 = vpop.f32.mrf.mxu1  ;;  %v17755_v16 = vld [vmem:[#allocation22 + $0xc0] ss:$16 sps:$4 sm:$0xff]  }
0x1c4a   :  { %10648 = vmatprep.subr.bf16.mxu1 %v16019_v38  ;;  %v10102_v38 = vadd.f32 %v20049_v54, %v7354_v7  ;;  %v15971_v44 = vcombine.high %v7214_v15, %v7222_v32  ;;  %v10059_v35 = vadd.f32 %v20035_v43, %v10016_v42  ;;  %v15970_v36 = vcombine.low %v7214_v15, %v7222_v32  ;;  %v17754_v54 = vld [vmem:[#allocation22 + $0x2e4] ss:$16 sps:$4 sm:$0xff]   ;;  %v17752_v43 = vld [vmem:[#allocation22 + $0x2e0] ss:$16 sps:$4 sm:$0xff]  }
0x1c4b   :  { %v17763_v15 = vld [vmem:[#allocation22 + $0xa4] ss:$16 sps:$4 sm:$0xff]  }
0x1c4c   :  { %10606 = vmatpush2.bf16.msra.mxu0 %v15762_v21  ;;  %v17751_v21 = vld [vmem:[#allocation22 + $0xe4] ss:$16 sps:$4 sm:$0xff]   ;;  %v10668_v17 = vmax.f32 %v10059_v35, 0.0  ;;  %v17767_v35 = vld [vmem:[#allocation22 + $0x80] ss:$16 sps:$4 sm:$0xff]  }
0x1c4d   :  { %10649 = vmatpush2.bf16.msra.mxu1 %v16018_v46  ;;  %10607 = vmatprep.subr.bf16.mxu0 %v15747_v63  ;;  %v10145_v46 = vadd.f32 %v20051_v25, %v10102_v38  ;;  %v10684_v63 = vmax.f32 %v10063_v30, 0.0  ;;  %v17757_v25 = vld [vmem:[#allocation22 + $0xc4] ss:$16 sps:$4 sm:$0xff]  }
0x1c4e   :  { %10650 = vmatprep.subr.bf16.mxu1 %v16003_v47  ;;  %v10686_v47 = vmax.f32 %v10149_v18, 0.0  ;;  %v17769_v38 = vld [vmem:[#allocation22 + $0x84] ss:$16 sps:$4 sm:$0xff]  }
0x1c4f   :  { %v10670_v0 = vmax.f32 %v10145_v46, 0.0  ;;  %v17772_v30 = vld [vmem:[#allocation22 + $0x284] ss:$16 sps:$4 sm:$0xff]  }
0x1c50   :  { %10608 = vmatpush2.bf16.msra.mxu0 %v15746_v19  ;;  %v20110_v19 = vpack.c.bf16 %v10684_v63, %v10668_v17  ;;  %v17773_v63 = vld [vmem:[#allocation22 + $0x60] ss:$16 sps:$4 sm:$0xff]  }
0x1c51   :  { %10651 = vmatpush2.bf16.msra.mxu1 %v16002_v51  ;;  %10609 = vmatprep.subr.bf16.mxu0 %v15731_v61  ;;  %v17760_v51 = vld [vmem:[#allocation22 + $0x2c4] ss:$16 sps:$4 sm:$0xff]   ;;  %v20113_v61 = vpack.c.bf16 %v10686_v47, %v10670_v0  ;;  %v17776_v47 = vld [vmem:[#allocation22 + $0x260] ss:$16 sps:$4 sm:$0xff]  }
0x1c52   :  { %10652 = vmatprep.subr.bf16.mxu1 %v15987_v53  ;;  %v17779_v17 = vld [vmem:[#allocation22 + $0x40] ss:$16 sps:$4 sm:$0xff]   ;;  %v17787_v0 = vld [vmem:[#allocation22 + $0x24] ss:$16 sps:$4 sm:$0xff]  }
0x1c54   :  { %10610 = vmatpush2.bf16.msra.mxu0 %v15730_v39 }
0x1c55   :  { %10653 = vmatpush2.bf16.msra.mxu1 %v15986_v3  ;;  %10611 = vmatprep.subr.bf16.mxu0 %v15715_v4  ;;  %v17764_v4 = vld [vmem:[#allocation22 + $0x2a0] ss:$16 sps:$4 sm:$0xff]  }
0x1c56   :  { %10654 = vmatprep.subr.bf16.mxu1 %v15971_v44 }
0x1c58   :  { %10612 = vmatpush2.bf16.msra.mxu0 %v15714_v9 }
0x1c59   :  { %10655 = vmatpush2.bf16.msra.mxu1 %v15970_v36  ;;  %13809 = vmatprep.subr.bf16.mxu0 %v17751_v21  ;;  %v17770_v36 = vld [vmem:[#allocation22 + $0x280] ss:$16 sps:$4 sm:$0xff]   ;;  %v17775_v21 = vld [vmem:[#allocation22 + $0x64] ss:$16 sps:$4 sm:$0xff]  }
0x1c5a   :  { %13852 = vmatprep.subr.bf16.mxu1 %v17754_v54  ;;  %v17778_v54 = vld [vmem:[#allocation22 + $0x264] ss:$16 sps:$4 sm:$0xff]  }
0x1c5b   :  { %v10357_v49 = vpop.f32.mrf.mxu0  ;;  %10614 = vmatmul.mubr.bf16.vlgmr.msra.gmra.mxu0 %v20000_v59 }
0x1c5c   :  { %v10358_v7 = vadd.f32 %v10357_v49, %v7374_v8  ;;  %v10400_v53 = vpop.f32.mrf.mxu1  ;;  %10657 = vmatmul.mubr.bf16.vlgmr.msra.gmra.mxu1 %v20004_v29  ;;  %13810 = vmatpush1.bf16.msra.mxu0 %v17749_v58  ;;  %v17761_v29 = vld [vmem:[#allocation22 + $0xa0] ss:$16 sps:$4 sm:$0xff]   ;;  %v17784_v58 = vld [vmem:[#allocation22 + $0x244] ss:$16 sps:$4 sm:$0xff]  }
0x1c5d   :  { %13841 = vmatprep.mubr.bf16.mxu0 %v20110_v19  ;;  %13853 = vmatpush1.bf16.msra.mxu1 %v17752_v43  ;;  %v20117_v37 = vpop.f32.mrf.mxu0  ;;  %v17782_v43 = vld [vmem:[#allocation22 + $0x240] ss:$16 sps:$4 sm:$0xff]  }
0x1c5e   :  { %v10401_v32 = vadd.f32 %v10400_v53, %v10358_v7  ;;  %13884 = vmatprep.mubr.bf16.mxu1 %v20113_v61  ;;  %v20120_v59 = vpop.f32.mrf.mxu1  ;;  %13811 = vmatprep.subr.bf16.mxu0 %v17757_v25  ;;  %v17790_v25 = vld [vmem:[#allocation22 + $0x224] ss:$16 sps:$4 sm:$0xff]   ;;  %v17785_v49 = vld [vmem:[#allocation22 + $0x20] ss:$16 sps:$4 sm:$0xff]  }
0x1c5f   :  { %v10361_v39 = vpop.f32.mrf.mxu0  ;;  %13854 = vmatprep.subr.bf16.mxu1 %v17760_v51  ;;  %v17788_v51 = vld [vmem:[#allocation22 + $0x220] ss:$16 sps:$4 sm:$0xff]   ;;  %v17793_v7 = vld [vmem:[#allocation22 + $0x4] ss:$16 sps:$4 sm:$0xff]  }
0x1c60   :  { %v10362_v42 = vadd.f32 %v10361_v39, %v7374_v8  ;;  %13812 = vmatpush1.bf16.msra.mxu0 %v17755_v16  ;;  %v10404_v3 = vpop.f32.mrf.mxu1  ;;  %v10675_v18 = vmax.f32 %v10401_v32, 0.0  ;;  %v17781_v8 = vld [vmem:[#allocation22 + $0x44] ss:$16 sps:$4 sm:$0xff]   ;;  %v17791_v16 = vld [vmem:[#allocation22] ss:$16 sps:$4 sm:$0xff]  }
0x1c61   :  { %13855 = vmatpush1.bf16.msra.mxu1 %v17758_v13  ;;  %13813 = vmatprep.subr.bf16.mxu0 %v17763_v15  ;;  %v17796_v53 = vld [vmem:[#allocation22 + $0x204] ss:$16 sps:$4 sm:$0xff]   ;;  %v17794_v13 = vld [vmem:[#allocation22 + $0x200] ss:$16 sps:$4 sm:$0xff]  }
0x1c62   :  { %v10405_v44 = vadd.f32 %v10404_v3, %v10362_v42  ;;  %13856 = vmatprep.subr.bf16.mxu1 %v17766_v2  ;;  %v17799_v15 = vld [vmem:[#allocation22 + $0x1e4] ss:$16 sps:$4 sm:$0xff]   ;;  %v17797_v2 = vld [vmem:[#allocation22 + $0x1e0] ss:$16 sps:$4 sm:$0xff]  }
0x1c63   :  { %v17802_v32 = vld [vmem:[#allocation22 + $0x3e4] ss:$16 sps:$4 sm:$0xff]   ;;  %v17800_v39 = vld [vmem:[#allocation22 + $0x3e0] ss:$16 sps:$4 sm:$0xff]  }
0x1c64   :  { %v10691_v9 = vmax.f32 %v10405_v44, 0.0  ;;  %13814 = vmatpush1.bf16.msra.mxu0 %v17761_v29  ;;  %v17805_v42 = vld [vmem:[#allocation22 + $0x1c4] ss:$16 sps:$4 sm:$0xff]   ;;  %v17803_v3 = vld [vmem:[#allocation22 + $0x1c0] ss:$16 sps:$4 sm:$0xff]  }
0x1c65   :  { %13857 = vmatpush1.bf16.msra.mxu1 %v17764_v4  ;;  %13815 = vmatprep.subr.bf16.mxu0 %v17769_v38  ;;  %v17808_v29 = vld [vmem:[#allocation22 + $0x3c4] ss:$16 sps:$4 sm:$0xff]   ;;  %v17806_v4 = vld [vmem:[#allocation22 + $0x3c0] ss:$16 sps:$4 sm:$0xff]  }
0x1c66   :  { %v20122_v46 = vpack.c.bf16 %v10691_v9, %v10675_v18  ;;  %13858 = vmatprep.subr.bf16.mxu1 %v17772_v30  ;;  %v17811_v38 = vld [vmem:[#allocation22 + $0x1a4] ss:$16 sps:$4 sm:$0xff]   ;;  %v17809_v30 = vld [vmem:[#allocation22 + $0x1a0] ss:$16 sps:$4 sm:$0xff]  }
0x1c67   :  { %v17814_v44 = vld [vmem:[#allocation22 + $0x3a4] ss:$16 sps:$4 sm:$0xff]   ;;  %v17812_v18 = vld [vmem:[#allocation22 + $0x3a0] ss:$16 sps:$4 sm:$0xff]  }
0x1c68   :  { %13816 = vmatpush1.bf16.msra.mxu0 %v17767_v35  ;;  %v17817_v9 = vld [vmem:[#allocation22 + $0x184] ss:$16 sps:$4 sm:$0xff]  }
0x1c69   :  { %13859 = vmatpush1.bf16.msra.mxu1 %v17770_v36  ;;  %13817 = vmatprep.subr.bf16.mxu0 %v17775_v21  ;;  %v17820_v35 = vld [vmem:[#allocation22 + $0x384] ss:$16 sps:$4 sm:$0xff]   ;;  %v17815_v36 = vld [vmem:[#allocation22 + $0x180] ss:$16 sps:$4 sm:$0xff]  }
0x1c6a   :  { %13860 = vmatprep.subr.bf16.mxu1 %v17778_v54  ;;  %v17818_v21 = vld [vmem:[#allocation22 + $0x380] ss:$16 sps:$4 sm:$0xff]   ;;  %v17823_v54 = vld [vmem:[#allocation22 + $0x164] ss:$16 sps:$4 sm:$0xff]  }
0x1c6c   :  { %13818 = vmatpush1.bf16.msra.mxu0 %v17773_v63  ;;  %v17826_v63 = vld [vmem:[#allocation22 + $0x364] ss:$16 sps:$4 sm:$0xff]  }
0x1c6d   :  { %13861 = vmatpush1.bf16.msra.mxu1 %v17776_v47  ;;  %13819 = vmatprep.subr.bf16.mxu0 %v17781_v8  ;;  %v17821_v47 = vld [vmem:[#allocation22 + $0x160] ss:$16 sps:$4 sm:$0xff]  }
0x1c6e   :  { %13862 = vmatprep.subr.bf16.mxu1 %v17784_v58  ;;  %v17824_v8 = vld [vmem:[#allocation22 + $0x360] ss:$16 sps:$4 sm:$0xff]   ;;  %v17829_v58 = vld [vmem:[#allocation22 + $0x144] ss:$16 sps:$4 sm:$0xff]  }
0x1c70   :  { %13820 = vmatpush1.bf16.msra.mxu0 %v17779_v17  ;;  %v17832_v17 = vld [vmem:[#allocation22 + $0x344] ss:$16 sps:$4 sm:$0xff]  }
0x1c71   :  { %13863 = vmatpush1.bf16.msra.mxu1 %v17782_v43  ;;  %13821 = vmatprep.subr.bf16.mxu0 %v17787_v0  ;;  %v17827_v43 = vld [vmem:[#allocation22 + $0x140] ss:$16 sps:$4 sm:$0xff]  }
0x1c72   :  { %13864 = vmatprep.subr.bf16.mxu1 %v17790_v25  ;;  %v20501_v0 = vld [vmem:[#allocation41_spill] sm:$0xff] }
0x1c73   :  { %v7362_v25 = vrot.slane %v20072_v41, %v20501_v0 }
0x1c74   :  { %13822 = vmatpush1.bf16.msra.mxu0 %v17785_v49  ;;  %v17830_v49 = vld [vmem:[#allocation22 + $0x340] ss:$16 sps:$4 sm:$0xff]  }
0x1c75   :  { %13865 = vmatpush1.bf16.msra.mxu1 %v17788_v51  ;;  %13823 = vmatprep.subr.bf16.mxu0 %v17793_v7  ;;  %v17835_v51 = vld [vmem:[#allocation22 + $0x124] ss:$16 sps:$4 sm:$0xff]   ;;  %v20502_v7 = vld [vmem:[#allocation43_spill] sm:$0xff] }
0x1c76   :  { %13866 = vmatprep.subr.bf16.mxu1 %v17796_v53  ;;  %v7370_v53 = vrot.slane %v20072_v41, %v20502_v7 }
0x1c78   :  { %13824 = vmatpush1.bf16.msra.mxu0 %v17791_v16  ;;  %v17838_v16 = vld [vmem:[#allocation22 + $0x324] ss:$16 sps:$4 sm:$0xff]  }
0x1c79   :  { %13867 = vmatpush1.bf16.msra.mxu1 %v17794_v13  ;;  %13825 = vmatprep.subr.bf16.mxu0 %v17799_v15  ;;  %v10192_v13 = vadd.f32 %v20076_v60, %v7362_v25  ;;  %v10278_v15 = vadd.f32 %v20106_v6, %v7370_v53  ;;  %v17839_v60 = vld [vmem:[#allocation22 + $0x100] ss:$16 sps:$4 sm:$0xff]  }
0x1c7a   :  { %13868 = vmatprep.subr.bf16.mxu1 %v17802_v32  ;;  %v17833_v32 = vld [vmem:[#allocation22 + $0x120] ss:$16 sps:$4 sm:$0xff]  }
0x1c7b   :  { %v10235_v41 = vadd.f32 %v20078_v40, %v10192_v13  ;;  %v7382_v40 = vrot.slane %v20101_v34, %v19175_v28  ;;  %v17862_v13 = vld [vmem:[#allocation22 + $0x6a4] ss:$16 sps:$4 sm:$0xff]  }
0x1c7c   :  { %13826 = vmatpush2.bf16.msra.mxu0 %v17797_v2  ;;  %v10188_v2 = vadd.f32 %v20065_v57, %v7362_v25  ;;  %v17847_v57 = vld [vmem:[#allocation22 + $0x4e4] ss:$16 sps:$4 sm:$0xff]  }
0x1c7d   :  { %13869 = vmatpush2.bf16.msra.mxu1 %v17800_v39  ;;  %13827 = vmatprep.subr.bf16.mxu0 %v17805_v42  ;;  %v17836_v39 = vld [vmem:[#allocation22 + $0x320] ss:$16 sps:$4 sm:$0xff]   ;;  %v17841_v42 = vld [vmem:[#allocation22 + $0x104] ss:$16 sps:$4 sm:$0xff]  }
0x1c7e   :  { %13870 = vmatprep.subr.bf16.mxu1 %v17808_v29  ;;  %v10274_v29 = vadd.f32 %v20083_v27, %v7370_v53  ;;  %v10231_v6 = vadd.f32 %v20068_v56, %v10188_v2  ;;  %v17848_v56 = vld [vmem:[#allocation22 + $0x6e0] ss:$16 sps:$4 sm:$0xff]  }
0x1c7f   :  { %v17857_v2 = vld [vmem:[#allocation22 + $0x4a0] ss:$16 sps:$4 sm:$0xff]  }
0x1c80   :  { %13828 = vmatpush2.bf16.msra.mxu0 %v17803_v3  ;;  %v17844_v3 = vld [vmem:[#allocation22 + $0x304] ss:$16 sps:$4 sm:$0xff]  }
0x1c81   :  { %13871 = vmatpush2.bf16.msra.mxu1 %v17806_v4  ;;  %13829 = vmatprep.subr.bf16.mxu0 %v17811_v38  ;;  %v10321_v4 = vadd.f32 %v20108_v12, %v10278_v15  ;;  %v17842_v38 = vld [vmem:[#allocation22 + $0x300] ss:$16 sps:$4 sm:$0xff]   ;;  %v10672_v12 = vmax.f32 %v10231_v6, 0.0 }
0x1c82   :  { %13872 = vmatprep.subr.bf16.mxu1 %v17814_v44  ;;  %v10317_v44 = vadd.f32 %v20086_v11, %v10274_v29  ;;  %v17853_v11 = vld [vmem:[#allocation22 + $0x4c4] ss:$16 sps:$4 sm:$0xff]   ;;  %v17863_v6 = vld [vmem:[#allocation22 + $0x480] ss:$16 sps:$4 sm:$0xff]  }
0x1c83   :  { %v10690_v27 = vmax.f32 %v10321_v4, 0.0  ;;  %v17865_v29 = vld [vmem:[#allocation22 + $0x484] ss:$16 sps:$4 sm:$0xff]  }
0x1c84   :  { %13830 = vmatpush2.bf16.msra.mxu0 %v17809_v30  ;;  %v17850_v30 = vld [vmem:[#allocation22 + $0x6e4] ss:$16 sps:$4 sm:$0xff]  }
0x1c85   :  { %13873 = vmatpush2.bf16.msra.mxu1 %v17812_v18  ;;  %13831 = vmatprep.subr.bf16.mxu0 %v17817_v9  ;;  %v10688_v18 = vmax.f32 %v10235_v41, 0.0  ;;  %v17845_v9 = vld [vmem:[#allocation22 + $0x4e0] ss:$16 sps:$4 sm:$0xff]   ;;  %v17868_v41 = vld [vmem:[#allocation22 + $0x684] ss:$16 sps:$4 sm:$0xff]  }
0x1c86   :  { %13874 = vmatprep.subr.bf16.mxu1 %v17820_v35  ;;  %v20138_v35 = vpop.f32.mrf.mxu0 }
0x1c88   :  { %13832 = vmatpush2.bf16.msra.mxu0 %v17815_v36  ;;  %v10674_v36 = vmax.f32 %v10317_v44, 0.0 }
0x1c89   :  { %13875 = vmatpush2.bf16.msra.mxu1 %v17818_v21  ;;  %13833 = vmatprep.subr.bf16.mxu0 %v17823_v54  ;;  %v20140_v21 = vpop.f32.mrf.mxu1  ;;  %v20142_v54 = vpack.c.bf16 %v10688_v18, %v10672_v12  ;;  %v17869_v18 = vld [vmem:[#allocation22 + $0x460] ss:$16 sps:$4 sm:$0xff]  }
0x1c8a   :  { %13876 = vmatprep.subr.bf16.mxu1 %v17826_v63  ;;  %v17875_v12 = vld [vmem:[#allocation22 + $0x440] ss:$16 sps:$4 sm:$0xff]  }
0x1c8c   :  { %13834 = vmatpush2.bf16.msra.mxu0 %v17821_v47  ;;  %v17856_v47 = vld [vmem:[#allocation22 + $0x6c4] ss:$16 sps:$4 sm:$0xff]  }
0x1c8d   :  { %13877 = vmatpush2.bf16.msra.mxu1 %v17824_v8  ;;  %13835 = vmatprep.subr.bf16.mxu0 %v17829_v58  ;;  %v20145_v8 = vpack.c.bf16 %v10690_v27, %v10674_v36  ;;  %v17872_v27 = vld [vmem:[#allocation22 + $0x660] ss:$16 sps:$4 sm:$0xff]   ;;  %v17883_v36 = vld [vmem:[#allocation22 + $0x424] ss:$16 sps:$4 sm:$0xff]  }
0x1c8e   :  { %13878 = vmatprep.subr.bf16.mxu1 %v17832_v17 }
0x1c90   :  { %13836 = vmatpush2.bf16.msra.mxu0 %v17827_v43  ;;  %v17851_v43 = vld [vmem:[#allocation22 + $0x4c0] ss:$16 sps:$4 sm:$0xff]  }
0x1c91   :  { %13879 = vmatpush2.bf16.msra.mxu1 %v17830_v49  ;;  %13837 = vmatprep.subr.bf16.mxu0 %v17835_v51  ;;  %v17854_v49 = vld [vmem:[#allocation22 + $0x6c0] ss:$16 sps:$4 sm:$0xff]   ;;  %v17859_v51 = vld [vmem:[#allocation22 + $0x4a4] ss:$16 sps:$4 sm:$0xff]  }
0x1c92   :  { %13880 = vmatprep.subr.bf16.mxu1 %v17838_v16 }
0x1c94   :  { %13838 = vmatpush2.bf16.msra.mxu0 %v17833_v32 }
0x1c95   :  { %13881 = vmatpush2.bf16.msra.mxu1 %v17836_v39  ;;  %13839 = vmatprep.subr.bf16.mxu0 %v17841_v42  ;;  %v17860_v42 = vld [vmem:[#allocation22 + $0x6a0] ss:$16 sps:$4 sm:$0xff]  }
0x1c96   :  { %13882 = vmatprep.subr.bf16.mxu1 %v17844_v3 }
0x1c98   :  { %13840 = vmatpush2.bf16.msra.mxu0 %v17839_v60 }
0x1c99   :  { %13883 = vmatpush2.bf16.msra.mxu1 %v17842_v38  ;;  %13895 = vmatprep.subr.bf16.mxu0 %v17847_v57  ;;  %v17866_v38 = vld [vmem:[#allocation22 + $0x680] ss:$16 sps:$4 sm:$0xff]   ;;  %v17871_v57 = vld [vmem:[#allocation22 + $0x464] ss:$16 sps:$4 sm:$0xff]  }
0x1c9a   :  { %13938 = vmatprep.subr.bf16.mxu1 %v17850_v30  ;;  %v17874_v30 = vld [vmem:[#allocation22 + $0x664] ss:$16 sps:$4 sm:$0xff]  }
0x1c9b   :  { %v10443_v63 = vpop.f32.mrf.mxu0  ;;  %13842 = vmatmul.mubr.bf16.vlgmr.msra.gmra.mxu0 %v20038_v1 }
0x1c9c   :  { %v10444_v58 = vadd.f32 %v10443_v63, %v7382_v40  ;;  %v10486_v17 = vpop.f32.mrf.mxu1  ;;  %13885 = vmatmul.mubr.bf16.vlgmr.msra.gmra.mxu1 %v20054_v48  ;;  %13896 = vmatpush1.bf16.msra.mxu0 %v17845_v9  ;;  %v17880_v9 = vld [vmem:[#allocation22 + $0x644] ss:$16 sps:$4 sm:$0xff]   ;;  %v17881_v63 = vld [vmem:[#allocation22 + $0x420] ss:$16 sps:$4 sm:$0xff]  }
0x1c9d   :  { %13927 = vmatprep.mubr.bf16.mxu0 %v20142_v54  ;;  %13939 = vmatpush1.bf16.msra.mxu1 %v17848_v56  ;;  %v20149_v25 = vpop.f32.mrf.mxu0  ;;  %v17878_v56 = vld [vmem:[#allocation22 + $0x640] ss:$16 sps:$4 sm:$0xff]  }
0x1c9e   :  { %v10487_v53 = vadd.f32 %v10486_v17, %v10444_v58  ;;  %13970 = vmatprep.mubr.bf16.mxu1 %v20145_v8  ;;  %v20152_v16 = vpop.f32.mrf.mxu1  ;;  %13897 = vmatprep.subr.bf16.mxu0 %v17853_v11  ;;  %v17886_v11 = vld [vmem:[#allocation22 + $0x624] ss:$16 sps:$4 sm:$0xff]  }
0x1c9f   :  { %v10447_v15 = vpop.f32.mrf.mxu0  ;;  %13940 = vmatprep.subr.bf16.mxu1 %v17856_v47  ;;  %v17884_v47 = vld [vmem:[#allocation22 + $0x620] ss:$16 sps:$4 sm:$0xff]   ;;  %v17889_v58 = vld [vmem:[#allocation22 + $0x404] ss:$16 sps:$4 sm:$0xff]  }
0x1ca0   :  { %v10448_v32 = vadd.f32 %v10447_v15, %v7382_v40  ;;  %13898 = vmatpush1.bf16.msra.mxu0 %v17851_v43  ;;  %v10490_v39 = vpop.f32.mrf.mxu1  ;;  %v10677_v4 = vmax.f32 %v10487_v53, 0.0  ;;  %v17877_v40 = vld [vmem:[#allocation22 + $0x444] ss:$16 sps:$4 sm:$0xff]   ;;  %v17887_v43 = vld [vmem:[#allocation22 + $0x400] ss:$16 sps:$4 sm:$0xff]  }
0x1ca1   :  { %13941 = vmatpush1.bf16.msra.mxu1 %v17854_v49  ;;  %13899 = vmatprep.subr.bf16.mxu0 %v17859_v51  ;;  %v17892_v17 = vld [vmem:[#allocation22 + $0x604] ss:$16 sps:$4 sm:$0xff]   ;;  %v17890_v49 = vld [vmem:[#allocation22 + $0x600] ss:$16 sps:$4 sm:$0xff]  }
0x1ca2   :  { %v10491_v3 = vadd.f32 %v10490_v39, %v10448_v32  ;;  %13942 = vmatprep.subr.bf16.mxu1 %v17862_v13  ;;  %v17895_v51 = vld [vmem:[#allocation22 + $0x5e4] ss:$16 sps:$4 sm:$0xff]   ;;  %v17893_v13 = vld [vmem:[#allocation22 + $0x5e0] ss:$16 sps:$4 sm:$0xff]  }
0x1ca3   :  { %v17898_v53 = vld [vmem:[#allocation22 + $0x7e4] ss:$16 sps:$4 sm:$0xff]   ;;  %v17896_v15 = vld [vmem:[#allocation22 + $0x7e0] ss:$16 sps:$4 sm:$0xff]  }
0x1ca4   :  { %v10693_v60 = vmax.f32 %v10491_v3, 0.0  ;;  %13900 = vmatpush1.bf16.msra.mxu0 %v17857_v2  ;;  %v17901_v32 = vld [vmem:[#allocation22 + $0x5c4] ss:$16 sps:$4 sm:$0xff]   ;;  %v17899_v39 = vld [vmem:[#allocation22 + $0x5c0] ss:$16 sps:$4 sm:$0xff]  }
0x1ca5   :  { %13943 = vmatpush1.bf16.msra.mxu1 %v17860_v42  ;;  %13901 = vmatprep.subr.bf16.mxu0 %v17865_v29  ;;  %v17904_v2 = vld [vmem:[#allocation22 + $0x7c4] ss:$16 sps:$4 sm:$0xff]   ;;  %v17902_v42 = vld [vmem:[#allocation22 + $0x7c0] ss:$16 sps:$4 sm:$0xff]  }
0x1ca6   :  { %v20154_v44 = vpack.c.bf16 %v10693_v60, %v10677_v4  ;;  %13944 = vmatprep.subr.bf16.mxu1 %v17868_v41  ;;  %v17907_v29 = vld [vmem:[#allocation22 + $0x5a4] ss:$16 sps:$4 sm:$0xff]   ;;  %v17905_v41 = vld [vmem:[#allocation22 + $0x5a0] ss:$16 sps:$4 sm:$0xff]  }
0x1ca7   :  { %v17910_v3 = vld [vmem:[#allocation22 + $0x7a4] ss:$16 sps:$4 sm:$0xff]   ;;  %v17908_v4 = vld [vmem:[#allocation22 + $0x7a0] ss:$16 sps:$4 sm:$0xff]  }
0x1ca8   :  { %13902 = vmatpush1.bf16.msra.mxu0 %v17863_v6  ;;  %v17913_v60 = vld [vmem:[#allocation22 + $0x584] ss:$16 sps:$4 sm:$0xff]  }
0x1ca9   :  { %13945 = vmatpush1.bf16.msra.mxu1 %v17866_v38  ;;  %13903 = vmatprep.subr.bf16.mxu0 %v17871_v57  ;;  %v17916_v6 = vld [vmem:[#allocation22 + $0x784] ss:$16 sps:$4 sm:$0xff]   ;;  %v17911_v38 = vld [vmem:[#allocation22 + $0x580] ss:$16 sps:$4 sm:$0xff]  }
0x1caa   :  { %13946 = vmatprep.subr.bf16.mxu1 %v17874_v30  ;;  %v17914_v57 = vld [vmem:[#allocation22 + $0x780] ss:$16 sps:$4 sm:$0xff]   ;;  %v17919_v30 = vld [vmem:[#allocation22 + $0x564] ss:$16 sps:$4 sm:$0xff]  }
0x1cac   :  { %13904 = vmatpush1.bf16.msra.mxu0 %v17869_v18  ;;  %v17922_v18 = vld [vmem:[#allocation22 + $0x764] ss:$16 sps:$4 sm:$0xff]  }
0x1cad   :  { %13947 = vmatpush1.bf16.msra.mxu1 %v17872_v27  ;;  %13905 = vmatprep.subr.bf16.mxu0 %v17877_v40  ;;  %v17917_v27 = vld [vmem:[#allocation22 + $0x560] ss:$16 sps:$4 sm:$0xff]  }
0x1cae   :  { %13948 = vmatprep.subr.bf16.mxu1 %v17880_v9  ;;  %v17920_v40 = vld [vmem:[#allocation22 + $0x760] ss:$16 sps:$4 sm:$0xff]   ;;  %v17925_v9 = vld [vmem:[#allocation22 + $0x544] ss:$16 sps:$4 sm:$0xff]  }
0x1cb0   :  { %13906 = vmatpush1.bf16.msra.mxu0 %v17875_v12  ;;  %v17928_v12 = vld [vmem:[#allocation22 + $0x744] ss:$16 sps:$4 sm:$0xff]  }
0x1cb1   :  { %13949 = vmatpush1.bf16.msra.mxu1 %v17878_v56  ;;  %13907 = vmatprep.subr.bf16.mxu0 %v17883_v36  ;;  %v17923_v56 = vld [vmem:[#allocation22 + $0x540] ss:$16 sps:$4 sm:$0xff]   ;;  %v7378_v36 = vrot.slane %v20101_v34, %v19166_v23 }
0x1cb2   :  { %13950 = vmatprep.subr.bf16.mxu1 %v17886_v11  ;;  %v10449_v11 = vpop.f32.mrf.mxu0 }
0x1cb4   :  { %13908 = vmatpush1.bf16.msra.mxu0 %v17881_v63  ;;  %v17926_v63 = vld [vmem:[#allocation22 + $0x740] ss:$16 sps:$4 sm:$0xff]  }
0x1cb5   :  { %13951 = vmatpush1.bf16.msra.mxu1 %v17884_v47  ;;  %13909 = vmatprep.subr.bf16.mxu0 %v17889_v58  ;;  %v17931_v47 = vld [vmem:[#allocation22 + $0x524] ss:$16 sps:$4 sm:$0xff]   ;;  %v7386_v58 = vrot.slane %v20101_v34, %v19172_v26 }
0x1cb6   :  { %13952 = vmatprep.subr.bf16.mxu1 %v17892_v17  ;;  %v17934_v17 = vld [vmem:[#allocation22 + $0x724] ss:$16 sps:$4 sm:$0xff]  }
0x1cb8   :  { %13910 = vmatpush1.bf16.msra.mxu0 %v17887_v43  ;;  %v10364_v43 = vadd.f32 %v20138_v35, %v7378_v36 }
0x1cb9   :  { %13953 = vmatpush1.bf16.msra.mxu1 %v17890_v49  ;;  %13911 = vmatprep.subr.bf16.mxu0 %v17895_v51  ;;  %v10450_v49 = vadd.f32 %v10449_v11, %v7386_v58  ;;  %v17929_v51 = vld [vmem:[#allocation22 + $0x520] ss:$16 sps:$4 sm:$0xff]  }
0x1cba   :  { %13954 = vmatprep.subr.bf16.mxu1 %v17898_v53  ;;  %v10360_v53 = vadd.f32 %v20117_v37, %v7378_v36  ;;  %v17943_v37 = vld [vmem:[#allocation22 + $0x8e4] ss:$16 sps:$4 sm:$0xff]   ;;  %v17950_v11 = vld [vmem:[#allocation22 + $0xac0] ss:$16 sps:$4 sm:$0xff]  }
0x1cbc   :  { %13912 = vmatpush2.bf16.msra.mxu0 %v17893_v13  ;;  %v17932_v13 = vld [vmem:[#allocation22 + $0x720] ss:$16 sps:$4 sm:$0xff]   ;;  %v10403_v35 = vadd.f32 %v20120_v59, %v10360_v53 }
0x1cbd   :  { %13955 = vmatpush2.bf16.msra.mxu1 %v17896_v15  ;;  %13913 = vmatprep.subr.bf16.mxu0 %v17901_v32  ;;  %v17937_v15 = vld [vmem:[#allocation22 + $0x504] ss:$16 sps:$4 sm:$0xff]   ;;  %v10446_v32 = vadd.f32 %v20149_v25, %v7386_v58 }
0x1cbe   :  { %13956 = vmatprep.subr.bf16.mxu1 %v17904_v2  ;;  %v17940_v2 = vld [vmem:[#allocation22 + $0x704] ss:$16 sps:$4 sm:$0xff]  }
0x1cc0   :  { %13914 = vmatpush2.bf16.msra.mxu0 %v17899_v39  ;;  %v10407_v39 = vadd.f32 %v20140_v21, %v10364_v43  ;;  %v7390_v21 = vrot.slane %v20101_v34, %v20499_v5  ;;  %v17947_v5 = vld [vmem:[#allocation22 + $0x8c0] ss:$16 sps:$4 sm:$0xff]  }
0x1cc1   :  { %13957 = vmatpush2.bf16.msra.mxu1 %v17902_v42  ;;  %13915 = vmatprep.subr.bf16.mxu0 %v17907_v29  ;;  %v10492_v42 = vpop.f32.mrf.mxu1 }
0x1cc2   :  { %13958 = vmatprep.subr.bf16.mxu1 %v17910_v3  ;;  %v10493_v29 = vadd.f32 %v10492_v42, %v10450_v49  ;;  %v17935_v3 = vld [vmem:[#allocation22 + $0x500] ss:$16 sps:$4 sm:$0xff]  }
0x1cc4   :  { %13916 = vmatpush2.bf16.msra.mxu0 %v17905_v41  ;;  %v17938_v41 = vld [vmem:[#allocation22 + $0x700] ss:$16 sps:$4 sm:$0xff]   ;;  %v10694_v25 = vmax.f32 %v10493_v29, 0.0 }
0x1cc5   :  { %13959 = vmatpush2.bf16.msra.mxu1 %v17908_v4  ;;  %13917 = vmatprep.subr.bf16.mxu0 %v17913_v60  ;;  %v10489_v4 = vadd.f32 %v20152_v16, %v10446_v32  ;;  %v17946_v60 = vld [vmem:[#allocation22 + $0xae4] ss:$16 sps:$4 sm:$0xff]   ;;  %v17959_v29 = vld [vmem:[#allocation22 + $0x880] ss:$16 sps:$4 sm:$0xff]  }
0x1cc6   :  { %13960 = vmatprep.subr.bf16.mxu1 %v17916_v6  ;;  %v10692_v6 = vmax.f32 %v10407_v39, 0.0  ;;  %v17952_v16 = vld [vmem:[#allocation22 + $0xac4] ss:$16 sps:$4 sm:$0xff]  }
0x1cc7   :  { %v10678_v59 = vmax.f32 %v10489_v4, 0.0  ;;  %v17965_v4 = vld [vmem:[#allocation22 + $0x860] ss:$16 sps:$4 sm:$0xff]  }
0x1cc8   :  { %13918 = vmatpush2.bf16.msra.mxu0 %v17911_v38  ;;  %v17941_v38 = vld [vmem:[#allocation22 + $0x8e0] ss:$16 sps:$4 sm:$0xff]  }
0x1cc9   :  { %13961 = vmatpush2.bf16.msra.mxu1 %v17914_v57  ;;  %13919 = vmatprep.subr.bf16.mxu0 %v17919_v30  ;;  %v10676_v57 = vmax.f32 %v10403_v35, 0.0  ;;  %v17944_v30 = vld [vmem:[#allocation22 + $0xae0] ss:$16 sps:$4 sm:$0xff]   ;;  %v17967_v35 = vld [vmem:[#allocation22 + $0x864] ss:$16 sps:$4 sm:$0xff]  }
0x1cca   :  { %13962 = vmatprep.subr.bf16.mxu1 %v17922_v18  ;;  %v17949_v18 = vld [vmem:[#allocation22 + $0x8c4] ss:$16 sps:$4 sm:$0xff]  }
0x1ccc   :  { %13920 = vmatpush2.bf16.msra.mxu0 %v17917_v27  ;;  %v20168_v27 = vpack.c.bf16 %v10692_v6, %v10676_v57  ;;  %v17973_v6 = vld [vmem:[#allocation22 + $0x844] ss:$16 sps:$4 sm:$0xff]  }
0x1ccd   :  { %13963 = vmatpush2.bf16.msra.mxu1 %v17920_v40  ;;  %13921 = vmatprep.subr.bf16.mxu0 %v17925_v9  ;;  %v20171_v9 = vpack.c.bf16 %v10694_v25, %v10678_v59  ;;  %v17976_v25 = vld [vmem:[#allocation22 + $0xa44] ss:$16 sps:$4 sm:$0xff]   ;;  %v17977_v59 = vld [vmem:[#allocation22 + $0x820] ss:$16 sps:$4 sm:$0xff]  }
0x1cce   :  { %13964 = vmatprep.subr.bf16.mxu1 %v17928_v12  ;;  %v17979_v57 = vld [vmem:[#allocation22 + $0x824] ss:$16 sps:$4 sm:$0xff]  }
0x1cd0   :  { %13922 = vmatpush2.bf16.msra.mxu0 %v17923_v56 }
0x1cd1   :  { %13965 = vmatpush2.bf16.msra.mxu1 %v17926_v63  ;;  %13923 = vmatprep.subr.bf16.mxu0 %v17931_v47  ;;  %v17955_v63 = vld [vmem:[#allocation22 + $0x8a4] ss:$16 sps:$4 sm:$0xff]  }
0x1cd2   :  { %13966 = vmatprep.subr.bf16.mxu1 %v17934_v17  ;;  %v17958_v17 = vld [vmem:[#allocation22 + $0xaa4] ss:$16 sps:$4 sm:$0xff]  }
0x1cd4   :  { %13924 = vmatpush2.bf16.msra.mxu0 %v17929_v51  ;;  %v17953_v51 = vld [vmem:[#allocation22 + $0x8a0] ss:$16 sps:$4 sm:$0xff]  }
0x1cd5   :  { %13967 = vmatpush2.bf16.msra.mxu1 %v17932_v13  ;;  %13925 = vmatprep.subr.bf16.mxu0 %v17937_v15  ;;  %v17956_v13 = vld [vmem:[#allocation22 + $0xaa0] ss:$16 sps:$4 sm:$0xff]   ;;  %v17961_v15 = vld [vmem:[#allocation22 + $0x884] ss:$16 sps:$4 sm:$0xff]  }
0x1cd6   :  { %13968 = vmatprep.subr.bf16.mxu1 %v17940_v2  ;;  %v17964_v2 = vld [vmem:[#allocation22 + $0xa84] ss:$16 sps:$4 sm:$0xff]  }
0x1cd8   :  { %13926 = vmatpush2.bf16.msra.mxu0 %v17935_v3  ;;  %v17962_v3 = vld [vmem:[#allocation22 + $0xa80] ss:$16 sps:$4 sm:$0xff]  }
0x1cd9   :  { %13969 = vmatpush2.bf16.msra.mxu1 %v17938_v41  ;;  %13981 = vmatprep.subr.bf16.mxu0 %v17943_v37  ;;  %v17970_v37 = vld [vmem:[#allocation22 + $0xa64] ss:$16 sps:$4 sm:$0xff]  }
0x1cda   :  { %14024 = vmatprep.subr.bf16.mxu1 %v17946_v60  ;;  %v17968_v60 = vld [vmem:[#allocation22 + $0xa60] ss:$16 sps:$4 sm:$0xff]  }
0x1cdb   :  { %v10529_v40 = vpop.f32.mrf.mxu0  ;;  %13928 = vmatmul.mubr.bf16.vlgmr.msra.gmra.mxu0 %v20070_v52 }
0x1cdc   :  { %v10530_v12 = vadd.f32 %v10529_v40, %v7390_v21  ;;  %v10572_v56 = vpop.f32.mrf.mxu1  ;;  %13971 = vmatmul.mubr.bf16.vlgmr.msra.gmra.mxu1 %v20088_v33  ;;  %13982 = vmatpush1.bf16.msra.mxu0 %v17941_v38  ;;  %v17974_v38 = vld [vmem:[#allocation22 + $0xa40] ss:$16 sps:$4 sm:$0xff]   ;;  %v17985_v40 = vld [vmem:[#allocation22 + $0x804] ss:$16 sps:$4 sm:$0xff]  }
0x1cdd   :  { %14013 = vmatprep.mubr.bf16.mxu0 %v20168_v27  ;;  %14025 = vmatpush1.bf16.msra.mxu1 %v17944_v30  ;;  %v20175_v36 = vpop.f32.mrf.mxu0  ;;  %v17982_v30 = vld [vmem:[#allocation22 + $0xa24] ss:$16 sps:$4 sm:$0xff]  }
0x1cde   :  { %v10573_v47 = vadd.f32 %v10572_v56, %v10530_v12  ;;  %14056 = vmatprep.mubr.bf16.mxu1 %v20171_v9  ;;  %v20178_v58 = vpop.f32.mrf.mxu1  ;;  %13983 = vmatprep.subr.bf16.mxu0 %v17949_v18  ;;  %v17980_v18 = vld [vmem:[#allocation22 + $0xa20] ss:$16 sps:$4 sm:$0xff]  }
0x1cdf   :  { %v10533_v43 = vpop.f32.mrf.mxu0  ;;  %14026 = vmatprep.subr.bf16.mxu1 %v17952_v16  ;;  %v17988_v16 = vld [vmem:[#allocation22 + $0xa04] ss:$16 sps:$4 sm:$0xff]   ;;  %v17983_v12 = vld [vmem:[#allocation22 + $0x800] ss:$16 sps:$4 sm:$0xff]  }
0x1ce0   :  { %v10534_v49 = vadd.f32 %v10533_v43, %v7390_v21  ;;  %13984 = vmatpush1.bf16.msra.mxu0 %v17947_v5  ;;  %v10576_v53 = vpop.f32.mrf.mxu1  ;;  %v10679_v39 = vmax.f32 %v10573_v47, 0.0  ;;  %v17971_v21 = vld [vmem:[#allocation22 + $0x840] ss:$16 sps:$4 sm:$0xff]   ;;  %v17991_v5 = vld [vmem:[#allocation22 + $0x9e4] ss:$16 sps:$4 sm:$0xff]  }
0x1ce1   :  { %14027 = vmatpush1.bf16.msra.mxu1 %v17950_v11  ;;  %13985 = vmatprep.subr.bf16.mxu0 %v17955_v63  ;;  %v17986_v56 = vld [vmem:[#allocation22 + $0xa00] ss:$16 sps:$4 sm:$0xff]   ;;  %v17994_v11 = vld [vmem:[#allocation22 + $0xbe4] ss:$16 sps:$4 sm:$0xff]  }
0x1ce2   :  { %v10577_v32 = vadd.f32 %v10576_v53, %v10534_v49  ;;  %14028 = vmatprep.subr.bf16.mxu1 %v17958_v17  ;;  %v17989_v63 = vld [vmem:[#allocation22 + $0x9e0] ss:$16 sps:$4 sm:$0xff]   ;;  %v17997_v17 = vld [vmem:[#allocation22 + $0x9c4] ss:$16 sps:$4 sm:$0xff]  }
0x1ce3   :  { %v17992_v47 = vld [vmem:[#allocation22 + $0xbe0] ss:$16 sps:$4 sm:$0xff]   ;;  %v18000_v43 = vld [vmem:[#allocation22 + $0xbc4] ss:$16 sps:$4 sm:$0xff]  }
0x1ce4   :  { %v10695_v42 = vmax.f32 %v10577_v32, 0.0  ;;  %13986 = vmatpush1.bf16.msra.mxu0 %v17953_v51  ;;  %v17995_v49 = vld [vmem:[#allocation22 + $0x9c0] ss:$16 sps:$4 sm:$0xff]   ;;  %v18003_v53 = vld [vmem:[#allocation22 + $0x9a4] ss:$16 sps:$4 sm:$0xff]  }
0x1ce5   :  { %14029 = vmatpush1.bf16.msra.mxu1 %v17956_v13  ;;  %13987 = vmatprep.subr.bf16.mxu0 %v17961_v15  ;;  %v17998_v51 = vld [vmem:[#allocation22 + $0xbc0] ss:$16 sps:$4 sm:$0xff]   ;;  %v18006_v13 = vld [vmem:[#allocation22 + $0xba4] ss:$16 sps:$4 sm:$0xff]  }
0x1ce6   :  { %v20180_v41 = vpack.c.bf16 %v10695_v42, %v10679_v39  ;;  %14030 = vmatprep.subr.bf16.mxu1 %v17964_v2  ;;  %v18001_v15 = vld [vmem:[#allocation22 + $0x9a0] ss:$16 sps:$4 sm:$0xff]   ;;  %v18009_v2 = vld [vmem:[#allocation22 + $0x984] ss:$16 sps:$4 sm:$0xff]  }
0x1ce7   :  { %v18004_v32 = vld [vmem:[#allocation22 + $0xba0] ss:$16 sps:$4 sm:$0xff]   ;;  %v18012_v39 = vld [vmem:[#allocation22 + $0xb84] ss:$16 sps:$4 sm:$0xff]  }
0x1ce8   :  { %13988 = vmatpush1.bf16.msra.mxu0 %v17959_v29  ;;  %v18007_v42 = vld [vmem:[#allocation22 + $0x980] ss:$16 sps:$4 sm:$0xff]  }
0x1ce9   :  { %14031 = vmatpush1.bf16.msra.mxu1 %v17962_v3  ;;  %13989 = vmatprep.subr.bf16.mxu0 %v17967_v35  ;;  %v18010_v29 = vld [vmem:[#allocation22 + $0xb80] ss:$16 sps:$4 sm:$0xff]   ;;  %v18015_v3 = vld [vmem:[#allocation22 + $0x964] ss:$16 sps:$4 sm:$0xff]  }
0x1cea   :  { %14032 = vmatprep.subr.bf16.mxu1 %v17970_v37  ;;  %v18018_v35 = vld [vmem:[#allocation22 + $0xb64] ss:$16 sps:$4 sm:$0xff]   ;;  %v18013_v37 = vld [vmem:[#allocation22 + $0x960] ss:$16 sps:$4 sm:$0xff]  }
0x1cec   :  { %13990 = vmatpush1.bf16.msra.mxu0 %v17965_v4  ;;  %v18016_v4 = vld [vmem:[#allocation22 + $0xb60] ss:$16 sps:$4 sm:$0xff]  }
0x1ced   :  { %14033 = vmatpush1.bf16.msra.mxu1 %v17968_v60  ;;  %13991 = vmatprep.subr.bf16.mxu0 %v17973_v6  ;;  %v18021_v60 = vld [vmem:[#allocation22 + $0x944] ss:$16 sps:$4 sm:$0xff]  }
0x1cee   :  { %14034 = vmatprep.subr.bf16.mxu1 %v17976_v25  ;;  %v18024_v6 = vld [vmem:[#allocation22 + $0xb44] ss:$16 sps:$4 sm:$0xff]   ;;  %v10535_v25 = vpop.f32.mrf.mxu0 }
0x1cf0   :  { %13992 = vmatpush1.bf16.msra.mxu0 %v17971_v21  ;;  %v18019_v21 = vld [vmem:[#allocation22 + $0x940] ss:$16 sps:$4 sm:$0xff]  }
0x1cf1   :  { %14035 = vmatpush1.bf16.msra.mxu1 %v17974_v38  ;;  %13993 = vmatprep.subr.bf16.mxu0 %v17979_v57  ;;  %v7394_v38 = vrot.slane %v20101_v34, %v20501_v0  ;;  %v18022_v57 = vld [vmem:[#allocation22 + $0xb40] ss:$16 sps:$4 sm:$0xff]  }
0x1cf2   :  { %14036 = vmatprep.subr.bf16.mxu1 %v17982_v30  ;;  %v18027_v30 = vld [vmem:[#allocation22 + $0x924] ss:$16 sps:$4 sm:$0xff]   ;;  %v18031_v0 = vld [vmem:[#allocation22 + $0x900] ss:$16 sps:$4 sm:$0xff]  }
0x1cf4   :  { %13994 = vmatpush1.bf16.msra.mxu0 %v17977_v59  ;;  %v18030_v59 = vld [vmem:[#allocation22 + $0xb24] ss:$16 sps:$4 sm:$0xff]  }
0x1cf5   :  { %14037 = vmatpush1.bf16.msra.mxu1 %v17980_v18  ;;  %13995 = vmatprep.subr.bf16.mxu0 %v17985_v40  ;;  %v10536_v18 = vadd.f32 %v10535_v25, %v7394_v38  ;;  %v18025_v40 = vld [vmem:[#allocation22 + $0x920] ss:$16 sps:$4 sm:$0xff]  }
0x1cf6   :  { %14038 = vmatprep.subr.bf16.mxu1 %v17988_v16  ;;  %v10532_v16 = vadd.f32 %v20175_v36, %v7394_v38  ;;  %v18037_v36 = vld [vmem:[#allocation22 + $0xce0] ss:$16 sps:$4 sm:$0xff]  }
0x1cf7   :  { %v18049_v25 = vld [vmem:[#allocation22 + $0xca0] ss:$16 sps:$4 sm:$0xff]  }
0x1cf8   :  { %13996 = vmatpush1.bf16.msra.mxu0 %v17983_v12  ;;  %v18028_v12 = vld [vmem:[#allocation22 + $0xb20] ss:$16 sps:$4 sm:$0xff]  }
0x1cf9   :  { %14039 = vmatpush1.bf16.msra.mxu1 %v17986_v56  ;;  %13997 = vmatprep.subr.bf16.mxu0 %v17991_v5  ;;  %v18033_v56 = vld [vmem:[#allocation22 + $0x904] ss:$16 sps:$4 sm:$0xff]   ;;  %v10578_v5 = vpop.f32.mrf.mxu1  ;;  %v18052_v38 = vld [vmem:[#allocation22 + $0xea0] ss:$16 sps:$4 sm:$0xff]  }
0x1cfa   :  { %14040 = vmatprep.subr.bf16.mxu1 %v17994_v11  ;;  %v18036_v11 = vld [vmem:[#allocation22 + $0xb04] ss:$16 sps:$4 sm:$0xff]  }
0x1cfc   :  { %13998 = vmatpush2.bf16.msra.mxu0 %v17989_v63  ;;  %v10579_v63 = vadd.f32 %v10578_v5, %v10536_v18  ;;  %v18060_v18 = vld [vmem:[#allocation22 + $0xe84] ss:$16 sps:$4 sm:$0xff]  }
0x1cfd   :  { %14041 = vmatpush2.bf16.msra.mxu1 %v17992_v47  ;;  %13999 = vmatprep.subr.bf16.mxu0 %v17997_v17  ;;  %v10575_v47 = vadd.f32 %v20178_v58, %v10532_v16  ;;  %v18034_v17 = vld [vmem:[#allocation22 + $0xb00] ss:$16 sps:$4 sm:$0xff]   ;;  %v18063_v5 = vld [vmem:[#allocation22 + $0xc64] ss:$16 sps:$4 sm:$0xff]  }
0x1cfe   :  { %14042 = vmatprep.subr.bf16.mxu1 %v18000_v43  ;;  %v18039_v43 = vld [vmem:[#allocation22 + $0xce4] ss:$16 sps:$4 sm:$0xff]  }
0x1d00   :  { %14000 = vmatpush2.bf16.msra.mxu0 %v17995_v49  ;;  %v18042_v49 = vld [vmem:[#allocation22 + $0xee4] ss:$16 sps:$4 sm:$0xff]  }
0x1d01   :  { %14043 = vmatpush2.bf16.msra.mxu1 %v17998_v51  ;;  %14001 = vmatprep.subr.bf16.mxu0 %v18003_v53  ;;  %v10696_v51 = vmax.f32 %v10579_v63, 0.0  ;;  %v10680_v53 = vmax.f32 %v10575_v47, 0.0 }
0x1d02   :  { %14044 = vmatprep.subr.bf16.mxu1 %v18006_v13  ;;  %v18040_v13 = vld [vmem:[#allocation22 + $0xee0] ss:$16 sps:$4 sm:$0xff]  }
0x1d03   :  { %v20188_v58 = vpack.c.bf16 %v10696_v51, %v10680_v53  ;;  %v18072_v51 = vld [vmem:[#allocation22 + $0xe44] ss:$16 sps:$4 sm:$0xff]   ;;  %v18070_v53 = vld [vmem:[#allocation22 + $0xe40] ss:$16 sps:$4 sm:$0xff]  }
0x1d04   :  { %14002 = vmatpush2.bf16.msra.mxu0 %v18001_v15  ;;  %v7402_v15 = vrot.slane %v20101_v34, %v20502_v7  ;;  %v18051_v34 = vld [vmem:[#allocation22 + $0xca4] ss:$16 sps:$4 sm:$0xff]  }
0x1d05   :  { %14045 = vmatpush2.bf16.msra.mxu1 %v18004_v32  ;;  %14003 = vmatprep.subr.bf16.mxu0 %v18009_v2  ;;  %v18045_v32 = vld [vmem:[#allocation22 + $0xcc4] ss:$16 sps:$4 sm:$0xff]  }
0x1d06   :  { %14046 = vmatprep.subr.bf16.mxu1 %v18012_v39  ;;  %v18048_v2 = vld [vmem:[#allocation22 + $0xec4] ss:$16 sps:$4 sm:$0xff]  }
0x1d08   :  { %14004 = vmatpush2.bf16.msra.mxu0 %v18007_v42 }
0x1d09   :  { %14047 = vmatpush2.bf16.msra.mxu1 %v18010_v29  ;;  %14005 = vmatprep.subr.bf16.mxu0 %v18015_v3  ;;  %v18043_v29 = vld [vmem:[#allocation22 + $0xcc0] ss:$16 sps:$4 sm:$0xff]  }
0x1d0a   :  { %14048 = vmatprep.subr.bf16.mxu1 %v18018_v35  ;;  %v18046_v35 = vld [vmem:[#allocation22 + $0xec0] ss:$16 sps:$4 sm:$0xff]  }
0x1d0c   :  { %14006 = vmatpush2.bf16.msra.mxu0 %v18013_v37 }
0x1d0d   :  { %14049 = vmatpush2.bf16.msra.mxu1 %v18016_v4  ;;  %14007 = vmatprep.subr.bf16.mxu0 %v18021_v60  ;;  %v18054_v4 = vld [vmem:[#allocation22 + $0xea4] ss:$16 sps:$4 sm:$0xff]  }
0x1d0e   :  { %14050 = vmatprep.subr.bf16.mxu1 %v18024_v6 }
0x1d10   :  { %14008 = vmatpush2.bf16.msra.mxu0 %v18019_v21 }
0x1d11   :  { %14051 = vmatpush2.bf16.msra.mxu1 %v18022_v57  ;;  %14009 = vmatprep.subr.bf16.mxu0 %v18027_v30  ;;  %v18057_v57 = vld [vmem:[#allocation22 + $0xc84] ss:$16 sps:$4 sm:$0xff]  }
0x1d12   :  { %14052 = vmatprep.subr.bf16.mxu1 %v18030_v59 }
0x1d14   :  { %14010 = vmatpush2.bf16.msra.mxu0 %v18025_v40 }
0x1d15   :  { %14053 = vmatpush2.bf16.msra.mxu1 %v18028_v12  ;;  %14011 = vmatprep.subr.bf16.mxu0 %v18033_v56  ;;  %v18055_v12 = vld [vmem:[#allocation22 + $0xc80] ss:$16 sps:$4 sm:$0xff]  }
0x1d16   :  { %14054 = vmatprep.subr.bf16.mxu1 %v18036_v11  ;;  %v18058_v56 = vld [vmem:[#allocation22 + $0xe80] ss:$16 sps:$4 sm:$0xff]  }
0x1d18   :  { %14012 = vmatpush2.bf16.msra.mxu0 %v18031_v0  ;;  %v18066_v0 = vld [vmem:[#allocation22 + $0xe64] ss:$16 sps:$4 sm:$0xff]  }
0x1d19   :  { %14055 = vmatpush2.bf16.msra.mxu1 %v18034_v17  ;;  %14067 = vmatprep.subr.bf16.mxu0 %v18039_v43  ;;  %v18061_v17 = vld [vmem:[#allocation22 + $0xc60] ss:$16 sps:$4 sm:$0xff]  }
0x1d1a   :  { %14110 = vmatprep.subr.bf16.mxu1 %v18042_v49  ;;  %v18064_v43 = vld [vmem:[#allocation22 + $0xe60] ss:$16 sps:$4 sm:$0xff]   ;;  %v18069_v49 = vld [vmem:[#allocation22 + $0xc44] ss:$16 sps:$4 sm:$0xff]  }
0x1d1b   :  { %v20190_v39 = vpop.f32.mrf.mxu0  ;;  %14014 = vmatmul.mubr.bf16.vlgmr.msra.gmra.mxu0 %v20122_v46 }
0x1d1c   :  { %v20193_v42 = vpop.f32.mrf.mxu1  ;;  %14057 = vmatmul.mubr.bf16.vlgmr.msra.gmra.mxu1 %v20154_v44  ;;  %14068 = vmatpush1.bf16.msra.mxu0 %v18037_v36  ;;  %v18067_v36 = vld [vmem:[#allocation22 + $0xc40] ss:$16 sps:$4 sm:$0xff]  }
0x1d1d   :  { %14099 = vmatprep.mubr.bf16.mxu0 %v20188_v58  ;;  %14111 = vmatpush1.bf16.msra.mxu1 %v18040_v13  ;;  %v10617_v3 = vpop.f32.mrf.mxu0  ;;  %v18075_v13 = vld [vmem:[#allocation22 + $0xc24] ss:$16 sps:$4 sm:$0xff]  }
0x1d1e   :  { %v10618_v7 = vadd.f32 %v10617_v3, %v7402_v15  ;;  %v10660_v37 = vpop.f32.mrf.mxu1  ;;  %14069 = vmatprep.subr.bf16.mxu0 %v18045_v32  ;;  %14112 = vmatprep.subr.bf16.mxu1 %v18048_v2  ;;  %v18073_v32 = vld [vmem:[#allocation22 + $0xc20] ss:$16 sps:$4 sm:$0xff]   ;;  %v18084_v3 = vld [vmem:[#allocation22 + $0xe04] ss:$16 sps:$4 sm:$0xff]  }
0x1d1f   :  { %v20197_v60 = vpop.f32.mrf.mxu0  ;;  %v18076_v2 = vld [vmem:[#allocation22 + $0xe20] ss:$16 sps:$4 sm:$0xff]  }
0x1d20   :  { %v20199_v6 = vpop.f32.mrf.mxu1  ;;  %14070 = vmatpush1.bf16.msra.mxu0 %v18043_v29  ;;  %v10661_v30 = vadd.f32 %v10660_v37, %v10618_v7  ;;  %v18081_v29 = vld [vmem:[#allocation22 + $0xc04] ss:$16 sps:$4 sm:$0xff]  }
0x1d21   :  { %14113 = vmatpush1.bf16.msra.mxu1 %v18046_v35  ;;  %v10621_v21 = vpop.f32.mrf.mxu0  ;;  %14071 = vmatprep.subr.bf16.mxu0 %v18051_v34  ;;  %v18079_v35 = vld [vmem:[#allocation22 + $0xc00] ss:$16 sps:$4 sm:$0xff]   ;;  %v18087_v7 = vld [vmem:[#allocation22 + $0xde4] ss:$16 sps:$4 sm:$0xff]  }
0x1d22   :  { %v10622_v59 = vadd.f32 %v10621_v21, %v7402_v15  ;;  %14114 = vmatprep.subr.bf16.mxu1 %v18054_v4  ;;  %v10664_v40 = vpop.f32.mrf.mxu1  ;;  %v10682_v11 = vmax.f32 %v10661_v30, 0.0  ;;  %v18078_v15 = vld [vmem:[#allocation22 + $0xe24] ss:$16 sps:$4 sm:$0xff]   ;;  %v18082_v34 = vld [vmem:[#allocation22 + $0xe00] ss:$16 sps:$4 sm:$0xff]  }
0x1d23   :  { %v18090_v37 = vld [vmem:[#allocation22 + $0xfe4] ss:$16 sps:$4 sm:$0xff]   ;;  %v18085_v4 = vld [vmem:[#allocation22 + $0xde0] ss:$16 sps:$4 sm:$0xff]  }
0x1d24   :  { %v10665_v16 = vadd.f32 %v10664_v40, %v10622_v59  ;;  %14072 = vmatpush1.bf16.msra.mxu0 %v18049_v25  ;;  %v18088_v25 = vld [vmem:[#allocation22 + $0xfe0] ss:$16 sps:$4 sm:$0xff]   ;;  %v18093_v21 = vld [vmem:[#allocation22 + $0xdc4] ss:$16 sps:$4 sm:$0xff]  }
0x1d25   :  { %14115 = vmatpush1.bf16.msra.mxu1 %v18052_v38  ;;  %14073 = vmatprep.subr.bf16.mxu0 %v18057_v57  ;;  %v18096_v38 = vld [vmem:[#allocation22 + $0xfc4] ss:$16 sps:$4 sm:$0xff]   ;;  %v18091_v57 = vld [vmem:[#allocation22 + $0xdc0] ss:$16 sps:$4 sm:$0xff]  }
0x1d26   :  { %v10698_v63 = vmax.f32 %v10665_v16, 0.0  ;;  %14116 = vmatprep.subr.bf16.mxu1 %v18060_v18  ;;  %v18094_v30 = vld [vmem:[#allocation22 + $0xfc0] ss:$16 sps:$4 sm:$0xff]   ;;  %v18099_v59 = vld [vmem:[#allocation22 + $0xda4] ss:$16 sps:$4 sm:$0xff]  }
0x1d27   :  { %v18102_v18 = vld [vmem:[#allocation22 + $0xfa4] ss:$16 sps:$4 sm:$0xff]   ;;  %v18097_v40 = vld [vmem:[#allocation22 + $0xda0] ss:$16 sps:$4 sm:$0xff]  }
0x1d28   :  { %v20201_v47 = vpack.c.bf16 %v10698_v63, %v10682_v11  ;;  %14074 = vmatpush1.bf16.msra.mxu0 %v18055_v12  ;;  %v18100_v16 = vld [vmem:[#allocation22 + $0xfa0] ss:$16 sps:$4 sm:$0xff]   ;;  %v18105_v12 = vld [vmem:[#allocation22 + $0xd84] ss:$16 sps:$4 sm:$0xff]  }
0x1d29   :  { %14117 = vmatpush1.bf16.msra.mxu1 %v18058_v56  ;;  %14075 = vmatprep.subr.bf16.mxu0 %v18063_v5  ;;  %v18108_v56 = vld [vmem:[#allocation22 + $0xf84] ss:$16 sps:$4 sm:$0xff]   ;;  %v18103_v5 = vld [vmem:[#allocation22 + $0xd80] ss:$16 sps:$4 sm:$0xff]  }
0x1d2a   :  { %14142 = vmatprep.mubr.bf16.mxu1 %v20201_v47  ;;  %14118 = vmatprep.subr.bf16.mxu1 %v18066_v0  ;;  %v18106_v11 = vld [vmem:[#allocation22 + $0xf80] ss:$16 sps:$4 sm:$0xff]   ;;  %v18111_v63 = vld [vmem:[#allocation22 + $0xd64] ss:$16 sps:$4 sm:$0xff]  }
0x1d2b   :  { %v18114_v0 = vld [vmem:[#allocation22 + $0xf64] ss:$16 sps:$4 sm:$0xff]  }
0x1d2c   :  { %14076 = vmatpush1.bf16.msra.mxu0 %v18061_v17  ;;  %v18109_v17 = vld [vmem:[#allocation22 + $0xd60] ss:$16 sps:$4 sm:$0xff]  }
0x1d2d   :  { %14119 = vmatpush1.bf16.msra.mxu1 %v18064_v43  ;;  %14077 = vmatprep.subr.bf16.mxu0 %v18069_v49  ;;  %v18112_v43 = vld [vmem:[#allocation22 + $0xf60] ss:$16 sps:$4 sm:$0xff]   ;;  %v18117_v49 = vld [vmem:[#allocation22 + $0xd44] ss:$16 sps:$4 sm:$0xff]  }
0x1d2e   :  { %14120 = vmatprep.subr.bf16.mxu1 %v18072_v51  ;;  %v18120_v51 = vld [vmem:[#allocation22 + $0xf44] ss:$16 sps:$4 sm:$0xff]  }
0x1d30   :  { %14078 = vmatpush1.bf16.msra.mxu0 %v18067_v36  ;;  %v18624_v36 = vld [vmem:[#allocation20 + $0x8] sm:$0xff] }
0x1d31   :  { %14121 = vmatpush1.bf16.msra.mxu1 %v18070_v53  ;;  %14079 = vmatprep.subr.bf16.mxu0 %v18075_v13  ;;  %v7398_v53 = vrot.slane %v18624_v36, %v20500_v10  ;;  %v18115_v13 = vld [vmem:[#allocation22 + $0xd40] ss:$16 sps:$4 sm:$0xff]   ;;  %v18165_v36 = vld [vmem:[#allocation22 + $0x4c] ss:$16 sps:$4 sm:$0xff]  }
0x1d32   :  { %14122 = vmatprep.subr.bf16.mxu1 %v18078_v15  ;;  %v18118_v15 = vld [vmem:[#allocation22 + $0xf40] ss:$16 sps:$4 sm:$0xff]  }
0x1d34   :  { %14080 = vmatpush1.bf16.msra.mxu0 %v18073_v32  ;;  %v18123_v32 = vld [vmem:[#allocation22 + $0xd24] ss:$16 sps:$4 sm:$0xff]  }
0x1d35   :  { %14123 = vmatpush1.bf16.msra.mxu1 %v18076_v2  ;;  %14081 = vmatprep.subr.bf16.mxu0 %v18081_v29  ;;  %v10620_v2 = vadd.f32 %v20197_v60, %v7398_v53  ;;  %v18126_v29 = vld [vmem:[#allocation22 + $0xf24] ss:$16 sps:$4 sm:$0xff]   ;;  %v18130_v60 = vld [vmem:[#allocation22 + $0xf00] ss:$16 sps:$4 sm:$0xff]  }
0x1d36   :  { %14124 = vmatprep.subr.bf16.mxu1 %v18084_v3  ;;  %v10616_v3 = vadd.f32 %v20190_v39, %v7398_v53  ;;  %v18138_v39 = vld [vmem:[#allocation22 + $0x2ec] ss:$16 sps:$4 sm:$0xff]  }
0x1d37   :  { %v10663_v10 = vadd.f32 %v20199_v6, %v10620_v2  ;;  %v18168_v53 = vld [vmem:[#allocation22 + $0x24c] ss:$16 sps:$4 sm:$0xff]  }
0x1d38   :  { %14082 = vmatpush1.bf16.msra.mxu0 %v18079_v35  ;;  %v18121_v35 = vld [vmem:[#allocation22 + $0xd20] ss:$16 sps:$4 sm:$0xff]   ;;  %v18174_v2 = vld [vmem:[#allocation22 + $0x22c] ss:$16 sps:$4 sm:$0xff]  }
0x1d39   :  { %14125 = vmatpush1.bf16.msra.mxu1 %v18082_v34  ;;  %14083 = vmatprep.subr.bf16.mxu0 %v18087_v7  ;;  %v18124_v34 = vld [vmem:[#allocation22 + $0xf20] ss:$16 sps:$4 sm:$0xff]   ;;  %v18129_v7 = vld [vmem:[#allocation22 + $0xd04] ss:$16 sps:$4 sm:$0xff]  }
0x1d3a   :  { %14126 = vmatprep.subr.bf16.mxu1 %v18090_v37  ;;  %v18132_v37 = vld [vmem:[#allocation22 + $0xf04] ss:$16 sps:$4 sm:$0xff]  }
0x1d3c   :  { %14084 = vmatpush2.bf16.msra.mxu0 %v18085_v4  ;;  %v10659_v4 = vadd.f32 %v20193_v42, %v10616_v3  ;;  %v18144_v42 = vld [vmem:[#allocation22 + $0x2cc] ss:$16 sps:$4 sm:$0xff]   ;;  %v18172_v3 = vld [vmem:[#allocation22 + $0x228] ss:$16 sps:$4 sm:$0xff]  }
0x1d3d   :  { %14127 = vmatpush2.bf16.msra.mxu1 %v18088_v25  ;;  %14085 = vmatprep.subr.bf16.mxu0 %v18093_v21  ;;  %v18127_v25 = vld [vmem:[#allocation22 + $0xd00] ss:$16 sps:$4 sm:$0xff]   ;;  %v18135_v21 = vld [vmem:[#allocation22 + $0xec] ss:$16 sps:$4 sm:$0xff]  }
0x1d3e   :  { %14128 = vmatprep.subr.bf16.mxu1 %v18096_v38  ;;  %v10697_v38 = vmax.f32 %v10663_v10, 0.0  ;;  %v18178_v10 = vld [vmem:[#allocation22 + $0x208] ss:$16 sps:$4 sm:$0xff]  }
0x1d40   :  { %14086 = vmatpush2.bf16.msra.mxu0 %v18091_v57  ;;  %v10681_v57 = vmax.f32 %v10659_v4, 0.0  ;;  %v18186_v4 = vld [vmem:[#allocation22 + $0x3ec] ss:$16 sps:$4 sm:$0xff]  }
0x1d41   :  { %14129 = vmatpush2.bf16.msra.mxu1 %v18094_v30  ;;  %14087 = vmatprep.subr.bf16.mxu0 %v18099_v59  ;;  %v18133_v30 = vld [vmem:[#allocation22 + $0xe8] ss:$16 sps:$4 sm:$0xff]  }
0x1d42   :  { %14130 = vmatprep.subr.bf16.mxu1 %v18102_v18  ;;  %v18136_v59 = vld [vmem:[#allocation22 + $0x2e8] ss:$16 sps:$4 sm:$0xff]   ;;  %v20209_v6 = vpack.c.bf16 %v10697_v38, %v10681_v57  ;;  %v18141_v18 = vld [vmem:[#allocation22 + $0xcc] ss:$16 sps:$4 sm:$0xff]  }
0x1d43   :  { %v18192_v38 = vld [vmem:[#allocation22 + $0x3cc] ss:$16 sps:$4 sm:$0xff]   ;;  %v18190_v57 = vld [vmem:[#allocation22 + $0x3c8] ss:$16 sps:$4 sm:$0xff]  }
0x1d44   :  { %14088 = vmatpush2.bf16.msra.mxu0 %v18097_v40  ;;  %v18139_v40 = vld [vmem:[#allocation22 + $0xc8] ss:$16 sps:$4 sm:$0xff]  }
0x1d45   :  { %14131 = vmatpush2.bf16.msra.mxu1 %v18100_v16  ;;  %14089 = vmatprep.subr.bf16.mxu0 %v18105_v12  ;;  %v18142_v16 = vld [vmem:[#allocation22 + $0x2c8] ss:$16 sps:$4 sm:$0xff]   ;;  %v18147_v12 = vld [vmem:[#allocation22 + $0xac] ss:$16 sps:$4 sm:$0xff]  }
0x1d46   :  { %14132 = vmatprep.subr.bf16.mxu1 %v18108_v56  ;;  %v18150_v56 = vld [vmem:[#allocation22 + $0x2ac] ss:$16 sps:$4 sm:$0xff]  }
0x1d48   :  { %14090 = vmatpush2.bf16.msra.mxu0 %v18103_v5  ;;  %v18145_v5 = vld [vmem:[#allocation22 + $0xa8] ss:$16 sps:$4 sm:$0xff]  }
0x1d49   :  { %14133 = vmatpush2.bf16.msra.mxu1 %v18106_v11  ;;  %14091 = vmatprep.subr.bf16.mxu0 %v18111_v63  ;;  %v18148_v11 = vld [vmem:[#allocation22 + $0x2a8] ss:$16 sps:$4 sm:$0xff]   ;;  %v18153_v63 = vld [vmem:[#allocation22 + $0x8c] ss:$16 sps:$4 sm:$0xff]  }
0x1d4a   :  { %14134 = vmatprep.subr.bf16.mxu1 %v18114_v0  ;;  %v18156_v0 = vld [vmem:[#allocation22 + $0x28c] ss:$16 sps:$4 sm:$0xff]  }
0x1d4c   :  { %14092 = vmatpush2.bf16.msra.mxu0 %v18109_v17  ;;  %v18151_v17 = vld [vmem:[#allocation22 + $0x88] ss:$16 sps:$4 sm:$0xff]  }
0x1d4d   :  { %14135 = vmatpush2.bf16.msra.mxu1 %v18112_v43  ;;  %14093 = vmatprep.subr.bf16.mxu0 %v18117_v49  ;;  %v18159_v43 = vld [vmem:[#allocation22 + $0x6c] ss:$16 sps:$4 sm:$0xff]  }
0x1d4e   :  { %14136 = vmatprep.subr.bf16.mxu1 %v18120_v51  ;;  %v18162_v49 = vld [vmem:[#allocation22 + $0x26c] ss:$16 sps:$4 sm:$0xff]   ;;  %v18160_v51 = vld [vmem:[#allocation22 + $0x268] ss:$16 sps:$4 sm:$0xff]  }
0x1d50   :  { %14094 = vmatpush2.bf16.msra.mxu0 %v18115_v13  ;;  %v18163_v13 = vld [vmem:[#allocation22 + $0x48] ss:$16 sps:$4 sm:$0xff]  }
0x1d51   :  { %14137 = vmatpush2.bf16.msra.mxu1 %v18118_v15  ;;  %14095 = vmatprep.subr.bf16.mxu0 %v18123_v32  ;;  %v18166_v15 = vld [vmem:[#allocation22 + $0x248] ss:$16 sps:$4 sm:$0xff]   ;;  %v18171_v32 = vld [vmem:[#allocation22 + $0x2c] ss:$16 sps:$4 sm:$0xff]  }
0x1d52   :  { %14138 = vmatprep.subr.bf16.mxu1 %v18126_v29  ;;  %v18169_v29 = vld [vmem:[#allocation22 + $0x28] ss:$16 sps:$4 sm:$0xff]  }
0x1d54   :  { %14096 = vmatpush2.bf16.msra.mxu0 %v18121_v35  ;;  %v18177_v35 = vld [vmem:[#allocation22 + $0xc] ss:$16 sps:$4 sm:$0xff]  }
0x1d55   :  { %14139 = vmatpush2.bf16.msra.mxu1 %v18124_v34  ;;  %14097 = vmatprep.subr.bf16.mxu0 %v18129_v7  ;;  %v18180_v34 = vld [vmem:[#allocation22 + $0x20c] ss:$16 sps:$4 sm:$0xff]   ;;  %v18175_v7 = vld [vmem:[#allocation22 + $0x8] ss:$16 sps:$4 sm:$0xff]  }
0x1d56   :  { %14140 = vmatprep.subr.bf16.mxu1 %v18132_v37  ;;  %v18183_v37 = vld [vmem:[#allocation22 + $0x1ec] ss:$16 sps:$4 sm:$0xff]  }
0x1d58   :  { %14098 = vmatpush2.bf16.msra.mxu0 %v18127_v25  ;;  %v18181_v25 = vld [vmem:[#allocation22 + $0x1e8] ss:$16 sps:$4 sm:$0xff]  }
0x1d59   :  { %14141 = vmatpush2.bf16.msra.mxu1 %v18130_v60  ;;  %14153 = vmatprep.subr.bf16.mxu0 %v18135_v21  ;;  %v18184_v60 = vld [vmem:[#allocation22 + $0x3e8] ss:$16 sps:$4 sm:$0xff]   ;;  %v18189_v21 = vld [vmem:[#allocation22 + $0x1cc] ss:$16 sps:$4 sm:$0xff]  }
0x1d5a   :  { %14196 = vmatprep.subr.bf16.mxu1 %v18138_v39  ;;  %v18187_v39 = vld [vmem:[#allocation22 + $0x1c8] ss:$16 sps:$4 sm:$0xff]  }
0x1d5b   :  { %14100 = vmatmul.mubr.bf16.vlgmr.msra.gmra.mxu0 %v20180_v41 }
0x1d5c   :  { %14143 = vmatmul.mubr.bf16.vlgmr.msra.gmra.mxu1 %v20209_v6  ;;  %14154 = vmatpush1.bf16.msra.mxu0 %v18133_v30  ;;  %v18195_v30 = vld [vmem:[#allocation22 + $0x1ac] ss:$16 sps:$4 sm:$0xff]  }
0x1d5d   :  { %14185 = vmatprep.mubr.bf16.mxu0 %v20110_v19  ;;  %14197 = vmatpush1.bf16.msra.mxu1 %v18136_v59  ;;  %v18154_v19 = vld [vmem:[#allocation22 + $0x288] ss:$16 sps:$4 sm:$0xff]   ;;  %v18198_v59 = vld [vmem:[#allocation22 + $0x3ac] ss:$16 sps:$4 sm:$0xff]  }
0x1d5e   :  { %14228 = vmatprep.mubr.bf16.mxu1 %v20113_v61  ;;  %14155 = vmatprep.subr.bf16.mxu0 %v18141_v18  ;;  %v18157_v61 = vld [vmem:[#allocation22 + $0x68] ss:$16 sps:$4 sm:$0xff]  }
0x1d5f   :  { %14198 = vmatprep.subr.bf16.mxu1 %v18144_v42  ;;  %v18193_v18 = vld [vmem:[#allocation22 + $0x1a8] ss:$16 sps:$4 sm:$0xff]  }
0x1d60   :  { %14156 = vmatpush1.bf16.msra.mxu0 %v18139_v40  ;;  %v18196_v42 = vld [vmem:[#allocation22 + $0x3a8] ss:$16 sps:$4 sm:$0xff]   ;;  %v18201_v40 = vld [vmem:[#allocation22 + $0x18c] ss:$16 sps:$4 sm:$0xff]  }
0x1d61   :  { %14199 = vmatpush1.bf16.msra.mxu1 %v18142_v16  ;;  %14157 = vmatprep.subr.bf16.mxu0 %v18147_v12  ;;  %v18204_v16 = vld [vmem:[#allocation22 + $0x38c] ss:$16 sps:$4 sm:$0xff]   ;;  %v18199_v12 = vld [vmem:[#allocation22 + $0x188] ss:$16 sps:$4 sm:$0xff]  }
0x1d62   :  { %14200 = vmatprep.subr.bf16.mxu1 %v18150_v56  ;;  %v18202_v56 = vld [vmem:[#allocation22 + $0x388] ss:$16 sps:$4 sm:$0xff]  }
0x1d64   :  { %14158 = vmatpush1.bf16.msra.mxu0 %v18145_v5  ;;  %v18207_v5 = vld [vmem:[#allocation22 + $0x16c] ss:$16 sps:$4 sm:$0xff]  }
0x1d65   :  { %14201 = vmatpush1.bf16.msra.mxu1 %v18148_v11  ;;  %14159 = vmatprep.subr.bf16.mxu0 %v18153_v63  ;;  %v18210_v11 = vld [vmem:[#allocation22 + $0x36c] ss:$16 sps:$4 sm:$0xff]   ;;  %v18205_v63 = vld [vmem:[#allocation22 + $0x168] ss:$16 sps:$4 sm:$0xff]  }
0x1d66   :  { %14202 = vmatprep.subr.bf16.mxu1 %v18156_v0  ;;  %v18208_v0 = vld [vmem:[#allocation22 + $0x368] ss:$16 sps:$4 sm:$0xff]  }
0x1d68   :  { %14160 = vmatpush1.bf16.msra.mxu0 %v18151_v17  ;;  %v18213_v17 = vld [vmem:[#allocation22 + $0x14c] ss:$16 sps:$4 sm:$0xff]  }
0x1d69   :  { %14203 = vmatpush1.bf16.msra.mxu1 %v18154_v19  ;;  %14161 = vmatprep.subr.bf16.mxu0 %v18159_v43  ;;  %v18216_v19 = vld [vmem:[#allocation22 + $0x34c] ss:$16 sps:$4 sm:$0xff]   ;;  %v18211_v43 = vld [vmem:[#allocation22 + $0x148] ss:$16 sps:$4 sm:$0xff]  }
0x1d6a   :  { %14204 = vmatprep.subr.bf16.mxu1 %v18162_v49  ;;  %v18214_v49 = vld [vmem:[#allocation22 + $0x348] ss:$16 sps:$4 sm:$0xff]  }
0x1d6c   :  { %14162 = vmatpush1.bf16.msra.mxu0 %v18157_v61  ;;  %v18219_v61 = vld [vmem:[#allocation22 + $0x12c] ss:$16 sps:$4 sm:$0xff]  }
0x1d6d   :  { %14205 = vmatpush1.bf16.msra.mxu1 %v18160_v51  ;;  %14163 = vmatprep.subr.bf16.mxu0 %v18165_v36  ;;  %v18222_v51 = vld [vmem:[#allocation22 + $0x32c] ss:$16 sps:$4 sm:$0xff]   ;;  %v18217_v36 = vld [vmem:[#allocation22 + $0x128] ss:$16 sps:$4 sm:$0xff]  }
0x1d6e   :  { %14206 = vmatprep.subr.bf16.mxu1 %v18168_v53  ;;  %v18220_v53 = vld [vmem:[#allocation22 + $0x328] ss:$16 sps:$4 sm:$0xff]  }
0x1d70   :  { %14164 = vmatpush1.bf16.msra.mxu0 %v18163_v13  ;;  %v18225_v13 = vld [vmem:[#allocation22 + $0x10c] ss:$16 sps:$4 sm:$0xff]  }
0x1d71   :  { %14207 = vmatpush1.bf16.msra.mxu1 %v18166_v15  ;;  %14165 = vmatprep.subr.bf16.mxu0 %v18171_v32  ;;  %v18228_v15 = vld [vmem:[#allocation22 + $0x30c] ss:$16 sps:$4 sm:$0xff]   ;;  %v18223_v32 = vld [vmem:[#allocation22 + $0x108] ss:$16 sps:$4 sm:$0xff]  }
0x1d72   :  { %14208 = vmatprep.subr.bf16.mxu1 %v18174_v2  ;;  %v18226_v2 = vld [vmem:[#allocation22 + $0x308] ss:$16 sps:$4 sm:$0xff]  }
0x1d74   :  { %14166 = vmatpush1.bf16.msra.mxu0 %v18169_v29  ;;  %v18231_v29 = vld [vmem:[#allocation22 + $0x4ec] ss:$16 sps:$4 sm:$0xff]  }
0x1d75   :  { %14209 = vmatpush1.bf16.msra.mxu1 %v18172_v3  ;;  %14167 = vmatprep.subr.bf16.mxu0 %v18177_v35  ;;  %v18234_v3 = vld [vmem:[#allocation22 + $0x6ec] ss:$16 sps:$4 sm:$0xff]   ;;  %v18229_v35 = vld [vmem:[#allocation22 + $0x4e8] ss:$16 sps:$4 sm:$0xff]  }
0x1d76   :  { %14210 = vmatprep.subr.bf16.mxu1 %v18180_v34  ;;  %v18232_v34 = vld [vmem:[#allocation22 + $0x6e8] ss:$16 sps:$4 sm:$0xff]  }
0x1d78   :  { %14168 = vmatpush1.bf16.msra.mxu0 %v18175_v7  ;;  %v18237_v7 = vld [vmem:[#allocation22 + $0x4cc] ss:$16 sps:$4 sm:$0xff]  }
0x1d79   :  { %14211 = vmatpush1.bf16.msra.mxu1 %v18178_v10  ;;  %14169 = vmatprep.subr.bf16.mxu0 %v18183_v37  ;;  %v18240_v10 = vld [vmem:[#allocation22 + $0x6cc] ss:$16 sps:$4 sm:$0xff]   ;;  %v18235_v37 = vld [vmem:[#allocation22 + $0x4c8] ss:$16 sps:$4 sm:$0xff]  }
0x1d7a   :  { %14212 = vmatprep.subr.bf16.mxu1 %v18186_v4  ;;  %v18238_v4 = vld [vmem:[#allocation22 + $0x6c8] ss:$16 sps:$4 sm:$0xff]  }
0x1d7c   :  { %14170 = vmatpush2.bf16.msra.mxu0 %v18181_v25  ;;  %v18243_v25 = vld [vmem:[#allocation22 + $0x4ac] ss:$16 sps:$4 sm:$0xff]  }
0x1d7d   :  { %14213 = vmatpush2.bf16.msra.mxu1 %v18184_v60  ;;  %14171 = vmatprep.subr.bf16.mxu0 %v18189_v21  ;;  %v18246_v60 = vld [vmem:[#allocation22 + $0x6ac] ss:$16 sps:$4 sm:$0xff]   ;;  %v18241_v21 = vld [vmem:[#allocation22 + $0x4a8] ss:$16 sps:$4 sm:$0xff]  }
0x1d7e   :  { %14214 = vmatprep.subr.bf16.mxu1 %v18192_v38  ;;  %v18249_v38 = vld [vmem:[#allocation22 + $0x48c] ss:$16 sps:$4 sm:$0xff]  }
0x1d80   :  { %14172 = vmatpush2.bf16.msra.mxu0 %v18187_v39  ;;  %v18247_v39 = vld [vmem:[#allocation22 + $0x488] ss:$16 sps:$4 sm:$0xff]  }
0x1d81   :  { %14215 = vmatpush2.bf16.msra.mxu1 %v18190_v57  ;;  %14173 = vmatprep.subr.bf16.mxu0 %v18195_v30  ;;  %v18255_v57 = vld [vmem:[#allocation22 + $0x46c] ss:$16 sps:$4 sm:$0xff]  }
0x1d82   :  { %14216 = vmatprep.subr.bf16.mxu1 %v18198_v59  ;;  %v18258_v30 = vld [vmem:[#allocation22 + $0x66c] ss:$16 sps:$4 sm:$0xff]   ;;  %v18256_v59 = vld [vmem:[#allocation22 + $0x668] ss:$16 sps:$4 sm:$0xff]  }
0x1d84   :  { %14174 = vmatpush2.bf16.msra.mxu0 %v18193_v18  ;;  %v18261_v18 = vld [vmem:[#allocation22 + $0x44c] ss:$16 sps:$4 sm:$0xff]  }
0x1d85   :  { %14217 = vmatpush2.bf16.msra.mxu1 %v18196_v42  ;;  %14175 = vmatprep.subr.bf16.mxu0 %v18201_v40  ;;  %v18264_v42 = vld [vmem:[#allocation22 + $0x64c] ss:$16 sps:$4 sm:$0xff]   ;;  %v18259_v40 = vld [vmem:[#allocation22 + $0x448] ss:$16 sps:$4 sm:$0xff]  }
0x1d86   :  { %14218 = vmatprep.subr.bf16.mxu1 %v18204_v16  ;;  %v18262_v16 = vld [vmem:[#allocation22 + $0x648] ss:$16 sps:$4 sm:$0xff]  }
0x1d88   :  { %14176 = vmatpush2.bf16.msra.mxu0 %v18199_v12  ;;  %v18267_v12 = vld [vmem:[#allocation22 + $0x42c] ss:$16 sps:$4 sm:$0xff]  }
0x1d89   :  { %14219 = vmatpush2.bf16.msra.mxu1 %v18202_v56  ;;  %14177 = vmatprep.subr.bf16.mxu0 %v18207_v5  ;;  %v18270_v56 = vld [vmem:[#allocation22 + $0x62c] ss:$16 sps:$4 sm:$0xff]   ;;  %v18265_v5 = vld [vmem:[#allocation22 + $0x428] ss:$16 sps:$4 sm:$0xff]  }
0x1d8a   :  { %14220 = vmatprep.subr.bf16.mxu1 %v18210_v11  ;;  %v18268_v11 = vld [vmem:[#allocation22 + $0x628] ss:$16 sps:$4 sm:$0xff]  }
0x1d8c   :  { %14178 = vmatpush2.bf16.msra.mxu0 %v18205_v63  ;;  %v18273_v63 = vld [vmem:[#allocation22 + $0x40c] ss:$16 sps:$4 sm:$0xff]  }
0x1d8d   :  { %14221 = vmatpush2.bf16.msra.mxu1 %v18208_v0  ;;  %14179 = vmatprep.subr.bf16.mxu0 %v18213_v17  ;;  %v18276_v0 = vld [vmem:[#allocation22 + $0x60c] ss:$16 sps:$4 sm:$0xff]   ;;  %v18271_v17 = vld [vmem:[#allocation22 + $0x408] ss:$16 sps:$4 sm:$0xff]  }
0x1d8e   :  { %14222 = vmatprep.subr.bf16.mxu1 %v18216_v19  ;;  %v18274_v19 = vld [vmem:[#allocation22 + $0x608] ss:$16 sps:$4 sm:$0xff]  }
0x1d90   :  { %14180 = vmatpush2.bf16.msra.mxu0 %v18211_v43  ;;  %v18279_v43 = vld [vmem:[#allocation22 + $0x5ec] ss:$16 sps:$4 sm:$0xff]  }
0x1d91   :  { %14223 = vmatpush2.bf16.msra.mxu1 %v18214_v49  ;;  %14181 = vmatprep.subr.bf16.mxu0 %v18219_v61  ;;  %v18282_v49 = vld [vmem:[#allocation22 + $0x7ec] ss:$16 sps:$4 sm:$0xff]   ;;  %v18277_v61 = vld [vmem:[#allocation22 + $0x5e8] ss:$16 sps:$4 sm:$0xff]  }
0x1d92   :  { %14224 = vmatprep.subr.bf16.mxu1 %v18222_v51  ;;  %v18280_v51 = vld [vmem:[#allocation22 + $0x7e8] ss:$16 sps:$4 sm:$0xff]  }
0x1d94   :  { %14182 = vmatpush2.bf16.msra.mxu0 %v18217_v36  ;;  %v18285_v36 = vld [vmem:[#allocation22 + $0x5cc] ss:$16 sps:$4 sm:$0xff]  }
0x1d95   :  { %14225 = vmatpush2.bf16.msra.mxu1 %v18220_v53  ;;  %14183 = vmatprep.subr.bf16.mxu0 %v18225_v13  ;;  %v18288_v53 = vld [vmem:[#allocation22 + $0x7cc] ss:$16 sps:$4 sm:$0xff]   ;;  %v18283_v13 = vld [vmem:[#allocation22 + $0x5c8] ss:$16 sps:$4 sm:$0xff]  }
0x1d96   :  { %14226 = vmatprep.subr.bf16.mxu1 %v18228_v15  ;;  %v18286_v15 = vld [vmem:[#allocation22 + $0x7c8] ss:$16 sps:$4 sm:$0xff]  }
0x1d98   :  { %14184 = vmatpush2.bf16.msra.mxu0 %v18223_v32  ;;  %v18291_v32 = vld [vmem:[#allocation22 + $0x5ac] ss:$16 sps:$4 sm:$0xff]  }
0x1d99   :  { %14227 = vmatpush2.bf16.msra.mxu1 %v18226_v2  ;;  %14239 = vmatprep.subr.bf16.mxu0 %v18231_v29  ;;  %v18294_v2 = vld [vmem:[#allocation22 + $0x7ac] ss:$16 sps:$4 sm:$0xff]   ;;  %v18289_v29 = vld [vmem:[#allocation22 + $0x5a8] ss:$16 sps:$4 sm:$0xff]  }
0x1d9a   :  { %14282 = vmatprep.subr.bf16.mxu1 %v18234_v3  ;;  %v18292_v3 = vld [vmem:[#allocation22 + $0x7a8] ss:$16 sps:$4 sm:$0xff]  }
0x1d9b   :  { %14186 = vmatmul.mubr.bf16.vlgmr.msra.gmra.mxu0 %v20038_v1  ;;  %v18244_v1 = vld [vmem:[#allocation22 + $0x6a8] ss:$16 sps:$4 sm:$0xff]  }
0x1d9c   :  { %14229 = vmatmul.mubr.bf16.vlgmr.msra.gmra.mxu1 %v20054_v48  ;;  %14240 = vmatpush1.bf16.msra.mxu0 %v18229_v35  ;;  %v18252_v48 = vld [vmem:[#allocation22 + $0x68c] ss:$16 sps:$4 sm:$0xff]  }
0x1d9d   :  { %14271 = vmatprep.mubr.bf16.mxu0 %v20142_v54  ;;  %14283 = vmatpush1.bf16.msra.mxu1 %v18232_v34  ;;  %v18250_v54 = vld [vmem:[#allocation22 + $0x688] ss:$16 sps:$4 sm:$0xff]   ;;  %v18297_v35 = vld [vmem:[#allocation22 + $0x58c] ss:$16 sps:$4 sm:$0xff]  }
0x1d9e   :  { %14314 = vmatprep.mubr.bf16.mxu1 %v20145_v8  ;;  %14241 = vmatprep.subr.bf16.mxu0 %v18237_v7  ;;  %v18253_v8 = vld [vmem:[#allocation22 + $0x468] ss:$16 sps:$4 sm:$0xff]   ;;  %v18300_v34 = vld [vmem:[#allocation22 + $0x78c] ss:$16 sps:$4 sm:$0xff]  }
0x1d9f   :  { %14284 = vmatprep.subr.bf16.mxu1 %v18240_v10  ;;  %v18295_v7 = vld [vmem:[#allocation22 + $0x588] ss:$16 sps:$4 sm:$0xff]  }
0x1da0   :  { %14242 = vmatpush1.bf16.msra.mxu0 %v18235_v37  ;;  %v18298_v10 = vld [vmem:[#allocation22 + $0x788] ss:$16 sps:$4 sm:$0xff]   ;;  %v18303_v37 = vld [vmem:[#allocation22 + $0x56c] ss:$16 sps:$4 sm:$0xff]  }
0x1da1   :  { %14285 = vmatpush1.bf16.msra.mxu1 %v18238_v4  ;;  %14243 = vmatprep.subr.bf16.mxu0 %v18243_v25  ;;  %v18306_v4 = vld [vmem:[#allocation22 + $0x76c] ss:$16 sps:$4 sm:$0xff]   ;;  %v18301_v25 = vld [vmem:[#allocation22 + $0x568] ss:$16 sps:$4 sm:$0xff]  }
0x1da2   :  { %14286 = vmatprep.subr.bf16.mxu1 %v18246_v60  ;;  %v18304_v60 = vld [vmem:[#allocation22 + $0x768] ss:$16 sps:$4 sm:$0xff]  }
0x1da4   :  { %14244 = vmatpush1.bf16.msra.mxu0 %v18241_v21  ;;  %v18309_v21 = vld [vmem:[#allocation22 + $0x54c] ss:$16 sps:$4 sm:$0xff]  }
0x1da5   :  { %14287 = vmatpush1.bf16.msra.mxu1 %v18244_v1  ;;  %14245 = vmatprep.subr.bf16.mxu0 %v18249_v38  ;;  %v18312_v1 = vld [vmem:[#allocation22 + $0x74c] ss:$16 sps:$4 sm:$0xff]   ;;  %v18307_v38 = vld [vmem:[#allocation22 + $0x548] ss:$16 sps:$4 sm:$0xff]  }
0x1da6   :  { %14288 = vmatprep.subr.bf16.mxu1 %v18252_v48  ;;  %v18310_v48 = vld [vmem:[#allocation22 + $0x748] ss:$16 sps:$4 sm:$0xff]  }
0x1da8   :  { %14246 = vmatpush1.bf16.msra.mxu0 %v18247_v39  ;;  %v18315_v39 = vld [vmem:[#allocation22 + $0x52c] ss:$16 sps:$4 sm:$0xff]  }
0x1da9   :  { %14289 = vmatpush1.bf16.msra.mxu1 %v18250_v54  ;;  %14247 = vmatprep.subr.bf16.mxu0 %v18255_v57  ;;  %v18318_v54 = vld [vmem:[#allocation22 + $0x72c] ss:$16 sps:$4 sm:$0xff]   ;;  %v18313_v57 = vld [vmem:[#allocation22 + $0x528] ss:$16 sps:$4 sm:$0xff]  }
0x1daa   :  { %14290 = vmatprep.subr.bf16.mxu1 %v18258_v30  ;;  %v18316_v30 = vld [vmem:[#allocation22 + $0x728] ss:$16 sps:$4 sm:$0xff]  }
0x1dac   :  { %14248 = vmatpush1.bf16.msra.mxu0 %v18253_v8  ;;  %v18321_v8 = vld [vmem:[#allocation22 + $0x50c] ss:$16 sps:$4 sm:$0xff]  }
0x1dad   :  { %14291 = vmatpush1.bf16.msra.mxu1 %v18256_v59  ;;  %14249 = vmatprep.subr.bf16.mxu0 %v18261_v18  ;;  %v18324_v59 = vld [vmem:[#allocation22 + $0x70c] ss:$16 sps:$4 sm:$0xff]   ;;  %v18319_v18 = vld [vmem:[#allocation22 + $0x508] ss:$16 sps:$4 sm:$0xff]  }
0x1dae   :  { %14292 = vmatprep.subr.bf16.mxu1 %v18264_v42  ;;  %v18322_v42 = vld [vmem:[#allocation22 + $0x708] ss:$16 sps:$4 sm:$0xff]  }
0x1db0   :  { %14250 = vmatpush1.bf16.msra.mxu0 %v18259_v40  ;;  %v18327_v40 = vld [vmem:[#allocation22 + $0x8ec] ss:$16 sps:$4 sm:$0xff]  }
0x1db1   :  { %14293 = vmatpush1.bf16.msra.mxu1 %v18262_v16  ;;  %14251 = vmatprep.subr.bf16.mxu0 %v18267_v12  ;;  %v18330_v16 = vld [vmem:[#allocation22 + $0xaec] ss:$16 sps:$4 sm:$0xff]   ;;  %v18325_v12 = vld [vmem:[#allocation22 + $0x8e8] ss:$16 sps:$4 sm:$0xff]  }
0x1db2   :  { %14294 = vmatprep.subr.bf16.mxu1 %v18270_v56  ;;  %v18328_v56 = vld [vmem:[#allocation22 + $0xae8] ss:$16 sps:$4 sm:$0xff]  }
0x1db4   :  { %14252 = vmatpush1.bf16.msra.mxu0 %v18265_v5  ;;  %v18333_v5 = vld [vmem:[#allocation22 + $0x8cc] ss:$16 sps:$4 sm:$0xff]  }
0x1db5   :  { %14295 = vmatpush1.bf16.msra.mxu1 %v18268_v11  ;;  %14253 = vmatprep.subr.bf16.mxu0 %v18273_v63  ;;  %v18336_v11 = vld [vmem:[#allocation22 + $0xacc] ss:$16 sps:$4 sm:$0xff]   ;;  %v18331_v63 = vld [vmem:[#allocation22 + $0x8c8] ss:$16 sps:$4 sm:$0xff]  }
0x1db6   :  { %14296 = vmatprep.subr.bf16.mxu1 %v18276_v0  ;;  %v18334_v0 = vld [vmem:[#allocation22 + $0xac8] ss:$16 sps:$4 sm:$0xff]  }
0x1db8   :  { %14254 = vmatpush1.bf16.msra.mxu0 %v18271_v17  ;;  %v18339_v17 = vld [vmem:[#allocation22 + $0x8ac] ss:$16 sps:$4 sm:$0xff]  }
0x1db9   :  { %14297 = vmatpush1.bf16.msra.mxu1 %v18274_v19  ;;  %14255 = vmatprep.subr.bf16.mxu0 %v18279_v43  ;;  %v18342_v19 = vld [vmem:[#allocation22 + $0xaac] ss:$16 sps:$4 sm:$0xff]   ;;  %v18337_v43 = vld [vmem:[#allocation22 + $0x8a8] ss:$16 sps:$4 sm:$0xff]  }
0x1dba   :  { %14298 = vmatprep.subr.bf16.mxu1 %v18282_v49  ;;  %v18345_v49 = vld [vmem:[#allocation22 + $0x88c] ss:$16 sps:$4 sm:$0xff]  }
0x1dbc   :  { %14256 = vmatpush2.bf16.msra.mxu0 %v18277_v61  ;;  %v18343_v61 = vld [vmem:[#allocation22 + $0x888] ss:$16 sps:$4 sm:$0xff]  }
0x1dbd   :  { %14299 = vmatpush2.bf16.msra.mxu1 %v18280_v51  ;;  %14257 = vmatprep.subr.bf16.mxu0 %v18285_v36  ;;  %v18351_v51 = vld [vmem:[#allocation22 + $0x86c] ss:$16 sps:$4 sm:$0xff]  }
0x1dbe   :  { %14300 = vmatprep.subr.bf16.mxu1 %v18288_v53  ;;  %v18354_v36 = vld [vmem:[#allocation22 + $0xa6c] ss:$16 sps:$4 sm:$0xff]   ;;  %v18352_v53 = vld [vmem:[#allocation22 + $0xa68] ss:$16 sps:$4 sm:$0xff]  }
0x1dc0   :  { %14258 = vmatpush2.bf16.msra.mxu0 %v18283_v13  ;;  %v18357_v13 = vld [vmem:[#allocation22 + $0x84c] ss:$16 sps:$4 sm:$0xff]  }
0x1dc1   :  { %14301 = vmatpush2.bf16.msra.mxu1 %v18286_v15  ;;  %14259 = vmatprep.subr.bf16.mxu0 %v18291_v32  ;;  %v18360_v15 = vld [vmem:[#allocation22 + $0xa4c] ss:$16 sps:$4 sm:$0xff]   ;;  %v18355_v32 = vld [vmem:[#allocation22 + $0x848] ss:$16 sps:$4 sm:$0xff]  }
0x1dc2   :  { %14302 = vmatprep.subr.bf16.mxu1 %v18294_v2  ;;  %v18358_v2 = vld [vmem:[#allocation22 + $0xa48] ss:$16 sps:$4 sm:$0xff]  }
0x1dc4   :  { %14260 = vmatpush2.bf16.msra.mxu0 %v18289_v29  ;;  %v18363_v29 = vld [vmem:[#allocation22 + $0x82c] ss:$16 sps:$4 sm:$0xff]  }
0x1dc5   :  { %14303 = vmatpush2.bf16.msra.mxu1 %v18292_v3  ;;  %14261 = vmatprep.subr.bf16.mxu0 %v18297_v35  ;;  %v18366_v3 = vld [vmem:[#allocation22 + $0xa2c] ss:$16 sps:$4 sm:$0xff]   ;;  %v18361_v35 = vld [vmem:[#allocation22 + $0x828] ss:$16 sps:$4 sm:$0xff]  }
0x1dc6   :  { %14304 = vmatprep.subr.bf16.mxu1 %v18300_v34  ;;  %v18364_v34 = vld [vmem:[#allocation22 + $0xa28] ss:$16 sps:$4 sm:$0xff]  }
0x1dc8   :  { %14262 = vmatpush2.bf16.msra.mxu0 %v18295_v7  ;;  %v18369_v7 = vld [vmem:[#allocation22 + $0x80c] ss:$16 sps:$4 sm:$0xff]  }
0x1dc9   :  { %14305 = vmatpush2.bf16.msra.mxu1 %v18298_v10  ;;  %14263 = vmatprep.subr.bf16.mxu0 %v18303_v37  ;;  %v18372_v10 = vld [vmem:[#allocation22 + $0xa0c] ss:$16 sps:$4 sm:$0xff]   ;;  %v18367_v37 = vld [vmem:[#allocation22 + $0x808] ss:$16 sps:$4 sm:$0xff]  }
0x1dca   :  { %14306 = vmatprep.subr.bf16.mxu1 %v18306_v4  ;;  %v18370_v4 = vld [vmem:[#allocation22 + $0xa08] ss:$16 sps:$4 sm:$0xff]  }
0x1dcc   :  { %14264 = vmatpush2.bf16.msra.mxu0 %v18301_v25  ;;  %v18375_v25 = vld [vmem:[#allocation22 + $0x9ec] ss:$16 sps:$4 sm:$0xff]  }
0x1dcd   :  { %14307 = vmatpush2.bf16.msra.mxu1 %v18304_v60  ;;  %14265 = vmatprep.subr.bf16.mxu0 %v18309_v21  ;;  %v18378_v60 = vld [vmem:[#allocation22 + $0xbec] ss:$16 sps:$4 sm:$0xff]   ;;  %v18373_v21 = vld [vmem:[#allocation22 + $0x9e8] ss:$16 sps:$4 sm:$0xff]  }
0x1dce   :  { %14308 = vmatprep.subr.bf16.mxu1 %v18312_v1  ;;  %v18376_v1 = vld [vmem:[#allocation22 + $0xbe8] ss:$16 sps:$4 sm:$0xff]  }
0x1dd0   :  { %14266 = vmatpush2.bf16.msra.mxu0 %v18307_v38  ;;  %v18381_v38 = vld [vmem:[#allocation22 + $0x9cc] ss:$16 sps:$4 sm:$0xff]  }
0x1dd1   :  { %14309 = vmatpush2.bf16.msra.mxu1 %v18310_v48  ;;  %14267 = vmatprep.subr.bf16.mxu0 %v18315_v39  ;;  %v18384_v48 = vld [vmem:[#allocation22 + $0xbcc] ss:$16 sps:$4 sm:$0xff]   ;;  %v18379_v39 = vld [vmem:[#allocation22 + $0x9c8] ss:$16 sps:$4 sm:$0xff]  }
0x1dd2   :  { %14310 = vmatprep.subr.bf16.mxu1 %v18318_v54  ;;  %v18382_v54 = vld [vmem:[#allocation22 + $0xbc8] ss:$16 sps:$4 sm:$0xff]  }
0x1dd4   :  { %14268 = vmatpush2.bf16.msra.mxu0 %v18313_v57  ;;  %v18387_v57 = vld [vmem:[#allocation22 + $0x9ac] ss:$16 sps:$4 sm:$0xff]  }
0x1dd5   :  { %14311 = vmatpush2.bf16.msra.mxu1 %v18316_v30  ;;  %14269 = vmatprep.subr.bf16.mxu0 %v18321_v8  ;;  %v18390_v30 = vld [vmem:[#allocation22 + $0xbac] ss:$16 sps:$4 sm:$0xff]   ;;  %v18385_v8 = vld [vmem:[#allocation22 + $0x9a8] ss:$16 sps:$4 sm:$0xff]  }
0x1dd6   :  { %14312 = vmatprep.subr.bf16.mxu1 %v18324_v59  ;;  %v18388_v59 = vld [vmem:[#allocation22 + $0xba8] ss:$16 sps:$4 sm:$0xff]  }
0x1dd8   :  { %14270 = vmatpush2.bf16.msra.mxu0 %v18319_v18  ;;  %v18393_v18 = vld [vmem:[#allocation22 + $0x98c] ss:$16 sps:$4 sm:$0xff]  }
0x1dd9   :  { %14313 = vmatpush2.bf16.msra.mxu1 %v18322_v42  ;;  %14325 = vmatprep.subr.bf16.mxu0 %v18327_v40  ;;  %v18396_v42 = vld [vmem:[#allocation22 + $0xb8c] ss:$16 sps:$4 sm:$0xff]   ;;  %v18391_v40 = vld [vmem:[#allocation22 + $0x988] ss:$16 sps:$4 sm:$0xff]  }
0x1dda   :  { %14368 = vmatprep.subr.bf16.mxu1 %v18330_v16  ;;  %v18394_v16 = vld [vmem:[#allocation22 + $0xb88] ss:$16 sps:$4 sm:$0xff]  }
0x1ddb   :  { %14272 = vmatmul.mubr.bf16.vlgmr.msra.gmra.mxu0 %v20070_v52  ;;  %v18340_v52 = vld [vmem:[#allocation22 + $0xaa8] ss:$16 sps:$4 sm:$0xff]  }
0x1ddc   :  { %14315 = vmatmul.mubr.bf16.vlgmr.msra.gmra.mxu1 %v20088_v33  ;;  %14326 = vmatpush1.bf16.msra.mxu0 %v18325_v12  ;;  %v18348_v33 = vld [vmem:[#allocation22 + $0xa8c] ss:$16 sps:$4 sm:$0xff]  }
0x1ddd   :  { %14357 = vmatprep.mubr.bf16.mxu0 %v20168_v27  ;;  %14369 = vmatpush1.bf16.msra.mxu1 %v18328_v56  ;;  %v18346_v27 = vld [vmem:[#allocation22 + $0xa88] ss:$16 sps:$4 sm:$0xff]   ;;  %v18399_v12 = vld [vmem:[#allocation22 + $0x96c] ss:$16 sps:$4 sm:$0xff]  }
0x1dde   :  { %14400 = vmatprep.mubr.bf16.mxu1 %v20171_v9  ;;  %14327 = vmatprep.subr.bf16.mxu0 %v18333_v5  ;;  %v18349_v9 = vld [vmem:[#allocation22 + $0x868] ss:$16 sps:$4 sm:$0xff]   ;;  %v18402_v56 = vld [vmem:[#allocation22 + $0xb6c] ss:$16 sps:$4 sm:$0xff]  }
0x1ddf   :  { %14370 = vmatprep.subr.bf16.mxu1 %v18336_v11  ;;  %v18397_v5 = vld [vmem:[#allocation22 + $0x968] ss:$16 sps:$4 sm:$0xff]  }
0x1de0   :  { %14328 = vmatpush1.bf16.msra.mxu0 %v18331_v63  ;;  %v18400_v11 = vld [vmem:[#allocation22 + $0xb68] ss:$16 sps:$4 sm:$0xff]   ;;  %v18405_v63 = vld [vmem:[#allocation22 + $0x94c] ss:$16 sps:$4 sm:$0xff]  }
0x1de1   :  { %14371 = vmatpush1.bf16.msra.mxu1 %v18334_v0  ;;  %14329 = vmatprep.subr.bf16.mxu0 %v18339_v17  ;;  %v18408_v0 = vld [vmem:[#allocation22 + $0xb4c] ss:$16 sps:$4 sm:$0xff]   ;;  %v18403_v17 = vld [vmem:[#allocation22 + $0x948] ss:$16 sps:$4 sm:$0xff]  }
0x1de2   :  { %14372 = vmatprep.subr.bf16.mxu1 %v18342_v19  ;;  %v18406_v19 = vld [vmem:[#allocation22 + $0xb48] ss:$16 sps:$4 sm:$0xff]  }
0x1de4   :  { %14330 = vmatpush1.bf16.msra.mxu0 %v18337_v43  ;;  %v18411_v43 = vld [vmem:[#allocation22 + $0x92c] ss:$16 sps:$4 sm:$0xff]  }
0x1de5   :  { %14373 = vmatpush1.bf16.msra.mxu1 %v18340_v52  ;;  %14331 = vmatprep.subr.bf16.mxu0 %v18345_v49  ;;  %v18414_v52 = vld [vmem:[#allocation22 + $0xb2c] ss:$16 sps:$4 sm:$0xff]   ;;  %v18409_v49 = vld [vmem:[#allocation22 + $0x928] ss:$16 sps:$4 sm:$0xff]  }
0x1de6   :  { %14374 = vmatprep.subr.bf16.mxu1 %v18348_v33  ;;  %v18412_v33 = vld [vmem:[#allocation22 + $0xb28] ss:$16 sps:$4 sm:$0xff]  }
0x1de8   :  { %14332 = vmatpush1.bf16.msra.mxu0 %v18343_v61  ;;  %v18417_v61 = vld [vmem:[#allocation22 + $0x90c] ss:$16 sps:$4 sm:$0xff]  }
0x1de9   :  { %14375 = vmatpush1.bf16.msra.mxu1 %v18346_v27  ;;  %14333 = vmatprep.subr.bf16.mxu0 %v18351_v51  ;;  %v18420_v27 = vld [vmem:[#allocation22 + $0xb0c] ss:$16 sps:$4 sm:$0xff]   ;;  %v18415_v51 = vld [vmem:[#allocation22 + $0x908] ss:$16 sps:$4 sm:$0xff]  }
0x1dea   :  { %14376 = vmatprep.subr.bf16.mxu1 %v18354_v36  ;;  %v18418_v36 = vld [vmem:[#allocation22 + $0xb08] ss:$16 sps:$4 sm:$0xff]  }
0x1dec   :  { %14334 = vmatpush1.bf16.msra.mxu0 %v18349_v9  ;;  %v18423_v9 = vld [vmem:[#allocation22 + $0xcec] ss:$16 sps:$4 sm:$0xff]  }
0x1ded   :  { %14377 = vmatpush1.bf16.msra.mxu1 %v18352_v53  ;;  %14335 = vmatprep.subr.bf16.mxu0 %v18357_v13  ;;  %v18426_v53 = vld [vmem:[#allocation22 + $0xeec] ss:$16 sps:$4 sm:$0xff]   ;;  %v18421_v13 = vld [vmem:[#allocation22 + $0xce8] ss:$16 sps:$4 sm:$0xff]  }
0x1dee   :  { %14378 = vmatprep.subr.bf16.mxu1 %v18360_v15  ;;  %v18424_v15 = vld [vmem:[#allocation22 + $0xee8] ss:$16 sps:$4 sm:$0xff]  }
0x1df0   :  { %14336 = vmatpush1.bf16.msra.mxu0 %v18355_v32  ;;  %v18429_v32 = vld [vmem:[#allocation22 + $0xccc] ss:$16 sps:$4 sm:$0xff]  }
0x1df1   :  { %14379 = vmatpush1.bf16.msra.mxu1 %v18358_v2  ;;  %14337 = vmatprep.subr.bf16.mxu0 %v18363_v29  ;;  %v18432_v2 = vld [vmem:[#allocation22 + $0xecc] ss:$16 sps:$4 sm:$0xff]   ;;  %v18427_v29 = vld [vmem:[#allocation22 + $0xcc8] ss:$16 sps:$4 sm:$0xff]  }
0x1df2   :  { %14380 = vmatprep.subr.bf16.mxu1 %v18366_v3  ;;  %v18430_v3 = vld [vmem:[#allocation22 + $0xec8] ss:$16 sps:$4 sm:$0xff]  }
0x1df4   :  { %14338 = vmatpush1.bf16.msra.mxu0 %v18361_v35  ;;  %v18435_v35 = vld [vmem:[#allocation22 + $0xcac] ss:$16 sps:$4 sm:$0xff]  }
0x1df5   :  { %14381 = vmatpush1.bf16.msra.mxu1 %v18364_v34  ;;  %14339 = vmatprep.subr.bf16.mxu0 %v18369_v7  ;;  %v18438_v34 = vld [vmem:[#allocation22 + $0xeac] ss:$16 sps:$4 sm:$0xff]   ;;  %v18433_v7 = vld [vmem:[#allocation22 + $0xca8] ss:$16 sps:$4 sm:$0xff]  }
0x1df6   :  { %14382 = vmatprep.subr.bf16.mxu1 %v18372_v10  ;;  %v18441_v10 = vld [vmem:[#allocation22 + $0xc8c] ss:$16 sps:$4 sm:$0xff]  }
0x1df8   :  { %14340 = vmatpush1.bf16.msra.mxu0 %v18367_v37  ;;  %v18439_v37 = vld [vmem:[#allocation22 + $0xc88] ss:$16 sps:$4 sm:$0xff]  }
0x1df9   :  { %14383 = vmatpush1.bf16.msra.mxu1 %v18370_v4  ;;  %14341 = vmatprep.subr.bf16.mxu0 %v18375_v25  ;;  %v18447_v4 = vld [vmem:[#allocation22 + $0xc6c] ss:$16 sps:$4 sm:$0xff]  }
0x1dfa   :  { %14384 = vmatprep.subr.bf16.mxu1 %v18378_v60  ;;  %v18450_v25 = vld [vmem:[#allocation22 + $0xe6c] ss:$16 sps:$4 sm:$0xff]   ;;  %v18448_v60 = vld [vmem:[#allocation22 + $0xe68] ss:$16 sps:$4 sm:$0xff]  }
0x1dfc   :  { %14342 = vmatpush2.bf16.msra.mxu0 %v18373_v21  ;;  %v18453_v21 = vld [vmem:[#allocation22 + $0xc4c] ss:$16 sps:$4 sm:$0xff]  }
0x1dfd   :  { %14385 = vmatpush2.bf16.msra.mxu1 %v18376_v1  ;;  %14343 = vmatprep.subr.bf16.mxu0 %v18381_v38  ;;  %v18456_v1 = vld [vmem:[#allocation22 + $0xe4c] ss:$16 sps:$4 sm:$0xff]   ;;  %v18451_v38 = vld [vmem:[#allocation22 + $0xc48] ss:$16 sps:$4 sm:$0xff]  }
0x1dfe   :  { %14386 = vmatprep.subr.bf16.mxu1 %v18384_v48  ;;  %v18454_v48 = vld [vmem:[#allocation22 + $0xe48] ss:$16 sps:$4 sm:$0xff]  }
0x1e00   :  { %14344 = vmatpush2.bf16.msra.mxu0 %v18379_v39  ;;  %v18459_v39 = vld [vmem:[#allocation22 + $0xc2c] ss:$16 sps:$4 sm:$0xff]  }
0x1e01   :  { %14387 = vmatpush2.bf16.msra.mxu1 %v18382_v54  ;;  %14345 = vmatprep.subr.bf16.mxu0 %v18387_v57  ;;  %v18462_v54 = vld [vmem:[#allocation22 + $0xe2c] ss:$16 sps:$4 sm:$0xff]   ;;  %v18457_v57 = vld [vmem:[#allocation22 + $0xc28] ss:$16 sps:$4 sm:$0xff]  }
0x1e02   :  { %14388 = vmatprep.subr.bf16.mxu1 %v18390_v30  ;;  %v18460_v30 = vld [vmem:[#allocation22 + $0xe28] ss:$16 sps:$4 sm:$0xff]  }
0x1e04   :  { %14346 = vmatpush2.bf16.msra.mxu0 %v18385_v8  ;;  %v18465_v8 = vld [vmem:[#allocation22 + $0xc0c] ss:$16 sps:$4 sm:$0xff]  }
0x1e05   :  { %14389 = vmatpush2.bf16.msra.mxu1 %v18388_v59  ;;  %14347 = vmatprep.subr.bf16.mxu0 %v18393_v18  ;;  %v18468_v59 = vld [vmem:[#allocation22 + $0xe0c] ss:$16 sps:$4 sm:$0xff]   ;;  %v18463_v18 = vld [vmem:[#allocation22 + $0xc08] ss:$16 sps:$4 sm:$0xff]  }
0x1e06   :  { %14390 = vmatprep.subr.bf16.mxu1 %v18396_v42  ;;  %v18466_v42 = vld [vmem:[#allocation22 + $0xe08] ss:$16 sps:$4 sm:$0xff]  }
0x1e08   :  { %14348 = vmatpush2.bf16.msra.mxu0 %v18391_v40  ;;  %v18471_v40 = vld [vmem:[#allocation22 + $0xdec] ss:$16 sps:$4 sm:$0xff]  }
0x1e09   :  { %14391 = vmatpush2.bf16.msra.mxu1 %v18394_v16  ;;  %14349 = vmatprep.subr.bf16.mxu0 %v18399_v12  ;;  %v18474_v16 = vld [vmem:[#allocation22 + $0xfec] ss:$16 sps:$4 sm:$0xff]   ;;  %v18469_v12 = vld [vmem:[#allocation22 + $0xde8] ss:$16 sps:$4 sm:$0xff]  }
0x1e0a   :  { %14392 = vmatprep.subr.bf16.mxu1 %v18402_v56  ;;  %v18472_v56 = vld [vmem:[#allocation22 + $0xfe8] ss:$16 sps:$4 sm:$0xff]  }
0x1e0c   :  { %14350 = vmatpush2.bf16.msra.mxu0 %v18397_v5  ;;  %v18477_v5 = vld [vmem:[#allocation22 + $0xdcc] ss:$16 sps:$4 sm:$0xff]  }
0x1e0d   :  { %14393 = vmatpush2.bf16.msra.mxu1 %v18400_v11  ;;  %14351 = vmatprep.subr.bf16.mxu0 %v18405_v63  ;;  %v18480_v11 = vld [vmem:[#allocation22 + $0xfcc] ss:$16 sps:$4 sm:$0xff]   ;;  %v18475_v63 = vld [vmem:[#allocation22 + $0xdc8] ss:$16 sps:$4 sm:$0xff]  }
0x1e0e   :  { %14394 = vmatprep.subr.bf16.mxu1 %v18408_v0  ;;  %v18478_v0 = vld [vmem:[#allocation22 + $0xfc8] ss:$16 sps:$4 sm:$0xff]  }
0x1e10   :  { %14352 = vmatpush2.bf16.msra.mxu0 %v18403_v17  ;;  %v18483_v17 = vld [vmem:[#allocation22 + $0xdac] ss:$16 sps:$4 sm:$0xff]  }
0x1e11   :  { %14395 = vmatpush2.bf16.msra.mxu1 %v18406_v19  ;;  %14353 = vmatprep.subr.bf16.mxu0 %v18411_v43  ;;  %v18486_v19 = vld [vmem:[#allocation22 + $0xfac] ss:$16 sps:$4 sm:$0xff]   ;;  %v18481_v43 = vld [vmem:[#allocation22 + $0xda8] ss:$16 sps:$4 sm:$0xff]  }
0x1e12   :  { %14396 = vmatprep.subr.bf16.mxu1 %v18414_v52  ;;  %v18484_v52 = vld [vmem:[#allocation22 + $0xfa8] ss:$16 sps:$4 sm:$0xff]  }
0x1e14   :  { %14354 = vmatpush2.bf16.msra.mxu0 %v18409_v49  ;;  %v18489_v49 = vld [vmem:[#allocation22 + $0xd8c] ss:$16 sps:$4 sm:$0xff]  }
0x1e15   :  { %14397 = vmatpush2.bf16.msra.mxu1 %v18412_v33  ;;  %14355 = vmatprep.subr.bf16.mxu0 %v18417_v61  ;;  %v18492_v33 = vld [vmem:[#allocation22 + $0xf8c] ss:$16 sps:$4 sm:$0xff]   ;;  %v18487_v61 = vld [vmem:[#allocation22 + $0xd88] ss:$16 sps:$4 sm:$0xff]  }
0x1e16   :  { %14398 = vmatprep.subr.bf16.mxu1 %v18420_v27  ;;  %v18490_v27 = vld [vmem:[#allocation22 + $0xf88] ss:$16 sps:$4 sm:$0xff]  }
0x1e18   :  { %14356 = vmatpush2.bf16.msra.mxu0 %v18415_v51  ;;  %v18495_v51 = vld [vmem:[#allocation22 + $0xd6c] ss:$16 sps:$4 sm:$0xff]  }
0x1e19   :  { %14399 = vmatpush2.bf16.msra.mxu1 %v18418_v36  ;;  %14411 = vmatprep.subr.bf16.mxu0 %v18423_v9  ;;  %v18498_v36 = vld [vmem:[#allocation22 + $0xf6c] ss:$16 sps:$4 sm:$0xff]   ;;  %v18493_v9 = vld [vmem:[#allocation22 + $0xd68] ss:$16 sps:$4 sm:$0xff]  }
0x1e1a   :  { %14454 = vmatprep.subr.bf16.mxu1 %v18426_v53  ;;  %v18496_v53 = vld [vmem:[#allocation22 + $0xf68] ss:$16 sps:$4 sm:$0xff]  }
0x1e1b   :  { %14358 = vmatmul.mubr.bf16.vlgmr.msra.gmra.mxu0 %v20122_v46  ;;  %v18436_v46 = vld [vmem:[#allocation22 + $0xea8] ss:$16 sps:$4 sm:$0xff]  }
0x1e1c   :  { %14401 = vmatmul.mubr.bf16.vlgmr.msra.gmra.mxu1 %v20154_v44  ;;  %14412 = vmatpush1.bf16.msra.mxu0 %v18421_v13  ;;  %v18444_v44 = vld [vmem:[#allocation22 + $0xe8c] ss:$16 sps:$4 sm:$0xff]  }
0x1e1d   :  { %14443 = vmatprep.mubr.bf16.mxu0 %v20188_v58  ;;  %14455 = vmatpush1.bf16.msra.mxu1 %v18424_v15  ;;  %v18442_v58 = vld [vmem:[#allocation22 + $0xe88] ss:$16 sps:$4 sm:$0xff]   ;;  %v18501_v13 = vld [vmem:[#allocation22 + $0xd4c] ss:$16 sps:$4 sm:$0xff]  }
0x1e1e   :  { %14486 = vmatprep.mubr.bf16.mxu1 %v20201_v47  ;;  %14413 = vmatprep.subr.bf16.mxu0 %v18429_v32  ;;  %v18445_v47 = vld [vmem:[#allocation22 + $0xc68] ss:$16 sps:$4 sm:$0xff]   ;;  %v18504_v15 = vld [vmem:[#allocation22 + $0xf4c] ss:$16 sps:$4 sm:$0xff]  }
0x1e1f   :  { %14456 = vmatprep.subr.bf16.mxu1 %v18432_v2  ;;  %v18499_v32 = vld [vmem:[#allocation22 + $0xd48] ss:$16 sps:$4 sm:$0xff]  }
0x1e20   :  { %14414 = vmatpush1.bf16.msra.mxu0 %v18427_v29  ;;  %v18502_v2 = vld [vmem:[#allocation22 + $0xf48] ss:$16 sps:$4 sm:$0xff]   ;;  %v18507_v29 = vld [vmem:[#allocation22 + $0xd2c] ss:$16 sps:$4 sm:$0xff]  }
0x1e21   :  { %14457 = vmatpush1.bf16.msra.mxu1 %v18430_v3  ;;  %14415 = vmatprep.subr.bf16.mxu0 %v18435_v35  ;;  %v18510_v3 = vld [vmem:[#allocation22 + $0xf2c] ss:$16 sps:$4 sm:$0xff]   ;;  %v18505_v35 = vld [vmem:[#allocation22 + $0xd28] ss:$16 sps:$4 sm:$0xff]  }
0x1e22   :  { %14458 = vmatprep.subr.bf16.mxu1 %v18438_v34  ;;  %v18508_v34 = vld [vmem:[#allocation22 + $0xf28] ss:$16 sps:$4 sm:$0xff]  }
0x1e24   :  { %14416 = vmatpush1.bf16.msra.mxu0 %v18433_v7  ;;  %v18513_v7 = vld [vmem:[#allocation22 + $0xd0c] ss:$16 sps:$4 sm:$0xff]  }
0x1e25   :  { %14459 = vmatpush1.bf16.msra.mxu1 %v18436_v46  ;;  %14417 = vmatprep.subr.bf16.mxu0 %v18441_v10  ;;  %v18516_v46 = vld [vmem:[#allocation22 + $0xf0c] ss:$16 sps:$4 sm:$0xff]   ;;  %v18511_v10 = vld [vmem:[#allocation22 + $0xd08] ss:$16 sps:$4 sm:$0xff]  }
0x1e26   :  { %14460 = vmatprep.subr.bf16.mxu1 %v18444_v44  ;;  %v18514_v44 = vld [vmem:[#allocation22 + $0xf08] ss:$16 sps:$4 sm:$0xff]  }
0x1e28   :  { %14418 = vmatpush1.bf16.msra.mxu0 %v18439_v37  ;;  %v13843_v37 = vpop.f32.mrf.mxu0 }
0x1e29   :  { %14461 = vmatpush1.bf16.msra.mxu1 %v18442_v58  ;;  %14419 = vmatprep.subr.bf16.mxu0 %v18447_v4  ;;  %v13886_v58 = vpop.f32.mrf.mxu1 }
0x1e2a   :  { %14462 = vmatprep.subr.bf16.mxu1 %v18450_v25  ;;  %v13845_v4 = vpop.f32.mrf.mxu0 }
0x1e2b   :  { %v13888_v25 = vpop.f32.mrf.mxu1 }
0x1e2c   :  { %14420 = vmatpush1.bf16.msra.mxu0 %v18445_v47  ;;  %v13847_v47 = vpop.f32.mrf.mxu0 }
0x1e2d   :  { %14463 = vmatpush1.bf16.msra.mxu1 %v18448_v60  ;;  %14421 = vmatprep.subr.bf16.mxu0 %v18453_v21  ;;  %v13890_v60 = vpop.f32.mrf.mxu1 }
0x1e2e   :  { %14464 = vmatprep.subr.bf16.mxu1 %v18456_v1  ;;  %v13849_v21 = vpop.f32.mrf.mxu0 }
0x1e2f   :  { %v13892_v1 = vpop.f32.mrf.mxu1 }
0x1e30   :  { %14422 = vmatpush1.bf16.msra.mxu0 %v18451_v38  ;;  %v13929_v38 = vpop.f32.mrf.mxu0 }
0x1e31   :  { %14465 = vmatpush1.bf16.msra.mxu1 %v18454_v48  ;;  %14423 = vmatprep.subr.bf16.mxu0 %v18459_v39  ;;  %v13972_v48 = vpop.f32.mrf.mxu1 }
0x1e32   :  { %14466 = vmatprep.subr.bf16.mxu1 %v18462_v54  ;;  %v13931_v39 = vpop.f32.mrf.mxu0 }
0x1e33   :  { %v13974_v54 = vpop.f32.mrf.mxu1 }
0x1e34   :  { %14424 = vmatpush1.bf16.msra.mxu0 %v18457_v57  ;;  %v13933_v57 = vpop.f32.mrf.mxu0 }
0x1e35   :  { %14467 = vmatpush1.bf16.msra.mxu1 %v18460_v30  ;;  %14425 = vmatprep.subr.bf16.mxu0 %v18465_v8  ;;  %v20229_v30 = vpop.f32.mrf.mxu1 }
0x1e36   :  { %14468 = vmatprep.subr.bf16.mxu1 %v18468_v59  ;;  %v13935_v8 = vpop.f32.mrf.mxu0 }
0x1e37   :  { %v13978_v59 = vpop.f32.mrf.mxu1 }
0x1e38   :  { %14426 = vmatpush1.bf16.msra.mxu0 %v18463_v18 }
0x1e39   :  { %14469 = vmatpush1.bf16.msra.mxu1 %v18466_v42  ;;  %14427 = vmatprep.subr.bf16.mxu0 %v18471_v40  ;;  %v20231_v18 = vpop.f32.mrf.mxu1 }
0x1e3a   :  { %14470 = vmatprep.subr.bf16.mxu1 %v18474_v16 }
0x1e3b   :  { %v14060_v42 = vpop.f32.mrf.mxu1 }
0x1e3c   :  { %14428 = vmatpush2.bf16.msra.mxu0 %v18469_v12 }
0x1e3d   :  { %14471 = vmatpush2.bf16.msra.mxu1 %v18472_v56  ;;  %14429 = vmatprep.subr.bf16.mxu0 %v18477_v5  ;;  %v20235_v16 = vpop.f32.mrf.mxu1 }
0x1e3e   :  { %14472 = vmatprep.subr.bf16.mxu1 %v18480_v11 }
0x1e3f   :  { %v20237_v56 = vpop.f32.mrf.mxu1 }
0x1e40   :  { %14430 = vmatpush2.bf16.msra.mxu0 %v18475_v63 }
0x1e41   :  { %14473 = vmatpush2.bf16.msra.mxu1 %v18478_v0  ;;  %14431 = vmatprep.subr.bf16.mxu0 %v18483_v17  ;;  %v20241_v11 = vpop.f32.mrf.mxu1 }
0x1e42   :  { %14474 = vmatprep.subr.bf16.mxu1 %v18486_v19 }
0x1e43   :  { %v20243_v0 = vpop.f32.mrf.mxu1 }
0x1e44   :  { %14432 = vmatpush2.bf16.msra.mxu0 %v18481_v43 }
0x1e45   :  { %14475 = vmatpush2.bf16.msra.mxu1 %v18484_v52  ;;  %14433 = vmatprep.subr.bf16.mxu0 %v18489_v49  ;;  %v20247_v19 = vpop.f32.mrf.mxu1 }
0x1e46   :  { %14476 = vmatprep.subr.bf16.mxu1 %v18492_v33  ;;  %20504 = vst [vmem:[#allocation42_spill] sm:$0xff] %v20247_v19 }
0x1e47   :  { %v20251_v52 = vpop.f32.mrf.mxu1 }
0x1e48   :  { %14434 = vmatpush2.bf16.msra.mxu0 %v18487_v61  ;;  %20505 = vst [vmem:[#allocation41_spill] sm:$0xff] %v20251_v52 }
0x1e49   :  { %14477 = vmatpush2.bf16.msra.mxu1 %v18490_v27  ;;  %14435 = vmatprep.subr.bf16.mxu0 %v18495_v51 }
0x1e4a   :  { %14478 = vmatprep.subr.bf16.mxu1 %v18498_v36 }
0x1e4c   :  { %14436 = vmatpush2.bf16.msra.mxu0 %v18493_v9  ;;  %v11227_v9 = vld [vmem:[#allocation23] sm:$0xf] }
0x1e4d   :  { %14479 = vmatpush2.bf16.msra.mxu1 %v18496_v53  ;;  %14437 = vmatprep.subr.bf16.mxu0 %v18501_v13  ;;  %v11236_v53 = vrot.slane %v11227_v9, %v19166_v23  ;;  %v11244_v23 = vrot.slane %v11227_v9, %v19172_v26 }
0x1e4e   :  { %14480 = vmatprep.subr.bf16.mxu1 %v18504_v15 }
0x1e50   :  { %14438 = vmatpush2.bf16.msra.mxu0 %v18499_v32  ;;  %v11232_v32 = vrot.slane %v11227_v9, %v19169_v24 }
0x1e51   :  { %14481 = vmatpush2.bf16.msra.mxu1 %v18502_v2  ;;  %14439 = vmatprep.subr.bf16.mxu0 %v18507_v29 }
0x1e52   :  { %14482 = vmatprep.subr.bf16.mxu1 %v18510_v3  ;;  %v13846_v3 = vadd.f32 %v13845_v4, %v11236_v53  ;;  %v13848_v20 = vadd.f32 %v13847_v47, %v11232_v32 }
0x1e54   :  { %14440 = vmatpush2.bf16.msra.mxu0 %v18505_v35  ;;  %v13844_v35 = vadd.f32 %v13843_v37, %v11232_v32  ;;  %v13891_v55 = vadd.f32 %v13890_v60, %v13848_v20 }
0x1e55   :  { %14483 = vmatpush2.bf16.msra.mxu1 %v18508_v34  ;;  %14441 = vmatprep.subr.bf16.mxu0 %v18513_v7 }
0x1e56   :  { %14484 = vmatprep.subr.bf16.mxu1 %v18516_v46  ;;  %v13889_v46 = vadd.f32 %v13888_v25, %v13846_v3  ;;  %v13887_v62 = vadd.f32 %v13886_v58, %v13844_v35 }
0x1e58   :  { %14442 = vmatpush2.bf16.msra.mxu0 %v18511_v10  ;;  %v13850_v10 = vadd.f32 %v13849_v21, %v11236_v53  ;;  %v13932_v22 = vadd.f32 %v13931_v39, %v13889_v46  ;;  %v13930_v19 = vadd.f32 %v13929_v38, %v13887_v62  ;;  %v13934_v21 = vadd.f32 %v13933_v57, %v13891_v55 }
0x1e59   :  { %14485 = vmatpush2.bf16.msra.mxu1 %v18514_v44  ;;  %v11240_v44 = vrot.slane %v11227_v9, %v19175_v28 }
0x1e5a   :  { %v13893_v45 = vadd.f32 %v13892_v1, %v13850_v10  ;;  %v13975_v52 = vadd.f32 %v13974_v54, %v13932_v22  ;;  %v13973_v25 = vadd.f32 %v13972_v48, %v13930_v19  ;;  %v13977_v62 = vadd.f32 %v20229_v30, %v13934_v21  ;;  %v20510_v10 = vld [vmem:[#allocation42_spill] sm:$0xff] }
0x1e5b   :  { %14444 = vmatmul.mubr.bf16.vlgmr.msra.gmra.mxu0 %v20180_v41  ;;  %v14015_v41 = vpop.f32.mrf.mxu0 }
0x1e5c   :  { %14487 = vmatmul.mubr.bf16.vlgmr.msra.gmra.mxu1 %v20209_v6  ;;  %v14230_v33 = vpop.f32.mrf.mxu1  ;;  %v13936_v4 = vadd.f32 %v13935_v8, %v13893_v45  ;;  %v14016_v35 = vadd.f32 %v14015_v41, %v13973_v25 }
0x1e5d   :  { %v14017_v6 = vpop.f32.mrf.mxu0 }
0x1e5e   :  { %v14232_v27 = vpop.f32.mrf.mxu1  ;;  %v14018_v53 = vadd.f32 %v14017_v6, %v13975_v52  ;;  %v13979_v32 = vadd.f32 %v13978_v59, %v13936_v4  ;;  %v14059_v55 = vadd.f32 %v20231_v18, %v14016_v35 }
0x1e5f   :  { %v20233_v40 = vpop.f32.mrf.mxu0 }
0x1e60   :  { %v14234_v36 = vpop.f32.mrf.mxu1  ;;  %v14061_v20 = vadd.f32 %v14060_v42, %v14018_v53  ;;  %v14020_v48 = vadd.f32 %v20233_v40, %v13977_v62  ;;  %v20511_v53 = vld [vmem:[#allocation44_spill] sm:$0xff] }
0x1e61   :  { %v14021_v12 = vpop.f32.mrf.mxu0 }
0x1e62   :  { %v14236_v15 = vpop.f32.mrf.mxu1  ;;  %v14022_v22 = vadd.f32 %v14021_v12, %v13979_v32  ;;  %v14063_v19 = vadd.f32 %v20235_v16, %v14020_v48 }
0x1e63   :  { %v20239_v5 = vpop.f32.mrf.mxu0 }
0x1e65   :  { %v14103_v63 = vpop.f32.mrf.mxu0 }
0x1e67   :  { %v20245_v17 = vpop.f32.mrf.mxu0 }
0x1e68   :  { %20503 = vst [vmem:[#allocation40_spill] sm:$0xff] %v20245_v17 }
0x1e69   :  { %v20249_v43 = vpop.f32.mrf.mxu0 }
0x1e6b   :  { %v14187_v49 = vpop.f32.mrf.mxu0 }
0x1e6c   :  { %v14188_v24 = vadd.f32 %v14187_v49, %v11240_v44 }
0x1e6d   :  { %v14189_v61 = vpop.f32.mrf.mxu0 }
0x1e6e   :  { %v14190_v14 = vadd.f32 %v14189_v61, %v11244_v23  ;;  %v14231_v58 = vadd.f32 %v14230_v33, %v14188_v24  ;;  %v14104_v24 = vadd.f32 %v14103_v63, %v14061_v20 }
0x1e6f   :  { %v14191_v51 = vpop.f32.mrf.mxu0 }
0x1e70   :  { %v14192_v47 = vadd.f32 %v14191_v51, %v11240_v44  ;;  %v14233_v9 = vadd.f32 %v14232_v27, %v14190_v14  ;;  %v14065_v14 = vadd.f32 %v20237_v56, %v14022_v22  ;;  %v14147_v52 = vadd.f32 %v20243_v0, %v14104_v24  ;;  %v20514_v22 = vld [vmem:[#allocation45_spill] sm:$0xff]  ;;  %v20515_v24 = vld [vmem:[#allocation50_spill] sm:$0xff] }
0x1e71   :  { %v14193_v13 = vpop.f32.mrf.mxu0 }
0x1e72   :  { %v14194_v46 = vadd.f32 %v14193_v13, %v11244_v23  ;;  %v14235_v60 = vadd.f32 %v14234_v36, %v14192_v47  ;;  %v14102_v23 = vadd.f32 %v20239_v5, %v14059_v55  ;;  %v14108_v18 = vadd.f32 %v20249_v43, %v14065_v14  ;;  %v20507_v36 = vld [vmem:[#allocation39_spill] sm:$0xff]  ;;  %v20516_v14 = vld [vmem:[#allocation46_spill] sm:$0xff] }
0x1e73   :  { %v14498_v13 = vadd.f32 %v14147_v52, %v20507_v36 }
0x1e74   :  { %v14237_v57 = vadd.f32 %v14236_v15, %v14194_v46  ;;  %v14145_v49 = vadd.f32 %v20241_v11, %v14102_v23  ;;  %v20508_v15 = vld [vmem:[#allocation41_spill] sm:$0xff] }
0x1e9b   :  { %v14273_v2 = vpop.f32.mrf.mxu0 }
0x1e9c   :  { %v14316_v29 = vpop.f32.mrf.mxu1  ;;  %v14274_v1 = vadd.f32 %v14273_v2, %v14231_v58  ;;  %v14151_v2 = vadd.f32 %v20508_v15, %v14108_v18 }
0x1e9d   :  { %v14275_v34 = vpop.f32.mrf.mxu0 }
0x1e9e   :  { %v14318_v7 = vpop.f32.mrf.mxu1  ;;  %v14276_v38 = vadd.f32 %v14275_v34, %v14233_v9  ;;  %v14317_v8 = vadd.f32 %v14316_v29, %v14274_v1  ;;  %v20513_v1 = vld [vmem:[#allocation48_spill] sm:$0xff] }
0x1e9f   :  { %v14277_v31 = vpop.f32.mrf.mxu0 }
0x1ea0   :  { %v14320_v50 = vpop.f32.mrf.mxu1  ;;  %v14278_v59 = vadd.f32 %v14277_v31, %v14235_v60  ;;  %v14319_v30 = vadd.f32 %v14318_v7, %v14276_v38  ;;  %v20506_v31 = vld [vmem:[#allocation40_spill] sm:$0xff] }
0x1ea1   :  { %v14279_v37 = vpop.f32.mrf.mxu0  ;;  %v14106_v33 = vadd.f32 %v20506_v31, %v14063_v19 }
0x1ea2   :  { %v14322_v17 = vpop.f32.mrf.mxu1  ;;  %v14280_v6 = vadd.f32 %v14279_v37, %v14237_v57  ;;  %v14321_v40 = vadd.f32 %v14320_v50, %v14278_v59  ;;  %v20509_v50 = vld [vmem:[#allocation47_spill] sm:$0xff] }
0x1ea3   :  { %v14497_v7 = vadd.f32 %v14145_v49, %v20509_v50  ;;  %v14149_v11 = vadd.f32 %v20510_v10, %v14106_v33 }
0x1ea4   :  { %v14323_v61 = vadd.f32 %v14322_v17, %v14280_v6  ;;  %v18517_v6 = vld [vmem:[%s20444_s17 + $0x78] sm:$0xff]  }
0x1ea5   :  { %v14507_v21 = vadd.f32 %v14498_v13, %v14497_v7  ;;  %v14501_v62 = vadd.f32 %v14149_v11, %v20513_v1  ;;  %16717 = vmatprep.subr.bf16.mxu0 %v18517_v6  ;;  %v18519_v11 = vld [vmem:[%s20444_s17 + $0x38] sm:$0xff]  }
0x1ea6   :  { %16718 = vmatpush3.bf16.msra.mxu0 %v18519_v11  ;;  %v18535_v1 = vld [vmem:[%s20444_s17 + $0x18] sm:$0xff]  }
0x1edb   :  { %v14359_v3 = vpop.f32.mrf.mxu0 }
0x1edc   :  { %v14402_v39 = vpop.f32.mrf.mxu1  ;;  %v14360_v42 = vadd.f32 %v14359_v3, %v14317_v8  ;;  %v14502_v3 = vadd.f32 %v14151_v2, %v20511_v53  ;;  %v18526_v53 = vld [vmem:[%s20444_s17 + $0xe8] sm:$0xff]  }
0x1edd   :  { %v14361_v45 = vpop.f32.mrf.mxu0 }
0x1ede   :  { %v14404_v54 = vpop.f32.mrf.mxu1  ;;  %v14362_v63 = vadd.f32 %v14361_v45, %v14319_v30  ;;  %v14403_v5 = vadd.f32 %v14402_v39, %v14360_v42  ;;  %v20512_v39 = vld [vmem:[#allocation49_spill] sm:$0xff]  ;;  %v14512_v48 = vadd.f32 %v14502_v3, %v14501_v62  ;;  %v18518_v42 = vld [vmem:[%s20444_s17 + $0xf8] sm:$0xff]  }
0x1edf   :  { %v14363_v41 = vpop.f32.mrf.mxu0  ;;  %16739 = vmatprep.subr.bf16.mxu1 %v18518_v42 }
0x1ee0   :  { %v14406_v12 = vpop.f32.mrf.mxu1  ;;  %v14364_v27 = vadd.f32 %v14363_v41, %v14321_v40  ;;  %v14405_v29 = vadd.f32 %v14404_v54, %v14362_v63 }
0x1ee1   :  { %v14365_v56 = vpop.f32.mrf.mxu0 }
0x1ee2   :  { %v14408_v51 = vpop.f32.mrf.mxu1  ;;  %v14366_v0 = vadd.f32 %v14365_v56, %v14323_v61  ;;  %v14407_v4 = vadd.f32 %v14406_v12, %v14364_v27 }
0x1ee4   :  { %v14409_v47 = vadd.f32 %v14408_v51, %v14366_v0 }
0x1f1b   :  { %v14445_v16 = vpop.f32.mrf.mxu0 }
0x1f1c   :  { %v14446_v34 = vadd.f32 %v14445_v16, %v14403_v5  ;;  %v14488_v43 = vpop.f32.mrf.mxu1 }
0x1f1d   :  { %v14447_v44 = vpop.f32.mrf.mxu0 }
0x1f1e   :  { %v14489_v37 = vadd.f32 %v14488_v43, %v14446_v34  ;;  %v14448_v17 = vadd.f32 %v14447_v44, %v14405_v29  ;;  %v14490_v25 = vpop.f32.mrf.mxu1  ;;  %v18520_v44 = vld [vmem:[%s20444_s17 + $0xb8] sm:$0xff]  }
0x1f1f   :  { %v14449_v58 = vpop.f32.mrf.mxu0  ;;  %16740 = vmatpush3.bf16.msra.mxu1 %v18520_v44 }
0x1f20   :  { %v14499_v32 = vadd.f32 %v14489_v37, %v20512_v39  ;;  %v14491_v35 = vadd.f32 %v14490_v25, %v14448_v17  ;;  %v14450_v9 = vadd.f32 %v14449_v58, %v14407_v4  ;;  %v14492_v46 = vpop.f32.mrf.mxu1  ;;  %v18521_v4 = vld [vmem:[%s20444_s17 + $0x70] sm:$0xff]   ;;  %v18528_v58 = vld [vmem:[%s20444_s17 + $0xa8] sm:$0xff]   ;;  %v18530_v39 = vld [vmem:[%s20444_s17 + $0xe0] sm:$0xff]  }
0x1f21   :  { %v14451_v20 = vpop.f32.mrf.mxu0  ;;  %v18522_v37 = vld [vmem:[%s20444_s17 + $0xf0] sm:$0xff]   ;;  %16719 = vmatprep.subr.bf16.mxu0 %v18521_v4 }
0x1f22   :  { %v14500_v45 = vadd.f32 %v14491_v35, %v20514_v22  ;;  %v14493_v60 = vadd.f32 %v14492_v46, %v14450_v9  ;;  %v14452_v38 = vadd.f32 %v14451_v20, %v14409_v47  ;;  %v14508_v54 = vadd.f32 %v14507_v21, %v14499_v32  ;;  %v14494_v55 = vpop.f32.mrf.mxu1  ;;  %v18523_v17 = vld [vmem:[%s20444_s17 + $0x30] sm:$0xff]   ;;  %16741 = vmatprep.subr.bf16.mxu1 %v18522_v37  ;;  %v18525_v21 = vld [vmem:[%s20444_s17 + $0x68] sm:$0xff]   ;;  %v18529_v47 = vld [vmem:[%s20444_s17 + $0x60] sm:$0xff]  }
0x1f23   :  { %v18524_v25 = vld [vmem:[%s20444_s17 + $0xb0] sm:$0xff]   ;;  %16720 = vmatpush3.bf16.msra.mxu0 %v18523_v17  ;;  %v18532_v35 = vld [vmem:[%s20444_s17 + $0xa0] sm:$0xff]   ;;  %v18533_v9 = vld [vmem:[%s20444_s17 + $0x58] sm:$0xff]  }
0x1f24   :  { %v14503_v57 = vadd.f32 %v14493_v60, %v20515_v24  ;;  %v14495_v8 = vadd.f32 %v14494_v55, %v14452_v38  ;;  %v14509_v59 = vadd.f32 %v14508_v54, %v14500_v45  ;;  %16742 = vmatpush3.bf16.msra.mxu1 %v18524_v25  ;;  %16721 = vmatprep.subr.bf16.mxu0 %v18525_v21  ;;  %v18534_v46 = vld [vmem:[%s20444_s17 + $0xd8] sm:$0xff]   ;;  %v18537_v20 = vld [vmem:[%s20444_s17 + $0x50] sm:$0xff]   ;;  %v18541_v38 = vld [vmem:[%s20444_s17 + $0x48] sm:$0xff]  }
0x1f25   :  { %16743 = vmatprep.subr.bf16.mxu1 %v18526_v53  ;;  %v18538_v22 = vld [vmem:[%s20444_s17 + $0xd0] sm:$0xff]   ;;  %v18542_v54 = vld [vmem:[%s20444_s17 + $0xc8] sm:$0xff]   ;;  %v18545_v24 = vld [vmem:[%s20444_s17 + $0x40] sm:$0xff]  }
0x1f26   :  { %v14504_v23 = vadd.f32 %v14495_v8, %v20516_v14  ;;  %14510 = vadd.xlane.f32.xlu0 %v14509_v59  ;;  %v14513_v41 = vadd.f32 %v14512_v48, %v14503_v57  ;;  %v18540_v60 = vld [vmem:[%s20444_s17 + $0x90] sm:$0xff]   ;;  %v18543_v55 = vld [vmem:[%s20444_s17 + $0x8] sm:$0xff]   ;;  %v18547_v8 = vld [vmem:[%s20444_s17] sm:$0xff]  }
0x1f27   :  { %v18544_v48 = vld [vmem:[%s20444_s17 + $0x88] sm:$0xff]   ;;  %v18548_v59 = vld [vmem:[%s20444_s17 + $0x80] sm:$0xff]  }
0x1f28   :  { %v14514_v30 = vadd.f32 %v14513_v41, %v14504_v23  ;;  %16744 = vmatpush3.bf16.msra.mxu1 %v18528_v58 }
0x1f29   :  { %16745 = vmatprep.subr.bf16.mxu1 %v18530_v39 }
0x1f2a   :  { %14515 = vadd.xlane.f32.xlu1 %v14514_v30 }
0x1f2c   :  { %16746 = vmatpush3.bf16.msra.mxu1 %v18532_v35 }
0x1f2d   :  { %16747 = vmatprep.subr.bf16.mxu1 %v18534_v46 }
0x1faf   :  { %v14511_v12 = vpop.xlane.xlu0 %14510 }
0x1fb0   :  { %v14517_v19 = vmul.f32 0.001953125, %v14511_v12  ;;  %v14505_v12 = vld [vmem:[#allocation25] sm:$0xf] }
0x1fb2   :  { %v20283_v52 = vsub.f32 %v14497_v7, %v14517_v19  ;;  %v20285_v18 = vsub.f32 %v14498_v13, %v14517_v19  ;;  %v20287_v40 = vsub.f32 %v14499_v32, %v14517_v19  ;;  %v20289_v49 = vsub.f32 %v14500_v45, %v14517_v19  ;;  %v18531_v32 = vld [vmem:[%s20444_s17 + $0x20] sm:$0xff]   ;;  %v18539_v45 = vld [vmem:[%s20444_s17 + $0x10] sm:$0xff]  }
0x1fb3   :  { %v14516_v63 = vpop.xlane.xlu1 %14515 }
0x1fb4   :  { %v14518_v31 = vmul.f32 0.001953125, %v14516_v63  ;;  %v14527_v33 = vmul.f32 %v20283_v52, %v20283_v52  ;;  %v14528_v56 = vmul.f32 %v20285_v18, %v20285_v18  ;;  %v14529_v61 = vmul.f32 %v20287_v40, %v20287_v40  ;;  %v14506_v63 = vld [vmem:[#allocation26] sm:$0xf] }
0x1fb5   :  { %v14530_v13 = vmul.f32 %v20289_v49, %v20289_v49 }
0x1fb6   :  { %v20297_v5 = vsub.f32 %v14501_v62, %v14518_v31  ;;  %v20299_v27 = vsub.f32 %v14502_v3, %v14518_v31  ;;  %v14535_v51 = vadd.f32 %v14528_v56, %v14527_v33  ;;  %v20301_v36 = vsub.f32 %v14503_v57, %v14518_v31  ;;  %v18527_v3 = vld [vmem:[%s20444_s17 + $0x28] sm:$0xff]   ;;  %v18536_v62 = vld [vmem:[%s20444_s17 + $0x98] sm:$0xff]   ;;  %v18546_v57 = vld [vmem:[%s20444_s17 + $0xc0] sm:$0xff]  }
0x1fb7   :  { %v20305_v2 = vsub.f32 %v14504_v23, %v14518_v31  ;;  %16722 = vmatpush3.bf16.msra.mxu0 %v18527_v3  ;;  %16748 = vmatpush3.bf16.msra.mxu1 %v18536_v62  ;;  %v20517_v33 = vld [vmem:[#allocation37_spill] sm:$0xff] }
0x1fb8   :  { %v14536_v15 = vadd.f32 %v14535_v51, %v14529_v61  ;;  %v14531_v16 = vmul.f32 %v20297_v5, %v20297_v5  ;;  %v14532_v29 = vmul.f32 %v20299_v27, %v20299_v27  ;;  %v14533_v34 = vmul.f32 %v20301_v36, %v20301_v36  ;;  %16723 = vmatprep.subr.bf16.mxu0 %v18529_v47 }
0x1fb9   :  { %v14534_v50 = vmul.f32 %v20305_v2, %v20305_v2  ;;  %16749 = vmatprep.subr.bf16.mxu1 %v18538_v22  ;;  %v14567_v56 = vrot.slane %v14505_v12, %v20517_v33  ;;  %v14575_v51 = vrot.slane %v14505_v12, %v19172_v26 }
0x1fba   :  { %v14537_v0 = vadd.f32 %v14536_v15, %v14530_v13  ;;  %v14540_v43 = vadd.f32 %v14532_v29, %v14531_v16  ;;  %v20518_v15 = vld [vmem:[#allocation38_spill] sm:$0xff] }
0x1fbb   :  { %16724 = vmatpush3.bf16.msra.mxu0 %v18531_v32  ;;  %16750 = vmatpush3.bf16.msra.mxu1 %v18540_v60  ;;  %v14563_v16 = vrot.slane %v14505_v12, %v20518_v15 }
0x1fbc   :  { %14538 = vadd.xlane.f32.xlu0 %v14537_v0  ;;  %v14541_v7 = vadd.f32 %v14540_v43, %v14533_v34  ;;  %16725 = vmatprep.subr.bf16.mxu0 %v18533_v9  ;;  %v14571_v0 = vrot.slane %v14505_v12, %v19175_v28  ;;  %v14596_v43 = vrot.slane %v14506_v63, %v20517_v33 }
0x1fbd   :  { %16751 = vmatprep.subr.bf16.mxu1 %v18542_v54 }
0x1fbe   :  { %v14542_v10 = vadd.f32 %v14541_v7, %v14534_v50  ;;  %v14604_v50 = vrot.slane %v14506_v63, %v19172_v26  ;;  %v14600_v7 = vrot.slane %v14506_v63, %v19175_v28 }
0x1fbf   :  { %16726 = vmatpush3.bf16.msra.mxu0 %v18535_v1  ;;  %16752 = vmatpush3.bf16.msra.mxu1 %v18544_v48  ;;  %v16596_v1 = vld [vmem:[#allocation2] ss:$0 sm:$0xff] }
0x1fc0   :  { %14543 = vadd.xlane.f32.xlu1 %v14542_v10  ;;  %16727 = vmatprep.subr.bf16.mxu0 %v18537_v20 }
0x1fc1   :  { %16753 = vmatprep.subr.bf16.mxu1 %v18546_v57 }
0x1fc3   :  { %16728 = vmatpush3.bf16.msra.mxu0 %v18539_v45  ;;  %16754 = vmatpush3.bf16.msra.mxu1 %v18548_v59 }
0x1fc4   :  { %16729 = vmatprep.subr.bf16.mxu0 %v18541_v38 }
0x1fc7   :  { %16730 = vmatpush3.bf16.msra.mxu0 %v18543_v55 }
0x1fc8   :  { %16731 = vmatprep.subr.bf16.mxu0 %v18545_v24 }
0x1fcb   :  { %16732 = vmatpush3.bf16.msra.mxu0 %v18547_v8 }
0x2045   :  { %v14539_v14 = vpop.xlane.xlu0 %14538 }
0x2046   :  { %v14545_v23 = vmul.f32 0.001953125, %v14539_v14 }
0x2048   :  { %v14547_v41 = vadd.f32 1e-05, %v14545_v23 }
0x2049   :  { %v14544_v30 = vpop.xlane.xlu1 %14543 }
0x204a   :  { %18617 = vrsqrt.f32 %v14547_v41  ;;  %v14546_v6 = vmul.f32 0.001953125, %v14544_v30 }
0x204c   :  { %v14548_v42 = vadd.f32 1e-05, %v14546_v6 }
0x204e   :  { %18619 = vrsqrt.f32 %v14548_v42 }
0x2057   :  { %v18618_v19 = vpop.eup %18617 }
0x2058   :  { %v14552_v31 = vmul.f32 %v18618_v19, %v20285_v18  ;;  %v14554_v61 = vmul.f32 %v18618_v19, %v20289_v49  ;;  %v14551_v13 = vmul.f32 %v18618_v19, %v20283_v52  ;;  %v14553_v29 = vmul.f32 %v18618_v19, %v20287_v40 }
0x2059   :  { %v14592_v18 = vrot.slane %v14506_v63, %v20518_v15 }
0x205a   :  { %v14581_v10 = vmul.f32 %v14567_v56, %v14552_v31  ;;  %v14583_v11 = vmul.f32 %v14575_v51, %v14554_v61  ;;  %v14580_v40 = vmul.f32 %v14563_v16, %v14551_v13  ;;  %v14582_v37 = vmul.f32 %v14571_v0, %v14553_v29 }
0x205b   :  { %v18620_v34 = vpop.eup %18619 }
0x205c   :  { %v14556_v49 = vmul.f32 %v18620_v34, %v20299_v27  ;;  %v14558_v52 = vmul.f32 %v18620_v34, %v20305_v2  ;;  %v14555_v44 = vmul.f32 %v18620_v34, %v20297_v5  ;;  %v14557_v4 = vmul.f32 %v18620_v34, %v20301_v36 }
0x205d   :  { %v14610_v53 = vadd.f32 %v14596_v43, %v14581_v10  ;;  %v14612_v58 = vadd.f32 %v14604_v50, %v14583_v11  ;;  %v14609_v47 = vadd.f32 %v14592_v18, %v14580_v40  ;;  %v14611_v39 = vadd.f32 %v14600_v7, %v14582_v37 }
0x205e   :  { %v14585_v17 = vmul.f32 %v14567_v56, %v14556_v49  ;;  %v14587_v25 = vmul.f32 %v14575_v51, %v14558_v52  ;;  %v14584_v21 = vmul.f32 %v14563_v16, %v14555_v44  ;;  %v14586_v26 = vmul.f32 %v14571_v0, %v14557_v4 }
0x2060   :  { %v14614_v3 = vadd.f32 %v14596_v43, %v14585_v17  ;;  %v14616_v28 = vadd.f32 %v14604_v50, %v14587_v25  ;;  %v14613_v27 = vadd.f32 %v14592_v18, %v14584_v21  ;;  %v14615_v32 = vadd.f32 %v14600_v7, %v14586_v26 }
0x2062   :  { %v14618_v2 = vpack.c.bf16 %v14614_v3, %v14610_v53  ;;  %v14620_v35 = vpack.c.bf16 %v14616_v28, %v14612_v58  ;;  %v14617_v9 = vpack.c.bf16 %v14613_v27, %v14609_v47  ;;  %v14619_v5 = vpack.c.bf16 %v14615_v32, %v14611_v39 }
0x2064   :  { %14916 = vmatprep.mubr.bf16.mxu0 %v14618_v2  ;;  %14957 = vmatprep.mubr.bf16.mxu1 %v14620_v35 }
0x2065   :  { %14917 = vmatmul.mubr.bf16.vlgmr.msra.gmra.mxu0 %v14617_v9  ;;  %14958 = vmatmul.mubr.bf16.vlgmr.msra.gmra.mxu1 %v14619_v5 }
0x2125   :  { %v16733_v36 = vpop.f32.mrf.mxu0  ;;  %v16755_v46 = vpop.f32.mrf.mxu1 }
0x2127   :  { %v16734_v62 = vpop.f32.mrf.mxu0  ;;  %v16756_v20 = vpop.f32.mrf.mxu1 }
0x2128   :  { %v16735_v22 = vadd.f32 %v16734_v62, %v16733_v36  ;;  %v16757_v54 = vadd.f32 %v16756_v20, %v16755_v46 }
0x2129   :  { %v16736_v45 = vpop.f32.mrf.mxu0  ;;  %v16758_v60 = vpop.f32.mrf.mxu1 }
0x212a   :  { %v14919_v38 = vadd.f32 %v16735_v22, %v16596_v1 }
0x212b   :  { %v16737_v55 = vpop.f32.mrf.mxu0  ;;  %v16759_v48 = vpop.f32.mrf.mxu1 }
0x212c   :  { %v14960_v24 = vadd.f32 %v16757_v54, %v14919_v38  ;;  %v16738_v57 = vadd.f32 %v16737_v55, %v16736_v45  ;;  %v16760_v59 = vadd.f32 %v16759_v48, %v16758_v60 }
0x212e   :  { %14967 = vst.msk [vmem:[%s20446_s19] sm:$0xff] %vm14966_vm6, %v14960_v24  ;;  %v14922_v8 = vadd.f32 %v16738_v57, %v16596_v1 }
0x2130   :  { %v14963_v14 = vadd.f32 %v16760_v59, %v14922_v8 }
0x2132   :  { %14968 = vst.msk [vmem:[%s20446_s19 + $0x8] sm:$0xff] %vm14966_vm6, %v14963_v14 }
0x2133   :  { %14973 = vsyncpa [#allocation4], 1 }
0x2134   :  { %14974 = vsyncpa [#allocation6], 1 }
0x2135   :  { %14975 = vsyncpa [#allocation9], 1 }
0x2136   :  { %14976 = vsyncpa [#allocation12], 1 }
0x2137   :  { %14977 = vsyncpa [#allocation15], 1 }
0x2138   :  { %14978 = vsyncpa [#allocation18], 1 }
0x2139   :  { %14979 = vsyncpa [#allocation21], 1 }
0x213a   :  { %14980 = vsyncpa [#allocation24], 1 }
0x213b   :  { %14981 = vsyncpa [#allocation27], 1 }

</bundles_post_ra>
